<compile_context>
chip_gen: v6e
topology: v6e:2x2x1
jax: 0.10.0
libtpu: 0.0.40
codegen_flags: <defaults>
</compile_context>

<pallas_src>
import functools

import jax
import jax.numpy as jnp
from jax import lax
from jax.experimental import pallas as pl
from jax.experimental.pallas import tpu as pltpu


def _vae_kernel(lane_dense,
                x_ref,
                wih_e_ref, whh_e_ref, b_e_ref,
                wstat_ref, bstat_ref,
                wzd_ref, bzd_ref,
                wih_dh_ref, b_d_ref,
                wmo_dy_ref, bo_dy_ref,
                whh_d_ref,
                wm1_ref, bm1_ref, wm2_ref, bm2_ref,
                wo_ref, bo_ref,
                wo_c1_ref, bo_c1_ref, wc2_ref, bc2_ref,
                y_ref, stat_ref, coeff_ref,
                xpre_ref, m_ref):
    S, TB, E = x_ref.shape
    H = whh_e_ref.shape[0]
    M2 = m_ref.shape[2]
    C = wc2_ref.shape[1]
    f32 = jnp.float32
    cdt = xpre_ref.dtype          # compute dtype for weights / scratches (bf16)

    def dot(a, w):
        # LHS cast to the weight dtype only at the MXU boundary; accumulation
        # and all elementwise math stay f32 (v5e has no bf16 VPU/EUP).
        return jnp.dot(a.astype(w.dtype), w, preferred_element_type=f32)

    # Lane mask selecting the g-gate columns [2H, 3H) of the 4H preactivation.
    col = lax.broadcasted_iota(jnp.int32, (TB, 4 * H), 1)
    g_mask = (col >= 2 * H) & (col < 3 * H)
    g_scale = jnp.where(g_mask, 2.0, 1.0)

    def lstm_step(pre, c):
        # One EUP sigmoid over the full (TB, 4H) block; the g gate's tanh is
        # recovered as tanh(x) = 2*sigmoid(2x) - 1 with VPU-only fixups
        # (halves transcendental width vs. sigmoid(pre) + tanh(pre)).
        s = jax.nn.sigmoid(pre * g_scale)
        act = jnp.where(g_mask, 2.0 * s - 1.0, s)
        i_g = act[:, 0 * H:1 * H]
        f_g = act[:, 1 * H:2 * H]
        g_g = act[:, 2 * H:3 * H]
        o_g = act[:, 3 * H:4 * H]
        c_new = f_g * c + i_g * g_g
        h_new = o_g * jnp.tanh(c_new)
        return h_new, c_new

    # ---------------- encoder LSTM (x_rnn, batch mode, last hidden) ----------------
    # Input projection hoisted out of the recurrence: one (S*TB, E)@(E, 4H)
    # matmul (+ bias, added once), stored in a compute-dtype scratch.
    xpre_ref[...] = (dot(x_ref[...].reshape(S * TB, E), wih_e_ref[...])
                     + b_e_ref[...]).reshape(S, TB, 4 * H).astype(cdt)
    whh_e = whh_e_ref[...]

    h = jnp.zeros((TB, H), f32)
    c = jnp.zeros((TB, H), f32)
    # TODO(synk): switch both recurrences to lax.fori_loop(unroll=2..4) if
    # window_size grows well beyond ~16 (full unroll inflates vreg live ranges).
    for t in range(S):
        pre = xpre_ref[t].astype(f32) + dot(h, whh_e)
        h, c = lstm_step(pre, c)

    # ---------------- VAE heads ([mu | logvar] fused); eval mode: z = mu ----------------
    stat = dot(h, wstat_ref[...]) + bstat_ref[...]       # (TB, 2Z)
    stat_ref[...] = stat
    Z = stat.shape[1] // 2
    mu = stat[:, :Z]
    # TODO(synk): training-mode reparameterization noise and dropout masks not
    # implemented (eval semantics: z = mu, dropout = identity).
    h_y = dot(mu, wzd_ref[...]) + bzd_ref[...]           # fc_z_dec

    # ---------------- decoder: step-mode LSTM + MLP, d_out folded off hot path ----------------
    whh_d = whh_d_ref[...]
    wmo_dy = wmo_dy_ref[...]
    wm1, wm2 = wm1_ref[...], wm2_ref[...]
    # Loop-invariant bias broadcasts hoisted out of the recurrence.
    bm1 = jnp.broadcast_to(bm1_ref[...], (TB, wm1.shape[1]))
    bm2 = jnp.broadcast_to(bm2_ref[...], (TB, M2))

    def mlp(hd):
        m1 = jnp.tanh(dot(hd, wm1) + bm1)                # d_mlp layer 1 (tanh)
        return jnp.tanh(dot(m1, wm2) + bm2)              # d_mlp layer 2 (tanh)

    # torch.cat([h_y, y_p], 1) @ W_ih == h_y @ W_ih[:H] + y_p @ W_ih[H:];
    # h_y is constant across decode steps -> project it (and the bias) once.
    hy_pre = dot(h_y, wih_dh_ref[...]) + b_d_ref[...]    # (TB, 4H), constant over t
    hy_pre_b = hy_pre + bo_dy_ref[...]                   # adds (bo @ W_ih_y) for t >= 1

    # t = 0: h_d = c_d = 0 and y_prev = 0 -> preactivation is exactly hy_pre.
    hd, cd = lstm_step(hy_pre, jnp.zeros((TB, H), f32))
    m = mlp(hd)
    m_ref[0] = m.astype(cdt)
    for t in range(1, S):
        # y_prev @ W_ih_y == m_prev @ (wo @ W_ih_y) + bo @ W_ih_y, so the
        # lane-sparse (K=E=8) d_out matmul never touches the recurrence.
        pre = hy_pre_b + dot(m, wmo_dy) + dot(hd, whh_d)
        hd, cd = lstm_step(pre, cd)
        m = mlp(hd)
        m_ref[t] = m.astype(cdt)

    # ------------- batched epilogue: d_out + coeff regressor over all S*TB rows -------------
    m_flat = m_ref[...].reshape(S * TB, M2)
    y_flat = dot(m_flat, wo_ref[...]) + bo_ref[...]                 # (S*TB, E)
    q = jnp.tanh(dot(m_flat, wo_c1_ref[...]) + bo_c1_ref[...])      # (S*TB, H)
    cf = dot(q, wc2_ref[...]) + bc2_ref[...]                        # (S*TB, C)
    if lane_dense:
        # Lane-dense stores: last dim TB (>= 128 in production) instead of E/C = 8.
        y_ref[...] = jnp.transpose(y_flat.reshape(S, TB, E), (0, 2, 1))
        coeff_ref[...] = jnp.transpose(cf.reshape(S, TB, C), (0, 2, 1))
    else:
        y_ref[...] = y_flat.reshape(S, TB, E)
        coeff_ref[...] = cf.reshape(S, TB, C)


def _round_up(a, m):
    return (a + m - 1) // m * m


def vae_forward(listener_emotion, listener_3dmm, params, window_size,
                block_b=256, compute_dtype=jnp.bfloat16):
    """Eval-mode forward.  block_b must be a multiple of 128
    (use 128-256 on v7x / 64 MiB VMEM, 256-512 on v5e / v6e)."""
    B, T, E = listener_emotion.shape
    assert T % window_size == 0, "seq_len must be divisible by window_size"
    assert block_b % 128 == 0
    S = window_size
    Bp = B * (T // S)

    (wih_e, whh_e, b_e, wmu, bmu, wlv, blv, wzd, bzd,
     wih_dh, wih_dy, whh_d, b_d, wm1, bm1, wm2, bm2, wo, bo,
     wc1, bc1, wc2, bc2) = params

    H = whh_e.shape[0]
    Z = wmu.shape[1]
    C = wc2.shape[1]
    M2 = wm2.shape[1]
    f32 = jnp.float32
    cdt = compute_dtype
    hi = lax.Precision.HIGHEST

    # Fused / folded weights (computed once, outside the kernel):
    #   [mu | logvar] head; d_out folded into the decoder input path
    #   (wo @ W_ih_y) and into the coeff regressor first layer (wo @ wc1).
    wstat = jnp.concatenate([wmu, wlv], axis=1)               # (H, 2Z)
    bstat = jnp.concatenate([bmu, blv], axis=1)               # (1, 2Z)
    wmo_dy = jnp.dot(wo, wih_dy, precision=hi)                # (M2, 4H)
    bo_dy = jnp.dot(bo, wih_dy, precision=hi)                 # (1, 4H)
    wo_c1 = jnp.dot(wo, wc1, precision=hi)                    # (M2, H)
    bo_c1 = jnp.dot(bo, wc1, precision=hi) + bc1              # (1, H)

    # Weight matrices in the compute dtype (bf16 hits the MXU rate and halves
    # weight VMEM/DMA); biases stay f32 (VPU adds on f32 accumulators).
    as_w = lambda w: w.astype(cdt)
    as_b = lambda b: b.astype(f32)
    kernel_params = (
        as_w(wih_e), as_w(whh_e), as_b(b_e),
        as_w(wstat), as_b(bstat),
        as_w(wzd), as_b(bzd),
        as_w(wih_dh), as_b(b_d),
        as_w(wmo_dy), as_b(bo_dy),
        as_w(whh_d),
        as_w(wm1), as_b(bm1), as_w(wm2), as_b(bm2),
        as_w(wo), as_b(bo),
        as_w(wo_c1), as_b(bo_c1), as_w(wc2), as_b(bc2))

    # Window-batch tile.  Lane-dense output blocks put TB in the last dim, so
    # TB must be a multiple of 128 (or a single block).  Keep >= 2 grid steps
    # whenever Bp allows it so both v7x TensorCores get work.
    if Bp >= 2 * block_b:
        TB = block_b
    elif Bp >= 256:
        TB = 128
    else:
        TB = _round_up(Bp, 8)          # single block; too small to split on 128-lane tiles
    Bp_pad = _round_up(Bp, TB)
    n_blk = Bp_pad // TB

    x = listener_emotion.astype(cdt).reshape(Bp, S, E).transpose(1, 0, 2)
    if Bp_pad != Bp:
        x = jnp.pad(x, ((0, 0), (0, Bp_pad - Bp), (0, 0)))

    # Explicit VMEM budget (floor = 32 MiB scoped default, never constraining
    # below actual need; on v7x shrink block_b rather than raising past 64 MiB).
    itemsize = jnp.dtype(cdt).itemsize
    w_bytes = sum(int(a.size) * a.dtype.itemsize for a in kernel_params)
    blk_bytes = 2 * (S * TB * E * itemsize
                     + (S * TB * (E + C) + TB * 2 * Z) * 4)
    scratch_bytes = (S * TB * 4 * H + S * TB * M2) * itemsize
    est = 2 * w_bytes + blk_bytes + scratch_bytes + (4 << 20)
    vmem_limit = int(min(128 << 20, max(32 << 20, est)))

    def run(single_buffer_weights, lane_dense):
        def w_spec(a):
            n = a.ndim
            idx = lambda i, n=n: (0,) * n
            if single_buffer_weights:
                # Grid-invariant weights: one VMEM copy instead of a double buffer.
                return pl.BlockSpec(a.shape, idx, pipeline_mode=pl.Buffered(1))
            return pl.BlockSpec(a.shape, idx)

        in_specs = ([pl.BlockSpec((S, TB, E), lambda i: (0, i, 0))]
                    + [w_spec(w) for w in kernel_params])
        if lane_dense:
            out_specs = (pl.BlockSpec((S, E, TB), lambda i: (0, 0, i)),
                         pl.BlockSpec((TB, 2 * Z), lambda i: (i, 0)),
                         pl.BlockSpec((S, C, TB), lambda i: (0, 0, i)))
            out_shape = (jax.ShapeDtypeStruct((S, E, Bp_pad), f32),   # y (lane-dense)
                         jax.ShapeDtypeStruct((Bp_pad, 2 * Z), f32),  # [mu | logvar]
                         jax.ShapeDtypeStruct((S, C, Bp_pad), f32))   # 3dmm coeffs
        else:
            out_specs = (pl.BlockSpec((S, TB, E), lambda i: (0, i, 0)),
                         pl.BlockSpec((TB, 2 * Z), lambda i: (i, 0)),
                         pl.BlockSpec((S, TB, C), lambda i: (0, i, 0)))
            out_shape = (jax.ShapeDtypeStruct((S, Bp_pad, E), f32),
                         jax.ShapeDtypeStruct((Bp_pad, 2 * Z), f32),
                         jax.ShapeDtypeStruct((S, Bp_pad, C), f32))
        out = pl.pallas_call(
            functools.partial(_vae_kernel, lane_dense),
            out_shape=out_shape,
            grid=(n_blk,),
            in_specs=in_specs,
            out_specs=out_specs,
            scratch_shapes=[pltpu.VMEM((S, TB, 4 * H), cdt),   # encoder preactivations
                            pltpu.VMEM((S, TB, M2), cdt)],     # per-step MLP outputs
            compiler_params=pltpu.CompilerParams(
                dimension_semantics=("parallel",),
                vmem_limit_bytes=vmem_limit),
        )(x, *kernel_params)
        return jax.block_until_ready(out)

    try:
        y, stat, coeff = run(True, True)
        lane_dense = True
    except Exception:
        # TODO(synk): pipeline_mode=pl.Buffered(1) or the in-kernel minor
        # transpose is unsupported on this jax build; fall back to default
        # double-buffered weights and batch-major (masked-store) outputs.
        y, stat, coeff = run(False, False)
        lane_dense = False

    if lane_dense:
        Y_r = y[:, :, :Bp].transpose(2, 0, 1).reshape(B, T, E)
        coeff_3dmm = coeff[:, :, :Bp].transpose(2, 0, 1).reshape(B, T, C)
    else:
        Y_r = y[:, :Bp].transpose(1, 0, 2).reshape(B, T, E)
        coeff_3dmm = coeff[:, :Bp].transpose(1, 0, 2).reshape(B, T, C)
    mu = stat[:Bp, :Z]
    logvar = stat[:Bp, Z:]
    return {
        'prediction': Y_r,
        'target': listener_emotion,
        'coefficients_3dmm': coeff_3dmm,
        'target_coefficients': listener_3dmm,
        'mu': mu,
        'logvar': logvar,
    }


def init_params(key, E, H, Z, emb_dims, C):
    def lin(k, din, dout, scale=0.1):
        k1, k2 = jax.random.split(k)
        return (scale * jax.random.normal(k1, (din, dout), jnp.float32),
                scale * jax.random.normal(k2, (1, dout), jnp.float32))

    keys = jax.random.split(key, 13)
    wih_e, be1 = lin(keys[0], E, 4 * H)        # x_rnn W_ih^T
    whh_e, be2 = lin(keys[1], H, 4 * H)        # x_rnn W_hh^T
    b_e = be1 + be2                            # b_ih + b_hh
    wmu, bmu = lin(keys[2], H, Z)              # fc_mu_enc
    wlv, blv = lin(keys[3], H, Z)              # fc_logvar_enc
    wzd, bzd = lin(keys[4], Z, H)              # fc_z_dec
    wih_dh, bd1 = lin(keys[5], H, 4 * H)       # d_rnn W_ih^T rows acting on h_y
    wih_dy, _ = lin(keys[6], E, 4 * H)         # d_rnn W_ih^T rows acting on y_prev
    whh_d, bd2 = lin(keys[7], H, 4 * H)        # d_rnn W_hh^T
    b_d = bd1 + bd2
    M1, M2 = emb_dims
    wm1, bm1 = lin(keys[8], H, M1)             # d_mlp layer 1
    wm2, bm2 = lin(keys[9], M1, M2)            # d_mlp layer 2
    wo, bo = lin(keys[10], M2, E)              # d_out
    wc1, bc1 = lin(keys[11], E, H)             # coeff_reg[0]
    wc2, bc2 = lin(keys[12], H, C)             # coeff_reg[2]
    return (wih_e, whh_e, b_e, wmu, bmu, wlv, blv, wzd, bzd,
            wih_dh, wih_dy, whh_d, b_d, wm1, bm1, wm2, bm2, wo, bo,
            wc1, bc1, wc2, bc2)


def reference_forward(listener_emotion, params, window_size):
    """Pure-JAX re-implementation of the PyTorch forward (eval mode)."""
    (wih_e, whh_e, b_e, wmu, bmu, wlv, blv, wzd, bzd,
     wih_dh, wih_dy, whh_d, b_d, wm1, bm1, wm2, bm2, wo, bo,
     wc1, bc1, wc2, bc2) = params
    B, T, E = listener_emotion.shape
    S = window_size
    Bp = B * (T // S)
    H = whh_e.shape[0]
    x = listener_emotion.reshape(Bp, S, E).transpose(1, 0, 2)

    hi = lax.Precision.HIGHEST
    mm = lambda a, b: jnp.dot(a, b, precision=hi)

    def lstm(pre, c):
        i = jax.nn.sigmoid(pre[:, :H])
        f = jax.nn.sigmoid(pre[:, H:2 * H])
        g = jnp.tanh(pre[:, 2 * H:3 * H])
        o = jax.nn.sigmoid(pre[:, 3 * H:])
        c_new = f * c + i * g
        return o * jnp.tanh(c_new), c_new

    h = jnp.zeros((Bp, H)); c = jnp.zeros((Bp, H))
    for t in range(S):
        h, c = lstm(mm(x[t], wih_e) + mm(h, whh_e) + b_e, c)
    mu = mm(h, wmu) + bmu
    logvar = mm(h, wlv) + blv
    h_y = mm(mu, wzd) + bzd
    hd = jnp.zeros((Bp, H)); cd = jnp.zeros((Bp, H))
    y_prev = jnp.zeros((Bp, E))
    ys = []
    for _ in range(S):
        hd, cd = lstm(mm(h_y, wih_dh) + mm(y_prev, wih_dy) + mm(hd, whh_d) + b_d, cd)
        m = jnp.tanh(mm(hd, wm1) + bm1)
        m = jnp.tanh(mm(m, wm2) + bm2)
        y_prev = mm(m, wo) + bo
        ys.append(y_prev)
    Y = jnp.stack(ys).transpose(1, 0, 2).reshape(B, T, E)
    coeff = mm(jnp.tanh(mm(Y.reshape(-1, E), wc1) + bc1), wc2) + bc2
    return {'prediction': Y, 'coefficients_3dmm': coeff.reshape(B, T, -1),
            'mu': mu, 'logvar': logvar}


if __name__ == "__main__":
    key = jax.random.PRNGKey(0)
    # small cfg: window_size=8, emotion_dim=8, hidden_dim=32, z_dim=16,
    #            emb_dims=(32, 32), coeff_3dmm_dim=8
    B, T = 2, 16
    WINDOW, E, H, Z, C = 8, 8, 32, 16, 8
    EMB = (32, 32)

    kx, k3, kp = jax.random.split(key, 3)
    listener_emotion = jax.random.normal(kx, (B, T, E), jnp.float32)
    listener_3dmm = jax.random.normal(k3, (B, T, C), jnp.float32)
    params = init_params(kp, E, H, Z, EMB, C)

    ref = reference_forward(listener_emotion, params, WINDOW)

    # f32 path: tight check of the kernel structure against the pure-JAX reference.
    out32 = vae_forward(listener_emotion, listener_3dmm, params, WINDOW,
                        compute_dtype=jnp.float32)
    jax.block_until_ready(out32)
    for name in ('prediction', 'coefficients_3dmm', 'mu', 'logvar'):
        a, b = out32[name], ref[name]
        assert a.shape == b.shape, (name, a.shape, b.shape)
        assert bool(jnp.allclose(a, b, atol=2e-3, rtol=2e-3)), name

    # bf16-weight path (production config): looser check (bf16 weight quantization).
    out = vae_forward(listener_emotion, listener_3dmm, params, WINDOW,
                      compute_dtype=jnp.bfloat16)
    jax.block_until_ready(out)
    for name in ('prediction', 'coefficients_3dmm', 'mu', 'logvar'):
        a, b = out[name], ref[name]
        assert a.shape == b.shape, (name, a.shape, b.shape)
        assert bool(jnp.allclose(a, b, atol=5e-2, rtol=5e-2)), name

    assert out['prediction'].shape == (B, T, E)
    assert out['coefficients_3dmm'].shape == (B, T, C)
    assert out['mu'].shape == (B * (T // WINDOW), Z)
    assert out['logvar'].shape == (B * (T // WINDOW), Z)

    print("KERNEL_OK")
</pallas_src>

<mosaic_0001>
module attributes {stable_mosaic.version = 11 : i64} {
  func.func @_vae_kernel(%arg0: i32, %arg1: memref<8x8x8xf32, #tpu.memory_space<vmem>>, %arg2: memref<8x128xf32, #tpu.memory_space<vmem>>, %arg3: memref<32x128xf32, #tpu.memory_space<vmem>>, %arg4: memref<1x128xf32, #tpu.memory_space<vmem>>, %arg5: memref<32x32xf32, #tpu.memory_space<vmem>>, %arg6: memref<1x32xf32, #tpu.memory_space<vmem>>, %arg7: memref<16x32xf32, #tpu.memory_space<vmem>>, %arg8: memref<1x32xf32, #tpu.memory_space<vmem>>, %arg9: memref<32x128xf32, #tpu.memory_space<vmem>>, %arg10: memref<1x128xf32, #tpu.memory_space<vmem>>, %arg11: memref<32x128xf32, #tpu.memory_space<vmem>>, %arg12: memref<1x128xf32, #tpu.memory_space<vmem>>, %arg13: memref<32x128xf32, #tpu.memory_space<vmem>>, %arg14: memref<32x32xf32, #tpu.memory_space<vmem>>, %arg15: memref<1x32xf32, #tpu.memory_space<vmem>>, %arg16: memref<32x32xf32, #tpu.memory_space<vmem>>, %arg17: memref<1x32xf32, #tpu.memory_space<vmem>>, %arg18: memref<32x8xf32, #tpu.memory_space<vmem>>, %arg19: memref<1x8xf32, #tpu.memory_space<vmem>>, %arg20: memref<32x32xf32, #tpu.memory_space<vmem>>, %arg21: memref<1x32xf32, #tpu.memory_space<vmem>>, %arg22: memref<32x8xf32, #tpu.memory_space<vmem>>, %arg23: memref<1x8xf32, #tpu.memory_space<vmem>>, %arg24: memref<8x8x8xf32, #tpu.memory_space<vmem>>, %arg25: memref<8x32xf32, #tpu.memory_space<vmem>>, %arg26: memref<8x8x8xf32, #tpu.memory_space<vmem>>, %arg27: memref<8x8x128xf32, #tpu.memory_space<vmem>>, %arg28: memref<8x8x32xf32, #tpu.memory_space<vmem>>) attributes {dimension_semantics = [#tpu.dimension_semantics<parallel>], iteration_bounds = array<i64: 1>, scalar_prefetch = 0 : i64, scratch_operands = 2 : i64, tpu.core_type = #tpu.core_type<tc>, window_params = [{transform_indices = @transform_0, window_bounds = array<i64: 8, 8, 8>}, {pipeline_mode = #tpu.pipeline_mode<synchronous>, transform_indices = @transform_1, window_bounds = array<i64: 8, 128>}, {pipeline_mode = #tpu.pipeline_mode<synchronous>, transform_indices = @transform_2, window_bounds = array<i64: 32, 128>}, {pipeline_mode = #tpu.pipeline_mode<synchronous>, transform_indices = @transform_3, window_bounds = array<i64: 1, 128>}, {pipeline_mode = #tpu.pipeline_mode<synchronous>, transform_indices = @transform_4, window_bounds = array<i64: 32, 32>}, {pipeline_mode = #tpu.pipeline_mode<synchronous>, transform_indices = @transform_5, window_bounds = array<i64: 1, 32>}, {pipeline_mode = #tpu.pipeline_mode<synchronous>, transform_indices = @transform_6, window_bounds = array<i64: 16, 32>}, {pipeline_mode = #tpu.pipeline_mode<synchronous>, transform_indices = @transform_7, window_bounds = array<i64: 1, 32>}, {pipeline_mode = #tpu.pipeline_mode<synchronous>, transform_indices = @transform_8, window_bounds = array<i64: 32, 128>}, {pipeline_mode = #tpu.pipeline_mode<synchronous>, transform_indices = @transform_9, window_bounds = array<i64: 1, 128>}, {pipeline_mode = #tpu.pipeline_mode<synchronous>, transform_indices = @transform_10, window_bounds = array<i64: 32, 128>}, {pipeline_mode = #tpu.pipeline_mode<synchronous>, transform_indices = @transform_11, window_bounds = array<i64: 1, 128>}, {pipeline_mode = #tpu.pipeline_mode<synchronous>, transform_indices = @transform_12, window_bounds = array<i64: 32, 128>}, {pipeline_mode = #tpu.pipeline_mode<synchronous>, transform_indices = @transform_13, window_bounds = array<i64: 32, 32>}, {pipeline_mode = #tpu.pipeline_mode<synchronous>, transform_indices = @transform_14, window_bounds = array<i64: 1, 32>}, {pipeline_mode = #tpu.pipeline_mode<synchronous>, transform_indices = @transform_15, window_bounds = array<i64: 32, 32>}, {pipeline_mode = #tpu.pipeline_mode<synchronous>, transform_indices = @transform_16, window_bounds = array<i64: 1, 32>}, {pipeline_mode = #tpu.pipeline_mode<synchronous>, transform_indices = @transform_17, window_bounds = array<i64: 32, 8>}, {pipeline_mode = #tpu.pipeline_mode<synchronous>, transform_indices = @transform_18, window_bounds = array<i64: 1, 8>}, {pipeline_mode = #tpu.pipeline_mode<synchronous>, transform_indices = @transform_19, window_bounds = array<i64: 32, 32>}, {pipeline_mode = #tpu.pipeline_mode<synchronous>, transform_indices = @transform_20, window_bounds = array<i64: 1, 32>}, {pipeline_mode = #tpu.pipeline_mode<synchronous>, transform_indices = @transform_21, window_bounds = array<i64: 32, 8>}, {pipeline_mode = #tpu.pipeline_mode<synchronous>, transform_indices = @transform_22, window_bounds = array<i64: 1, 8>}, {transform_indices = @transform_23, window_bounds = array<i64: 8, 8, 8>}, {transform_indices = @transform_24, window_bounds = array<i64: 8, 32>}, {transform_indices = @transform_25, window_bounds = array<i64: 8, 8, 8>}]} {
    %0 = tpu.iota {dimensions = array<i32: 1>} : vector<8x128xi32>
    %c64_i32 = arith.constant 64 : i32
    %1 = vector.broadcast %c64_i32 : i32 to vector<8x128xi32>
    %2 = arith.cmpi sge, %0, %1 : vector<8x128xi32>
    %c96_i32 = arith.constant 96 : i32
    %3 = vector.broadcast %c96_i32 : i32 to vector<8x128xi32>
    %4 = arith.cmpi slt, %0, %3 : vector<8x128xi32>
    %5 = arith.andi %2, %4 : vector<8x128xi1>
    %cst = arith.constant 2.000000e+00 : f32
    %cst_0 = arith.constant 1.000000e+00 : f32
    %6 = vector.broadcast %cst : f32 to vector<8x128xf32>
    %7 = vector.broadcast %cst_0 : f32 to vector<8x128xf32>
    %8 = arith.select %5, %6, %7 : vector<8x128xi1>, vector<8x128xf32>
    %c0 = arith.constant 0 : index
    %c0_1 = arith.constant 0 : index
    %c0_2 = arith.constant 0 : index
    %9 = vector.load %arg1[%c0, %c0_1, %c0_2] : memref<8x8x8xf32, #tpu.memory_space<vmem>>, vector<8x8x8xf32>
    %10 = vector.shape_cast %9 : vector<8x8x8xf32> to vector<64x8xf32>
    %c0_3 = arith.constant 0 : index
    %c0_4 = arith.constant 0 : index
    %11 = vector.load %arg2[%c0_3, %c0_4] : memref<8x128xf32, #tpu.memory_space<vmem>>, vector<8x128xf32>
    %cst_5 = arith.constant dense<0.000000e+00> : vector<64x128xf32>
    %12 = tpu.matmul %10, %11, %cst_5 {dimension_numbers = #tpu.dot_dimension_numbers<[1], [0], [0], [1], [0, 0, 1, 1], [], []>} : vector<64x8xf32>, vector<8x128xf32>, vector<64x128xf32> -> vector<64x128xf32>
    %c0_6 = arith.constant 0 : index
    %c0_7 = arith.constant 0 : index
    %13 = vector.load %arg4[%c0_6, %c0_7] : memref<1x128xf32, #tpu.memory_space<vmem>>, vector<1x128xf32>
    %14 = vector.broadcast %13 : vector<1x128xf32> to vector<64x128xf32>
    %15 = arith.addf %12, %14 : vector<64x128xf32>
    %16 = vector.shape_cast %15 : vector<64x128xf32> to vector<8x8x128xf32>
    %c0_8 = arith.constant 0 : index
    %c0_9 = arith.constant 0 : index
    %c0_10 = arith.constant 0 : index
    %17 = vector.load %arg27[%c0_8, %c0_9, %c0_10] : memref<8x8x128xf32, #tpu.memory_space<vmem>>, vector<8x8x128xf32>
    tpu.vector_store %arg27[%c0_8, %c0_9, %c0_10], %16 {strides = array<i32>} : memref<8x8x128xf32, #tpu.memory_space<vmem>>, vector<8x8x128xf32>,
    %c0_11 = arith.constant 0 : index
    %c0_12 = arith.constant 0 : index
    %18 = vector.load %arg3[%c0_11, %c0_12] : memref<32x128xf32, #tpu.memory_space<vmem>>, vector<32x128xf32>
    %cst_13 = arith.constant 0.000000e+00 : f32
    %19 = vector.broadcast %cst_13 : f32 to vector<8x32xf32>
    %cst_14 = arith.constant 0.000000e+00 : f32
    %20 = vector.broadcast %cst_14 : f32 to vector<8x32xf32>
    %c0_15 = arith.constant 0 : index
    %c0_16 = arith.constant 0 : index
    %c0_17 = arith.constant 0 : index
    %21 = vector.load %arg27[%c0_15, %c0_16, %c0_17] : memref<8x8x128xf32, #tpu.memory_space<vmem>>, vector<1x8x128xf32>
    %22 = vector.shape_cast %21 : vector<1x8x128xf32> to vector<8x128xf32>
    %cst_18 = arith.constant dense<0.000000e+00> : vector<8x128xf32>
    %23 = tpu.matmul %19, %18, %cst_18 {dimension_numbers = #tpu.dot_dimension_numbers<[1], [0], [0], [1], [0, 0, 1, 1], [], []>} : vector<8x32xf32>, vector<32x128xf32>, vector<8x128xf32> -> vector<8x128xf32>
    %24 = arith.addf %22, %23 : vector<8x128xf32>
    %25 = arith.mulf %24, %8 : vector<8x128xf32>
    %26 = arith.negf %25 : vector<8x128xf32>
    %27 = math.exp %26 : vector<8x128xf32>
    %cst_19 = arith.constant 1.000000e+00 : f32
    %28 = vector.broadcast %cst_19 : f32 to vector<8x128xf32>
    %29 = arith.addf %28, %27 : vector<8x128xf32>
    %30 = arith.divf %28, %29 : vector<8x128xf32>
    %cst_20 = arith.constant 2.000000e+00 : f32
    %31 = vector.broadcast %cst_20 : f32 to vector<8x128xf32>
    %32 = arith.mulf %31, %30 : vector<8x128xf32>
    %cst_21 = arith.constant 1.000000e+00 : f32
    %33 = vector.broadcast %cst_21 : f32 to vector<8x128xf32>
    %34 = arith.subf %32, %33 : vector<8x128xf32>
    %35 = arith.select %5, %34, %30 : vector<8x128xi1>, vector<8x128xf32>
    %36 = vector.extract_strided_slice %35 {offsets = [0, 0], sizes = [8, 32], strides = [1, 1]} : vector<8x128xf32> to vector<8x32xf32>
    %37 = vector.extract_strided_slice %35 {offsets = [0, 32], sizes = [8, 32], strides = [1, 1]} : vector<8x128xf32> to vector<8x32xf32>
    %38 = vector.extract_strided_slice %35 {offsets = [0, 64], sizes = [8, 32], strides = [1, 1]} : vector<8x128xf32> to vector<8x32xf32>
    %39 = vector.extract_strided_slice %35 {offsets = [0, 96], sizes = [8, 32], strides = [1, 1]} : vector<8x128xf32> to vector<8x32xf32>
    %40 = arith.mulf %37, %20 : vector<8x32xf32>
    %41 = arith.mulf %36, %38 : vector<8x32xf32>
    %42 = arith.addf %40, %41 : vector<8x32xf32>
    %43 = math.tanh %42 : vector<8x32xf32>
    %44 = arith.mulf %39, %43 : vector<8x32xf32>
    %c1 = arith.constant 1 : index
    %c0_22 = arith.constant 0 : index
    %c0_23 = arith.constant 0 : index
    %45 = vector.load %arg27[%c1, %c0_22, %c0_23] : memref<8x8x128xf32, #tpu.memory_space<vmem>>, vector<1x8x128xf32>
    %46 = vector.shape_cast %45 : vector<1x8x128xf32> to vector<8x128xf32>
    %cst_24 = arith.constant dense<0.000000e+00> : vector<8x128xf32>
    %47 = tpu.matmul %44, %18, %cst_24 {dimension_numbers = #tpu.dot_dimension_numbers<[1], [0], [0], [1], [0, 0, 1, 1], [], []>} : vector<8x32xf32>, vector<32x128xf32>, vector<8x128xf32> -> vector<8x128xf32>
    %48 = arith.addf %46, %47 : vector<8x128xf32>
    %49 = arith.mulf %48, %8 : vector<8x128xf32>
    %50 = arith.negf %49 : vector<8x128xf32>
    %51 = math.exp %50 : vector<8x128xf32>
    %cst_25 = arith.constant 1.000000e+00 : f32
    %52 = vector.broadcast %cst_25 : f32 to vector<8x128xf32>
    %53 = arith.addf %52, %51 : vector<8x128xf32>
    %54 = arith.divf %52, %53 : vector<8x128xf32>
    %cst_26 = arith.constant 2.000000e+00 : f32
    %55 = vector.broadcast %cst_26 : f32 to vector<8x128xf32>
    %56 = arith.mulf %55, %54 : vector<8x128xf32>
    %cst_27 = arith.constant 1.000000e+00 : f32
    %57 = vector.broadcast %cst_27 : f32 to vector<8x128xf32>
    %58 = arith.subf %56, %57 : vector<8x128xf32>
    %59 = arith.select %5, %58, %54 : vector<8x128xi1>, vector<8x128xf32>
    %60 = vector.extract_strided_slice %59 {offsets = [0, 0], sizes = [8, 32], strides = [1, 1]} : vector<8x128xf32> to vector<8x32xf32>
    %61 = vector.extract_strided_slice %59 {offsets = [0, 32], sizes = [8, 32], strides = [1, 1]} : vector<8x128xf32> to vector<8x32xf32>
    %62 = vector.extract_strided_slice %59 {offsets = [0, 64], sizes = [8, 32], strides = [1, 1]} : vector<8x128xf32> to vector<8x32xf32>
    %63 = vector.extract_strided_slice %59 {offsets = [0, 96], sizes = [8, 32], strides = [1, 1]} : vector<8x128xf32> to vector<8x32xf32>
    %64 = arith.mulf %61, %42 : vector<8x32xf32>
    %65 = arith.mulf %60, %62 : vector<8x32xf32>
    %66 = arith.addf %64, %65 : vector<8x32xf32>
    %67 = math.tanh %66 : vector<8x32xf32>
    %68 = arith.mulf %63, %67 : vector<8x32xf32>
    %c2 = arith.constant 2 : index
    %c0_28 = arith.constant 0 : index
    %c0_29 = arith.constant 0 : index
    %69 = vector.load %arg27[%c2, %c0_28, %c0_29] : memref<8x8x128xf32, #tpu.memory_space<vmem>>, vector<1x8x128xf32>
    %70 = vector.shape_cast %69 : vector<1x8x128xf32> to vector<8x128xf32>
    %cst_30 = arith.constant dense<0.000000e+00> : vector<8x128xf32>
    %71 = tpu.matmul %68, %18, %cst_30 {dimension_numbers = #tpu.dot_dimension_numbers<[1], [0], [0], [1], [0, 0, 1, 1], [], []>} : vector<8x32xf32>, vector<32x128xf32>, vector<8x128xf32> -> vector<8x128xf32>
    %72 = arith.addf %70, %71 : vector<8x128xf32>
    %73 = arith.mulf %72, %8 : vector<8x128xf32>
    %74 = arith.negf %73 : vector<8x128xf32>
    %75 = math.exp %74 : vector<8x128xf32>
    %cst_31 = arith.constant 1.000000e+00 : f32
    %76 = vector.broadcast %cst_31 : f32 to vector<8x128xf32>
    %77 = arith.addf %76, %75 : vector<8x128xf32>
    %78 = arith.divf %76, %77 : vector<8x128xf32>
    %cst_32 = arith.constant 2.000000e+00 : f32
    %79 = vector.broadcast %cst_32 : f32 to vector<8x128xf32>
    %80 = arith.mulf %79, %78 : vector<8x128xf32>
    %cst_33 = arith.constant 1.000000e+00 : f32
    %81 = vector.broadcast %cst_33 : f32 to vector<8x128xf32>
    %82 = arith.subf %80, %81 : vector<8x128xf32>
    %83 = arith.select %5, %82, %78 : vector<8x128xi1>, vector<8x128xf32>
    %84 = vector.extract_strided_slice %83 {offsets = [0, 0], sizes = [8, 32], strides = [1, 1]} : vector<8x128xf32> to vector<8x32xf32>
    %85 = vector.extract_strided_slice %83 {offsets = [0, 32], sizes = [8, 32], strides = [1, 1]} : vector<8x128xf32> to vector<8x32xf32>
    %86 = vector.extract_strided_slice %83 {offsets = [0, 64], sizes = [8, 32], strides = [1, 1]} : vector<8x128xf32> to vector<8x32xf32>
    %87 = vector.extract_strided_slice %83 {offsets = [0, 96], sizes = [8, 32], strides = [1, 1]} : vector<8x128xf32> to vector<8x32xf32>
    %88 = arith.mulf %85, %66 : vector<8x32xf32>
    %89 = arith.mulf %84, %86 : vector<8x32xf32>
    %90 = arith.addf %88, %89 : vector<8x32xf32>
    %91 = math.tanh %90 : vector<8x32xf32>
    %92 = arith.mulf %87, %91 : vector<8x32xf32>
    %c3 = arith.constant 3 : index
    %c0_34 = arith.constant 0 : index
    %c0_35 = arith.constant 0 : index
    %93 = vector.load %arg27[%c3, %c0_34, %c0_35] : memref<8x8x128xf32, #tpu.memory_space<vmem>>, vector<1x8x128xf32>
    %94 = vector.shape_cast %93 : vector<1x8x128xf32> to vector<8x128xf32>
    %cst_36 = arith.constant dense<0.000000e+00> : vector<8x128xf32>
    %95 = tpu.matmul %92, %18, %cst_36 {dimension_numbers = #tpu.dot_dimension_numbers<[1], [0], [0], [1], [0, 0, 1, 1], [], []>} : vector<8x32xf32>, vector<32x128xf32>, vector<8x128xf32> -> vector<8x128xf32>
    %96 = arith.addf %94, %95 : vector<8x128xf32>
    %97 = arith.mulf %96, %8 : vector<8x128xf32>
    %98 = arith.negf %97 : vector<8x128xf32>
    %99 = math.exp %98 : vector<8x128xf32>
    %cst_37 = arith.constant 1.000000e+00 : f32
    %100 = vector.broadcast %cst_37 : f32 to vector<8x128xf32>
    %101 = arith.addf %100, %99 : vector<8x128xf32>
    %102 = arith.divf %100, %101 : vector<8x128xf32>
    %cst_38 = arith.constant 2.000000e+00 : f32
    %103 = vector.broadcast %cst_38 : f32 to vector<8x128xf32>
    %104 = arith.mulf %103, %102 : vector<8x128xf32>
    %cst_39 = arith.constant 1.000000e+00 : f32
    %105 = vector.broadcast %cst_39 : f32 to vector<8x128xf32>
    %106 = arith.subf %104, %105 : vector<8x128xf32>
    %107 = arith.select %5, %106, %102 : vector<8x128xi1>, vector<8x128xf32>
    %108 = vector.extract_strided_slice %107 {offsets = [0, 0], sizes = [8, 32], strides = [1, 1]} : vector<8x128xf32> to vector<8x32xf32>
    %109 = vector.extract_strided_slice %107 {offsets = [0, 32], sizes = [8, 32], strides = [1, 1]} : vector<8x128xf32> to vector<8x32xf32>
    %110 = vector.extract_strided_slice %107 {offsets = [0, 64], sizes = [8, 32], strides = [1, 1]} : vector<8x128xf32> to vector<8x32xf32>
    %111 = vector.extract_strided_slice %107 {offsets = [0, 96], sizes = [8, 32], strides = [1, 1]} : vector<8x128xf32> to vector<8x32xf32>
    %112 = arith.mulf %109, %90 : vector<8x32xf32>
    %113 = arith.mulf %108, %110 : vector<8x32xf32>
    %114 = arith.addf %112, %113 : vector<8x32xf32>
    %115 = math.tanh %114 : vector<8x32xf32>
    %116 = arith.mulf %111, %115 : vector<8x32xf32>
    %c4 = arith.constant 4 : index
    %c0_40 = arith.constant 0 : index
    %c0_41 = arith.constant 0 : index
    %117 = vector.load %arg27[%c4, %c0_40, %c0_41] : memref<8x8x128xf32, #tpu.memory_space<vmem>>, vector<1x8x128xf32>
    %118 = vector.shape_cast %117 : vector<1x8x128xf32> to vector<8x128xf32>
    %cst_42 = arith.constant dense<0.000000e+00> : vector<8x128xf32>
    %119 = tpu.matmul %116, %18, %cst_42 {dimension_numbers = #tpu.dot_dimension_numbers<[1], [0], [0], [1], [0, 0, 1, 1], [], []>} : vector<8x32xf32>, vector<32x128xf32>, vector<8x128xf32> -> vector<8x128xf32>
    %120 = arith.addf %118, %119 : vector<8x128xf32>
    %121 = arith.mulf %120, %8 : vector<8x128xf32>
    %122 = arith.negf %121 : vector<8x128xf32>
    %123 = math.exp %122 : vector<8x128xf32>
    %cst_43 = arith.constant 1.000000e+00 : f32
    %124 = vector.broadcast %cst_43 : f32 to vector<8x128xf32>
    %125 = arith.addf %124, %123 : vector<8x128xf32>
    %126 = arith.divf %124, %125 : vector<8x128xf32>
    %cst_44 = arith.constant 2.000000e+00 : f32
    %127 = vector.broadcast %cst_44 : f32 to vector<8x128xf32>
    %128 = arith.mulf %127, %126 : vector<8x128xf32>
    %cst_45 = arith.constant 1.000000e+00 : f32
    %129 = vector.broadcast %cst_45 : f32 to vector<8x128xf32>
    %130 = arith.subf %128, %129 : vector<8x128xf32>
    %131 = arith.select %5, %130, %126 : vector<8x128xi1>, vector<8x128xf32>
    %132 = vector.extract_strided_slice %131 {offsets = [0, 0], sizes = [8, 32], strides = [1, 1]} : vector<8x128xf32> to vector<8x32xf32>
    %133 = vector.extract_strided_slice %131 {offsets = [0, 32], sizes = [8, 32], strides = [1, 1]} : vector<8x128xf32> to vector<8x32xf32>
    %134 = vector.extract_strided_slice %131 {offsets = [0, 64], sizes = [8, 32], strides = [1, 1]} : vector<8x128xf32> to vector<8x32xf32>
    %135 = vector.extract_strided_slice %131 {offsets = [0, 96], sizes = [8, 32], strides = [1, 1]} : vector<8x128xf32> to vector<8x32xf32>
    %136 = arith.mulf %133, %114 : vector<8x32xf32>
    %137 = arith.mulf %132, %134 : vector<8x32xf32>
    %138 = arith.addf %136, %137 : vector<8x32xf32>
    %139 = math.tanh %138 : vector<8x32xf32>
    %140 = arith.mulf %135, %139 : vector<8x32xf32>
    %c5 = arith.constant 5 : index
    %c0_46 = arith.constant 0 : index
    %c0_47 = arith.constant 0 : index
    %141 = vector.load %arg27[%c5, %c0_46, %c0_47] : memref<8x8x128xf32, #tpu.memory_space<vmem>>, vector<1x8x128xf32>
    %142 = vector.shape_cast %141 : vector<1x8x128xf32> to vector<8x128xf32>
    %cst_48 = arith.constant dense<0.000000e+00> : vector<8x128xf32>
    %143 = tpu.matmul %140, %18, %cst_48 {dimension_numbers = #tpu.dot_dimension_numbers<[1], [0], [0], [1], [0, 0, 1, 1], [], []>} : vector<8x32xf32>, vector<32x128xf32>, vector<8x128xf32> -> vector<8x128xf32>
    %144 = arith.addf %142, %143 : vector<8x128xf32>
    %145 = arith.mulf %144, %8 : vector<8x128xf32>
    %146 = arith.negf %145 : vector<8x128xf32>
    %147 = math.exp %146 : vector<8x128xf32>
    %cst_49 = arith.constant 1.000000e+00 : f32
    %148 = vector.broadcast %cst_49 : f32 to vector<8x128xf32>
    %149 = arith.addf %148, %147 : vector<8x128xf32>
    %150 = arith.divf %148, %149 : vector<8x128xf32>
    %cst_50 = arith.constant 2.000000e+00 : f32
    %151 = vector.broadcast %cst_50 : f32 to vector<8x128xf32>
    %152 = arith.mulf %151, %150 : vector<8x128xf32>
    %cst_51 = arith.constant 1.000000e+00 : f32
    %153 = vector.broadcast %cst_51 : f32 to vector<8x128xf32>
    %154 = arith.subf %152, %153 : vector<8x128xf32>
    %155 = arith.select %5, %154, %150 : vector<8x128xi1>, vector<8x128xf32>
    %156 = vector.extract_strided_slice %155 {offsets = [0, 0], sizes = [8, 32], strides = [1, 1]} : vector<8x128xf32> to vector<8x32xf32>
    %157 = vector.extract_strided_slice %155 {offsets = [0, 32], sizes = [8, 32], strides = [1, 1]} : vector<8x128xf32> to vector<8x32xf32>
    %158 = vector.extract_strided_slice %155 {offsets = [0, 64], sizes = [8, 32], strides = [1, 1]} : vector<8x128xf32> to vector<8x32xf32>
    %159 = vector.extract_strided_slice %155 {offsets = [0, 96], sizes = [8, 32], strides = [1, 1]} : vector<8x128xf32> to vector<8x32xf32>
    %160 = arith.mulf %157, %138 : vector<8x32xf32>
    %161 = arith.mulf %156, %158 : vector<8x32xf32>
    %162 = arith.addf %160, %161 : vector<8x32xf32>
    %163 = math.tanh %162 : vector<8x32xf32>
    %164 = arith.mulf %159, %163 : vector<8x32xf32>
    %c6 = arith.constant 6 : index
    %c0_52 = arith.constant 0 : index
    %c0_53 = arith.constant 0 : index
    %165 = vector.load %arg27[%c6, %c0_52, %c0_53] : memref<8x8x128xf32, #tpu.memory_space<vmem>>, vector<1x8x128xf32>
    %166 = vector.shape_cast %165 : vector<1x8x128xf32> to vector<8x128xf32>
    %cst_54 = arith.constant dense<0.000000e+00> : vector<8x128xf32>
    %167 = tpu.matmul %164, %18, %cst_54 {dimension_numbers = #tpu.dot_dimension_numbers<[1], [0], [0], [1], [0, 0, 1, 1], [], []>} : vector<8x32xf32>, vector<32x128xf32>, vector<8x128xf32> -> vector<8x128xf32>
    %168 = arith.addf %166, %167 : vector<8x128xf32>
    %169 = arith.mulf %168, %8 : vector<8x128xf32>
    %170 = arith.negf %169 : vector<8x128xf32>
    %171 = math.exp %170 : vector<8x128xf32>
    %cst_55 = arith.constant 1.000000e+00 : f32
    %172 = vector.broadcast %cst_55 : f32 to vector<8x128xf32>
    %173 = arith.addf %172, %171 : vector<8x128xf32>
    %174 = arith.divf %172, %173 : vector<8x128xf32>
    %cst_56 = arith.constant 2.000000e+00 : f32
    %175 = vector.broadcast %cst_56 : f32 to vector<8x128xf32>
    %176 = arith.mulf %175, %174 : vector<8x128xf32>
    %cst_57 = arith.constant 1.000000e+00 : f32
    %177 = vector.broadcast %cst_57 : f32 to vector<8x128xf32>
    %178 = arith.subf %176, %177 : vector<8x128xf32>
    %179 = arith.select %5, %178, %174 : vector<8x128xi1>, vector<8x128xf32>
    %180 = vector.extract_strided_slice %179 {offsets = [0, 0], sizes = [8, 32], strides = [1, 1]} : vector<8x128xf32> to vector<8x32xf32>
    %181 = vector.extract_strided_slice %179 {offsets = [0, 32], sizes = [8, 32], strides = [1, 1]} : vector<8x128xf32> to vector<8x32xf32>
    %182 = vector.extract_strided_slice %179 {offsets = [0, 64], sizes = [8, 32], strides = [1, 1]} : vector<8x128xf32> to vector<8x32xf32>
    %183 = vector.extract_strided_slice %179 {offsets = [0, 96], sizes = [8, 32], strides = [1, 1]} : vector<8x128xf32> to vector<8x32xf32>
    %184 = arith.mulf %181, %162 : vector<8x32xf32>
    %185 = arith.mulf %180, %182 : vector<8x32xf32>
    %186 = arith.addf %184, %185 : vector<8x32xf32>
    %187 = math.tanh %186 : vector<8x32xf32>
    %188 = arith.mulf %183, %187 : vector<8x32xf32>
    %c7 = arith.constant 7 : index
    %c0_58 = arith.constant 0 : index
    %c0_59 = arith.constant 0 : index
    %189 = vector.load %arg27[%c7, %c0_58, %c0_59] : memref<8x8x128xf32, #tpu.memory_space<vmem>>, vector<1x8x128xf32>
    %190 = vector.shape_cast %189 : vector<1x8x128xf32> to vector<8x128xf32>
    %cst_60 = arith.constant dense<0.000000e+00> : vector<8x128xf32>
    %191 = tpu.matmul %188, %18, %cst_60 {dimension_numbers = #tpu.dot_dimension_numbers<[1], [0], [0], [1], [0, 0, 1, 1], [], []>} : vector<8x32xf32>, vector<32x128xf32>, vector<8x128xf32> -> vector<8x128xf32>
    %192 = arith.addf %190, %191 : vector<8x128xf32>
    %193 = arith.mulf %192, %8 : vector<8x128xf32>
    %194 = arith.negf %193 : vector<8x128xf32>
    %195 = math.exp %194 : vector<8x128xf32>
    %cst_61 = arith.constant 1.000000e+00 : f32
    %196 = vector.broadcast %cst_61 : f32 to vector<8x128xf32>
    %197 = arith.addf %196, %195 : vector<8x128xf32>
    %198 = arith.divf %196, %197 : vector<8x128xf32>
    %cst_62 = arith.constant 2.000000e+00 : f32
    %199 = vector.broadcast %cst_62 : f32 to vector<8x128xf32>
    %200 = arith.mulf %199, %198 : vector<8x128xf32>
    %cst_63 = arith.constant 1.000000e+00 : f32
    %201 = vector.broadcast %cst_63 : f32 to vector<8x128xf32>
    %202 = arith.subf %200, %201 : vector<8x128xf32>
    %203 = arith.select %5, %202, %198 : vector<8x128xi1>, vector<8x128xf32>
    %204 = vector.extract_strided_slice %203 {offsets = [0, 0], sizes = [8, 32], strides = [1, 1]} : vector<8x128xf32> to vector<8x32xf32>
    %205 = vector.extract_strided_slice %203 {offsets = [0, 32], sizes = [8, 32], strides = [1, 1]} : vector<8x128xf32> to vector<8x32xf32>
    %206 = vector.extract_strided_slice %203 {offsets = [0, 64], sizes = [8, 32], strides = [1, 1]} : vector<8x128xf32> to vector<8x32xf32>
    %207 = vector.extract_strided_slice %203 {offsets = [0, 96], sizes = [8, 32], strides = [1, 1]} : vector<8x128xf32> to vector<8x32xf32>
    %208 = arith.mulf %205, %186 : vector<8x32xf32>
    %209 = arith.mulf %204, %206 : vector<8x32xf32>
    %210 = arith.addf %208, %209 : vector<8x32xf32>
    %211 = math.tanh %210 : vector<8x32xf32>
    %212 = arith.mulf %207, %211 : vector<8x32xf32>
    %c0_64 = arith.constant 0 : index
    %c0_65 = arith.constant 0 : index
    %213 = vector.load %arg5[%c0_64, %c0_65] : memref<32x32xf32, #tpu.memory_space<vmem>>, vector<32x32xf32>
    %cst_66 = arith.constant dense<0.000000e+00> : vector<8x32xf32>
    %214 = tpu.matmul %212, %213, %cst_66 {dimension_numbers = #tpu.dot_dimension_numbers<[1], [0], [0], [1], [0, 0, 1, 1], [], []>} : vector<8x32xf32>, vector<32x32xf32>, vector<8x32xf32> -> vector<8x32xf32>
    %c0_67 = arith.constant 0 : index
    %c0_68 = arith.constant 0 : index
    %215 = vector.load %arg6[%c0_67, %c0_68] : memref<1x32xf32, #tpu.memory_space<vmem>>, vector<1x32xf32>
    %216 = vector.broadcast %215 : vector<1x32xf32> to vector<8x32xf32>
    %217 = arith.addf %214, %216 : vector<8x32xf32>
    %c0_69 = arith.constant 0 : index
    %c0_70 = arith.constant 0 : index
    %218 = vector.load %arg25[%c0_69, %c0_70] : memref<8x32xf32, #tpu.memory_space<vmem>>, vector<8x32xf32>
    tpu.vector_store %arg25[%c0_69, %c0_70], %217 {strides = array<i32>} : memref<8x32xf32, #tpu.memory_space<vmem>>, vector<8x32xf32>,
    %219 = vector.extract_strided_slice %217 {offsets = [0, 0], sizes = [8, 16], strides = [1, 1]} : vector<8x32xf32> to vector<8x16xf32>
    %c0_71 = arith.constant 0 : index
    %c0_72 = arith.constant 0 : index
    %220 = vector.load %arg7[%c0_71, %c0_72] : memref<16x32xf32, #tpu.memory_space<vmem>>, vector<16x32xf32>
    %cst_73 = arith.constant dense<0.000000e+00> : vector<8x32xf32>
    %221 = tpu.matmul %219, %220, %cst_73 {dimension_numbers = #tpu.dot_dimension_numbers<[1], [0], [0], [1], [0, 0, 1, 1], [], []>} : vector<8x16xf32>, vector<16x32xf32>, vector<8x32xf32> -> vector<8x32xf32>
    %c0_74 = arith.constant 0 : index
    %c0_75 = arith.constant 0 : index
    %222 = vector.load %arg8[%c0_74, %c0_75] : memref<1x32xf32, #tpu.memory_space<vmem>>, vector<1x32xf32>
    %223 = vector.broadcast %222 : vector<1x32xf32> to vector<8x32xf32>
    %224 = arith.addf %221, %223 : vector<8x32xf32>
    %c0_76 = arith.constant 0 : index
    %c0_77 = arith.constant 0 : index
    %225 = vector.load %arg13[%c0_76, %c0_77] : memref<32x128xf32, #tpu.memory_space<vmem>>, vector<32x128xf32>
    %c0_78 = arith.constant 0 : index
    %c0_79 = arith.constant 0 : index
    %226 = vector.load %arg11[%c0_78, %c0_79] : memref<32x128xf32, #tpu.memory_space<vmem>>, vector<32x128xf32>
    %c0_80 = arith.constant 0 : index
    %c0_81 = arith.constant 0 : index
    %227 = vector.load %arg14[%c0_80, %c0_81] : memref<32x32xf32, #tpu.memory_space<vmem>>, vector<32x32xf32>
    %c0_82 = arith.constant 0 : index
    %c0_83 = arith.constant 0 : index
    %228 = vector.load %arg16[%c0_82, %c0_83] : memref<32x32xf32, #tpu.memory_space<vmem>>, vector<32x32xf32>
    %c0_84 = arith.constant 0 : index
    %c0_85 = arith.constant 0 : index
    %229 = vector.load %arg15[%c0_84, %c0_85] : memref<1x32xf32, #tpu.memory_space<vmem>>, vector<1x32xf32>
    %230 = vector.shape_cast %229 : vector<1x32xf32> to vector<1x32xf32>
    %231 = vector.broadcast %230 : vector<1x32xf32> to vector<8x32xf32>
    %c0_86 = arith.constant 0 : index
    %c0_87 = arith.constant 0 : index
    %232 = vector.load %arg17[%c0_86, %c0_87] : memref<1x32xf32, #tpu.memory_space<vmem>>, vector<1x32xf32>
    %233 = vector.shape_cast %232 : vector<1x32xf32> to vector<1x32xf32>
    %234 = vector.broadcast %233 : vector<1x32xf32> to vector<8x32xf32>
    %c0_88 = arith.constant 0 : index
    %c0_89 = arith.constant 0 : index
    %235 = vector.load %arg9[%c0_88, %c0_89] : memref<32x128xf32, #tpu.memory_space<vmem>>, vector<32x128xf32>
    %cst_90 = arith.constant dense<0.000000e+00> : vector<8x128xf32>
    %236 = tpu.matmul %224, %235, %cst_90 {dimension_numbers = #tpu.dot_dimension_numbers<[1], [0], [0], [1], [0, 0, 1, 1], [], []>} : vector<8x32xf32>, vector<32x128xf32>, vector<8x128xf32> -> vector<8x128xf32>
    %c0_91 = arith.constant 0 : index
    %c0_92 = arith.constant 0 : index
    %237 = vector.load %arg10[%c0_91, %c0_92] : memref<1x128xf32, #tpu.memory_space<vmem>>, vector<1x128xf32>
    %238 = vector.broadcast %237 : vector<1x128xf32> to vector<8x128xf32>
    %239 = arith.addf %236, %238 : vector<8x128xf32>
    %c0_93 = arith.constant 0 : index
    %c0_94 = arith.constant 0 : index
    %240 = vector.load %arg12[%c0_93, %c0_94] : memref<1x128xf32, #tpu.memory_space<vmem>>, vector<1x128xf32>
    %241 = vector.broadcast %240 : vector<1x128xf32> to vector<8x128xf32>
    %242 = arith.addf %239, %241 : vector<8x128xf32>
    %cst_95 = arith.constant 0.000000e+00 : f32
    %243 = vector.broadcast %cst_95 : f32 to vector<8x32xf32>
    %244 = arith.mulf %239, %8 : vector<8x128xf32>
    %245 = arith.negf %244 : vector<8x128xf32>
    %246 = math.exp %245 : vector<8x128xf32>
    %cst_96 = arith.constant 1.000000e+00 : f32
    %247 = vector.broadcast %cst_96 : f32 to vector<8x128xf32>
    %248 = arith.addf %247, %246 : vector<8x128xf32>
    %249 = arith.divf %247, %248 : vector<8x128xf32>
    %cst_97 = arith.constant 2.000000e+00 : f32
    %250 = vector.broadcast %cst_97 : f32 to vector<8x128xf32>
    %251 = arith.mulf %250, %249 : vector<8x128xf32>
    %cst_98 = arith.constant 1.000000e+00 : f32
    %252 = vector.broadcast %cst_98 : f32 to vector<8x128xf32>
    %253 = arith.subf %251, %252 : vector<8x128xf32>
    %254 = arith.select %5, %253, %249 : vector<8x128xi1>, vector<8x128xf32>
    %255 = vector.extract_strided_slice %254 {offsets = [0, 0], sizes = [8, 32], strides = [1, 1]} : vector<8x128xf32> to vector<8x32xf32>
    %256 = vector.extract_strided_slice %254 {offsets = [0, 32], sizes = [8, 32], strides = [1, 1]} : vector<8x128xf32> to vector<8x32xf32>
    %257 = vector.extract_strided_slice %254 {offsets = [0, 64], sizes = [8, 32], strides = [1, 1]} : vector<8x128xf32> to vector<8x32xf32>
    %258 = vector.extract_strided_slice %254 {offsets = [0, 96], sizes = [8, 32], strides = [1, 1]} : vector<8x128xf32> to vector<8x32xf32>
    %259 = arith.mulf %256, %243 : vector<8x32xf32>
    %260 = arith.mulf %255, %257 : vector<8x32xf32>
    %261 = arith.addf %259, %260 : vector<8x32xf32>
    %262 = math.tanh %261 : vector<8x32xf32>
    %263 = arith.mulf %258, %262 : vector<8x32xf32>
    %cst_99 = arith.constant dense<0.000000e+00> : vector<8x32xf32>
    %264 = tpu.matmul %263, %227, %cst_99 {dimension_numbers = #tpu.dot_dimension_numbers<[1], [0], [0], [1], [0, 0, 1, 1], [], []>} : vector<8x32xf32>, vector<32x32xf32>, vector<8x32xf32> -> vector<8x32xf32>
    %265 = arith.addf %264, %231 : vector<8x32xf32>
    %266 = math.tanh %265 : vector<8x32xf32>
    %cst_100 = arith.constant dense<0.000000e+00> : vector<8x32xf32>
    %267 = tpu.matmul %266, %228, %cst_100 {dimension_numbers = #tpu.dot_dimension_numbers<[1], [0], [0], [1], [0, 0, 1, 1], [], []>} : vector<8x32xf32>, vector<32x32xf32>, vector<8x32xf32> -> vector<8x32xf32>
    %268 = arith.addf %267, %234 : vector<8x32xf32>
    %269 = math.tanh %268 : vector<8x32xf32>
    %c0_101 = arith.constant 0 : index
    %c0_102 = arith.constant 0 : index
    %c0_103 = arith.constant 0 : index
    %270 = vector.load %arg28[%c0_101, %c0_102, %c0_103] : memref<8x8x32xf32, #tpu.memory_space<vmem>>, vector<1x8x32xf32>
    %271 = vector.shape_cast %270 : vector<1x8x32xf32> to vector<8x32xf32>
    %272 = vector.shape_cast %269 : vector<8x32xf32> to vector<1x8x32xf32>
    tpu.vector_store %arg28[%c0_101, %c0_102, %c0_103], %272 {strides = array<i32>} : memref<8x8x32xf32, #tpu.memory_space<vmem>>, vector<1x8x32xf32>,
    %cst_104 = arith.constant dense<0.000000e+00> : vector<8x128xf32>
    %273 = tpu.matmul %269, %226, %cst_104 {dimension_numbers = #tpu.dot_dimension_numbers<[1], [0], [0], [1], [0, 0, 1, 1], [], []>} : vector<8x32xf32>, vector<32x128xf32>, vector<8x128xf32> -> vector<8x128xf32>
    %274 = arith.addf %242, %273 : vector<8x128xf32>
    %cst_105 = arith.constant dense<0.000000e+00> : vector<8x128xf32>
    %275 = tpu.matmul %263, %225, %cst_105 {dimension_numbers = #tpu.dot_dimension_numbers<[1], [0], [0], [1], [0, 0, 1, 1], [], []>} : vector<8x32xf32>, vector<32x128xf32>, vector<8x128xf32> -> vector<8x128xf32>
    %276 = arith.addf %274, %275 : vector<8x128xf32>
    %277 = arith.mulf %276, %8 : vector<8x128xf32>
    %278 = arith.negf %277 : vector<8x128xf32>
    %279 = math.exp %278 : vector<8x128xf32>
    %cst_106 = arith.constant 1.000000e+00 : f32
    %280 = vector.broadcast %cst_106 : f32 to vector<8x128xf32>
    %281 = arith.addf %280, %279 : vector<8x128xf32>
    %282 = arith.divf %280, %281 : vector<8x128xf32>
    %cst_107 = arith.constant 2.000000e+00 : f32
    %283 = vector.broadcast %cst_107 : f32 to vector<8x128xf32>
    %284 = arith.mulf %283, %282 : vector<8x128xf32>
    %cst_108 = arith.constant 1.000000e+00 : f32
    %285 = vector.broadcast %cst_108 : f32 to vector<8x128xf32>
    %286 = arith.subf %284, %285 : vector<8x128xf32>
    %287 = arith.select %5, %286, %282 : vector<8x128xi1>, vector<8x128xf32>
    %288 = vector.extract_strided_slice %287 {offsets = [0, 0], sizes = [8, 32], strides = [1, 1]} : vector<8x128xf32> to vector<8x32xf32>
    %289 = vector.extract_strided_slice %287 {offsets = [0, 32], sizes = [8, 32], strides = [1, 1]} : vector<8x128xf32> to vector<8x32xf32>
    %290 = vector.extract_strided_slice %287 {offsets = [0, 64], sizes = [8, 32], strides = [1, 1]} : vector<8x128xf32> to vector<8x32xf32>
    %291 = vector.extract_strided_slice %287 {offsets = [0, 96], sizes = [8, 32], strides = [1, 1]} : vector<8x128xf32> to vector<8x32xf32>
    %292 = arith.mulf %289, %261 : vector<8x32xf32>
    %293 = arith.mulf %288, %290 : vector<8x32xf32>
    %294 = arith.addf %292, %293 : vector<8x32xf32>
    %295 = math.tanh %294 : vector<8x32xf32>
    %296 = arith.mulf %291, %295 : vector<8x32xf32>
    %cst_109 = arith.constant dense<0.000000e+00> : vector<8x32xf32>
    %297 = tpu.matmul %296, %227, %cst_109 {dimension_numbers = #tpu.dot_dimension_numbers<[1], [0], [0], [1], [0, 0, 1, 1], [], []>} : vector<8x32xf32>, vector<32x32xf32>, vector<8x32xf32> -> vector<8x32xf32>
    %298 = arith.addf %297, %231 : vector<8x32xf32>
    %299 = math.tanh %298 : vector<8x32xf32>
    %cst_110 = arith.constant dense<0.000000e+00> : vector<8x32xf32>
    %300 = tpu.matmul %299, %228, %cst_110 {dimension_numbers = #tpu.dot_dimension_numbers<[1], [0], [0], [1], [0, 0, 1, 1], [], []>} : vector<8x32xf32>, vector<32x32xf32>, vector<8x32xf32> -> vector<8x32xf32>
    %301 = arith.addf %300, %234 : vector<8x32xf32>
    %302 = math.tanh %301 : vector<8x32xf32>
    %c1_111 = arith.constant 1 : index
    %c0_112 = arith.constant 0 : index
    %c0_113 = arith.constant 0 : index
    %303 = vector.load %arg28[%c1_111, %c0_112, %c0_113] : memref<8x8x32xf32, #tpu.memory_space<vmem>>, vector<1x8x32xf32>
    %304 = vector.shape_cast %303 : vector<1x8x32xf32> to vector<8x32xf32>
    %305 = vector.shape_cast %302 : vector<8x32xf32> to vector<1x8x32xf32>
    tpu.vector_store %arg28[%c1_111, %c0_112, %c0_113], %305 {strides = array<i32>} : memref<8x8x32xf32, #tpu.memory_space<vmem>>, vector<1x8x32xf32>,
    %cst_114 = arith.constant dense<0.000000e+00> : vector<8x128xf32>
    %306 = tpu.matmul %302, %226, %cst_114 {dimension_numbers = #tpu.dot_dimension_numbers<[1], [0], [0], [1], [0, 0, 1, 1], [], []>} : vector<8x32xf32>, vector<32x128xf32>, vector<8x128xf32> -> vector<8x128xf32>
    %307 = arith.addf %242, %306 : vector<8x128xf32>
    %cst_115 = arith.constant dense<0.000000e+00> : vector<8x128xf32>
    %308 = tpu.matmul %296, %225, %cst_115 {dimension_numbers = #tpu.dot_dimension_numbers<[1], [0], [0], [1], [0, 0, 1, 1], [], []>} : vector<8x32xf32>, vector<32x128xf32>, vector<8x128xf32> -> vector<8x128xf32>
    %309 = arith.addf %307, %308 : vector<8x128xf32>
    %310 = arith.mulf %309, %8 : vector<8x128xf32>
    %311 = arith.negf %310 : vector<8x128xf32>
    %312 = math.exp %311 : vector<8x128xf32>
    %cst_116 = arith.constant 1.000000e+00 : f32
    %313 = vector.broadcast %cst_116 : f32 to vector<8x128xf32>
    %314 = arith.addf %313, %312 : vector<8x128xf32>
    %315 = arith.divf %313, %314 : vector<8x128xf32>
    %cst_117 = arith.constant 2.000000e+00 : f32
    %316 = vector.broadcast %cst_117 : f32 to vector<8x128xf32>
    %317 = arith.mulf %316, %315 : vector<8x128xf32>
    %cst_118 = arith.constant 1.000000e+00 : f32
    %318 = vector.broadcast %cst_118 : f32 to vector<8x128xf32>
    %319 = arith.subf %317, %318 : vector<8x128xf32>
    %320 = arith.select %5, %319, %315 : vector<8x128xi1>, vector<8x128xf32>
    %321 = vector.extract_strided_slice %320 {offsets = [0, 0], sizes = [8, 32], strides = [1, 1]} : vector<8x128xf32> to vector<8x32xf32>
    %322 = vector.extract_strided_slice %320 {offsets = [0, 32], sizes = [8, 32], strides = [1, 1]} : vector<8x128xf32> to vector<8x32xf32>
    %323 = vector.extract_strided_slice %320 {offsets = [0, 64], sizes = [8, 32], strides = [1, 1]} : vector<8x128xf32> to vector<8x32xf32>
    %324 = vector.extract_strided_slice %320 {offsets = [0, 96], sizes = [8, 32], strides = [1, 1]} : vector<8x128xf32> to vector<8x32xf32>
    %325 = arith.mulf %322, %294 : vector<8x32xf32>
    %326 = arith.mulf %321, %323 : vector<8x32xf32>
    %327 = arith.addf %325, %326 : vector<8x32xf32>
    %328 = math.tanh %327 : vector<8x32xf32>
    %329 = arith.mulf %324, %328 : vector<8x32xf32>
    %cst_119 = arith.constant dense<0.000000e+00> : vector<8x32xf32>
    %330 = tpu.matmul %329, %227, %cst_119 {dimension_numbers = #tpu.dot_dimension_numbers<[1], [0], [0], [1], [0, 0, 1, 1], [], []>} : vector<8x32xf32>, vector<32x32xf32>, vector<8x32xf32> -> vector<8x32xf32>
    %331 = arith.addf %330, %231 : vector<8x32xf32>
    %332 = math.tanh %331 : vector<8x32xf32>
    %cst_120 = arith.constant dense<0.000000e+00> : vector<8x32xf32>
    %333 = tpu.matmul %332, %228, %cst_120 {dimension_numbers = #tpu.dot_dimension_numbers<[1], [0], [0], [1], [0, 0, 1, 1], [], []>} : vector<8x32xf32>, vector<32x32xf32>, vector<8x32xf32> -> vector<8x32xf32>
    %334 = arith.addf %333, %234 : vector<8x32xf32>
    %335 = math.tanh %334 : vector<8x32xf32>
    %c2_121 = arith.constant 2 : index
    %c0_122 = arith.constant 0 : index
    %c0_123 = arith.constant 0 : index
    %336 = vector.load %arg28[%c2_121, %c0_122, %c0_123] : memref<8x8x32xf32, #tpu.memory_space<vmem>>, vector<1x8x32xf32>
    %337 = vector.shape_cast %336 : vector<1x8x32xf32> to vector<8x32xf32>
    %338 = vector.shape_cast %335 : vector<8x32xf32> to vector<1x8x32xf32>
    tpu.vector_store %arg28[%c2_121, %c0_122, %c0_123], %338 {strides = array<i32>} : memref<8x8x32xf32, #tpu.memory_space<vmem>>, vector<1x8x32xf32>,
    %cst_124 = arith.constant dense<0.000000e+00> : vector<8x128xf32>
    %339 = tpu.matmul %335, %226, %cst_124 {dimension_numbers = #tpu.dot_dimension_numbers<[1], [0], [0], [1], [0, 0, 1, 1], [], []>} : vector<8x32xf32>, vector<32x128xf32>, vector<8x128xf32> -> vector<8x128xf32>
    %340 = arith.addf %242, %339 : vector<8x128xf32>
    %cst_125 = arith.constant dense<0.000000e+00> : vector<8x128xf32>
    %341 = tpu.matmul %329, %225, %cst_125 {dimension_numbers = #tpu.dot_dimension_numbers<[1], [0], [0], [1], [0, 0, 1, 1], [], []>} : vector<8x32xf32>, vector<32x128xf32>, vector<8x128xf32> -> vector<8x128xf32>
    %342 = arith.addf %340, %341 : vector<8x128xf32>
    %343 = arith.mulf %342, %8 : vector<8x128xf32>
    %344 = arith.negf %343 : vector<8x128xf32>
    %345 = math.exp %344 : vector<8x128xf32>
    %cst_126 = arith.constant 1.000000e+00 : f32
    %346 = vector.broadcast %cst_126 : f32 to vector<8x128xf32>
    %347 = arith.addf %346, %345 : vector<8x128xf32>
    %348 = arith.divf %346, %347 : vector<8x128xf32>
    %cst_127 = arith.constant 2.000000e+00 : f32
    %349 = vector.broadcast %cst_127 : f32 to vector<8x128xf32>
    %350 = arith.mulf %349, %348 : vector<8x128xf32>
    %cst_128 = arith.constant 1.000000e+00 : f32
    %351 = vector.broadcast %cst_128 : f32 to vector<8x128xf32>
    %352 = arith.subf %350, %351 : vector<8x128xf32>
    %353 = arith.select %5, %352, %348 : vector<8x128xi1>, vector<8x128xf32>
    %354 = vector.extract_strided_slice %353 {offsets = [0, 0], sizes = [8, 32], strides = [1, 1]} : vector<8x128xf32> to vector<8x32xf32>
    %355 = vector.extract_strided_slice %353 {offsets = [0, 32], sizes = [8, 32], strides = [1, 1]} : vector<8x128xf32> to vector<8x32xf32>
    %356 = vector.extract_strided_slice %353 {offsets = [0, 64], sizes = [8, 32], strides = [1, 1]} : vector<8x128xf32> to vector<8x32xf32>
    %357 = vector.extract_strided_slice %353 {offsets = [0, 96], sizes = [8, 32], strides = [1, 1]} : vector<8x128xf32> to vector<8x32xf32>
    %358 = arith.mulf %355, %327 : vector<8x32xf32>
    %359 = arith.mulf %354, %356 : vector<8x32xf32>
    %360 = arith.addf %358, %359 : vector<8x32xf32>
    %361 = math.tanh %360 : vector<8x32xf32>
    %362 = arith.mulf %357, %361 : vector<8x32xf32>
    %cst_129 = arith.constant dense<0.000000e+00> : vector<8x32xf32>
    %363 = tpu.matmul %362, %227, %cst_129 {dimension_numbers = #tpu.dot_dimension_numbers<[1], [0], [0], [1], [0, 0, 1, 1], [], []>} : vector<8x32xf32>, vector<32x32xf32>, vector<8x32xf32> -> vector<8x32xf32>
    %364 = arith.addf %363, %231 : vector<8x32xf32>
    %365 = math.tanh %364 : vector<8x32xf32>
    %cst_130 = arith.constant dense<0.000000e+00> : vector<8x32xf32>
    %366 = tpu.matmul %365, %228, %cst_130 {dimension_numbers = #tpu.dot_dimension_numbers<[1], [0], [0], [1], [0, 0, 1, 1], [], []>} : vector<8x32xf32>, vector<32x32xf32>, vector<8x32xf32> -> vector<8x32xf32>
    %367 = arith.addf %366, %234 : vector<8x32xf32>
    %368 = math.tanh %367 : vector<8x32xf32>
    %c3_131 = arith.constant 3 : index
    %c0_132 = arith.constant 0 : index
    %c0_133 = arith.constant 0 : index
    %369 = vector.load %arg28[%c3_131, %c0_132, %c0_133] : memref<8x8x32xf32, #tpu.memory_space<vmem>>, vector<1x8x32xf32>
    %370 = vector.shape_cast %369 : vector<1x8x32xf32> to vector<8x32xf32>
    %371 = vector.shape_cast %368 : vector<8x32xf32> to vector<1x8x32xf32>
    tpu.vector_store %arg28[%c3_131, %c0_132, %c0_133], %371 {strides = array<i32>} : memref<8x8x32xf32, #tpu.memory_space<vmem>>, vector<1x8x32xf32>,
    %cst_134 = arith.constant dense<0.000000e+00> : vector<8x128xf32>
    %372 = tpu.matmul %368, %226, %cst_134 {dimension_numbers = #tpu.dot_dimension_numbers<[1], [0], [0], [1], [0, 0, 1, 1], [], []>} : vector<8x32xf32>, vector<32x128xf32>, vector<8x128xf32> -> vector<8x128xf32>
    %373 = arith.addf %242, %372 : vector<8x128xf32>
    %cst_135 = arith.constant dense<0.000000e+00> : vector<8x128xf32>
    %374 = tpu.matmul %362, %225, %cst_135 {dimension_numbers = #tpu.dot_dimension_numbers<[1], [0], [0], [1], [0, 0, 1, 1], [], []>} : vector<8x32xf32>, vector<32x128xf32>, vector<8x128xf32> -> vector<8x128xf32>
    %375 = arith.addf %373, %374 : vector<8x128xf32>
    %376 = arith.mulf %375, %8 : vector<8x128xf32>
    %377 = arith.negf %376 : vector<8x128xf32>
    %378 = math.exp %377 : vector<8x128xf32>
    %cst_136 = arith.constant 1.000000e+00 : f32
    %379 = vector.broadcast %cst_136 : f32 to vector<8x128xf32>
    %380 = arith.addf %379, %378 : vector<8x128xf32>
    %381 = arith.divf %379, %380 : vector<8x128xf32>
    %cst_137 = arith.constant 2.000000e+00 : f32
    %382 = vector.broadcast %cst_137 : f32 to vector<8x128xf32>
    %383 = arith.mulf %382, %381 : vector<8x128xf32>
    %cst_138 = arith.constant 1.000000e+00 : f32
    %384 = vector.broadcast %cst_138 : f32 to vector<8x128xf32>
    %385 = arith.subf %383, %384 : vector<8x128xf32>
    %386 = arith.select %5, %385, %381 : vector<8x128xi1>, vector<8x128xf32>
    %387 = vector.extract_strided_slice %386 {offsets = [0, 0], sizes = [8, 32], strides = [1, 1]} : vector<8x128xf32> to vector<8x32xf32>
    %388 = vector.extract_strided_slice %386 {offsets = [0, 32], sizes = [8, 32], strides = [1, 1]} : vector<8x128xf32> to vector<8x32xf32>
    %389 = vector.extract_strided_slice %386 {offsets = [0, 64], sizes = [8, 32], strides = [1, 1]} : vector<8x128xf32> to vector<8x32xf32>
    %390 = vector.extract_strided_slice %386 {offsets = [0, 96], sizes = [8, 32], strides = [1, 1]} : vector<8x128xf32> to vector<8x32xf32>
    %391 = arith.mulf %388, %360 : vector<8x32xf32>
    %392 = arith.mulf %387, %389 : vector<8x32xf32>
    %393 = arith.addf %391, %392 : vector<8x32xf32>
    %394 = math.tanh %393 : vector<8x32xf32>
    %395 = arith.mulf %390, %394 : vector<8x32xf32>
    %cst_139 = arith.constant dense<0.000000e+00> : vector<8x32xf32>
    %396 = tpu.matmul %395, %227, %cst_139 {dimension_numbers = #tpu.dot_dimension_numbers<[1], [0], [0], [1], [0, 0, 1, 1], [], []>} : vector<8x32xf32>, vector<32x32xf32>, vector<8x32xf32> -> vector<8x32xf32>
    %397 = arith.addf %396, %231 : vector<8x32xf32>
    %398 = math.tanh %397 : vector<8x32xf32>
    %cst_140 = arith.constant dense<0.000000e+00> : vector<8x32xf32>
    %399 = tpu.matmul %398, %228, %cst_140 {dimension_numbers = #tpu.dot_dimension_numbers<[1], [0], [0], [1], [0, 0, 1, 1], [], []>} : vector<8x32xf32>, vector<32x32xf32>, vector<8x32xf32> -> vector<8x32xf32>
    %400 = arith.addf %399, %234 : vector<8x32xf32>
    %401 = math.tanh %400 : vector<8x32xf32>
    %c4_141 = arith.constant 4 : index
    %c0_142 = arith.constant 0 : index
    %c0_143 = arith.constant 0 : index
    %402 = vector.load %arg28[%c4_141, %c0_142, %c0_143] : memref<8x8x32xf32, #tpu.memory_space<vmem>>, vector<1x8x32xf32>
    %403 = vector.shape_cast %402 : vector<1x8x32xf32> to vector<8x32xf32>
    %404 = vector.shape_cast %401 : vector<8x32xf32> to vector<1x8x32xf32>
    tpu.vector_store %arg28[%c4_141, %c0_142, %c0_143], %404 {strides = array<i32>} : memref<8x8x32xf32, #tpu.memory_space<vmem>>, vector<1x8x32xf32>,
    %cst_144 = arith.constant dense<0.000000e+00> : vector<8x128xf32>
    %405 = tpu.matmul %401, %226, %cst_144 {dimension_numbers = #tpu.dot_dimension_numbers<[1], [0], [0], [1], [0, 0, 1, 1], [], []>} : vector<8x32xf32>, vector<32x128xf32>, vector<8x128xf32> -> vector<8x128xf32>
    %406 = arith.addf %242, %405 : vector<8x128xf32>
    %cst_145 = arith.constant dense<0.000000e+00> : vector<8x128xf32>
    %407 = tpu.matmul %395, %225, %cst_145 {dimension_numbers = #tpu.dot_dimension_numbers<[1], [0], [0], [1], [0, 0, 1, 1], [], []>} : vector<8x32xf32>, vector<32x128xf32>, vector<8x128xf32> -> vector<8x128xf32>
    %408 = arith.addf %406, %407 : vector<8x128xf32>
    %409 = arith.mulf %408, %8 : vector<8x128xf32>
    %410 = arith.negf %409 : vector<8x128xf32>
    %411 = math.exp %410 : vector<8x128xf32>
    %cst_146 = arith.constant 1.000000e+00 : f32
    %412 = vector.broadcast %cst_146 : f32 to vector<8x128xf32>
    %413 = arith.addf %412, %411 : vector<8x128xf32>
    %414 = arith.divf %412, %413 : vector<8x128xf32>
    %cst_147 = arith.constant 2.000000e+00 : f32
    %415 = vector.broadcast %cst_147 : f32 to vector<8x128xf32>
    %416 = arith.mulf %415, %414 : vector<8x128xf32>
    %cst_148 = arith.constant 1.000000e+00 : f32
    %417 = vector.broadcast %cst_148 : f32 to vector<8x128xf32>
    %418 = arith.subf %416, %417 : vector<8x128xf32>
    %419 = arith.select %5, %418, %414 : vector<8x128xi1>, vector<8x128xf32>
    %420 = vector.extract_strided_slice %419 {offsets = [0, 0], sizes = [8, 32], strides = [1, 1]} : vector<8x128xf32> to vector<8x32xf32>
    %421 = vector.extract_strided_slice %419 {offsets = [0, 32], sizes = [8, 32], strides = [1, 1]} : vector<8x128xf32> to vector<8x32xf32>
    %422 = vector.extract_strided_slice %419 {offsets = [0, 64], sizes = [8, 32], strides = [1, 1]} : vector<8x128xf32> to vector<8x32xf32>
    %423 = vector.extract_strided_slice %419 {offsets = [0, 96], sizes = [8, 32], strides = [1, 1]} : vector<8x128xf32> to vector<8x32xf32>
    %424 = arith.mulf %421, %393 : vector<8x32xf32>
    %425 = arith.mulf %420, %422 : vector<8x32xf32>
    %426 = arith.addf %424, %425 : vector<8x32xf32>
    %427 = math.tanh %426 : vector<8x32xf32>
    %428 = arith.mulf %423, %427 : vector<8x32xf32>
    %cst_149 = arith.constant dense<0.000000e+00> : vector<8x32xf32>
    %429 = tpu.matmul %428, %227, %cst_149 {dimension_numbers = #tpu.dot_dimension_numbers<[1], [0], [0], [1], [0, 0, 1, 1], [], []>} : vector<8x32xf32>, vector<32x32xf32>, vector<8x32xf32> -> vector<8x32xf32>
    %430 = arith.addf %429, %231 : vector<8x32xf32>
    %431 = math.tanh %430 : vector<8x32xf32>
    %cst_150 = arith.constant dense<0.000000e+00> : vector<8x32xf32>
    %432 = tpu.matmul %431, %228, %cst_150 {dimension_numbers = #tpu.dot_dimension_numbers<[1], [0], [0], [1], [0, 0, 1, 1], [], []>} : vector<8x32xf32>, vector<32x32xf32>, vector<8x32xf32> -> vector<8x32xf32>
    %433 = arith.addf %432, %234 : vector<8x32xf32>
    %434 = math.tanh %433 : vector<8x32xf32>
    %c5_151 = arith.constant 5 : index
    %c0_152 = arith.constant 0 : index
    %c0_153 = arith.constant 0 : index
    %435 = vector.load %arg28[%c5_151, %c0_152, %c0_153] : memref<8x8x32xf32, #tpu.memory_space<vmem>>, vector<1x8x32xf32>
    %436 = vector.shape_cast %435 : vector<1x8x32xf32> to vector<8x32xf32>
    %437 = vector.shape_cast %434 : vector<8x32xf32> to vector<1x8x32xf32>
    tpu.vector_store %arg28[%c5_151, %c0_152, %c0_153], %437 {strides = array<i32>} : memref<8x8x32xf32, #tpu.memory_space<vmem>>, vector<1x8x32xf32>,
    %cst_154 = arith.constant dense<0.000000e+00> : vector<8x128xf32>
    %438 = tpu.matmul %434, %226, %cst_154 {dimension_numbers = #tpu.dot_dimension_numbers<[1], [0], [0], [1], [0, 0, 1, 1], [], []>} : vector<8x32xf32>, vector<32x128xf32>, vector<8x128xf32> -> vector<8x128xf32>
    %439 = arith.addf %242, %438 : vector<8x128xf32>
    %cst_155 = arith.constant dense<0.000000e+00> : vector<8x128xf32>
    %440 = tpu.matmul %428, %225, %cst_155 {dimension_numbers = #tpu.dot_dimension_numbers<[1], [0], [0], [1], [0, 0, 1, 1], [], []>} : vector<8x32xf32>, vector<32x128xf32>, vector<8x128xf32> -> vector<8x128xf32>
    %441 = arith.addf %439, %440 : vector<8x128xf32>
    %442 = arith.mulf %441, %8 : vector<8x128xf32>
    %443 = arith.negf %442 : vector<8x128xf32>
    %444 = math.exp %443 : vector<8x128xf32>
    %cst_156 = arith.constant 1.000000e+00 : f32
    %445 = vector.broadcast %cst_156 : f32 to vector<8x128xf32>
    %446 = arith.addf %445, %444 : vector<8x128xf32>
    %447 = arith.divf %445, %446 : vector<8x128xf32>
    %cst_157 = arith.constant 2.000000e+00 : f32
    %448 = vector.broadcast %cst_157 : f32 to vector<8x128xf32>
    %449 = arith.mulf %448, %447 : vector<8x128xf32>
    %cst_158 = arith.constant 1.000000e+00 : f32
    %450 = vector.broadcast %cst_158 : f32 to vector<8x128xf32>
    %451 = arith.subf %449, %450 : vector<8x128xf32>
    %452 = arith.select %5, %451, %447 : vector<8x128xi1>, vector<8x128xf32>
    %453 = vector.extract_strided_slice %452 {offsets = [0, 0], sizes = [8, 32], strides = [1, 1]} : vector<8x128xf32> to vector<8x32xf32>
    %454 = vector.extract_strided_slice %452 {offsets = [0, 32], sizes = [8, 32], strides = [1, 1]} : vector<8x128xf32> to vector<8x32xf32>
    %455 = vector.extract_strided_slice %452 {offsets = [0, 64], sizes = [8, 32], strides = [1, 1]} : vector<8x128xf32> to vector<8x32xf32>
    %456 = vector.extract_strided_slice %452 {offsets = [0, 96], sizes = [8, 32], strides = [1, 1]} : vector<8x128xf32> to vector<8x32xf32>
    %457 = arith.mulf %454, %426 : vector<8x32xf32>
    %458 = arith.mulf %453, %455 : vector<8x32xf32>
    %459 = arith.addf %457, %458 : vector<8x32xf32>
    %460 = math.tanh %459 : vector<8x32xf32>
    %461 = arith.mulf %456, %460 : vector<8x32xf32>
    %cst_159 = arith.constant dense<0.000000e+00> : vector<8x32xf32>
    %462 = tpu.matmul %461, %227, %cst_159 {dimension_numbers = #tpu.dot_dimension_numbers<[1], [0], [0], [1], [0, 0, 1, 1], [], []>} : vector<8x32xf32>, vector<32x32xf32>, vector<8x32xf32> -> vector<8x32xf32>
    %463 = arith.addf %462, %231 : vector<8x32xf32>
    %464 = math.tanh %463 : vector<8x32xf32>
    %cst_160 = arith.constant dense<0.000000e+00> : vector<8x32xf32>
    %465 = tpu.matmul %464, %228, %cst_160 {dimension_numbers = #tpu.dot_dimension_numbers<[1], [0], [0], [1], [0, 0, 1, 1], [], []>} : vector<8x32xf32>, vector<32x32xf32>, vector<8x32xf32> -> vector<8x32xf32>
    %466 = arith.addf %465, %234 : vector<8x32xf32>
    %467 = math.tanh %466 : vector<8x32xf32>
    %c6_161 = arith.constant 6 : index
    %c0_162 = arith.constant 0 : index
    %c0_163 = arith.constant 0 : index
    %468 = vector.load %arg28[%c6_161, %c0_162, %c0_163] : memref<8x8x32xf32, #tpu.memory_space<vmem>>, vector<1x8x32xf32>
    %469 = vector.shape_cast %468 : vector<1x8x32xf32> to vector<8x32xf32>
    %470 = vector.shape_cast %467 : vector<8x32xf32> to vector<1x8x32xf32>
    tpu.vector_store %arg28[%c6_161, %c0_162, %c0_163], %470 {strides = array<i32>} : memref<8x8x32xf32, #tpu.memory_space<vmem>>, vector<1x8x32xf32>,
    %cst_164 = arith.constant dense<0.000000e+00> : vector<8x128xf32>
    %471 = tpu.matmul %467, %226, %cst_164 {dimension_numbers = #tpu.dot_dimension_numbers<[1], [0], [0], [1], [0, 0, 1, 1], [], []>} : vector<8x32xf32>, vector<32x128xf32>, vector<8x128xf32> -> vector<8x128xf32>
    %472 = arith.addf %242, %471 : vector<8x128xf32>
    %cst_165 = arith.constant dense<0.000000e+00> : vector<8x128xf32>
    %473 = tpu.matmul %461, %225, %cst_165 {dimension_numbers = #tpu.dot_dimension_numbers<[1], [0], [0], [1], [0, 0, 1, 1], [], []>} : vector<8x32xf32>, vector<32x128xf32>, vector<8x128xf32> -> vector<8x128xf32>
    %474 = arith.addf %472, %473 : vector<8x128xf32>
    %475 = arith.mulf %474, %8 : vector<8x128xf32>
    %476 = arith.negf %475 : vector<8x128xf32>
    %477 = math.exp %476 : vector<8x128xf32>
    %cst_166 = arith.constant 1.000000e+00 : f32
    %478 = vector.broadcast %cst_166 : f32 to vector<8x128xf32>
    %479 = arith.addf %478, %477 : vector<8x128xf32>
    %480 = arith.divf %478, %479 : vector<8x128xf32>
    %cst_167 = arith.constant 2.000000e+00 : f32
    %481 = vector.broadcast %cst_167 : f32 to vector<8x128xf32>
    %482 = arith.mulf %481, %480 : vector<8x128xf32>
    %cst_168 = arith.constant 1.000000e+00 : f32
    %483 = vector.broadcast %cst_168 : f32 to vector<8x128xf32>
    %484 = arith.subf %482, %483 : vector<8x128xf32>
    %485 = arith.select %5, %484, %480 : vector<8x128xi1>, vector<8x128xf32>
    %486 = vector.extract_strided_slice %485 {offsets = [0, 0], sizes = [8, 32], strides = [1, 1]} : vector<8x128xf32> to vector<8x32xf32>
    %487 = vector.extract_strided_slice %485 {offsets = [0, 32], sizes = [8, 32], strides = [1, 1]} : vector<8x128xf32> to vector<8x32xf32>
    %488 = vector.extract_strided_slice %485 {offsets = [0, 64], sizes = [8, 32], strides = [1, 1]} : vector<8x128xf32> to vector<8x32xf32>
    %489 = vector.extract_strided_slice %485 {offsets = [0, 96], sizes = [8, 32], strides = [1, 1]} : vector<8x128xf32> to vector<8x32xf32>
    %490 = arith.mulf %487, %459 : vector<8x32xf32>
    %491 = arith.mulf %486, %488 : vector<8x32xf32>
    %492 = arith.addf %490, %491 : vector<8x32xf32>
    %493 = math.tanh %492 : vector<8x32xf32>
    %494 = arith.mulf %489, %493 : vector<8x32xf32>
    %cst_169 = arith.constant dense<0.000000e+00> : vector<8x32xf32>
    %495 = tpu.matmul %494, %227, %cst_169 {dimension_numbers = #tpu.dot_dimension_numbers<[1], [0], [0], [1], [0, 0, 1, 1], [], []>} : vector<8x32xf32>, vector<32x32xf32>, vector<8x32xf32> -> vector<8x32xf32>
    %496 = arith.addf %495, %231 : vector<8x32xf32>
    %497 = math.tanh %496 : vector<8x32xf32>
    %cst_170 = arith.constant dense<0.000000e+00> : vector<8x32xf32>
    %498 = tpu.matmul %497, %228, %cst_170 {dimension_numbers = #tpu.dot_dimension_numbers<[1], [0], [0], [1], [0, 0, 1, 1], [], []>} : vector<8x32xf32>, vector<32x32xf32>, vector<8x32xf32> -> vector<8x32xf32>
    %499 = arith.addf %498, %234 : vector<8x32xf32>
    %500 = math.tanh %499 : vector<8x32xf32>
    %c7_171 = arith.constant 7 : index
    %c0_172 = arith.constant 0 : index
    %c0_173 = arith.constant 0 : index
    %501 = vector.load %arg28[%c7_171, %c0_172, %c0_173] : memref<8x8x32xf32, #tpu.memory_space<vmem>>, vector<1x8x32xf32>
    %502 = vector.shape_cast %501 : vector<1x8x32xf32> to vector<8x32xf32>
    %503 = vector.shape_cast %500 : vector<8x32xf32> to vector<1x8x32xf32>
    tpu.vector_store %arg28[%c7_171, %c0_172, %c0_173], %503 {strides = array<i32>} : memref<8x8x32xf32, #tpu.memory_space<vmem>>, vector<1x8x32xf32>,
    %c0_174 = arith.constant 0 : index
    %c0_175 = arith.constant 0 : index
    %c0_176 = arith.constant 0 : index
    %504 = vector.load %arg28[%c0_174, %c0_175, %c0_176] : memref<8x8x32xf32, #tpu.memory_space<vmem>>, vector<8x8x32xf32>
    %505 = vector.shape_cast %504 : vector<8x8x32xf32> to vector<64x32xf32>
    %c0_177 = arith.constant 0 : index
    %c0_178 = arith.constant 0 : index
    %506 = vector.load %arg18[%c0_177, %c0_178] : memref<32x8xf32, #tpu.memory_space<vmem>>, vector<32x8xf32>
    %cst_179 = arith.constant dense<0.000000e+00> : vector<64x8xf32>
    %507 = tpu.matmul %505, %506, %cst_179 {dimension_numbers = #tpu.dot_dimension_numbers<[1], [0], [0], [1], [0, 0, 1, 1], [], []>} : vector<64x32xf32>, vector<32x8xf32>, vector<64x8xf32> -> vector<64x8xf32>
    %c0_180 = arith.constant 0 : index
    %c0_181 = arith.constant 0 : index
    %508 = vector.load %arg19[%c0_180, %c0_181] : memref<1x8xf32, #tpu.memory_space<vmem>>, vector<1x8xf32>
    %509 = vector.broadcast %508 : vector<1x8xf32> to vector<64x8xf32>
    %510 = arith.addf %507, %509 : vector<64x8xf32>
    %c0_182 = arith.constant 0 : index
    %c0_183 = arith.constant 0 : index
    %511 = vector.load %arg20[%c0_182, %c0_183] : memref<32x32xf32, #tpu.memory_space<vmem>>, vector<32x32xf32>
    %cst_184 = arith.constant dense<0.000000e+00> : vector<64x32xf32>
    %512 = tpu.matmul %505, %511, %cst_184 {dimension_numbers = #tpu.dot_dimension_numbers<[1], [0], [0], [1], [0, 0, 1, 1], [], []>} : vector<64x32xf32>, vector<32x32xf32>, vector<64x32xf32> -> vector<64x32xf32>
    %c0_185 = arith.constant 0 : index
    %c0_186 = arith.constant 0 : index
    %513 = vector.load %arg21[%c0_185, %c0_186] : memref<1x32xf32, #tpu.memory_space<vmem>>, vector<1x32xf32>
    %514 = vector.broadcast %513 : vector<1x32xf32> to vector<64x32xf32>
    %515 = arith.addf %512, %514 : vector<64x32xf32>
    %516 = math.tanh %515 : vector<64x32xf32>
    %c0_187 = arith.constant 0 : index
    %c0_188 = arith.constant 0 : index
    %517 = vector.load %arg22[%c0_187, %c0_188] : memref<32x8xf32, #tpu.memory_space<vmem>>, vector<32x8xf32>
    %cst_189 = arith.constant dense<0.000000e+00> : vector<64x8xf32>
    %518 = tpu.matmul %516, %517, %cst_189 {dimension_numbers = #tpu.dot_dimension_numbers<[1], [0], [0], [1], [0, 0, 1, 1], [], []>} : vector<64x32xf32>, vector<32x8xf32>, vector<64x8xf32> -> vector<64x8xf32>
    %c0_190 = arith.constant 0 : index
    %c0_191 = arith.constant 0 : index
    %519 = vector.load %arg23[%c0_190, %c0_191] : memref<1x8xf32, #tpu.memory_space<vmem>>, vector<1x8xf32>
    %520 = vector.broadcast %519 : vector<1x8xf32> to vector<64x8xf32>
    %521 = arith.addf %518, %520 : vector<64x8xf32>
    %522 = vector.shape_cast %510 : vector<64x8xf32> to vector<8x8x8xf32>
    %523 = tpu.transpose %522, [0, 2, 1] : vector<8x8x8xf32> -> vector<8x8x8xf32>
    %c0_192 = arith.constant 0 : index
    %c0_193 = arith.constant 0 : index
    %c0_194 = arith.constant 0 : index
    %524 = vector.load %arg24[%c0_192, %c0_193, %c0_194] : memref<8x8x8xf32, #tpu.memory_space<vmem>>, vector<8x8x8xf32>
    tpu.vector_store %arg24[%c0_192, %c0_193, %c0_194], %523 {strides = array<i32>} : memref<8x8x8xf32, #tpu.memory_space<vmem>>, vector<8x8x8xf32>,
    %525 = vector.shape_cast %521 : vector<64x8xf32> to vector<8x8x8xf32>
    %526 = tpu.transpose %525, [0, 2, 1] : vector<8x8x8xf32> -> vector<8x8x8xf32>
    %c0_195 = arith.constant 0 : index
    %c0_196 = arith.constant 0 : index
    %c0_197 = arith.constant 0 : index
    %527 = vector.load %arg26[%c0_195, %c0_196, %c0_197] : memref<8x8x8xf32, #tpu.memory_space<vmem>>, vector<8x8x8xf32>
    tpu.vector_store %arg26[%c0_195, %c0_196, %c0_197], %526 {strides = array<i32>} : memref<8x8x8xf32, #tpu.memory_space<vmem>>, vector<8x8x8xf32>,
    return
  }
  func.func @transform_0(%arg0: i32) -> (i32, i32, i32) {
    %c0_i32 = arith.constant 0 : i32
    %c0_i32_0 = arith.constant 0 : i32
    %c0_i32_1 = arith.constant 0 : i32
    return %c0_i32, %arg0, %c0_i32_0 : i32, i32, i32
  }
  func.func @transform_1(%arg0: i32) -> (i32, i32) {
    %c0_i32 = arith.constant 0 : i32
    %c0_i32_0 = arith.constant 0 : i32
    %c0_i32_1 = arith.constant 0 : i32
    return %c0_i32, %c0_i32_0 : i32, i32
  }
  func.func @transform_2(%arg0: i32) -> (i32, i32) {
    %c0_i32 = arith.constant 0 : i32
    %c0_i32_0 = arith.constant 0 : i32
    %c0_i32_1 = arith.constant 0 : i32
    return %c0_i32, %c0_i32_0 : i32, i32
  }
  func.func @transform_3(%arg0: i32) -> (i32, i32) {
    %c0_i32 = arith.constant 0 : i32
    %c0_i32_0 = arith.constant 0 : i32
    %c0_i32_1 = arith.constant 0 : i32
    return %c0_i32, %c0_i32_0 : i32, i32
  }
  func.func @transform_4(%arg0: i32) -> (i32, i32) {
    %c0_i32 = arith.constant 0 : i32
    %c0_i32_0 = arith.constant 0 : i32
    %c0_i32_1 = arith.constant 0 : i32
    return %c0_i32, %c0_i32_0 : i32, i32
  }
  func.func @transform_5(%arg0: i32) -> (i32, i32) {
    %c0_i32 = arith.constant 0 : i32
    %c0_i32_0 = arith.constant 0 : i32
    %c0_i32_1 = arith.constant 0 : i32
    return %c0_i32, %c0_i32_0 : i32, i32
  }
  func.func @transform_6(%arg0: i32) -> (i32, i32) {
    %c0_i32 = arith.constant 0 : i32
    %c0_i32_0 = arith.constant 0 : i32
    %c0_i32_1 = arith.constant 0 : i32
    return %c0_i32, %c0_i32_0 : i32, i32
  }
  func.func @transform_7(%arg0: i32) -> (i32, i32) {
    %c0_i32 = arith.constant 0 : i32
    %c0_i32_0 = arith.constant 0 : i32
    %c0_i32_1 = arith.constant 0 : i32
    return %c0_i32, %c0_i32_0 : i32, i32
  }
  func.func @transform_8(%arg0: i32) -> (i32, i32) {
    %c0_i32 = arith.constant 0 : i32
    %c0_i32_0 = arith.constant 0 : i32
    %c0_i32_1 = arith.constant 0 : i32
    return %c0_i32, %c0_i32_0 : i32, i32
  }
  func.func @transform_9(%arg0: i32) -> (i32, i32) {
    %c0_i32 = arith.constant 0 : i32
    %c0_i32_0 = arith.constant 0 : i32
    %c0_i32_1 = arith.constant 0 : i32
    return %c0_i32, %c0_i32_0 : i32, i32
  }
  func.func @transform_10(%arg0: i32) -> (i32, i32) {
    %c0_i32 = arith.constant 0 : i32
    %c0_i32_0 = arith.constant 0 : i32
    %c0_i32_1 = arith.constant 0 : i32
    return %c0_i32, %c0_i32_0 : i32, i32
  }
  func.func @transform_11(%arg0: i32) -> (i32, i32) {
    %c0_i32 = arith.constant 0 : i32
    %c0_i32_0 = arith.constant 0 : i32
    %c0_i32_1 = arith.constant 0 : i32
    return %c0_i32, %c0_i32_0 : i32, i32
  }
  func.func @transform_12(%arg0: i32) -> (i32, i32) {
    %c0_i32 = arith.constant 0 : i32
    %c0_i32_0 = arith.constant 0 : i32
    %c0_i32_1 = arith.constant 0 : i32
    return %c0_i32, %c0_i32_0 : i32, i32
  }
  func.func @transform_13(%arg0: i32) -> (i32, i32) {
    %c0_i32 = arith.constant 0 : i32
    %c0_i32_0 = arith.constant 0 : i32
    %c0_i32_1 = arith.constant 0 : i32
    return %c0_i32, %c0_i32_0 : i32, i32
  }
  func.func @transform_14(%arg0: i32) -> (i32, i32) {
    %c0_i32 = arith.constant 0 : i32
    %c0_i32_0 = arith.constant 0 : i32
    %c0_i32_1 = arith.constant 0 : i32
    return %c0_i32, %c0_i32_0 : i32, i32
  }
  func.func @transform_15(%arg0: i32) -> (i32, i32) {
    %c0_i32 = arith.constant 0 : i32
    %c0_i32_0 = arith.constant 0 : i32
    %c0_i32_1 = arith.constant 0 : i32
    return %c0_i32, %c0_i32_0 : i32, i32
  }
  func.func @transform_16(%arg0: i32) -> (i32, i32) {
    %c0_i32 = arith.constant 0 : i32
    %c0_i32_0 = arith.constant 0 : i32
    %c0_i32_1 = arith.constant 0 : i32
    return %c0_i32, %c0_i32_0 : i32, i32
  }
  func.func @transform_17(%arg0: i32) -> (i32, i32) {
    %c0_i32 = arith.constant 0 : i32
    %c0_i32_0 = arith.constant 0 : i32
    %c0_i32_1 = arith.constant 0 : i32
    return %c0_i32, %c0_i32_0 : i32, i32
  }
  func.func @transform_18(%arg0: i32) -> (i32, i32) {
    %c0_i32 = arith.constant 0 : i32
    %c0_i32_0 = arith.constant 0 : i32
    %c0_i32_1 = arith.constant 0 : i32
    return %c0_i32, %c0_i32_0 : i32, i32
  }
  func.func @transform_19(%arg0: i32) -> (i32, i32) {
    %c0_i32 = arith.constant 0 : i32
    %c0_i32_0 = arith.constant 0 : i32
    %c0_i32_1 = arith.constant 0 : i32
    return %c0_i32, %c0_i32_0 : i32, i32
  }
  func.func @transform_20(%arg0: i32) -> (i32, i32) {
    %c0_i32 = arith.constant 0 : i32
    %c0_i32_0 = arith.constant 0 : i32
    %c0_i32_1 = arith.constant 0 : i32
    return %c0_i32, %c0_i32_0 : i32, i32
  }
  func.func @transform_21(%arg0: i32) -> (i32, i32) {
    %c0_i32 = arith.constant 0 : i32
    %c0_i32_0 = arith.constant 0 : i32
    %c0_i32_1 = arith.constant 0 : i32
    return %c0_i32, %c0_i32_0 : i32, i32
  }
  func.func @transform_22(%arg0: i32) -> (i32, i32) {
    %c0_i32 = arith.constant 0 : i32
    %c0_i32_0 = arith.constant 0 : i32
    %c0_i32_1 = arith.constant 0 : i32
    return %c0_i32, %c0_i32_0 : i32, i32
  }
  func.func @transform_23(%arg0: i32) -> (i32, i32, i32) {
    %c0_i32 = arith.constant 0 : i32
    %c0_i32_0 = arith.constant 0 : i32
    %c0_i32_1 = arith.constant 0 : i32
    return %c0_i32, %c0_i32_0, %arg0 : i32, i32, i32
  }
  func.func @transform_24(%arg0: i32) -> (i32, i32) {
    %c0_i32 = arith.constant 0 : i32
    %c0_i32_0 = arith.constant 0 : i32
    return %arg0, %c0_i32 : i32, i32
  }
  func.func @transform_25(%arg0: i32) -> (i32, i32, i32) {
    %c0_i32 = arith.constant 0 : i32
    %c0_i32_0 = arith.constant 0 : i32
    %c0_i32_1 = arith.constant 0 : i32
    return %c0_i32, %c0_i32_0, %arg0 : i32, i32, i32
  }
}

module attributes {stable_mosaic.version = 11 : i64} {
  func.func @_vae_kernel(%arg0: i32, %arg1: memref<8x8x8xf32, #tpu.memory_space<vmem>>, %arg2: memref<8x128xf32, #tpu.memory_space<vmem>>, %arg3: memref<32x128xf32, #tpu.memory_space<vmem>>, %arg4: memref<1x128xf32, #tpu.memory_space<vmem>>, %arg5: memref<32x32xf32, #tpu.memory_space<vmem>>, %arg6: memref<1x32xf32, #tpu.memory_space<vmem>>, %arg7: memref<16x32xf32, #tpu.memory_space<vmem>>, %arg8: memref<1x32xf32, #tpu.memory_space<vmem>>, %arg9: memref<32x128xf32, #tpu.memory_space<vmem>>, %arg10: memref<1x128xf32, #tpu.memory_space<vmem>>, %arg11: memref<32x128xf32, #tpu.memory_space<vmem>>, %arg12: memref<1x128xf32, #tpu.memory_space<vmem>>, %arg13: memref<32x128xf32, #tpu.memory_space<vmem>>, %arg14: memref<32x32xf32, #tpu.memory_space<vmem>>, %arg15: memref<1x32xf32, #tpu.memory_space<vmem>>, %arg16: memref<32x32xf32, #tpu.memory_space<vmem>>, %arg17: memref<1x32xf32, #tpu.memory_space<vmem>>, %arg18: memref<32x8xf32, #tpu.memory_space<vmem>>, %arg19: memref<1x8xf32, #tpu.memory_space<vmem>>, %arg20: memref<32x32xf32, #tpu.memory_space<vmem>>, %arg21: memref<1x32xf32, #tpu.memory_space<vmem>>, %arg22: memref<32x8xf32, #tpu.memory_space<vmem>>, %arg23: memref<1x8xf32, #tpu.memory_space<vmem>>, %arg24: memref<8x8x8xf32, #tpu.memory_space<vmem>>, %arg25: memref<8x32xf32, #tpu.memory_space<vmem>>, %arg26: memref<8x8x8xf32, #tpu.memory_space<vmem>>, %arg27: memref<8x8x128xf32, #tpu.memory_space<vmem>>, %arg28: memref<8x8x32xf32, #tpu.memory_space<vmem>>) attributes {dimension_semantics = [#tpu.dimension_semantics<parallel>], iteration_bounds = array<i64: 1>, scalar_prefetch = 0 : i64, scratch_operands = 2 : i64, tpu.core_type = #tpu.core_type<tc>, window_params = [{transform_indices = @transform_0, window_bounds = array<i64: 8, 8, 8>}, {pipeline_mode = #tpu.pipeline_mode<synchronous>, transform_indices = @transform_1, window_bounds = array<i64: 8, 128>}, {pipeline_mode = #tpu.pipeline_mode<synchronous>, transform_indices = @transform_2, window_bounds = array<i64: 32, 128>}, {pipeline_mode = #tpu.pipeline_mode<synchronous>, transform_indices = @transform_3, window_bounds = array<i64: 1, 128>}, {pipeline_mode = #tpu.pipeline_mode<synchronous>, transform_indices = @transform_4, window_bounds = array<i64: 32, 32>}, {pipeline_mode = #tpu.pipeline_mode<synchronous>, transform_indices = @transform_5, window_bounds = array<i64: 1, 32>}, {pipeline_mode = #tpu.pipeline_mode<synchronous>, transform_indices = @transform_6, window_bounds = array<i64: 16, 32>}, {pipeline_mode = #tpu.pipeline_mode<synchronous>, transform_indices = @transform_7, window_bounds = array<i64: 1, 32>}, {pipeline_mode = #tpu.pipeline_mode<synchronous>, transform_indices = @transform_8, window_bounds = array<i64: 32, 128>}, {pipeline_mode = #tpu.pipeline_mode<synchronous>, transform_indices = @transform_9, window_bounds = array<i64: 1, 128>}, {pipeline_mode = #tpu.pipeline_mode<synchronous>, transform_indices = @transform_10, window_bounds = array<i64: 32, 128>}, {pipeline_mode = #tpu.pipeline_mode<synchronous>, transform_indices = @transform_11, window_bounds = array<i64: 1, 128>}, {pipeline_mode = #tpu.pipeline_mode<synchronous>, transform_indices = @transform_12, window_bounds = array<i64: 32, 128>}, {pipeline_mode = #tpu.pipeline_mode<synchronous>, transform_indices = @transform_13, window_bounds = array<i64: 32, 32>}, {pipeline_mode = #tpu.pipeline_mode<synchronous>, transform_indices = @transform_14, window_bounds = array<i64: 1, 32>}, {pipeline_mode = #tpu.pipeline_mode<synchronous>, transform_indices = @transform_15, window_bounds = array<i64: 32, 32>}, {pipeline_mode = #tpu.pipeline_mode<synchronous>, transform_indices = @transform_16, window_bounds = array<i64: 1, 32>}, {pipeline_mode = #tpu.pipeline_mode<synchronous>, transform_indices = @transform_17, window_bounds = array<i64: 32, 8>}, {pipeline_mode = #tpu.pipeline_mode<synchronous>, transform_indices = @transform_18, window_bounds = array<i64: 1, 8>}, {pipeline_mode = #tpu.pipeline_mode<synchronous>, transform_indices = @transform_19, window_bounds = array<i64: 32, 32>}, {pipeline_mode = #tpu.pipeline_mode<synchronous>, transform_indices = @transform_20, window_bounds = array<i64: 1, 32>}, {pipeline_mode = #tpu.pipeline_mode<synchronous>, transform_indices = @transform_21, window_bounds = array<i64: 32, 8>}, {pipeline_mode = #tpu.pipeline_mode<synchronous>, transform_indices = @transform_22, window_bounds = array<i64: 1, 8>}, {transform_indices = @transform_23, window_bounds = array<i64: 8, 8, 8>}, {transform_indices = @transform_24, window_bounds = array<i64: 8, 32>}, {transform_indices = @transform_25, window_bounds = array<i64: 8, 8, 8>}]} {
    %0 = tpu.iota {dimensions = array<i32: 1>} : vector<8x128xi32>
    %c64_i32 = arith.constant 64 : i32
    %1 = vector.broadcast %c64_i32 : i32 to vector<8x128xi32>
    %2 = arith.cmpi sge, %0, %1 : vector<8x128xi32>
    %c96_i32 = arith.constant 96 : i32
    %3 = vector.broadcast %c96_i32 : i32 to vector<8x128xi32>
    %4 = arith.cmpi slt, %0, %3 : vector<8x128xi32>
    %5 = arith.andi %2, %4 : vector<8x128xi1>
    %cst = arith.constant 2.000000e+00 : f32
    %cst_0 = arith.constant 1.000000e+00 : f32
    %6 = vector.broadcast %cst : f32 to vector<8x128xf32>
    %7 = vector.broadcast %cst_0 : f32 to vector<8x128xf32>
    %8 = arith.select %5, %6, %7 : vector<8x128xi1>, vector<8x128xf32>
    %c0 = arith.constant 0 : index
    %c0_1 = arith.constant 0 : index
    %c0_2 = arith.constant 0 : index
    %9 = vector.load %arg1[%c0, %c0_1, %c0_2] : memref<8x8x8xf32, #tpu.memory_space<vmem>>, vector<8x8x8xf32>
    %10 = vector.shape_cast %9 : vector<8x8x8xf32> to vector<64x8xf32>
    %c0_3 = arith.constant 0 : index
    %c0_4 = arith.constant 0 : index
    %11 = vector.load %arg2[%c0_3, %c0_4] : memref<8x128xf32, #tpu.memory_space<vmem>>, vector<8x128xf32>
    %cst_5 = arith.constant dense<0.000000e+00> : vector<64x128xf32>
    %12 = tpu.matmul %10, %11, %cst_5 {dimension_numbers = #tpu.dot_dimension_numbers<[1], [0], [0], [1], [0, 0, 1, 1], [], []>} : vector<64x8xf32>, vector<8x128xf32>, vector<64x128xf32> -> vector<64x128xf32>
    %c0_6 = arith.constant 0 : index
    %c0_7 = arith.constant 0 : index
    %13 = vector.load %arg4[%c0_6, %c0_7] : memref<1x128xf32, #tpu.memory_space<vmem>>, vector<1x128xf32>
    %14 = vector.broadcast %13 : vector<1x128xf32> to vector<64x128xf32>
    %15 = arith.addf %12, %14 : vector<64x128xf32>
    %16 = vector.shape_cast %15 : vector<64x128xf32> to vector<8x8x128xf32>
    %c0_8 = arith.constant 0 : index
    %c0_9 = arith.constant 0 : index
    %c0_10 = arith.constant 0 : index
    %17 = vector.load %arg27[%c0_8, %c0_9, %c0_10] : memref<8x8x128xf32, #tpu.memory_space<vmem>>, vector<8x8x128xf32>
    tpu.vector_store %arg27[%c0_8, %c0_9, %c0_10], %16 {strides = array<i32>} : memref<8x8x128xf32, #tpu.memory_space<vmem>>, vector<8x8x128xf32>,
    %c0_11 = arith.constant 0 : index
    %c0_12 = arith.constant 0 : index
    %18 = vector.load %arg3[%c0_11, %c0_12] : memref<32x128xf32, #tpu.memory_space<vmem>>, vector<32x128xf32>
    %cst_13 = arith.constant 0.000000e+00 : f32
    %19 = vector.broadcast %cst_13 : f32 to vector<8x32xf32>
    %cst_14 = arith.constant 0.000000e+00 : f32
    %20 = vector.broadcast %cst_14 : f32 to vector<8x32xf32>
    %c0_15 = arith.constant 0 : index
    %c0_16 = arith.constant 0 : index
    %c0_17 = arith.constant 0 : index
    %21 = vector.load %arg27[%c0_15, %c0_16, %c0_17] : memref<8x8x128xf32, #tpu.memory_space<vmem>>, vector<1x8x128xf32>
    %22 = vector.shape_cast %21 : vector<1x8x128xf32> to vector<8x128xf32>
    %cst_18 = arith.constant dense<0.000000e+00> : vector<8x128xf32>
    %23 = tpu.matmul %19, %18, %cst_18 {dimension_numbers = #tpu.dot_dimension_numbers<[1], [0], [0], [1], [0, 0, 1, 1], [], []>} : vector<8x32xf32>, vector<32x128xf32>, vector<8x128xf32> -> vector<8x128xf32>
    %24 = arith.addf %22, %23 : vector<8x128xf32>
    %25 = arith.mulf %24, %8 : vector<8x128xf32>
    %26 = arith.negf %25 : vector<8x128xf32>
    %27 = math.exp %26 : vector<8x128xf32>
    %cst_19 = arith.constant 1.000000e+00 : f32
    %28 = vector.broadcast %cst_19 : f32 to vector<8x128xf32>
    %29 = arith.addf %28, %27 : vector<8x128xf32>
    %30 = arith.divf %28, %29 : vector<8x128xf32>
    %cst_20 = arith.constant 2.000000e+00 : f32
    %31 = vector.broadcast %cst_20 : f32 to vector<8x128xf32>
    %32 = arith.mulf %31, %30 : vector<8x128xf32>
    %cst_21 = arith.constant 1.000000e+00 : f32
    %33 = vector.broadcast %cst_21 : f32 to vector<8x128xf32>
    %34 = arith.subf %32, %33 : vector<8x128xf32>
    %35 = arith.select %5, %34, %30 : vector<8x128xi1>, vector<8x128xf32>
    %36 = vector.extract_strided_slice %35 {offsets = [0, 0], sizes = [8, 32], strides = [1, 1]} : vector<8x128xf32> to vector<8x32xf32>
    %37 = vector.extract_strided_slice %35 {offsets = [0, 32], sizes = [8, 32], strides = [1, 1]} : vector<8x128xf32> to vector<8x32xf32>
    %38 = vector.extract_strided_slice %35 {offsets = [0, 64], sizes = [8, 32], strides = [1, 1]} : vector<8x128xf32> to vector<8x32xf32>
    %39 = vector.extract_strided_slice %35 {offsets = [0, 96], sizes = [8, 32], strides = [1, 1]} : vector<8x128xf32> to vector<8x32xf32>
    %40 = arith.mulf %37, %20 : vector<8x32xf32>
    %41 = arith.mulf %36, %38 : vector<8x32xf32>
    %42 = arith.addf %40, %41 : vector<8x32xf32>
    %43 = math.tanh %42 : vector<8x32xf32>
    %44 = arith.mulf %39, %43 : vector<8x32xf32>
    %c1 = arith.constant 1 : index
    %c0_22 = arith.constant 0 : index
    %c0_23 = arith.constant 0 : index
    %45 = vector.load %arg27[%c1, %c0_22, %c0_23] : memref<8x8x128xf32, #tpu.memory_space<vmem>>, vector<1x8x128xf32>
    %46 = vector.shape_cast %45 : vector<1x8x128xf32> to vector<8x128xf32>
    %cst_24 = arith.constant dense<0.000000e+00> : vector<8x128xf32>
    %47 = tpu.matmul %44, %18, %cst_24 {dimension_numbers = #tpu.dot_dimension_numbers<[1], [0], [0], [1], [0, 0, 1, 1], [], []>} : vector<8x32xf32>, vector<32x128xf32>, vector<8x128xf32> -> vector<8x128xf32>
    %48 = arith.addf %46, %47 : vector<8x128xf32>
    %49 = arith.mulf %48, %8 : vector<8x128xf32>
    %50 = arith.negf %49 : vector<8x128xf32>
    %51 = math.exp %50 : vector<8x128xf32>
    %cst_25 = arith.constant 1.000000e+00 : f32
    %52 = vector.broadcast %cst_25 : f32 to vector<8x128xf32>
    %53 = arith.addf %52, %51 : vector<8x128xf32>
    %54 = arith.divf %52, %53 : vector<8x128xf32>
    %cst_26 = arith.constant 2.000000e+00 : f32
    %55 = vector.broadcast %cst_26 : f32 to vector<8x128xf32>
    %56 = arith.mulf %55, %54 : vector<8x128xf32>
    %cst_27 = arith.constant 1.000000e+00 : f32
    %57 = vector.broadcast %cst_27 : f32 to vector<8x128xf32>
    %58 = arith.subf %56, %57 : vector<8x128xf32>
    %59 = arith.select %5, %58, %54 : vector<8x128xi1>, vector<8x128xf32>
    %60 = vector.extract_strided_slice %59 {offsets = [0, 0], sizes = [8, 32], strides = [1, 1]} : vector<8x128xf32> to vector<8x32xf32>
    %61 = vector.extract_strided_slice %59 {offsets = [0, 32], sizes = [8, 32], strides = [1, 1]} : vector<8x128xf32> to vector<8x32xf32>
    %62 = vector.extract_strided_slice %59 {offsets = [0, 64], sizes = [8, 32], strides = [1, 1]} : vector<8x128xf32> to vector<8x32xf32>
    %63 = vector.extract_strided_slice %59 {offsets = [0, 96], sizes = [8, 32], strides = [1, 1]} : vector<8x128xf32> to vector<8x32xf32>
    %64 = arith.mulf %61, %42 : vector<8x32xf32>
    %65 = arith.mulf %60, %62 : vector<8x32xf32>
    %66 = arith.addf %64, %65 : vector<8x32xf32>
    %67 = math.tanh %66 : vector<8x32xf32>
    %68 = arith.mulf %63, %67 : vector<8x32xf32>
    %c2 = arith.constant 2 : index
    %c0_28 = arith.constant 0 : index
    %c0_29 = arith.constant 0 : index
    %69 = vector.load %arg27[%c2, %c0_28, %c0_29] : memref<8x8x128xf32, #tpu.memory_space<vmem>>, vector<1x8x128xf32>
    %70 = vector.shape_cast %69 : vector<1x8x128xf32> to vector<8x128xf32>
    %cst_30 = arith.constant dense<0.000000e+00> : vector<8x128xf32>
    %71 = tpu.matmul %68, %18, %cst_30 {dimension_numbers = #tpu.dot_dimension_numbers<[1], [0], [0], [1], [0, 0, 1, 1], [], []>} : vector<8x32xf32>, vector<32x128xf32>, vector<8x128xf32> -> vector<8x128xf32>
    %72 = arith.addf %70, %71 : vector<8x128xf32>
    %73 = arith.mulf %72, %8 : vector<8x128xf32>
    %74 = arith.negf %73 : vector<8x128xf32>
    %75 = math.exp %74 : vector<8x128xf32>
    %cst_31 = arith.constant 1.000000e+00 : f32
    %76 = vector.broadcast %cst_31 : f32 to vector<8x128xf32>
    %77 = arith.addf %76, %75 : vector<8x128xf32>
    %78 = arith.divf %76, %77 : vector<8x128xf32>
    %cst_32 = arith.constant 2.000000e+00 : f32
    %79 = vector.broadcast %cst_32 : f32 to vector<8x128xf32>
    %80 = arith.mulf %79, %78 : vector<8x128xf32>
    %cst_33 = arith.constant 1.000000e+00 : f32
    %81 = vector.broadcast %cst_33 : f32 to vector<8x128xf32>
    %82 = arith.subf %80, %81 : vector<8x128xf32>
    %83 = arith.select %5, %82, %78 : vector<8x128xi1>, vector<8x128xf32>
    %84 = vector.extract_strided_slice %83 {offsets = [0, 0], sizes = [8, 32], strides = [1, 1]} : vector<8x128xf32> to vector<8x32xf32>
    %85 = vector.extract_strided_slice %83 {offsets = [0, 32], sizes = [8, 32], strides = [1, 1]} : vector<8x128xf32> to vector<8x32xf32>
    %86 = vector.extract_strided_slice %83 {offsets = [0, 64], sizes = [8, 32], strides = [1, 1]} : vector<8x128xf32> to vector<8x32xf32>
    %87 = vector.extract_strided_slice %83 {offsets = [0, 96], sizes = [8, 32], strides = [1, 1]} : vector<8x128xf32> to vector<8x32xf32>
    %88 = arith.mulf %85, %66 : vector<8x32xf32>
    %89 = arith.mulf %84, %86 : vector<8x32xf32>
    %90 = arith.addf %88, %89 : vector<8x32xf32>
    %91 = math.tanh %90 : vector<8x32xf32>
    %92 = arith.mulf %87, %91 : vector<8x32xf32>
    %c3 = arith.constant 3 : index
    %c0_34 = arith.constant 0 : index
    %c0_35 = arith.constant 0 : index
    %93 = vector.load %arg27[%c3, %c0_34, %c0_35] : memref<8x8x128xf32, #tpu.memory_space<vmem>>, vector<1x8x128xf32>
    %94 = vector.shape_cast %93 : vector<1x8x128xf32> to vector<8x128xf32>
    %cst_36 = arith.constant dense<0.000000e+00> : vector<8x128xf32>
    %95 = tpu.matmul %92, %18, %cst_36 {dimension_numbers = #tpu.dot_dimension_numbers<[1], [0], [0], [1], [0, 0, 1, 1], [], []>} : vector<8x32xf32>, vector<32x128xf32>, vector<8x128xf32> -> vector<8x128xf32>
    %96 = arith.addf %94, %95 : vector<8x128xf32>
    %97 = arith.mulf %96, %8 : vector<8x128xf32>
    %98 = arith.negf %97 : vector<8x128xf32>
    %99 = math.exp %98 : vector<8x128xf32>
    %cst_37 = arith.constant 1.000000e+00 : f32
    %100 = vector.broadcast %cst_37 : f32 to vector<8x128xf32>
    %101 = arith.addf %100, %99 : vector<8x128xf32>
    %102 = arith.divf %100, %101 : vector<8x128xf32>
    %cst_38 = arith.constant 2.000000e+00 : f32
    %103 = vector.broadcast %cst_38 : f32 to vector<8x128xf32>
    %104 = arith.mulf %103, %102 : vector<8x128xf32>
    %cst_39 = arith.constant 1.000000e+00 : f32
    %105 = vector.broadcast %cst_39 : f32 to vector<8x128xf32>
    %106 = arith.subf %104, %105 : vector<8x128xf32>
    %107 = arith.select %5, %106, %102 : vector<8x128xi1>, vector<8x128xf32>
    %108 = vector.extract_strided_slice %107 {offsets = [0, 0], sizes = [8, 32], strides = [1, 1]} : vector<8x128xf32> to vector<8x32xf32>
    %109 = vector.extract_strided_slice %107 {offsets = [0, 32], sizes = [8, 32], strides = [1, 1]} : vector<8x128xf32> to vector<8x32xf32>
    %110 = vector.extract_strided_slice %107 {offsets = [0, 64], sizes = [8, 32], strides = [1, 1]} : vector<8x128xf32> to vector<8x32xf32>
    %111 = vector.extract_strided_slice %107 {offsets = [0, 96], sizes = [8, 32], strides = [1, 1]} : vector<8x128xf32> to vector<8x32xf32>
    %112 = arith.mulf %109, %90 : vector<8x32xf32>
    %113 = arith.mulf %108, %110 : vector<8x32xf32>
    %114 = arith.addf %112, %113 : vector<8x32xf32>
    %115 = math.tanh %114 : vector<8x32xf32>
    %116 = arith.mulf %111, %115 : vector<8x32xf32>
    %c4 = arith.constant 4 : index
    %c0_40 = arith.constant 0 : index
    %c0_41 = arith.constant 0 : index
    %117 = vector.load %arg27[%c4, %c0_40, %c0_41] : memref<8x8x128xf32, #tpu.memory_space<vmem>>, vector<1x8x128xf32>
    %118 = vector.shape_cast %117 : vector<1x8x128xf32> to vector<8x128xf32>
    %cst_42 = arith.constant dense<0.000000e+00> : vector<8x128xf32>
    %119 = tpu.matmul %116, %18, %cst_42 {dimension_numbers = #tpu.dot_dimension_numbers<[1], [0], [0], [1], [0, 0, 1, 1], [], []>} : vector<8x32xf32>, vector<32x128xf32>, vector<8x128xf32> -> vector<8x128xf32>
    %120 = arith.addf %118, %119 : vector<8x128xf32>
    %121 = arith.mulf %120, %8 : vector<8x128xf32>
    %122 = arith.negf %121 : vector<8x128xf32>
    %123 = math.exp %122 : vector<8x128xf32>
    %cst_43 = arith.constant 1.000000e+00 : f32
    %124 = vector.broadcast %cst_43 : f32 to vector<8x128xf32>
    %125 = arith.addf %124, %123 : vector<8x128xf32>
    %126 = arith.divf %124, %125 : vector<8x128xf32>
    %cst_44 = arith.constant 2.000000e+00 : f32
    %127 = vector.broadcast %cst_44 : f32 to vector<8x128xf32>
    %128 = arith.mulf %127, %126 : vector<8x128xf32>
    %cst_45 = arith.constant 1.000000e+00 : f32
    %129 = vector.broadcast %cst_45 : f32 to vector<8x128xf32>
    %130 = arith.subf %128, %129 : vector<8x128xf32>
    %131 = arith.select %5, %130, %126 : vector<8x128xi1>, vector<8x128xf32>
    %132 = vector.extract_strided_slice %131 {offsets = [0, 0], sizes = [8, 32], strides = [1, 1]} : vector<8x128xf32> to vector<8x32xf32>
    %133 = vector.extract_strided_slice %131 {offsets = [0, 32], sizes = [8, 32], strides = [1, 1]} : vector<8x128xf32> to vector<8x32xf32>
    %134 = vector.extract_strided_slice %131 {offsets = [0, 64], sizes = [8, 32], strides = [1, 1]} : vector<8x128xf32> to vector<8x32xf32>
    %135 = vector.extract_strided_slice %131 {offsets = [0, 96], sizes = [8, 32], strides = [1, 1]} : vector<8x128xf32> to vector<8x32xf32>
    %136 = arith.mulf %133, %114 : vector<8x32xf32>
    %137 = arith.mulf %132, %134 : vector<8x32xf32>
    %138 = arith.addf %136, %137 : vector<8x32xf32>
    %139 = math.tanh %138 : vector<8x32xf32>
    %140 = arith.mulf %135, %139 : vector<8x32xf32>
    %c5 = arith.constant 5 : index
    %c0_46 = arith.constant 0 : index
    %c0_47 = arith.constant 0 : index
    %141 = vector.load %arg27[%c5, %c0_46, %c0_47] : memref<8x8x128xf32, #tpu.memory_space<vmem>>, vector<1x8x128xf32>
    %142 = vector.shape_cast %141 : vector<1x8x128xf32> to vector<8x128xf32>
    %cst_48 = arith.constant dense<0.000000e+00> : vector<8x128xf32>
    %143 = tpu.matmul %140, %18, %cst_48 {dimension_numbers = #tpu.dot_dimension_numbers<[1], [0], [0], [1], [0, 0, 1, 1], [], []>} : vector<8x32xf32>, vector<32x128xf32>, vector<8x128xf32> -> vector<8x128xf32>
    %144 = arith.addf %142, %143 : vector<8x128xf32>
    %145 = arith.mulf %144, %8 : vector<8x128xf32>
    %146 = arith.negf %145 : vector<8x128xf32>
    %147 = math.exp %146 : vector<8x128xf32>
    %cst_49 = arith.constant 1.000000e+00 : f32
    %148 = vector.broadcast %cst_49 : f32 to vector<8x128xf32>
    %149 = arith.addf %148, %147 : vector<8x128xf32>
    %150 = arith.divf %148, %149 : vector<8x128xf32>
    %cst_50 = arith.constant 2.000000e+00 : f32
    %151 = vector.broadcast %cst_50 : f32 to vector<8x128xf32>
    %152 = arith.mulf %151, %150 : vector<8x128xf32>
    %cst_51 = arith.constant 1.000000e+00 : f32
    %153 = vector.broadcast %cst_51 : f32 to vector<8x128xf32>
    %154 = arith.subf %152, %153 : vector<8x128xf32>
    %155 = arith.select %5, %154, %150 : vector<8x128xi1>, vector<8x128xf32>
    %156 = vector.extract_strided_slice %155 {offsets = [0, 0], sizes = [8, 32], strides = [1, 1]} : vector<8x128xf32> to vector<8x32xf32>
    %157 = vector.extract_strided_slice %155 {offsets = [0, 32], sizes = [8, 32], strides = [1, 1]} : vector<8x128xf32> to vector<8x32xf32>
    %158 = vector.extract_strided_slice %155 {offsets = [0, 64], sizes = [8, 32], strides = [1, 1]} : vector<8x128xf32> to vector<8x32xf32>
    %159 = vector.extract_strided_slice %155 {offsets = [0, 96], sizes = [8, 32], strides = [1, 1]} : vector<8x128xf32> to vector<8x32xf32>
    %160 = arith.mulf %157, %138 : vector<8x32xf32>
    %161 = arith.mulf %156, %158 : vector<8x32xf32>
    %162 = arith.addf %160, %161 : vector<8x32xf32>
    %163 = math.tanh %162 : vector<8x32xf32>
    %164 = arith.mulf %159, %163 : vector<8x32xf32>
    %c6 = arith.constant 6 : index
    %c0_52 = arith.constant 0 : index
    %c0_53 = arith.constant 0 : index
    %165 = vector.load %arg27[%c6, %c0_52, %c0_53] : memref<8x8x128xf32, #tpu.memory_space<vmem>>, vector<1x8x128xf32>
    %166 = vector.shape_cast %165 : vector<1x8x128xf32> to vector<8x128xf32>
    %cst_54 = arith.constant dense<0.000000e+00> : vector<8x128xf32>
    %167 = tpu.matmul %164, %18, %cst_54 {dimension_numbers = #tpu.dot_dimension_numbers<[1], [0], [0], [1], [0, 0, 1, 1], [], []>} : vector<8x32xf32>, vector<32x128xf32>, vector<8x128xf32> -> vector<8x128xf32>
    %168 = arith.addf %166, %167 : vector<8x128xf32>
    %169 = arith.mulf %168, %8 : vector<8x128xf32>
    %170 = arith.negf %169 : vector<8x128xf32>
    %171 = math.exp %170 : vector<8x128xf32>
    %cst_55 = arith.constant 1.000000e+00 : f32
    %172 = vector.broadcast %cst_55 : f32 to vector<8x128xf32>
    %173 = arith.addf %172, %171 : vector<8x128xf32>
    %174 = arith.divf %172, %173 : vector<8x128xf32>
    %cst_56 = arith.constant 2.000000e+00 : f32
    %175 = vector.broadcast %cst_56 : f32 to vector<8x128xf32>
    %176 = arith.mulf %175, %174 : vector<8x128xf32>
    %cst_57 = arith.constant 1.000000e+00 : f32
    %177 = vector.broadcast %cst_57 : f32 to vector<8x128xf32>
    %178 = arith.subf %176, %177 : vector<8x128xf32>
    %179 = arith.select %5, %178, %174 : vector<8x128xi1>, vector<8x128xf32>
    %180 = vector.extract_strided_slice %179 {offsets = [0, 0], sizes = [8, 32], strides = [1, 1]} : vector<8x128xf32> to vector<8x32xf32>
    %181 = vector.extract_strided_slice %179 {offsets = [0, 32], sizes = [8, 32], strides = [1, 1]} : vector<8x128xf32> to vector<8x32xf32>
    %182 = vector.extract_strided_slice %179 {offsets = [0, 64], sizes = [8, 32], strides = [1, 1]} : vector<8x128xf32> to vector<8x32xf32>
    %183 = vector.extract_strided_slice %179 {offsets = [0, 96], sizes = [8, 32], strides = [1, 1]} : vector<8x128xf32> to vector<8x32xf32>
    %184 = arith.mulf %181, %162 : vector<8x32xf32>
    %185 = arith.mulf %180, %182 : vector<8x32xf32>
    %186 = arith.addf %184, %185 : vector<8x32xf32>
    %187 = math.tanh %186 : vector<8x32xf32>
    %188 = arith.mulf %183, %187 : vector<8x32xf32>
    %c7 = arith.constant 7 : index
    %c0_58 = arith.constant 0 : index
    %c0_59 = arith.constant 0 : index
    %189 = vector.load %arg27[%c7, %c0_58, %c0_59] : memref<8x8x128xf32, #tpu.memory_space<vmem>>, vector<1x8x128xf32>
    %190 = vector.shape_cast %189 : vector<1x8x128xf32> to vector<8x128xf32>
    %cst_60 = arith.constant dense<0.000000e+00> : vector<8x128xf32>
    %191 = tpu.matmul %188, %18, %cst_60 {dimension_numbers = #tpu.dot_dimension_numbers<[1], [0], [0], [1], [0, 0, 1, 1], [], []>} : vector<8x32xf32>, vector<32x128xf32>, vector<8x128xf32> -> vector<8x128xf32>
    %192 = arith.addf %190, %191 : vector<8x128xf32>
    %193 = arith.mulf %192, %8 : vector<8x128xf32>
    %194 = arith.negf %193 : vector<8x128xf32>
    %195 = math.exp %194 : vector<8x128xf32>
    %cst_61 = arith.constant 1.000000e+00 : f32
    %196 = vector.broadcast %cst_61 : f32 to vector<8x128xf32>
    %197 = arith.addf %196, %195 : vector<8x128xf32>
    %198 = arith.divf %196, %197 : vector<8x128xf32>
    %cst_62 = arith.constant 2.000000e+00 : f32
    %199 = vector.broadcast %cst_62 : f32 to vector<8x128xf32>
    %200 = arith.mulf %199, %198 : vector<8x128xf32>
    %cst_63 = arith.constant 1.000000e+00 : f32
    %201 = vector.broadcast %cst_63 : f32 to vector<8x128xf32>
    %202 = arith.subf %200, %201 : vector<8x128xf32>
    %203 = arith.select %5, %202, %198 : vector<8x128xi1>, vector<8x128xf32>
    %204 = vector.extract_strided_slice %203 {offsets = [0, 0], sizes = [8, 32], strides = [1, 1]} : vector<8x128xf32> to vector<8x32xf32>
    %205 = vector.extract_strided_slice %203 {offsets = [0, 32], sizes = [8, 32], strides = [1, 1]} : vector<8x128xf32> to vector<8x32xf32>
    %206 = vector.extract_strided_slice %203 {offsets = [0, 64], sizes = [8, 32], strides = [1, 1]} : vector<8x128xf32> to vector<8x32xf32>
    %207 = vector.extract_strided_slice %203 {offsets = [0, 96], sizes = [8, 32], strides = [1, 1]} : vector<8x128xf32> to vector<8x32xf32>
    %208 = arith.mulf %205, %186 : vector<8x32xf32>
    %209 = arith.mulf %204, %206 : vector<8x32xf32>
    %210 = arith.addf %208, %209 : vector<8x32xf32>
    %211 = math.tanh %210 : vector<8x32xf32>
    %212 = arith.mulf %207, %211 : vector<8x32xf32>
    %c0_64 = arith.constant 0 : index
    %c0_65 = arith.constant 0 : index
    %213 = vector.load %arg5[%c0_64, %c0_65] : memref<32x32xf32, #tpu.memory_space<vmem>>, vector<32x32xf32>
    %cst_66 = arith.constant dense<0.000000e+00> : vector<8x32xf32>
    %214 = tpu.matmul %212, %213, %cst_66 {dimension_numbers = #tpu.dot_dimension_numbers<[1], [0], [0], [1], [0, 0, 1, 1], [], []>} : vector<8x32xf32>, vector<32x32xf32>, vector<8x32xf32> -> vector<8x32xf32>
    %c0_67 = arith.constant 0 : index
    %c0_68 = arith.constant 0 : index
    %215 = vector.load %arg6[%c0_67, %c0_68] : memref<1x32xf32, #tpu.memory_space<vmem>>, vector<1x32xf32>
    %216 = vector.broadcast %215 : vector<1x32xf32> to vector<8x32xf32>
    %217 = arith.addf %214, %216 : vector<8x32xf32>
    %c0_69 = arith.constant 0 : index
    %c0_70 = arith.constant 0 : index
    %218 = vector.load %arg25[%c0_69, %c0_70] : memref<8x32xf32, #tpu.memory_space<vmem>>, vector<8x32xf32>
    tpu.vector_store %arg25[%c0_69, %c0_70], %217 {strides = array<i32>} : memref<8x32xf32, #tpu.memory_space<vmem>>, vector<8x32xf32>,
    %219 = vector.extract_strided_slice %217 {offsets = [0, 0], sizes = [8, 16], strides = [1, 1]} : vector<8x32xf32> to vector<8x16xf32>
    %c0_71 = arith.constant 0 : index
    %c0_72 = arith.constant 0 : index
    %220 = vector.load %arg7[%c0_71, %c0_72] : memref<16x32xf32, #tpu.memory_space<vmem>>, vector<16x32xf32>
    %cst_73 = arith.constant dense<0.000000e+00> : vector<8x32xf32>
    %221 = tpu.matmul %219, %220, %cst_73 {dimension_numbers = #tpu.dot_dimension_numbers<[1], [0], [0], [1], [0, 0, 1, 1], [], []>} : vector<8x16xf32>, vector<16x32xf32>, vector<8x32xf32> -> vector<8x32xf32>
    %c0_74 = arith.constant 0 : index
    %c0_75 = arith.constant 0 : index
    %222 = vector.load %arg8[%c0_74, %c0_75] : memref<1x32xf32, #tpu.memory_space<vmem>>, vector<1x32xf32>
    %223 = vector.broadcast %222 : vector<1x32xf32> to vector<8x32xf32>
    %224 = arith.addf %221, %223 : vector<8x32xf32>
    %c0_76 = arith.constant 0 : index
    %c0_77 = arith.constant 0 : index
    %225 = vector.load %arg13[%c0_76, %c0_77] : memref<32x128xf32, #tpu.memory_space<vmem>>, vector<32x128xf32>
    %c0_78 = arith.constant 0 : index
    %c0_79 = arith.constant 0 : index
    %226 = vector.load %arg11[%c0_78, %c0_79] : memref<32x128xf32, #tpu.memory_space<vmem>>, vector<32x128xf32>
    %c0_80 = arith.constant 0 : index
    %c0_81 = arith.constant 0 : index
    %227 = vector.load %arg14[%c0_80, %c0_81] : memref<32x32xf32, #tpu.memory_space<vmem>>, vector<32x32xf32>
    %c0_82 = arith.constant 0 : index
    %c0_83 = arith.constant 0 : index
    %228 = vector.load %arg16[%c0_82, %c0_83] : memref<32x32xf32, #tpu.memory_space<vmem>>, vector<32x32xf32>
    %c0_84 = arith.constant 0 : index
    %c0_85 = arith.constant 0 : index
    %229 = vector.load %arg15[%c0_84, %c0_85] : memref<1x32xf32, #tpu.memory_space<vmem>>, vector<1x32xf32>
    %230 = vector.shape_cast %229 : vector<1x32xf32> to vector<1x32xf32>
    %231 = vector.broadcast %230 : vector<1x32xf32> to vector<8x32xf32>
    %c0_86 = arith.constant 0 : index
    %c0_87 = arith.constant 0 : index
    %232 = vector.load %arg17[%c0_86, %c0_87] : memref<1x32xf32, #tpu.memory_space<vmem>>, vector<1x32xf32>
    %233 = vector.shape_cast %232 : vector<1x32xf32> to vector<1x32xf32>
    %234 = vector.broadcast %233 : vector<1x32xf32> to vector<8x32xf32>
    %c0_88 = arith.constant 0 : index
    %c0_89 = arith.constant 0 : index
    %235 = vector.load %arg9[%c0_88, %c0_89] : memref<32x128xf32, #tpu.memory_space<vmem>>, vector<32x128xf32>
    %cst_90 = arith.constant dense<0.000000e+00> : vector<8x128xf32>
    %236 = tpu.matmul %224, %235, %cst_90 {dimension_numbers = #tpu.dot_dimension_numbers<[1], [0], [0], [1], [0, 0, 1, 1], [], []>} : vector<8x32xf32>, vector<32x128xf32>, vector<8x128xf32> -> vector<8x128xf32>
    %c0_91 = arith.constant 0 : index
    %c0_92 = arith.constant 0 : index
    %237 = vector.load %arg10[%c0_91, %c0_92] : memref<1x128xf32, #tpu.memory_space<vmem>>, vector<1x128xf32>
    %238 = vector.broadcast %237 : vector<1x128xf32> to vector<8x128xf32>
    %239 = arith.addf %236, %238 : vector<8x128xf32>
    %c0_93 = arith.constant 0 : index
    %c0_94 = arith.constant 0 : index
    %240 = vector.load %arg12[%c0_93, %c0_94] : memref<1x128xf32, #tpu.memory_space<vmem>>, vector<1x128xf32>
    %241 = vector.broadcast %240 : vector<1x128xf32> to vector<8x128xf32>
    %242 = arith.addf %239, %241 : vector<8x128xf32>
    %cst_95 = arith.constant 0.000000e+00 : f32
    %243 = vector.broadcast %cst_95 : f32 to vector<8x32xf32>
    %244 = arith.mulf %239, %8 : vector<8x128xf32>
    %245 = arith.negf %244 : vector<8x128xf32>
    %246 = math.exp %245 : vector<8x128xf32>
    %cst_96 = arith.constant 1.000000e+00 : f32
    %247 = vector.broadcast %cst_96 : f32 to vector<8x128xf32>
    %248 = arith.addf %247, %246 : vector<8x128xf32>
    %249 = arith.divf %247, %248 : vector<8x128xf32>
    %cst_97 = arith.constant 2.000000e+00 : f32
    %250 = vector.broadcast %cst_97 : f32 to vector<8x128xf32>
    %251 = arith.mulf %250, %249 : vector<8x128xf32>
    %cst_98 = arith.constant 1.000000e+00 : f32
    %252 = vector.broadcast %cst_98 : f32 to vector<8x128xf32>
    %253 = arith.subf %251, %252 : vector<8x128xf32>
    %254 = arith.select %5, %253, %249 : vector<8x128xi1>, vector<8x128xf32>
    %255 = vector.extract_strided_slice %254 {offsets = [0, 0], sizes = [8, 32], strides = [1, 1]} : vector<8x128xf32> to vector<8x32xf32>
    %256 = vector.extract_strided_slice %254 {offsets = [0, 32], sizes = [8, 32], strides = [1, 1]} : vector<8x128xf32> to vector<8x32xf32>
    %257 = vector.extract_strided_slice %254 {offsets = [0, 64], sizes = [8, 32], strides = [1, 1]} : vector<8x128xf32> to vector<8x32xf32>
    %258 = vector.extract_strided_slice %254 {offsets = [0, 96], sizes = [8, 32], strides = [1, 1]} : vector<8x128xf32> to vector<8x32xf32>
    %259 = arith.mulf %256, %243 : vector<8x32xf32>
    %260 = arith.mulf %255, %257 : vector<8x32xf32>
    %261 = arith.addf %259, %260 : vector<8x32xf32>
    %262 = math.tanh %261 : vector<8x32xf32>
    %263 = arith.mulf %258, %262 : vector<8x32xf32>
    %cst_99 = arith.constant dense<0.000000e+00> : vector<8x32xf32>
    %264 = tpu.matmul %263, %227, %cst_99 {dimension_numbers = #tpu.dot_dimension_numbers<[1], [0], [0], [1], [0, 0, 1, 1], [], []>} : vector<8x32xf32>, vector<32x32xf32>, vector<8x32xf32> -> vector<8x32xf32>
    %265 = arith.addf %264, %231 : vector<8x32xf32>
    %266 = math.tanh %265 : vector<8x32xf32>
    %cst_100 = arith.constant dense<0.000000e+00> : vector<8x32xf32>
    %267 = tpu.matmul %266, %228, %cst_100 {dimension_numbers = #tpu.dot_dimension_numbers<[1], [0], [0], [1], [0, 0, 1, 1], [], []>} : vector<8x32xf32>, vector<32x32xf32>, vector<8x32xf32> -> vector<8x32xf32>
    %268 = arith.addf %267, %234 : vector<8x32xf32>
    %269 = math.tanh %268 : vector<8x32xf32>
    %c0_101 = arith.constant 0 : index
    %c0_102 = arith.constant 0 : index
    %c0_103 = arith.constant 0 : index
    %270 = vector.load %arg28[%c0_101, %c0_102, %c0_103] : memref<8x8x32xf32, #tpu.memory_space<vmem>>, vector<1x8x32xf32>
    %271 = vector.shape_cast %270 : vector<1x8x32xf32> to vector<8x32xf32>
    %272 = vector.shape_cast %269 : vector<8x32xf32> to vector<1x8x32xf32>
    tpu.vector_store %arg28[%c0_101, %c0_102, %c0_103], %272 {strides = array<i32>} : memref<8x8x32xf32, #tpu.memory_space<vmem>>, vector<1x8x32xf32>,
    %cst_104 = arith.constant dense<0.000000e+00> : vector<8x128xf32>
    %273 = tpu.matmul %269, %226, %cst_104 {dimension_numbers = #tpu.dot_dimension_numbers<[1], [0], [0], [1], [0, 0, 1, 1], [], []>} : vector<8x32xf32>, vector<32x128xf32>, vector<8x128xf32> -> vector<8x128xf32>
    %274 = arith.addf %242, %273 : vector<8x128xf32>
    %cst_105 = arith.constant dense<0.000000e+00> : vector<8x128xf32>
    %275 = tpu.matmul %263, %225, %cst_105 {dimension_numbers = #tpu.dot_dimension_numbers<[1], [0], [0], [1], [0, 0, 1, 1], [], []>} : vector<8x32xf32>, vector<32x128xf32>, vector<8x128xf32> -> vector<8x128xf32>
    %276 = arith.addf %274, %275 : vector<8x128xf32>
    %277 = arith.mulf %276, %8 : vector<8x128xf32>
    %278 = arith.negf %277 : vector<8x128xf32>
    %279 = math.exp %278 : vector<8x128xf32>
    %cst_106 = arith.constant 1.000000e+00 : f32
    %280 = vector.broadcast %cst_106 : f32 to vector<8x128xf32>
    %281 = arith.addf %280, %279 : vector<8x128xf32>
    %282 = arith.divf %280, %281 : vector<8x128xf32>
    %cst_107 = arith.constant 2.000000e+00 : f32
    %283 = vector.broadcast %cst_107 : f32 to vector<8x128xf32>
    %284 = arith.mulf %283, %282 : vector<8x128xf32>
    %cst_108 = arith.constant 1.000000e+00 : f32
    %285 = vector.broadcast %cst_108 : f32 to vector<8x128xf32>
    %286 = arith.subf %284, %285 : vector<8x128xf32>
    %287 = arith.select %5, %286, %282 : vector<8x128xi1>, vector<8x128xf32>
    %288 = vector.extract_strided_slice %287 {offsets = [0, 0], sizes = [8, 32], strides = [1, 1]} : vector<8x128xf32> to vector<8x32xf32>
    %289 = vector.extract_strided_slice %287 {offsets = [0, 32], sizes = [8, 32], strides = [1, 1]} : vector<8x128xf32> to vector<8x32xf32>
    %290 = vector.extract_strided_slice %287 {offsets = [0, 64], sizes = [8, 32], strides = [1, 1]} : vector<8x128xf32> to vector<8x32xf32>
    %291 = vector.extract_strided_slice %287 {offsets = [0, 96], sizes = [8, 32], strides = [1, 1]} : vector<8x128xf32> to vector<8x32xf32>
    %292 = arith.mulf %289, %261 : vector<8x32xf32>
    %293 = arith.mulf %288, %290 : vector<8x32xf32>
    %294 = arith.addf %292, %293 : vector<8x32xf32>
    %295 = math.tanh %294 : vector<8x32xf32>
    %296 = arith.mulf %291, %295 : vector<8x32xf32>
    %cst_109 = arith.constant dense<0.000000e+00> : vector<8x32xf32>
    %297 = tpu.matmul %296, %227, %cst_109 {dimension_numbers = #tpu.dot_dimension_numbers<[1], [0], [0], [1], [0, 0, 1, 1], [], []>} : vector<8x32xf32>, vector<32x32xf32>, vector<8x32xf32> -> vector<8x32xf32>
    %298 = arith.addf %297, %231 : vector<8x32xf32>
    %299 = math.tanh %298 : vector<8x32xf32>
    %cst_110 = arith.constant dense<0.000000e+00> : vector<8x32xf32>
    %300 = tpu.matmul %299, %228, %cst_110 {dimension_numbers = #tpu.dot_dimension_numbers<[1], [0], [0], [1], [0, 0, 1, 1], [], []>} : vector<8x32xf32>, vector<32x32xf32>, vector<8x32xf32> -> vector<8x32xf32>
    %301 = arith.addf %300, %234 : vector<8x32xf32>
    %302 = math.tanh %301 : vector<8x32xf32>
    %c1_111 = arith.constant 1 : index
    %c0_112 = arith.constant 0 : index
    %c0_113 = arith.constant 0 : index
    %303 = vector.load %arg28[%c1_111, %c0_112, %c0_113] : memref<8x8x32xf32, #tpu.memory_space<vmem>>, vector<1x8x32xf32>
    %304 = vector.shape_cast %303 : vector<1x8x32xf32> to vector<8x32xf32>
    %305 = vector.shape_cast %302 : vector<8x32xf32> to vector<1x8x32xf32>
    tpu.vector_store %arg28[%c1_111, %c0_112, %c0_113], %305 {strides = array<i32>} : memref<8x8x32xf32, #tpu.memory_space<vmem>>, vector<1x8x32xf32>,
    %cst_114 = arith.constant dense<0.000000e+00> : vector<8x128xf32>
    %306 = tpu.matmul %302, %226, %cst_114 {dimension_numbers = #tpu.dot_dimension_numbers<[1], [0], [0], [1], [0, 0, 1, 1], [], []>} : vector<8x32xf32>, vector<32x128xf32>, vector<8x128xf32> -> vector<8x128xf32>
    %307 = arith.addf %242, %306 : vector<8x128xf32>
    %cst_115 = arith.constant dense<0.000000e+00> : vector<8x128xf32>
    %308 = tpu.matmul %296, %225, %cst_115 {dimension_numbers = #tpu.dot_dimension_numbers<[1], [0], [0], [1], [0, 0, 1, 1], [], []>} : vector<8x32xf32>, vector<32x128xf32>, vector<8x128xf32> -> vector<8x128xf32>
    %309 = arith.addf %307, %308 : vector<8x128xf32>
    %310 = arith.mulf %309, %8 : vector<8x128xf32>
    %311 = arith.negf %310 : vector<8x128xf32>
    %312 = math.exp %311 : vector<8x128xf32>
    %cst_116 = arith.constant 1.000000e+00 : f32
    %313 = vector.broadcast %cst_116 : f32 to vector<8x128xf32>
    %314 = arith.addf %313, %312 : vector<8x128xf32>
    %315 = arith.divf %313, %314 : vector<8x128xf32>
    %cst_117 = arith.constant 2.000000e+00 : f32
    %316 = vector.broadcast %cst_117 : f32 to vector<8x128xf32>
    %317 = arith.mulf %316, %315 : vector<8x128xf32>
    %cst_118 = arith.constant 1.000000e+00 : f32
    %318 = vector.broadcast %cst_118 : f32 to vector<8x128xf32>
    %319 = arith.subf %317, %318 : vector<8x128xf32>
    %320 = arith.select %5, %319, %315 : vector<8x128xi1>, vector<8x128xf32>
    %321 = vector.extract_strided_slice %320 {offsets = [0, 0], sizes = [8, 32], strides = [1, 1]} : vector<8x128xf32> to vector<8x32xf32>
    %322 = vector.extract_strided_slice %320 {offsets = [0, 32], sizes = [8, 32], strides = [1, 1]} : vector<8x128xf32> to vector<8x32xf32>
    %323 = vector.extract_strided_slice %320 {offsets = [0, 64], sizes = [8, 32], strides = [1, 1]} : vector<8x128xf32> to vector<8x32xf32>
    %324 = vector.extract_strided_slice %320 {offsets = [0, 96], sizes = [8, 32], strides = [1, 1]} : vector<8x128xf32> to vector<8x32xf32>
    %325 = arith.mulf %322, %294 : vector<8x32xf32>
    %326 = arith.mulf %321, %323 : vector<8x32xf32>
    %327 = arith.addf %325, %326 : vector<8x32xf32>
    %328 = math.tanh %327 : vector<8x32xf32>
    %329 = arith.mulf %324, %328 : vector<8x32xf32>
    %cst_119 = arith.constant dense<0.000000e+00> : vector<8x32xf32>
    %330 = tpu.matmul %329, %227, %cst_119 {dimension_numbers = #tpu.dot_dimension_numbers<[1], [0], [0], [1], [0, 0, 1, 1], [], []>} : vector<8x32xf32>, vector<32x32xf32>, vector<8x32xf32> -> vector<8x32xf32>
    %331 = arith.addf %330, %231 : vector<8x32xf32>
    %332 = math.tanh %331 : vector<8x32xf32>
    %cst_120 = arith.constant dense<0.000000e+00> : vector<8x32xf32>
    %333 = tpu.matmul %332, %228, %cst_120 {dimension_numbers = #tpu.dot_dimension_numbers<[1], [0], [0], [1], [0, 0, 1, 1], [], []>} : vector<8x32xf32>, vector<32x32xf32>, vector<8x32xf32> -> vector<8x32xf32>
    %334 = arith.addf %333, %234 : vector<8x32xf32>
    %335 = math.tanh %334 : vector<8x32xf32>
    %c2_121 = arith.constant 2 : index
    %c0_122 = arith.constant 0 : index
    %c0_123 = arith.constant 0 : index
    %336 = vector.load %arg28[%c2_121, %c0_122, %c0_123] : memref<8x8x32xf32, #tpu.memory_space<vmem>>, vector<1x8x32xf32>
    %337 = vector.shape_cast %336 : vector<1x8x32xf32> to vector<8x32xf32>
    %338 = vector.shape_cast %335 : vector<8x32xf32> to vector<1x8x32xf32>
    tpu.vector_store %arg28[%c2_121, %c0_122, %c0_123], %338 {strides = array<i32>} : memref<8x8x32xf32, #tpu.memory_space<vmem>>, vector<1x8x32xf32>,
    %cst_124 = arith.constant dense<0.000000e+00> : vector<8x128xf32>
    %339 = tpu.matmul %335, %226, %cst_124 {dimension_numbers = #tpu.dot_dimension_numbers<[1], [0], [0], [1], [0, 0, 1, 1], [], []>} : vector<8x32xf32>, vector<32x128xf32>, vector<8x128xf32> -> vector<8x128xf32>
    %340 = arith.addf %242, %339 : vector<8x128xf32>
    %cst_125 = arith.constant dense<0.000000e+00> : vector<8x128xf32>
    %341 = tpu.matmul %329, %225, %cst_125 {dimension_numbers = #tpu.dot_dimension_numbers<[1], [0], [0], [1], [0, 0, 1, 1], [], []>} : vector<8x32xf32>, vector<32x128xf32>, vector<8x128xf32> -> vector<8x128xf32>
    %342 = arith.addf %340, %341 : vector<8x128xf32>
    %343 = arith.mulf %342, %8 : vector<8x128xf32>
    %344 = arith.negf %343 : vector<8x128xf32>
    %345 = math.exp %344 : vector<8x128xf32>
    %cst_126 = arith.constant 1.000000e+00 : f32
    %346 = vector.broadcast %cst_126 : f32 to vector<8x128xf32>
    %347 = arith.addf %346, %345 : vector<8x128xf32>
    %348 = arith.divf %346, %347 : vector<8x128xf32>
    %cst_127 = arith.constant 2.000000e+00 : f32
    %349 = vector.broadcast %cst_127 : f32 to vector<8x128xf32>
    %350 = arith.mulf %349, %348 : vector<8x128xf32>
    %cst_128 = arith.constant 1.000000e+00 : f32
    %351 = vector.broadcast %cst_128 : f32 to vector<8x128xf32>
    %352 = arith.subf %350, %351 : vector<8x128xf32>
    %353 = arith.select %5, %352, %348 : vector<8x128xi1>, vector<8x128xf32>
    %354 = vector.extract_strided_slice %353 {offsets = [0, 0], sizes = [8, 32], strides = [1, 1]} : vector<8x128xf32> to vector<8x32xf32>
    %355 = vector.extract_strided_slice %353 {offsets = [0, 32], sizes = [8, 32], strides = [1, 1]} : vector<8x128xf32> to vector<8x32xf32>
    %356 = vector.extract_strided_slice %353 {offsets = [0, 64], sizes = [8, 32], strides = [1, 1]} : vector<8x128xf32> to vector<8x32xf32>
    %357 = vector.extract_strided_slice %353 {offsets = [0, 96], sizes = [8, 32], strides = [1, 1]} : vector<8x128xf32> to vector<8x32xf32>
    %358 = arith.mulf %355, %327 : vector<8x32xf32>
    %359 = arith.mulf %354, %356 : vector<8x32xf32>
    %360 = arith.addf %358, %359 : vector<8x32xf32>
    %361 = math.tanh %360 : vector<8x32xf32>
    %362 = arith.mulf %357, %361 : vector<8x32xf32>
    %cst_129 = arith.constant dense<0.000000e+00> : vector<8x32xf32>
    %363 = tpu.matmul %362, %227, %cst_129 {dimension_numbers = #tpu.dot_dimension_numbers<[1], [0], [0], [1], [0, 0, 1, 1], [], []>} : vector<8x32xf32>, vector<32x32xf32>, vector<8x32xf32> -> vector<8x32xf32>
    %364 = arith.addf %363, %231 : vector<8x32xf32>
    %365 = math.tanh %364 : vector<8x32xf32>
    %cst_130 = arith.constant dense<0.000000e+00> : vector<8x32xf32>
    %366 = tpu.matmul %365, %228, %cst_130 {dimension_numbers = #tpu.dot_dimension_numbers<[1], [0], [0], [1], [0, 0, 1, 1], [], []>} : vector<8x32xf32>, vector<32x32xf32>, vector<8x32xf32> -> vector<8x32xf32>
    %367 = arith.addf %366, %234 : vector<8x32xf32>
    %368 = math.tanh %367 : vector<8x32xf32>
    %c3_131 = arith.constant 3 : index
    %c0_132 = arith.constant 0 : index
    %c0_133 = arith.constant 0 : index
    %369 = vector.load %arg28[%c3_131, %c0_132, %c0_133] : memref<8x8x32xf32, #tpu.memory_space<vmem>>, vector<1x8x32xf32>
    %370 = vector.shape_cast %369 : vector<1x8x32xf32> to vector<8x32xf32>
    %371 = vector.shape_cast %368 : vector<8x32xf32> to vector<1x8x32xf32>
    tpu.vector_store %arg28[%c3_131, %c0_132, %c0_133], %371 {strides = array<i32>} : memref<8x8x32xf32, #tpu.memory_space<vmem>>, vector<1x8x32xf32>,
    %cst_134 = arith.constant dense<0.000000e+00> : vector<8x128xf32>
    %372 = tpu.matmul %368, %226, %cst_134 {dimension_numbers = #tpu.dot_dimension_numbers<[1], [0], [0], [1], [0, 0, 1, 1], [], []>} : vector<8x32xf32>, vector<32x128xf32>, vector<8x128xf32> -> vector<8x128xf32>
    %373 = arith.addf %242, %372 : vector<8x128xf32>
    %cst_135 = arith.constant dense<0.000000e+00> : vector<8x128xf32>
    %374 = tpu.matmul %362, %225, %cst_135 {dimension_numbers = #tpu.dot_dimension_numbers<[1], [0], [0], [1], [0, 0, 1, 1], [], []>} : vector<8x32xf32>, vector<32x128xf32>, vector<8x128xf32> -> vector<8x128xf32>
    %375 = arith.addf %373, %374 : vector<8x128xf32>
    %376 = arith.mulf %375, %8 : vector<8x128xf32>
    %377 = arith.negf %376 : vector<8x128xf32>
    %378 = math.exp %377 : vector<8x128xf32>
    %cst_136 = arith.constant 1.000000e+00 : f32
    %379 = vector.broadcast %cst_136 : f32 to vector<8x128xf32>
    %380 = arith.addf %379, %378 : vector<8x128xf32>
    %381 = arith.divf %379, %380 : vector<8x128xf32>
    %cst_137 = arith.constant 2.000000e+00 : f32
    %382 = vector.broadcast %cst_137 : f32 to vector<8x128xf32>
    %383 = arith.mulf %382, %381 : vector<8x128xf32>
    %cst_138 = arith.constant 1.000000e+00 : f32
    %384 = vector.broadcast %cst_138 : f32 to vector<8x128xf32>
    %385 = arith.subf %383, %384 : vector<8x128xf32>
    %386 = arith.select %5, %385, %381 : vector<8x128xi1>, vector<8x128xf32>
    %387 = vector.extract_strided_slice %386 {offsets = [0, 0], sizes = [8, 32], strides = [1, 1]} : vector<8x128xf32> to vector<8x32xf32>
    %388 = vector.extract_strided_slice %386 {offsets = [0, 32], sizes = [8, 32], strides = [1, 1]} : vector<8x128xf32> to vector<8x32xf32>
    %389 = vector.extract_strided_slice %386 {offsets = [0, 64], sizes = [8, 32], strides = [1, 1]} : vector<8x128xf32> to vector<8x32xf32>
    %390 = vector.extract_strided_slice %386 {offsets = [0, 96], sizes = [8, 32], strides = [1, 1]} : vector<8x128xf32> to vector<8x32xf32>
    %391 = arith.mulf %388, %360 : vector<8x32xf32>
    %392 = arith.mulf %387, %389 : vector<8x32xf32>
    %393 = arith.addf %391, %392 : vector<8x32xf32>
    %394 = math.tanh %393 : vector<8x32xf32>
    %395 = arith.mulf %390, %394 : vector<8x32xf32>
    %cst_139 = arith.constant dense<0.000000e+00> : vector<8x32xf32>
    %396 = tpu.matmul %395, %227, %cst_139 {dimension_numbers = #tpu.dot_dimension_numbers<[1], [0], [0], [1], [0, 0, 1, 1], [], []>} : vector<8x32xf32>, vector<32x32xf32>, vector<8x32xf32> -> vector<8x32xf32>
    %397 = arith.addf %396, %231 : vector<8x32xf32>
    %398 = math.tanh %397 : vector<8x32xf32>
    %cst_140 = arith.constant dense<0.000000e+00> : vector<8x32xf32>
    %399 = tpu.matmul %398, %228, %cst_140 {dimension_numbers = #tpu.dot_dimension_numbers<[1], [0], [0], [1], [0, 0, 1, 1], [], []>} : vector<8x32xf32>, vector<32x32xf32>, vector<8x32xf32> -> vector<8x32xf32>
    %400 = arith.addf %399, %234 : vector<8x32xf32>
    %401 = math.tanh %400 : vector<8x32xf32>
    %c4_141 = arith.constant 4 : index
    %c0_142 = arith.constant 0 : index
    %c0_143 = arith.constant 0 : index
    %402 = vector.load %arg28[%c4_141, %c0_142, %c0_143] : memref<8x8x32xf32, #tpu.memory_space<vmem>>, vector<1x8x32xf32>
    %403 = vector.shape_cast %402 : vector<1x8x32xf32> to vector<8x32xf32>
    %404 = vector.shape_cast %401 : vector<8x32xf32> to vector<1x8x32xf32>
    tpu.vector_store %arg28[%c4_141, %c0_142, %c0_143], %404 {strides = array<i32>} : memref<8x8x32xf32, #tpu.memory_space<vmem>>, vector<1x8x32xf32>,
    %cst_144 = arith.constant dense<0.000000e+00> : vector<8x128xf32>
    %405 = tpu.matmul %401, %226, %cst_144 {dimension_numbers = #tpu.dot_dimension_numbers<[1], [0], [0], [1], [0, 0, 1, 1], [], []>} : vector<8x32xf32>, vector<32x128xf32>, vector<8x128xf32> -> vector<8x128xf32>
    %406 = arith.addf %242, %405 : vector<8x128xf32>
    %cst_145 = arith.constant dense<0.000000e+00> : vector<8x128xf32>
    %407 = tpu.matmul %395, %225, %cst_145 {dimension_numbers = #tpu.dot_dimension_numbers<[1], [0], [0], [1], [0, 0, 1, 1], [], []>} : vector<8x32xf32>, vector<32x128xf32>, vector<8x128xf32> -> vector<8x128xf32>
    %408 = arith.addf %406, %407 : vector<8x128xf32>
    %409 = arith.mulf %408, %8 : vector<8x128xf32>
    %410 = arith.negf %409 : vector<8x128xf32>
    %411 = math.exp %410 : vector<8x128xf32>
    %cst_146 = arith.constant 1.000000e+00 : f32
    %412 = vector.broadcast %cst_146 : f32 to vector<8x128xf32>
    %413 = arith.addf %412, %411 : vector<8x128xf32>
    %414 = arith.divf %412, %413 : vector<8x128xf32>
    %cst_147 = arith.constant 2.000000e+00 : f32
    %415 = vector.broadcast %cst_147 : f32 to vector<8x128xf32>
    %416 = arith.mulf %415, %414 : vector<8x128xf32>
    %cst_148 = arith.constant 1.000000e+00 : f32
    %417 = vector.broadcast %cst_148 : f32 to vector<8x128xf32>
    %418 = arith.subf %416, %417 : vector<8x128xf32>
    %419 = arith.select %5, %418, %414 : vector<8x128xi1>, vector<8x128xf32>
    %420 = vector.extract_strided_slice %419 {offsets = [0, 0], sizes = [8, 32], strides = [1, 1]} : vector<8x128xf32> to vector<8x32xf32>
    %421 = vector.extract_strided_slice %419 {offsets = [0, 32], sizes = [8, 32], strides = [1, 1]} : vector<8x128xf32> to vector<8x32xf32>
    %422 = vector.extract_strided_slice %419 {offsets = [0, 64], sizes = [8, 32], strides = [1, 1]} : vector<8x128xf32> to vector<8x32xf32>
    %423 = vector.extract_strided_slice %419 {offsets = [0, 96], sizes = [8, 32], strides = [1, 1]} : vector<8x128xf32> to vector<8x32xf32>
    %424 = arith.mulf %421, %393 : vector<8x32xf32>
    %425 = arith.mulf %420, %422 : vector<8x32xf32>
    %426 = arith.addf %424, %425 : vector<8x32xf32>
    %427 = math.tanh %426 : vector<8x32xf32>
    %428 = arith.mulf %423, %427 : vector<8x32xf32>
    %cst_149 = arith.constant dense<0.000000e+00> : vector<8x32xf32>
    %429 = tpu.matmul %428, %227, %cst_149 {dimension_numbers = #tpu.dot_dimension_numbers<[1], [0], [0], [1], [0, 0, 1, 1], [], []>} : vector<8x32xf32>, vector<32x32xf32>, vector<8x32xf32> -> vector<8x32xf32>
    %430 = arith.addf %429, %231 : vector<8x32xf32>
    %431 = math.tanh %430 : vector<8x32xf32>
    %cst_150 = arith.constant dense<0.000000e+00> : vector<8x32xf32>
    %432 = tpu.matmul %431, %228, %cst_150 {dimension_numbers = #tpu.dot_dimension_numbers<[1], [0], [0], [1], [0, 0, 1, 1], [], []>} : vector<8x32xf32>, vector<32x32xf32>, vector<8x32xf32> -> vector<8x32xf32>
    %433 = arith.addf %432, %234 : vector<8x32xf32>
    %434 = math.tanh %433 : vector<8x32xf32>
    %c5_151 = arith.constant 5 : index
    %c0_152 = arith.constant 0 : index
    %c0_153 = arith.constant 0 : index
    %435 = vector.load %arg28[%c5_151, %c0_152, %c0_153] : memref<8x8x32xf32, #tpu.memory_space<vmem>>, vector<1x8x32xf32>
    %436 = vector.shape_cast %435 : vector<1x8x32xf32> to vector<8x32xf32>
    %437 = vector.shape_cast %434 : vector<8x32xf32> to vector<1x8x32xf32>
    tpu.vector_store %arg28[%c5_151, %c0_152, %c0_153], %437 {strides = array<i32>} : memref<8x8x32xf32, #tpu.memory_space<vmem>>, vector<1x8x32xf32>,
    %cst_154 = arith.constant dense<0.000000e+00> : vector<8x128xf32>
    %438 = tpu.matmul %434, %226, %cst_154 {dimension_numbers = #tpu.dot_dimension_numbers<[1], [0], [0], [1], [0, 0, 1, 1], [], []>} : vector<8x32xf32>, vector<32x128xf32>, vector<8x128xf32> -> vector<8x128xf32>
    %439 = arith.addf %242, %438 : vector<8x128xf32>
    %cst_155 = arith.constant dense<0.000000e+00> : vector<8x128xf32>
    %440 = tpu.matmul %428, %225, %cst_155 {dimension_numbers = #tpu.dot_dimension_numbers<[1], [0], [0], [1], [0, 0, 1, 1], [], []>} : vector<8x32xf32>, vector<32x128xf32>, vector<8x128xf32> -> vector<8x128xf32>
    %441 = arith.addf %439, %440 : vector<8x128xf32>
    %442 = arith.mulf %441, %8 : vector<8x128xf32>
    %443 = arith.negf %442 : vector<8x128xf32>
    %444 = math.exp %443 : vector<8x128xf32>
    %cst_156 = arith.constant 1.000000e+00 : f32
    %445 = vector.broadcast %cst_156 : f32 to vector<8x128xf32>
    %446 = arith.addf %445, %444 : vector<8x128xf32>
    %447 = arith.divf %445, %446 : vector<8x128xf32>
    %cst_157 = arith.constant 2.000000e+00 : f32
    %448 = vector.broadcast %cst_157 : f32 to vector<8x128xf32>
    %449 = arith.mulf %448, %447 : vector<8x128xf32>
    %cst_158 = arith.constant 1.000000e+00 : f32
    %450 = vector.broadcast %cst_158 : f32 to vector<8x128xf32>
    %451 = arith.subf %449, %450 : vector<8x128xf32>
    %452 = arith.select %5, %451, %447 : vector<8x128xi1>, vector<8x128xf32>
    %453 = vector.extract_strided_slice %452 {offsets = [0, 0], sizes = [8, 32], strides = [1, 1]} : vector<8x128xf32> to vector<8x32xf32>
    %454 = vector.extract_strided_slice %452 {offsets = [0, 32], sizes = [8, 32], strides = [1, 1]} : vector<8x128xf32> to vector<8x32xf32>
    %455 = vector.extract_strided_slice %452 {offsets = [0, 64], sizes = [8, 32], strides = [1, 1]} : vector<8x128xf32> to vector<8x32xf32>
    %456 = vector.extract_strided_slice %452 {offsets = [0, 96], sizes = [8, 32], strides = [1, 1]} : vector<8x128xf32> to vector<8x32xf32>
    %457 = arith.mulf %454, %426 : vector<8x32xf32>
    %458 = arith.mulf %453, %455 : vector<8x32xf32>
    %459 = arith.addf %457, %458 : vector<8x32xf32>
    %460 = math.tanh %459 : vector<8x32xf32>
    %461 = arith.mulf %456, %460 : vector<8x32xf32>
    %cst_159 = arith.constant dense<0.000000e+00> : vector<8x32xf32>
    %462 = tpu.matmul %461, %227, %cst_159 {dimension_numbers = #tpu.dot_dimension_numbers<[1], [0], [0], [1], [0, 0, 1, 1], [], []>} : vector<8x32xf32>, vector<32x32xf32>, vector<8x32xf32> -> vector<8x32xf32>
    %463 = arith.addf %462, %231 : vector<8x32xf32>
    %464 = math.tanh %463 : vector<8x32xf32>
    %cst_160 = arith.constant dense<0.000000e+00> : vector<8x32xf32>
    %465 = tpu.matmul %464, %228, %cst_160 {dimension_numbers = #tpu.dot_dimension_numbers<[1], [0], [0], [1], [0, 0, 1, 1], [], []>} : vector<8x32xf32>, vector<32x32xf32>, vector<8x32xf32> -> vector<8x32xf32>
    %466 = arith.addf %465, %234 : vector<8x32xf32>
    %467 = math.tanh %466 : vector<8x32xf32>
    %c6_161 = arith.constant 6 : index
    %c0_162 = arith.constant 0 : index
    %c0_163 = arith.constant 0 : index
    %468 = vector.load %arg28[%c6_161, %c0_162, %c0_163] : memref<8x8x32xf32, #tpu.memory_space<vmem>>, vector<1x8x32xf32>
    %469 = vector.shape_cast %468 : vector<1x8x32xf32> to vector<8x32xf32>
    %470 = vector.shape_cast %467 : vector<8x32xf32> to vector<1x8x32xf32>
    tpu.vector_store %arg28[%c6_161, %c0_162, %c0_163], %470 {strides = array<i32>} : memref<8x8x32xf32, #tpu.memory_space<vmem>>, vector<1x8x32xf32>,
    %cst_164 = arith.constant dense<0.000000e+00> : vector<8x128xf32>
    %471 = tpu.matmul %467, %226, %cst_164 {dimension_numbers = #tpu.dot_dimension_numbers<[1], [0], [0], [1], [0, 0, 1, 1], [], []>} : vector<8x32xf32>, vector<32x128xf32>, vector<8x128xf32> -> vector<8x128xf32>
    %472 = arith.addf %242, %471 : vector<8x128xf32>
    %cst_165 = arith.constant dense<0.000000e+00> : vector<8x128xf32>
    %473 = tpu.matmul %461, %225, %cst_165 {dimension_numbers = #tpu.dot_dimension_numbers<[1], [0], [0], [1], [0, 0, 1, 1], [], []>} : vector<8x32xf32>, vector<32x128xf32>, vector<8x128xf32> -> vector<8x128xf32>
    %474 = arith.addf %472, %473 : vector<8x128xf32>
    %475 = arith.mulf %474, %8 : vector<8x128xf32>
    %476 = arith.negf %475 : vector<8x128xf32>
    %477 = math.exp %476 : vector<8x128xf32>
    %cst_166 = arith.constant 1.000000e+00 : f32
    %478 = vector.broadcast %cst_166 : f32 to vector<8x128xf32>
    %479 = arith.addf %478, %477 : vector<8x128xf32>
    %480 = arith.divf %478, %479 : vector<8x128xf32>
    %cst_167 = arith.constant 2.000000e+00 : f32
    %481 = vector.broadcast %cst_167 : f32 to vector<8x128xf32>
    %482 = arith.mulf %481, %480 : vector<8x128xf32>
    %cst_168 = arith.constant 1.000000e+00 : f32
    %483 = vector.broadcast %cst_168 : f32 to vector<8x128xf32>
    %484 = arith.subf %482, %483 : vector<8x128xf32>
    %485 = arith.select %5, %484, %480 : vector<8x128xi1>, vector<8x128xf32>
    %486 = vector.extract_strided_slice %485 {offsets = [0, 0], sizes = [8, 32], strides = [1, 1]} : vector<8x128xf32> to vector<8x32xf32>
    %487 = vector.extract_strided_slice %485 {offsets = [0, 32], sizes = [8, 32], strides = [1, 1]} : vector<8x128xf32> to vector<8x32xf32>
    %488 = vector.extract_strided_slice %485 {offsets = [0, 64], sizes = [8, 32], strides = [1, 1]} : vector<8x128xf32> to vector<8x32xf32>
    %489 = vector.extract_strided_slice %485 {offsets = [0, 96], sizes = [8, 32], strides = [1, 1]} : vector<8x128xf32> to vector<8x32xf32>
    %490 = arith.mulf %487, %459 : vector<8x32xf32>
    %491 = arith.mulf %486, %488 : vector<8x32xf32>
    %492 = arith.addf %490, %491 : vector<8x32xf32>
    %493 = math.tanh %492 : vector<8x32xf32>
    %494 = arith.mulf %489, %493 : vector<8x32xf32>
    %cst_169 = arith.constant dense<0.000000e+00> : vector<8x32xf32>
    %495 = tpu.matmul %494, %227, %cst_169 {dimension_numbers = #tpu.dot_dimension_numbers<[1], [0], [0], [1], [0, 0, 1, 1], [], []>} : vector<8x32xf32>, vector<32x32xf32>, vector<8x32xf32> -> vector<8x32xf32>
    %496 = arith.addf %495, %231 : vector<8x32xf32>
    %497 = math.tanh %496 : vector<8x32xf32>
    %cst_170 = arith.constant dense<0.000000e+00> : vector<8x32xf32>
    %498 = tpu.matmul %497, %228, %cst_170 {dimension_numbers = #tpu.dot_dimension_numbers<[1], [0], [0], [1], [0, 0, 1, 1], [], []>} : vector<8x32xf32>, vector<32x32xf32>, vector<8x32xf32> -> vector<8x32xf32>
    %499 = arith.addf %498, %234 : vector<8x32xf32>
    %500 = math.tanh %499 : vector<8x32xf32>
    %c7_171 = arith.constant 7 : index
    %c0_172 = arith.constant 0 : index
    %c0_173 = arith.constant 0 : index
    %501 = vector.load %arg28[%c7_171, %c0_172, %c0_173] : memref<8x8x32xf32, #tpu.memory_space<vmem>>, vector<1x8x32xf32>
    %502 = vector.shape_cast %501 : vector<1x8x32xf32> to vector<8x32xf32>
    %503 = vector.shape_cast %500 : vector<8x32xf32> to vector<1x8x32xf32>
    tpu.vector_store %arg28[%c7_171, %c0_172, %c0_173], %503 {strides = array<i32>} : memref<8x8x32xf32, #tpu.memory_space<vmem>>, vector<1x8x32xf32>,
    %c0_174 = arith.constant 0 : index
    %c0_175 = arith.constant 0 : index
    %c0_176 = arith.constant 0 : index
    %504 = vector.load %arg28[%c0_174, %c0_175, %c0_176] : memref<8x8x32xf32, #tpu.memory_space<vmem>>, vector<8x8x32xf32>
    %505 = vector.shape_cast %504 : vector<8x8x32xf32> to vector<64x32xf32>
    %c0_177 = arith.constant 0 : index
    %c0_178 = arith.constant 0 : index
    %506 = vector.load %arg18[%c0_177, %c0_178] : memref<32x8xf32, #tpu.memory_space<vmem>>, vector<32x8xf32>
    %cst_179 = arith.constant dense<0.000000e+00> : vector<64x8xf32>
    %507 = tpu.matmul %505, %506, %cst_179 {dimension_numbers = #tpu.dot_dimension_numbers<[1], [0], [0], [1], [0, 0, 1, 1], [], []>} : vector<64x32xf32>, vector<32x8xf32>, vector<64x8xf32> -> vector<64x8xf32>
    %c0_180 = arith.constant 0 : index
    %c0_181 = arith.constant 0 : index
    %508 = vector.load %arg19[%c0_180, %c0_181] : memref<1x8xf32, #tpu.memory_space<vmem>>, vector<1x8xf32>
    %509 = vector.broadcast %508 : vector<1x8xf32> to vector<64x8xf32>
    %510 = arith.addf %507, %509 : vector<64x8xf32>
    %c0_182 = arith.constant 0 : index
    %c0_183 = arith.constant 0 : index
    %511 = vector.load %arg20[%c0_182, %c0_183] : memref<32x32xf32, #tpu.memory_space<vmem>>, vector<32x32xf32>
    %cst_184 = arith.constant dense<0.000000e+00> : vector<64x32xf32>
    %512 = tpu.matmul %505, %511, %cst_184 {dimension_numbers = #tpu.dot_dimension_numbers<[1], [0], [0], [1], [0, 0, 1, 1], [], []>} : vector<64x32xf32>, vector<32x32xf32>, vector<64x32xf32> -> vector<64x32xf32>
    %c0_185 = arith.constant 0 : index
    %c0_186 = arith.constant 0 : index
    %513 = vector.load %arg21[%c0_185, %c0_186] : memref<1x32xf32, #tpu.memory_space<vmem>>, vector<1x32xf32>
    %514 = vector.broadcast %513 : vector<1x32xf32> to vector<64x32xf32>
    %515 = arith.addf %512, %514 : vector<64x32xf32>
    %516 = math.tanh %515 : vector<64x32xf32>
    %c0_187 = arith.constant 0 : index
    %c0_188 = arith.constant 0 : index
    %517 = vector.load %arg22[%c0_187, %c0_188] : memref<32x8xf32, #tpu.memory_space<vmem>>, vector<32x8xf32>
    %cst_189 = arith.constant dense<0.000000e+00> : vector<64x8xf32>
    %518 = tpu.matmul %516, %517, %cst_189 {dimension_numbers = #tpu.dot_dimension_numbers<[1], [0], [0], [1], [0, 0, 1, 1], [], []>} : vector<64x32xf32>, vector<32x8xf32>, vector<64x8xf32> -> vector<64x8xf32>
    %c0_190 = arith.constant 0 : index
    %c0_191 = arith.constant 0 : index
    %519 = vector.load %arg23[%c0_190, %c0_191] : memref<1x8xf32, #tpu.memory_space<vmem>>, vector<1x8xf32>
    %520 = vector.broadcast %519 : vector<1x8xf32> to vector<64x8xf32>
    %521 = arith.addf %518, %520 : vector<64x8xf32>
    %522 = vector.shape_cast %510 : vector<64x8xf32> to vector<8x8x8xf32>
    %c0_192 = arith.constant 0 : index
    %c0_193 = arith.constant 0 : index
    %c0_194 = arith.constant 0 : index
    %523 = vector.load %arg24[%c0_192, %c0_193, %c0_194] : memref<8x8x8xf32, #tpu.memory_space<vmem>>, vector<8x8x8xf32>
    tpu.vector_store %arg24[%c0_192, %c0_193, %c0_194], %522 {strides = array<i32>} : memref<8x8x8xf32, #tpu.memory_space<vmem>>, vector<8x8x8xf32>,
    %524 = vector.shape_cast %521 : vector<64x8xf32> to vector<8x8x8xf32>
    %c0_195 = arith.constant 0 : index
    %c0_196 = arith.constant 0 : index
    %c0_197 = arith.constant 0 : index
    %525 = vector.load %arg26[%c0_195, %c0_196, %c0_197] : memref<8x8x8xf32, #tpu.memory_space<vmem>>, vector<8x8x8xf32>
    tpu.vector_store %arg26[%c0_195, %c0_196, %c0_197], %524 {strides = array<i32>} : memref<8x8x8xf32, #tpu.memory_space<vmem>>, vector<8x8x8xf32>,
    return
  }
  func.func @transform_0(%arg0: i32) -> (i32, i32, i32) {
    %c0_i32 = arith.constant 0 : i32
    %c0_i32_0 = arith.constant 0 : i32
    %c0_i32_1 = arith.constant 0 : i32
    return %c0_i32, %arg0, %c0_i32_0 : i32, i32, i32
  }
  func.func @transform_1(%arg0: i32) -> (i32, i32) {
    %c0_i32 = arith.constant 0 : i32
    %c0_i32_0 = arith.constant 0 : i32
    %c0_i32_1 = arith.constant 0 : i32
    return %c0_i32, %c0_i32_0 : i32, i32
  }
  func.func @transform_2(%arg0: i32) -> (i32, i32) {
    %c0_i32 = arith.constant 0 : i32
    %c0_i32_0 = arith.constant 0 : i32
    %c0_i32_1 = arith.constant 0 : i32
    return %c0_i32, %c0_i32_0 : i32, i32
  }
  func.func @transform_3(%arg0: i32) -> (i32, i32) {
    %c0_i32 = arith.constant 0 : i32
    %c0_i32_0 = arith.constant 0 : i32
    %c0_i32_1 = arith.constant 0 : i32
    return %c0_i32, %c0_i32_0 : i32, i32
  }
  func.func @transform_4(%arg0: i32) -> (i32, i32) {
    %c0_i32 = arith.constant 0 : i32
    %c0_i32_0 = arith.constant 0 : i32
    %c0_i32_1 = arith.constant 0 : i32
    return %c0_i32, %c0_i32_0 : i32, i32
  }
  func.func @transform_5(%arg0: i32) -> (i32, i32) {
    %c0_i32 = arith.constant 0 : i32
    %c0_i32_0 = arith.constant 0 : i32
    %c0_i32_1 = arith.constant 0 : i32
    return %c0_i32, %c0_i32_0 : i32, i32
  }
  func.func @transform_6(%arg0: i32) -> (i32, i32) {
    %c0_i32 = arith.constant 0 : i32
    %c0_i32_0 = arith.constant 0 : i32
    %c0_i32_1 = arith.constant 0 : i32
    return %c0_i32, %c0_i32_0 : i32, i32
  }
  func.func @transform_7(%arg0: i32) -> (i32, i32) {
    %c0_i32 = arith.constant 0 : i32
    %c0_i32_0 = arith.constant 0 : i32
    %c0_i32_1 = arith.constant 0 : i32
    return %c0_i32, %c0_i32_0 : i32, i32
  }
  func.func @transform_8(%arg0: i32) -> (i32, i32) {
    %c0_i32 = arith.constant 0 : i32
    %c0_i32_0 = arith.constant 0 : i32
    %c0_i32_1 = arith.constant 0 : i32
    return %c0_i32, %c0_i32_0 : i32, i32
  }
  func.func @transform_9(%arg0: i32) -> (i32, i32) {
    %c0_i32 = arith.constant 0 : i32
    %c0_i32_0 = arith.constant 0 : i32
    %c0_i32_1 = arith.constant 0 : i32
    return %c0_i32, %c0_i32_0 : i32, i32
  }
  func.func @transform_10(%arg0: i32) -> (i32, i32) {
    %c0_i32 = arith.constant 0 : i32
    %c0_i32_0 = arith.constant 0 : i32
    %c0_i32_1 = arith.constant 0 : i32
    return %c0_i32, %c0_i32_0 : i32, i32
  }
  func.func @transform_11(%arg0: i32) -> (i32, i32) {
    %c0_i32 = arith.constant 0 : i32
    %c0_i32_0 = arith.constant 0 : i32
    %c0_i32_1 = arith.constant 0 : i32
    return %c0_i32, %c0_i32_0 : i32, i32
  }
  func.func @transform_12(%arg0: i32) -> (i32, i32) {
    %c0_i32 = arith.constant 0 : i32
    %c0_i32_0 = arith.constant 0 : i32
    %c0_i32_1 = arith.constant 0 : i32
    return %c0_i32, %c0_i32_0 : i32, i32
  }
  func.func @transform_13(%arg0: i32) -> (i32, i32) {
    %c0_i32 = arith.constant 0 : i32
    %c0_i32_0 = arith.constant 0 : i32
    %c0_i32_1 = arith.constant 0 : i32
    return %c0_i32, %c0_i32_0 : i32, i32
  }
  func.func @transform_14(%arg0: i32) -> (i32, i32) {
    %c0_i32 = arith.constant 0 : i32
    %c0_i32_0 = arith.constant 0 : i32
    %c0_i32_1 = arith.constant 0 : i32
    return %c0_i32, %c0_i32_0 : i32, i32
  }
  func.func @transform_15(%arg0: i32) -> (i32, i32) {
    %c0_i32 = arith.constant 0 : i32
    %c0_i32_0 = arith.constant 0 : i32
    %c0_i32_1 = arith.constant 0 : i32
    return %c0_i32, %c0_i32_0 : i32, i32
  }
  func.func @transform_16(%arg0: i32) -> (i32, i32) {
    %c0_i32 = arith.constant 0 : i32
    %c0_i32_0 = arith.constant 0 : i32
    %c0_i32_1 = arith.constant 0 : i32
    return %c0_i32, %c0_i32_0 : i32, i32
  }
  func.func @transform_17(%arg0: i32) -> (i32, i32) {
    %c0_i32 = arith.constant 0 : i32
    %c0_i32_0 = arith.constant 0 : i32
    %c0_i32_1 = arith.constant 0 : i32
    return %c0_i32, %c0_i32_0 : i32, i32
  }
  func.func @transform_18(%arg0: i32) -> (i32, i32) {
    %c0_i32 = arith.constant 0 : i32
    %c0_i32_0 = arith.constant 0 : i32
    %c0_i32_1 = arith.constant 0 : i32
    return %c0_i32, %c0_i32_0 : i32, i32
  }
  func.func @transform_19(%arg0: i32) -> (i32, i32) {
    %c0_i32 = arith.constant 0 : i32
    %c0_i32_0 = arith.constant 0 : i32
    %c0_i32_1 = arith.constant 0 : i32
    return %c0_i32, %c0_i32_0 : i32, i32
  }
  func.func @transform_20(%arg0: i32) -> (i32, i32) {
    %c0_i32 = arith.constant 0 : i32
    %c0_i32_0 = arith.constant 0 : i32
    %c0_i32_1 = arith.constant 0 : i32
    return %c0_i32, %c0_i32_0 : i32, i32
  }
  func.func @transform_21(%arg0: i32) -> (i32, i32) {
    %c0_i32 = arith.constant 0 : i32
    %c0_i32_0 = arith.constant 0 : i32
    %c0_i32_1 = arith.constant 0 : i32
    return %c0_i32, %c0_i32_0 : i32, i32
  }
  func.func @transform_22(%arg0: i32) -> (i32, i32) {
    %c0_i32 = arith.constant 0 : i32
    %c0_i32_0 = arith.constant 0 : i32
    %c0_i32_1 = arith.constant 0 : i32
    return %c0_i32, %c0_i32_0 : i32, i32
  }
  func.func @transform_23(%arg0: i32) -> (i32, i32, i32) {
    %c0_i32 = arith.constant 0 : i32
    %c0_i32_0 = arith.constant 0 : i32
    %c0_i32_1 = arith.constant 0 : i32
    return %c0_i32, %arg0, %c0_i32_0 : i32, i32, i32
  }
  func.func @transform_24(%arg0: i32) -> (i32, i32) {
    %c0_i32 = arith.constant 0 : i32
    %c0_i32_0 = arith.constant 0 : i32
    return %arg0, %c0_i32 : i32, i32
  }
  func.func @transform_25(%arg0: i32) -> (i32, i32, i32) {
    %c0_i32 = arith.constant 0 : i32
    %c0_i32_0 = arith.constant 0 : i32
    %c0_i32_1 = arith.constant 0 : i32
    return %c0_i32, %arg0, %c0_i32_0 : i32, i32, i32
  }
}

</mosaic_0001>

<bundles_post_ra>
// kernel: tpu_custom_call.1
= control target key start
LH: loop header
LB: loop body
LE: loop exit
PB: predicated region body
PF: predicated region fallthrough
CT: control target
= control target key end

     0   :  { %s7570_s0 = inlined_call_operand.vmem [shape: f32[8,8,8], index: 0, kind: input, shape index: {}]   ;;  %s7571_s1 = inlined_call_operand.hbm [shape: f32[8,128], index: 1, kind: input, shape index: {}]   ;;  %s7572_s2 = inlined_call_operand.hbm [shape: f32[32,128], index: 2, kind: input, shape index: {}]   ;;  %s7573_s3 = inlined_call_operand.hbm [shape: f32[1,128], index: 3, kind: input, shape index: {}]   ;;  %s7574_s4 = inlined_call_operand.hbm [shape: f32[32,32], index: 4, kind: input, shape index: {}]   ;;  %s7575_s5 = inlined_call_operand.hbm [shape: f32[1,32], index: 5, kind: input, shape index: {}]   ;;  %s7576_s6 = inlined_call_operand.hbm [shape: f32[16,32], index: 6, kind: input, shape index: {}]   ;;  %s7577_s7 = inlined_call_operand.hbm [shape: f32[1,32], index: 7, kind: input, shape index: {}]   ;;  %s7578_s8 = inlined_call_operand.hbm [shape: f32[32,128], index: 8, kind: input, shape index: {}]   ;;  %s7579_s9 = inlined_call_operand.hbm [shape: f32[1,128], index: 9, kind: input, shape index: {}]   ;;  %s7580_s10 = inlined_call_operand.vmem [shape: f32[32,128], index: 10, kind: input, shape index: {}]   ;;  %s7581_s11 = inlined_call_operand.hbm [shape: f32[1,128], index: 11, kind: input, shape index: {}]   ;;  %s7582_s12 = inlined_call_operand.hbm [shape: f32[32,128], index: 12, kind: input, shape index: {}]   ;;  %s7583_s13 = inlined_call_operand.hbm [shape: f32[32,32], index: 13, kind: input, shape index: {}]   ;;  %s7584_s14 = inlined_call_operand.hbm [shape: f32[1,32], index: 14, kind: input, shape index: {}]   ;;  %s7585_s15 = inlined_call_operand.hbm [shape: f32[32,32], index: 15, kind: input, shape index: {}]   ;;  %s7586_s16 = inlined_call_operand.hbm [shape: f32[1,32], index: 16, kind: input, shape index: {}]   ;;  %s7587_s17 = inlined_call_operand.vmem [shape: f32[32,8], index: 17, kind: input, shape index: {}]   ;;  %s7588_s18 = inlined_call_operand.hbm [shape: f32[1,8], index: 18, kind: input, shape index: {}]   ;;  %s7589_s19 = inlined_call_operand.hbm [shape: f32[32,32], index: 19, kind: input, shape index: {}]   ;;  %s7590_s20 = inlined_call_operand.vmem [shape: f32[1,32], index: 20, kind: input, shape index: {}]   ;;  %s7591_s21 = inlined_call_operand.vmem [shape: f32[32,8], index: 21, kind: input, shape index: {}]   ;;  %s7592_s22 = inlined_call_operand.vmem [shape: f32[1,8], index: 22, kind: input, shape index: {}]   ;;  %s7593_s23 = inlined_call_operand.hbm [shape: f32[8,8,8], index: 23, kind: output, shape index: {0}]   ;;  %s7594_s24 = inlined_call_operand.hbm [shape: f32[8,32], index: 24, kind: output, shape index: {1}]   ;;  %s7595_s25 = inlined_call_operand.hbm [shape: f32[8,8,8], index: 25, kind: output, shape index: {2}]  }
   0x1   :  { %7597 = sst [smem:[#allocation46_spill]] %s7570_s0 }
   0x2   :  { %7598 = sst [smem:[#allocation47_spill]] %s7571_s1 }
   0x3   :  { %7599 = sst [smem:[#allocation48_spill]] %s7572_s2 }
   0x4   :  { %7600 = sst [smem:[#allocation49_spill]] %s7573_s3 }
   0x5   :  { %7601 = sst [smem:[#allocation50_spill]] %s7574_s4 }
   0x6   :  { %7602 = sst [smem:[#allocation51_spill]] %s7575_s5 }
   0x7   :  { %7603 = sst [smem:[#allocation52_spill]] %s7576_s6 }
   0x8   :  { %7604 = sst [smem:[#allocation53_spill]] %s7577_s7 }
   0x9   :  { %7605 = sst [smem:[#allocation54_spill]] %s7578_s8 }
   0xa   :  { %7606 = sst [smem:[#allocation55_spill]] %s7579_s9 }
   0xb   :  { %31 = vsyncpa [#allocation5], 0 }
   0xc   :  { %32 = vsyncpa [#allocation8], 0 }
   0xd   :  { %33 = vsyncpa [#allocation11], 0 }
   0xe   :  { %34 = vsyncpa [#allocation14], 0 }
   0xf   :  { %35 = vsyncpa [#allocation17], 0 }
  0x10   :  { %36 = vsyncpa [#allocation20], 0 }
  0x11   :  { %37 = vsyncpa [#allocation23], 0 }
  0x12   :  { %38 = vsyncpa [#allocation26], 0 }
  0x13   :  { %39 = vsyncpa [#allocation29], 0 }
  0x14   :  { %40 = vsyncpa [#allocation6], 0 }
  0x15   :  { %41 = vsyncpa [#allocation33], 0  ;;  %s6511_s29 = smov [#allocation7]  }
  0x16   :  { %s59_s2 = sshll.u32 %s6511_s29, 4  ;;  %s60_s2 = int_to_ptr.vmem [resolvable:$true] %s59_s2 }
  0x17   :  { %s6097_s6 = scalar_lea.vmem %s60_s2, 512  ;;  %p6102_p1 = scmp.lt.s32.totalorder %s60_s2, %s60_s2 }
  0x18   :  { %p6098_p0 = scmp.ne.s32.totalorder %s60_s2, %s6097_s6  ;;  %p6103_p2 = scmp.lt.s32.totalorder %s6097_s6, %s6097_s6 }
  0x1a   :  { %p6104_p3 = por %p6103_p2, %p6102_p1 }
  0x1c   :  { %p6105_p4 = pnand %p6104_p3, %p6098_p0 }
  0x1e   :  { %6108 = shalt.err (!%p6105_p4)
}
  0x1f   :  { %s6512_s30 = smov 128   ;;  %s6513_s7 = smov 8  }
  0x20   :  { %s7607_s1 = sld [smem:[#allocation48_spill]]  ;;  %s6514_s8 = smov [#allocation10]  }
  0x21   :  { %s81_s27 = sshll.u32 %s6514_s8, 4  ;;  %s6515_s4 = smov [#allocation13]   ;;  %s82_s27 = int_to_ptr.vmem [resolvable:$true] %s81_s27 }
  0x22   :  { %s103_s28 = sshll.u32 %s6515_s4, 4  ;;  %s6117_s9 = scalar_lea.vmem %s82_s27, 512  ;;  %s104_s28 = int_to_ptr.vmem [resolvable:$true] %s103_s28 }
  0x23   :  { %p6118_p5 = scmp.ne.s32.totalorder %s82_s27, %s6117_s9  ;;  %p6122_p6 = scmp.lt.s32.totalorder %s82_s27, %s82_s27 }
  0x24   :  { %p6123_p7 = scmp.lt.s32.totalorder %s6117_s9, %s6117_s9 }
  0x26   :  { %65 = dma.hbm_to_vmem [thread:$0]  %s7607_s1, 512, %s60_s2, [#allocation8], %s6512_s30, %s6512_s30, %s6513_s7  }
  0x27   :  { %p6124_p8 = por %p6123_p7, %p6122_p6 }
  0x29   :  { %p6125_p9 = pnand %p6124_p8, %p6118_p5 }
  0x2b   :  { %6128 = shalt.err (!%p6125_p9)
}
  0x2c   :  { %s7608_s29 = sld [smem:[#allocation50_spill]]  ;;  %s6137_s2 = scalar_lea.vmem %s104_s28, 256 }
  0x2d   :  { %p6138_p10 = scmp.ne.s32.totalorder %s104_s28, %s6137_s2  ;;  %p6142_p11 = scmp.lt.s32.totalorder %s104_s28, %s104_s28 }
  0x2e   :  { %p6143_p12 = scmp.lt.s32.totalorder %s6137_s2, %s6137_s2 }
  0x30   :  { %p6144_p13 = por %p6143_p12, %p6142_p11 }
  0x32   :  { %87 = dma.hbm_to_vmem [thread:$0]  %s7608_s29, 512, %s82_s27, [#allocation11], %s6512_s30, %s6512_s30, %s6513_s7  }
  0x33   :  { %p6145_p0 = pnand %p6144_p13, %p6138_p10 }
  0x35   :  { %6148 = shalt.err (!%p6145_p0)
}
  0x36   :  { %s7609_s26 = sld [smem:[#allocation52_spill]]  ;;  %s6516_s1 = smov [#allocation16]  }
  0x37   :  { %s125_s8 = sshll.u32 %s6516_s1, 4  ;;  %s6517_s4 = smov [#allocation19]   ;;  %s126_s8 = int_to_ptr.vmem [resolvable:$true] %s125_s8 }
  0x38   :  { %s150_s27 = sshll.u32 %s6517_s4, 4  ;;  %s6157_s9 = scalar_lea.vmem %s126_s8, 512  ;;  %s151_s27 = int_to_ptr.vmem [resolvable:$true] %s150_s27 }
  0x39   :  { %p6158_p1 = scmp.ne.s32.totalorder %s126_s8, %s6157_s9  ;;  %p6162_p2 = scmp.lt.s32.totalorder %s126_s8, %s126_s8 }
  0x3a   :  { %p6163_p3 = scmp.lt.s32.totalorder %s6157_s9, %s6157_s9 }
  0x3c   :  { %109 = dma.hbm_to_vmem [thread:$0]  %s7609_s26, 256, %s104_s28, [#allocation14], %s6512_s30, %s6512_s30, %s6513_s7  }
  0x3d   :  { %p6164_p4 = por %p6163_p3, %p6162_p2 }
  0x3f   :  { %p6165_p5 = pnand %p6164_p4, %p6158_p1 }
  0x41   :  { %6168 = shalt.err (!%p6165_p5)
}
  0x42   :  { %s7610_s29 = sld [smem:[#allocation54_spill]]  ;;  %s6177_s28 = scalar_lea.vmem %s151_s27, 16 }
  0x43   :  { %p6178_p6 = scmp.ne.s32.totalorder %s151_s27, %s6177_s28  ;;  %s6181_s2 = scalar_lea.vmem %s151_s27, 32 }
  0x44   :  { %p6182_p7 = scmp.lt.s32.totalorder %s151_s27, %s151_s27  ;;  %p6183_p8 = scmp.lt.s32.totalorder %s6181_s2, %s6177_s28 }
  0x46   :  { %p6184_p9 = por %p6183_p8, %p6182_p7 }
  0x48   :  { %131 = dma.hbm_to_vmem [thread:$0]  %s7610_s29, 512, %s126_s8, [#allocation17], %s6512_s30, %s6512_s30, %s6513_s7  }
  0x49   :  { %p6185_p10 = pnand %p6184_p9, %p6178_p6 }
  0x4b   :  { %6188 = shalt.err (!%p6185_p10)
}
  0x4c   :  { %153 = dma.hbm_to_vmem [thread:$0]  %s7581_s11, 16, %s151_s27, [#allocation20]  }
  0x4d   :  { %s6518_s26 = smov [#allocation22]   ;;  %s6519_s4 = smov [#allocation25]  }
  0x4e   :  { %s171_s1 = sshll.u32 %s6518_s26, 4  ;;  %s193_s9 = sshll.u32 %s6519_s4, 4  ;;  %s172_s1 = int_to_ptr.vmem [resolvable:$true] %s171_s1  ;;  %s194_s9 = int_to_ptr.vmem [resolvable:$true] %s193_s9 }
  0x4f   :  { %s6197_s5 = scalar_lea.vmem %s172_s1, 512  ;;  %p6202_p12 = scmp.lt.s32.totalorder %s172_s1, %s172_s1 }
  0x50   :  { %p6198_p11 = scmp.ne.s32.totalorder %s172_s1, %s6197_s5  ;;  %p6203_p13 = scmp.lt.s32.totalorder %s6197_s5, %s6197_s5 }
  0x52   :  { %p6204_p0 = por %p6203_p13, %p6202_p12 }
  0x54   :  { %p6205_p1 = pnand %p6204_p0, %p6198_p11 }
  0x56   :  { %6208 = shalt.err (!%p6205_p1)
}
  0x57   :  { %177 = dma.hbm_to_vmem [thread:$0]  %s7583_s13, 512, %s172_s1, [#allocation23], %s6512_s30, %s6512_s30, %s6513_s7  }
  0x58   :  { %s6217_s11 = scalar_lea.vmem %s194_s9, 512  ;;  %p6222_p3 = scmp.lt.s32.totalorder %s194_s9, %s194_s9 }
  0x59   :  { %p6218_p2 = scmp.ne.s32.totalorder %s194_s9, %s6217_s11  ;;  %p6223_p4 = scmp.lt.s32.totalorder %s6217_s11, %s6217_s11 }
  0x5b   :  { %p6224_p5 = por %p6223_p4, %p6222_p3 }
  0x5d   :  { %p6225_p6 = pnand %p6224_p5, %p6218_p2 }
  0x5f   :  { %6228 = shalt.err (!%p6225_p6)
}
  0x60   :  { %199 = dma.hbm_to_vmem [thread:$0]  %s7585_s15, 512, %s194_s9, [#allocation26], %s6512_s30, %s6512_s30, %s6513_s7  }
  0x61   :  { %s6520_s28 = smov [#allocation28]   ;;  %s6521_s6 = smov [#allocation4]  }
  0x62   :  { %s218_s2 = sshll.u32 %s6520_s28, 4  ;;  %s50_s13 = sshll.u32 %s6521_s6, 4  ;;  %s219_s2 = int_to_ptr.vmem [resolvable:$true] %s218_s2  ;;  %s51_s13 = int_to_ptr.vmem [resolvable:$true] %s50_s13 }
  0x63   :  { %s6237_s3 = scalar_lea.vmem %s219_s2, 16  ;;  %s6241_s26 = scalar_lea.vmem %s219_s2, 32 }
  0x64   :  { %p6238_p7 = scmp.ne.s32.totalorder %s219_s2, %s6237_s3  ;;  %p6242_p8 = scmp.lt.s32.totalorder %s219_s2, %s219_s2 }
  0x65   :  { %p6243_p9 = scmp.lt.s32.totalorder %s6241_s26, %s6237_s3 }
  0x67   :  { %p6244_p10 = por %p6243_p9, %p6242_p8 }
  0x69   :  { %p6245_p11 = pnand %p6244_p10, %p6238_p7 }
  0x6b   :  { %6248 = shalt.err (!%p6245_p11)
}
  0x6c   :  { %221 = dma.hbm_to_vmem [thread:$0]  %s7588_s18, 16, %s219_s2, [#allocation29]  }
  0x6d   :  { %s6257_s5 = scalar_lea.vmem %s51_s13, 128  ;;  %p6262_p13 = scmp.lt.s32.totalorder %s51_s13, %s51_s13 }
  0x6e   :  { %p6258_p12 = scmp.ne.s32.totalorder %s51_s13, %s6257_s5  ;;  %p6263_p0 = scmp.lt.s32.totalorder %s6257_s5, %s6257_s5 }
  0x70   :  { %p6264_p1 = por %p6263_p0, %p6262_p13 }
  0x72   :  { %p6265_p2 = pnand %p6264_p1, %p6258_p12 }
  0x74   :  { %6268 = shalt.err (!%p6265_p2)
}
  0x75   :  { %s7611_s8 = sld [smem:[#allocation47_spill]]  ;;  %s6522_s0 = smov [#allocation9]  }
  0x76   :  { %s72_s11 = sshll.u32 %s6522_s0, 4  ;;  %s6523_s27 = smov [#allocation12]   ;;  %s73_s11 = int_to_ptr.vmem [resolvable:$true] %s72_s11 }
  0x77   :  { %s94_s29 = sshll.u32 %s6523_s27, 4  ;;  %s6277_s28 = scalar_lea.vmem %s73_s11, 16  ;;  %s95_s29 = int_to_ptr.vmem [resolvable:$true] %s94_s29 }
  0x78   :  { %p6278_p3 = scmp.ne.s32.totalorder %s73_s11, %s6277_s28  ;;  %s6281_s18 = scalar_lea.vmem %s73_s11, 32 }
  0x79   :  { %p6282_p4 = scmp.lt.s32.totalorder %s73_s11, %s73_s11  ;;  %p6283_p5 = scmp.lt.s32.totalorder %s6281_s18, %s6277_s28 }
  0x7b   :  { %53 = dma.hbm_to_vmem [thread:$0]  %s7611_s8, 128, %s51_s13, [#allocation5]  }
  0x7c   :  { %p6284_p6 = por %p6283_p5, %p6282_p4 }
  0x7e   :  { %p6285_p7 = pnand %p6284_p6, %p6278_p3 }
  0x80   :  { %6288 = shalt.err (!%p6285_p7)
}
  0x81   :  { %s7612_s3 = sld [smem:[#allocation49_spill]]  ;;  %s6297_s26 = scalar_lea.vmem %s95_s29, 16 }
  0x82   :  { %p6298_p8 = scmp.ne.s32.totalorder %s95_s29, %s6297_s26  ;;  %s6301_s13 = scalar_lea.vmem %s95_s29, 32 }
  0x83   :  { %p6302_p9 = scmp.lt.s32.totalorder %s95_s29, %s95_s29  ;;  %p6303_p10 = scmp.lt.s32.totalorder %s6301_s13, %s6297_s26 }
  0x85   :  { %p6304_p11 = por %p6303_p10, %p6302_p9 }
  0x87   :  { %75 = dma.hbm_to_vmem [thread:$0]  %s7612_s3, 16, %s73_s11, [#allocation8]  }
  0x88   :  { %p6305_p12 = pnand %p6304_p11, %p6298_p8 }
  0x8a   :  { %6308 = shalt.err (!%p6305_p12)
}
  0x8b   :  { %s7613_s5 = sld [smem:[#allocation51_spill]]  ;;  %s6524_s15 = smov [#allocation15]  }
  0x8c   :  { %s116_s9 = sshll.u32 %s6524_s15, 4  ;;  %s6525_s8 = smov [#allocation18]   ;;  %s117_s9 = int_to_ptr.vmem [resolvable:$true] %s116_s9 }
  0x8d   :  { %s138_s0 = sshll.u32 %s6525_s8, 4  ;;  %s6317_s27 = scalar_lea.vmem %s117_s9, 16  ;;  %s139_s0 = int_to_ptr.vmem [resolvable:$true] %s138_s0 }
  0x8e   :  { %p6318_p13 = scmp.ne.s32.totalorder %s117_s9, %s6317_s27  ;;  %s6321_s11 = scalar_lea.vmem %s117_s9, 32 }
  0x8f   :  { %p6322_p0 = scmp.lt.s32.totalorder %s117_s9, %s117_s9  ;;  %p6323_p1 = scmp.lt.s32.totalorder %s6321_s11, %s6317_s27 }
  0x91   :  { %97 = dma.hbm_to_vmem [thread:$0]  %s7613_s5, 16, %s95_s29, [#allocation11]  }
  0x92   :  { %p6324_p2 = por %p6323_p1, %p6322_p0 }
  0x94   :  { %p6325_p3 = pnand %p6324_p2, %p6318_p13 }
  0x96   :  { %6328 = shalt.err (!%p6325_p3)
}
  0x97   :  { %s7614_s2 = sld [smem:[#allocation53_spill]]  ;;  %s6337_s6 = scalar_lea.vmem %s139_s0, 16 }
  0x98   :  { %p6338_p4 = scmp.ne.s32.totalorder %s139_s0, %s6337_s6  ;;  %s6341_s29 = scalar_lea.vmem %s139_s0, 32 }
  0x99   :  { %p6342_p5 = scmp.lt.s32.totalorder %s139_s0, %s139_s0  ;;  %p6343_p6 = scmp.lt.s32.totalorder %s6341_s29, %s6337_s6 }
  0x9b   :  { %p6344_p7 = por %p6343_p6, %p6342_p5 }
  0x9d   :  { %119 = dma.hbm_to_vmem [thread:$0]  %s7614_s2, 16, %s117_s9, [#allocation14]  }
  0x9e   :  { %p6345_p8 = pnand %p6344_p7, %p6338_p4 }
  0xa0   :  { %6348 = shalt.err (!%p6345_p8)
}
  0xa1   :  { %s7615_s13 = sld [smem:[#allocation55_spill]]  ;;  %s6526_s1 = smov [#allocation21]  }
  0xa2   :  { %s159_s4 = sshll.u32 %s6526_s1, 4  ;;  %s6527_s5 = smov [#allocation24]   ;;  %s160_s4 = int_to_ptr.vmem [resolvable:$true] %s159_s4 }
  0xa3   :  { %s184_s15 = sshll.u32 %s6527_s5, 4  ;;  %s6357_s8 = scalar_lea.vmem %s160_s4, 512  ;;  %s185_s15 = int_to_ptr.vmem [resolvable:$true] %s184_s15 }
  0xa4   :  { %p6358_p9 = scmp.ne.s32.totalorder %s160_s4, %s6357_s8  ;;  %p6362_p10 = scmp.lt.s32.totalorder %s160_s4, %s160_s4 }
  0xa5   :  { %p6363_p11 = scmp.lt.s32.totalorder %s6357_s8, %s6357_s8 }
  0xa7   :  { %141 = dma.hbm_to_vmem [thread:$0]  %s7615_s13, 16, %s139_s0, [#allocation17]  }
  0xa8   :  { %p6364_p12 = por %p6363_p11, %p6362_p10 }
  0xaa   :  { %p6365_p13 = pnand %p6364_p12, %p6358_p9 }
  0xac   :  { %6368 = shalt.err (!%p6365_p13)
}
  0xad   :  { %165 = dma.hbm_to_vmem [thread:$0]  %s7582_s12, 512, %s160_s4, [#allocation20], %s6512_s30, %s6512_s30, %s6513_s7  }
  0xae   :  { %s6377_s0 = scalar_lea.vmem %s185_s15, 16  ;;  %s6381_s11 = scalar_lea.vmem %s185_s15, 32 }
  0xaf   :  { %p6378_p0 = scmp.ne.s32.totalorder %s185_s15, %s6377_s0  ;;  %p6382_p1 = scmp.lt.s32.totalorder %s185_s15, %s185_s15 }
  0xb0   :  { %p6383_p2 = scmp.lt.s32.totalorder %s6381_s11, %s6377_s0 }
  0xb2   :  { %p6384_p3 = por %p6383_p2, %p6382_p1 }
  0xb4   :  { %p6385_p4 = pnand %p6384_p3, %p6378_p0 }
  0xb6   :  { %6388 = shalt.err (!%p6385_p4)
}
  0xb7   :  { %187 = dma.hbm_to_vmem [thread:$0]  %s7584_s14, 16, %s185_s15, [#allocation23]  }
  0xb8   :  { %s6528_s2 = smov [#allocation27]   ;;  %s6529_s29 = smov [#allocation30]  }
  0xb9   :  { %s206_s6 = sshll.u32 %s6528_s2, 4  ;;  %s227_s3 = sshll.u32 %s6529_s29, 4  ;;  %s207_s6 = int_to_ptr.vmem [resolvable:$true] %s206_s6  ;;  %s228_s3 = int_to_ptr.vmem [resolvable:$true] %s227_s3 }
  0xba   :  { %s6397_s26 = scalar_lea.vmem %s207_s6, 16  ;;  %s6401_s12 = scalar_lea.vmem %s207_s6, 32 }
  0xbb   :  { %p6398_p5 = scmp.ne.s32.totalorder %s207_s6, %s6397_s26  ;;  %p6402_p6 = scmp.lt.s32.totalorder %s207_s6, %s207_s6 }
  0xbc   :  { %p6403_p7 = scmp.lt.s32.totalorder %s6401_s12, %s6397_s26 }
  0xbe   :  { %p6404_p8 = por %p6403_p7, %p6402_p6 }
  0xc0   :  { %p6405_p9 = pnand %p6404_p8, %p6398_p5 }
  0xc2   :  { %6408 = shalt.err (!%p6405_p9)
}
  0xc3   :  { %209 = dma.hbm_to_vmem [thread:$0]  %s7586_s16, 16, %s207_s6, [#allocation26]  }
  0xc4   :  { %s6417_s4 = scalar_lea.vmem %s228_s3, 512  ;;  %p6422_p11 = scmp.lt.s32.totalorder %s228_s3, %s228_s3 }
  0xc5   :  { %p6418_p10 = scmp.ne.s32.totalorder %s228_s3, %s6417_s4  ;;  %p6423_p12 = scmp.lt.s32.totalorder %s6417_s4, %s6417_s4 }
  0xc7   :  { %p6424_p13 = por %p6423_p12, %p6422_p11 }
  0xc9   :  { %p6425_p0 = pnand %p6424_p13, %p6418_p10 }
  0xcb   :  { %6428 = shalt.err (!%p6425_p0)
}
  0xcc   :  { %233 = dma.hbm_to_vmem [thread:$0]  %s7589_s19, 512, %s228_s3, [#allocation29], %s6512_s30, %s6512_s30, %s6513_s7  }
  0xcd   :  { %6489 = dma.done.wait [#allocation5], 128  }
  0xce   :  { %6490 = vsyncadd [#allocation5], 4294967168 }
  0xcf   :  { %6491 = dma.done.wait [#allocation8], 528  }
  0xd0   :  { %6492 = vsyncadd [#allocation8], 4294966768 }
  0xd1   :  { %6493 = dma.done.wait [#allocation11], 528  }
  0xd2   :  { %6494 = vsyncadd [#allocation11], 4294966768 }
  0xd3   :  { %6495 = dma.done.wait [#allocation14], 272  }
  0xd4   :  { %6496 = vsyncadd [#allocation14], 4294967024 }
  0xd5   :  { %6497 = dma.done.wait [#allocation17], 528  }
  0xd6   :  { %6498 = vsyncadd [#allocation17], 4294966768 }
  0xd7   :  { %6499 = dma.done.wait [#allocation20], 528  }
  0xd8   :  { %6500 = vsyncadd [#allocation20], 4294966768 }
  0xd9   :  { %6501 = dma.done.wait [#allocation23], 528  }
  0xda   :  { %6502 = vsyncadd [#allocation23], 4294966768 }
  0xdb   :  { %6503 = dma.done.wait [#allocation26], 528  }
  0xdc   :  { %6504 = vsyncadd [#allocation26], 4294966768 }
  0xdd   :  { %6505 = dma.done.wait [#allocation29], 528  }
  0xde   :  { %6506 = vsyncadd [#allocation29], 4294966768  ;;  %v6530_v0 = vmov 0.0   ;;  %vm6531_vm0 = vmmov 0   ;;  %vm313_vm1 = vcmask 64512   ;;  %v305_v1 = vld [vmem:[#allocation4] sm:$0xff]  ;;  %v291_v8 = vlaneseq }
  0xdf   :  { %5401 = vmatprep.subr.mxu1 %v6530_v0  ;;  %5409 = vmatprep.mubr.msk.f32.mxu1 %vm6531_vm0, %v6530_v0  ;;  %v6746_v2 = vld [vmem:[#allocation7 + $0x18] sm:$0xff]  ;;  %s7616_s15 = sld [smem:[#allocation46_spill]]  ;;  %v6755_v5 = vld [vmem:[#allocation7 + $0x10] sm:$0xff]  ;;  %v6760_v6 = vld [vmem:[#allocation7 + $0x8] sm:$0xff]  ;;  %v6532_v15 = vmov 1.0   ;;  %s6533_s27 = smov 64  }
  0xe0   :  { %5387 = vmatprep.subr.mxu0 %v305_v1  ;;  %5402 = vmatpush3.msra.mxu1 %v6746_v2  ;;  %v6765_v7 = vld [vmem:[#allocation7] sm:$0xff]  ;;  %v292_v9 = vand.u32 127, %v291_v8  ;;  %s6534_s0 = smov 32   ;;  %vm456_vm5 = vcmask 261120   ;;  %vm1389_vm6 = vcmask 130048  }
  0xe1   :  { %5388 = vmatpush3.msra.mxu0 %v305_v1  ;;  %5403 = vmatprep.subr.mxu1 %v6530_v0  ;;  %v6790_v11 = vld [vmem:[#allocation9] ss:$0 sm:$0xff] }
  0xe2   :  { %5404 = vmatpush3.msra.mxu1 %v6755_v5  ;;  %5423 = vmatprep.subr.mxu0 %v6530_v0  ;;  %vm293_vm2 = vcmp.ge.s32.totalorder %v292_v9, 64  ;;  %vm294_vm3 = vcmp.lt.s32.totalorder %v292_v9, 96 }
  0xe3   :  { %5405 = vmatprep.subr.mxu1 %v6530_v0  ;;  %vm6793_vm4 = vmand %vm293_vm2, %vm294_vm3 }
  0xe4   :  { %5406 = vmatpush3.msra.mxu1 %v6760_v6  ;;  %v6799_v16 = vsel %vm6793_vm4, 2.0, %v6532_v15 }
  0xe5   :  { %v297_v3 = vld [vmem:[%s7616_s15] sm:$0xff]  ;;  %v298_v4 = vld [vmem:[%s7616_s15 + $0x8] sm:$0xff]  ;;  %5407 = vmatprep.subr.mxu1 %v6530_v0  ;;  %v299_v54 = vld [vmem:[%s7616_s15 + $0x10] sm:$0xff] }
  0xe6   :  { %5389 = vmatprep.mubr.msk.f32.mxu0 %vm313_vm1, %v297_v3  ;;  %5408 = vmatpush3.msra.mxu1 %v6765_v7  ;;  %v300_v55 = vld [vmem:[%s7616_s15 + $0x18] sm:$0xff]  ;;  %v301_v56 = vld [vmem:[%s7616_s15 + $0x20] sm:$0xff]  ;;  %v302_v57 = vld [vmem:[%s7616_s15 + $0x28] sm:$0xff] }
  0xe7   :  { %5390 = vmatmul.mubr.msk.f32.vlgmr.msra.gmra.mxu0 %vm313_vm1, %v298_v4  ;;  %5410 = vmatmul.mubr.f32.vlgmr.msra.gmra.mxu1 %v6530_v0  ;;  %v303_v58 = vld [vmem:[%s7616_s15 + $0x30] sm:$0xff]  ;;  %v304_v59 = vld [vmem:[%s7616_s15 + $0x38] sm:$0xff]  ;;  %s6536_s15 = smov [#allocation31]  }
  0xe8   :  { %5424 = vmatpush3.msra.mxu0 %v6746_v2  ;;  %5412 = vmatprep.subr.mxu1 %v6530_v0  ;;  %s4976_s8 = sshll.u32 %s6536_s15, 4  ;;  %s4977_s8 = int_to_ptr.vmem [resolvable:$true] %s4976_s8 }
  0xe9   :  { %5425 = vmatprep.subr.mxu0 %v6530_v0  ;;  %5413 = vmatpush3.msra.mxu1 %v6746_v2 }
  0xea   :  { %5426 = vmatpush3.msra.mxu0 %v6755_v5  ;;  %5420 = vmatprep.mubr.msk.f32.mxu1 %vm6531_vm0, %v6530_v0 }
  0xeb   :  { %5427 = vmatprep.subr.mxu0 %v6530_v0  ;;  %5414 = vmatprep.subr.mxu1 %v6530_v0 }
  0xec   :  { %5428 = vmatpush3.msra.mxu0 %v6760_v6  ;;  %5415 = vmatpush3.msra.mxu1 %v6755_v5 }
  0xed   :  { %5429 = vmatprep.subr.mxu0 %v6530_v0  ;;  %5416 = vmatprep.subr.mxu1 %v6530_v0 }
  0xee   :  { %5430 = vmatpush3.msra.mxu0 %v6765_v7  ;;  %5417 = vmatpush3.msra.mxu1 %v6760_v6 }
  0xef   :  { %5445 = vmatprep.subr.mxu0 %v6530_v0  ;;  %5418 = vmatprep.subr.mxu1 %v6530_v0 }
  0xf0   :  { %5419 = vmatpush3.msra.mxu1 %v6765_v7  ;;  %5392 = vmatprep.mubr.msk.f32.mxu0 %vm313_vm1, %v299_v54 }
  0xf1   :  { %5434 = vmatprep.subr.mxu1 %v6530_v0  ;;  %5393 = vmatmul.mubr.msk.f32.gmra.mxu0 %vm313_vm1, %v300_v55 }
  0xf2   :  { %5395 = vmatprep.mubr.msk.f32.mxu0 %vm313_vm1, %v301_v56 }
  0xf5   :  { %5396 = vmatmul.mubr.msk.f32.gmra.mxu0 %vm313_vm1, %v302_v57 }
  0xf6   :  { %5398 = vmatprep.mubr.msk.f32.mxu0 %vm313_vm1, %v303_v58 }
  0xf9   :  { %5399 = vmatmul.mubr.msk.f32.gmra.mxu0 %vm313_vm1, %v304_v59 }
  0xfa   :  { %5431 = vmatprep.mubr.msk.f32.mxu0 %vm6531_vm0, %v6530_v0 }
 0x1a7   :  { %v5391_v10 = vpop.f32.mrf.mxu0  ;;  %v526_v17 = vpop.f32.mrf.mxu1 }
 0x1a8   :  { %v410_v37 = vadd.f32 %v5391_v10, %v6790_v11 }
 0x1a9   :  { %v404_v12 = vpop.f32.mrf.mxu0  ;;  %v5411_v19 = vpop.f32.mrf.mxu1 }
 0x1aa   :  { %v405_v13 = vadd.f32 %v6790_v11, %v404_v12 }
 0x1ac   :  { %v530_v18 = vadd.f32 %v526_v17, %v405_v13 }
 0x1ae   :  { %v531_v20 = vmul.f32 %v530_v18, %v6799_v16 }
 0x1b0   :  { %v5034_v21 = vmul.f32 -1.442695, %v531_v20 }
 0x1b1   :  { %v5394_v1 = vpop.f32.mrf.mxu0 }
 0x1b2   :  { %5935 = vpow2.f32 %v5034_v21 }
 0x1b3   :  { %v414_v3 = vpop.f32.mrf.mxu0 }
 0x1b4   :  { %v415_v12 = vadd.f32 %v6790_v11, %v414_v3 }
 0x1b5   :  { %v6864_v4 = vpop.f32.mrf.mxu0 }
 0x1b7   :  { %v6866_v8 = vpop.f32.mrf.mxu0 }
 0x1b8   :  { %v425_v56 = vadd.f32 %v6790_v11, %v6866_v8 }
 0x1b9   :  { %v6868_v9 = vpop.f32.mrf.mxu0 }
 0x1bb   :  { %v6870_v10 = vpop.f32.mrf.mxu0 }
 0x1bf   :  { %v5936_v22 = vpop.eup %5935 }
 0x1c0   :  { %v535_v23 = vadd.f32 1.0, %v5936_v22 }
 0x1c2   :  { %5937 = vrcp.f32 %v535_v23 }
 0x1cf   :  { %v5938_v24 = vpop.eup %5937 }
 0x1d0   :  { %v538_v25 = vmul.f32 2.0, %v5938_v24 }
 0x1d2   :  { %v5035_v26 = vadd.f32 -1.0, %v538_v25 }
 0x1d4   :  { %v540_v27 = vsel %vm6793_vm4, %v5035_v26, %v5938_v24 }
 0x1d5   :  { %543 = vrot.lane.b32.xlu0 %v540_v27, %s6533_s27  ;;  %v541_v30 = vmul.f32 0.0, %v540_v27 }
 0x247   :  { %v544_v28 = vpop.permute.xlu0 %543 }
 0x248   :  { %v546_v29 = vmul.f32 %v544_v28, %v540_v27 }
 0x24a   :  { %548 = vrot.lane.b32.xlu0 %v546_v29, %s6534_s0 }
 0x2bc   :  { %v549_v31 = vpop.permute.xlu0 %548 }
 0x2bd   :  { %v551_v32 = vadd.f32 %v549_v31, %v541_v30 }
 0x2bf   :  { %5939 = vtanh.f32 %v551_v32 }
 0x2cc   :  { %v5940_v33 = vpop.eup %5939 }
 0x2cd   :  { %554 = vrot.lane.b32.xlu1 %v5940_v33, %s6533_s27 }
 0x33f   :  { %v555_v34 = vpop.permute.xlu1 %554 }
 0x340   :  { %v557_v35 = vmul.f32 %v555_v34, %v540_v27 }
 0x342   :  { %561 = vrot.lane.b32.xlu1 %v557_v35, %s6534_s0  ;;  %v420_v35 = vadd.f32 %v5394_v1, %v6790_v11 }
 0x3b4   :  { %v562_v36 = vpop.permute.xlu1 %561 }
 0x3b5   :  { %5421 = vmatmul.mubr.msk.f32.vlgmr.msra.gmra.mxu1 %vm456_vm5, %v562_v36 }
 0x3b6   :  { %5435 = vmatpush3.msra.mxu1 %v6746_v2  ;;  %5442 = vmatprep.mubr.msk.f32.mxu1 %vm6531_vm0, %v6530_v0 }
 0x3b7   :  { %5436 = vmatprep.subr.mxu1 %v6530_v0 }
 0x3b8   :  { %5437 = vmatpush3.msra.mxu1 %v6755_v5 }
 0x3b9   :  { %5438 = vmatprep.subr.mxu1 %v6530_v0 }
 0x3ba   :  { %5439 = vmatpush3.msra.mxu1 %v6760_v6 }
 0x3bb   :  { %5440 = vmatprep.subr.mxu1 %v6530_v0 }
 0x3bc   :  { %5441 = vmatpush3.msra.mxu1 %v6765_v7 }
 0x3bd   :  { %5456 = vmatprep.subr.mxu1 %v6530_v0 }
 0x475   :  { %v631_v38 = vpop.f32.mrf.mxu1 }
 0x476   :  { %v635_v39 = vadd.f32 %v631_v38, %v410_v37 }
 0x477   :  { %v5422_v40 = vpop.f32.mrf.mxu1 }
 0x478   :  { %v636_v41 = vmul.f32 %v635_v39, %v6799_v16 }
 0x47a   :  { %v5037_v42 = vmul.f32 -1.442695, %v636_v41 }
 0x47c   :  { %5941 = vpow2.f32 %v5037_v42 }
 0x489   :  { %v5942_v43 = vpop.eup %5941 }
 0x48a   :  { %v640_v44 = vadd.f32 1.0, %v5942_v43 }
 0x48c   :  { %5943 = vrcp.f32 %v640_v44 }
 0x499   :  { %v5944_v45 = vpop.eup %5943 }
 0x49a   :  { %v643_v46 = vmul.f32 2.0, %v5944_v45 }
 0x49c   :  { %v5038_v47 = vadd.f32 -1.0, %v643_v46 }
 0x49e   :  { %v645_v48 = vsel %vm6793_vm4, %v5038_v47, %v5944_v45 }
 0x49f   :  { %648 = vrot.lane.b32.xlu0 %v645_v48, %s6533_s27  ;;  %v646_v51 = vmul.f32 %v645_v48, %v551_v32 }
 0x511   :  { %v649_v49 = vpop.permute.xlu0 %648 }
 0x512   :  { %v651_v50 = vmul.f32 %v649_v49, %v645_v48 }
 0x514   :  { %653 = vrot.lane.b32.xlu1 %v651_v50, %s6534_s0 }
 0x586   :  { %v654_v52 = vpop.permute.xlu1 %653 }
 0x587   :  { %v656_v53 = vadd.f32 %v654_v52, %v646_v51 }
 0x589   :  { %5945 = vtanh.f32 %v656_v53 }
 0x596   :  { %v5946_v60 = vpop.eup %5945 }
 0x597   :  { %659 = vrot.lane.b32.xlu0 %v5946_v60, %s6533_s27 }
 0x609   :  { %v660_v61 = vpop.permute.xlu0 %659 }
 0x60a   :  { %v662_v62 = vmul.f32 %v660_v61, %v645_v48 }
 0x60c   :  { %666 = vrot.lane.b32.xlu1 %v662_v62, %s6534_s0 }
 0x67e   :  { %v667_v63 = vpop.permute.xlu1 %666 }
 0x67f   :  { %5432 = vmatmul.mubr.msk.f32.vlgmr.msra.gmra.mxu0 %vm456_vm5, %v667_v63 }
 0x680   :  { %5446 = vmatpush3.msra.mxu0 %v6746_v2  ;;  %5453 = vmatprep.mubr.msk.f32.mxu0 %vm6531_vm0, %v6530_v0 }
 0x681   :  { %5447 = vmatprep.subr.mxu0 %v6530_v0 }
 0x682   :  { %5448 = vmatpush3.msra.mxu0 %v6755_v5 }
 0x683   :  { %5449 = vmatprep.subr.mxu0 %v6530_v0 }
 0x684   :  { %5450 = vmatpush3.msra.mxu0 %v6760_v6 }
 0x685   :  { %5451 = vmatprep.subr.mxu0 %v6530_v0 }
 0x686   :  { %5452 = vmatpush3.msra.mxu0 %v6765_v7 }
 0x687   :  { %5467 = vmatprep.subr.mxu0 %v6530_v0 }
 0x73f   :  { %v736_v13 = vpop.f32.mrf.mxu0 }
 0x740   :  { %v740_v15 = vadd.f32 %v736_v13, %v415_v12 }
 0x741   :  { %v5433_v17 = vpop.f32.mrf.mxu0 }
 0x742   :  { %v741_v18 = vmul.f32 %v740_v15, %v6799_v16 }
 0x744   :  { %v5040_v19 = vmul.f32 -1.442695, %v741_v18 }
 0x746   :  { %5947 = vpow2.f32 %v5040_v19 }
 0x753   :  { %v5948_v20 = vpop.eup %5947 }
 0x754   :  { %v745_v21 = vadd.f32 1.0, %v5948_v20 }
 0x756   :  { %5949 = vrcp.f32 %v745_v21 }
 0x763   :  { %v5950_v22 = vpop.eup %5949 }
 0x764   :  { %v748_v23 = vmul.f32 2.0, %v5950_v22 }
 0x766   :  { %v5041_v24 = vadd.f32 -1.0, %v748_v23 }
 0x768   :  { %v750_v25 = vsel %vm6793_vm4, %v5041_v24, %v5950_v22 }
 0x769   :  { %753 = vrot.lane.b32.xlu0 %v750_v25, %s6533_s27  ;;  %v751_v28 = vmul.f32 %v750_v25, %v656_v53 }
 0x7db   :  { %v754_v26 = vpop.permute.xlu0 %753 }
 0x7dc   :  { %v756_v27 = vmul.f32 %v754_v26, %v750_v25 }
 0x7de   :  { %758 = vrot.lane.b32.xlu1 %v756_v27, %s6534_s0 }
 0x850   :  { %v759_v29 = vpop.permute.xlu1 %758 }
 0x851   :  { %v761_v30 = vadd.f32 %v759_v29, %v751_v28 }
 0x853   :  { %5951 = vtanh.f32 %v761_v30 }
 0x860   :  { %v5952_v31 = vpop.eup %5951 }
 0x861   :  { %764 = vrot.lane.b32.xlu0 %v5952_v31, %s6533_s27 }
 0x8d3   :  { %v765_v32 = vpop.permute.xlu0 %764 }
 0x8d4   :  { %v767_v33 = vmul.f32 %v765_v32, %v750_v25 }
 0x8d6   :  { %771 = vrot.lane.b32.xlu1 %v767_v33, %s6534_s0 }
 0x948   :  { %v772_v34 = vpop.permute.xlu1 %771 }
 0x949   :  { %5443 = vmatmul.mubr.msk.f32.vlgmr.msra.gmra.mxu1 %vm456_vm5, %v772_v34 }
 0x94a   :  { %5457 = vmatpush3.msra.mxu1 %v6746_v2  ;;  %5464 = vmatprep.mubr.msk.f32.mxu1 %vm6531_vm0, %v6530_v0 }
 0x94b   :  { %5458 = vmatprep.subr.mxu1 %v6530_v0 }
 0x94c   :  { %5459 = vmatpush3.msra.mxu1 %v6755_v5 }
 0x94d   :  { %5460 = vmatprep.subr.mxu1 %v6530_v0 }
 0x94e   :  { %5461 = vmatpush3.msra.mxu1 %v6760_v6 }
 0x94f   :  { %5462 = vmatprep.subr.mxu1 %v6530_v0 }
 0x950   :  { %5463 = vmatpush3.msra.mxu1 %v6765_v7 }
 0x951   :  { %5478 = vmatprep.subr.mxu1 %v6530_v0 }
 0xa09   :  { %v841_v36 = vpop.f32.mrf.mxu1 }
 0xa0a   :  { %v845_v37 = vadd.f32 %v841_v36, %v420_v35 }
 0xa0b   :  { %v5444_v38 = vpop.f32.mrf.mxu1 }
 0xa0c   :  { %v846_v39 = vmul.f32 %v845_v37, %v6799_v16 }
 0xa0e   :  { %v5043_v40 = vmul.f32 -1.442695, %v846_v39 }
 0xa10   :  { %5953 = vpow2.f32 %v5043_v40  ;;  %v435_v40 = vadd.f32 %v6790_v11, %v6870_v10 }
 0xa1d   :  { %v5954_v41 = vpop.eup %5953 }
 0xa1e   :  { %v850_v42 = vadd.f32 1.0, %v5954_v41 }
 0xa20   :  { %5955 = vrcp.f32 %v850_v42 }
 0xa2d   :  { %v5956_v43 = vpop.eup %5955 }
 0xa2e   :  { %v853_v44 = vmul.f32 2.0, %v5956_v43 }
 0xa30   :  { %v5044_v45 = vadd.f32 -1.0, %v853_v44 }
 0xa32   :  { %v855_v46 = vsel %vm6793_vm4, %v5044_v45, %v5956_v43 }
 0xa33   :  { %858 = vrot.lane.b32.xlu0 %v855_v46, %s6533_s27  ;;  %v856_v49 = vmul.f32 %v855_v46, %v761_v30 }
 0xaa5   :  { %v859_v47 = vpop.permute.xlu0 %858 }
 0xaa6   :  { %v861_v48 = vmul.f32 %v859_v47, %v855_v46 }
 0xaa8   :  { %863 = vrot.lane.b32.xlu1 %v861_v48, %s6534_s0 }
 0xb1a   :  { %v864_v50 = vpop.permute.xlu1 %863 }
 0xb1b   :  { %v866_v51 = vadd.f32 %v864_v50, %v856_v49 }
 0xb1d   :  { %5957 = vtanh.f32 %v866_v51 }
 0xb2a   :  { %v5958_v52 = vpop.eup %5957 }
 0xb2b   :  { %869 = vrot.lane.b32.xlu0 %v5958_v52, %s6533_s27 }
 0xb9d   :  { %v870_v53 = vpop.permute.xlu0 %869 }
 0xb9e   :  { %v872_v54 = vmul.f32 %v870_v53, %v855_v46 }
 0xba0   :  { %876 = vrot.lane.b32.xlu1 %v872_v54, %s6534_s0 }
 0xc12   :  { %v877_v55 = vpop.permute.xlu1 %876 }
 0xc13   :  { %5454 = vmatmul.mubr.msk.f32.vlgmr.msra.gmra.mxu0 %vm456_vm5, %v877_v55 }
 0xc14   :  { %5468 = vmatpush3.msra.mxu0 %v6746_v2  ;;  %5475 = vmatprep.mubr.msk.f32.mxu0 %vm6531_vm0, %v6530_v0 }
 0xc15   :  { %5469 = vmatprep.subr.mxu0 %v6530_v0 }
 0xc16   :  { %5470 = vmatpush3.msra.mxu0 %v6755_v5 }
 0xc17   :  { %5471 = vmatprep.subr.mxu0 %v6530_v0 }
 0xc18   :  { %5472 = vmatpush3.msra.mxu0 %v6760_v6 }
 0xc19   :  { %5473 = vmatprep.subr.mxu0 %v6530_v0 }
 0xc1a   :  { %5474 = vmatpush3.msra.mxu0 %v6765_v7 }
 0xc1b   :  { %5489 = vmatprep.subr.mxu0 %v6530_v0 }
 0xcd3   :  { %v946_v57 = vpop.f32.mrf.mxu0 }
 0xcd4   :  { %v950_v58 = vadd.f32 %v946_v57, %v425_v56 }
 0xcd5   :  { %v5455_v59 = vpop.f32.mrf.mxu0 }
 0xcd6   :  { %v951_v60 = vmul.f32 %v950_v58, %v6799_v16 }
 0xcd8   :  { %v5046_v61 = vmul.f32 -1.442695, %v951_v60  ;;  %v440_v60 = vadd.f32 %v6868_v9, %v6790_v11 }
 0xcda   :  { %5959 = vpow2.f32 %v5046_v61 }
 0xce7   :  { %v5960_v62 = vpop.eup %5959 }
 0xce8   :  { %v955_v63 = vadd.f32 1.0, %v5960_v62 }
 0xcea   :  { %5961 = vrcp.f32 %v955_v63 }
 0xcf7   :  { %v5962_v1 = vpop.eup %5961 }
 0xcf8   :  { %v958_v3 = vmul.f32 2.0, %v5962_v1 }
 0xcfa   :  { %v5047_v12 = vadd.f32 -1.0, %v958_v3 }
 0xcfc   :  { %v960_v13 = vsel %vm6793_vm4, %v5047_v12, %v5962_v1 }
 0xcfd   :  { %963 = vrot.lane.b32.xlu0 %v960_v13, %s6533_s27  ;;  %v961_v17 = vmul.f32 %v960_v13, %v866_v51 }
 0xd6f   :  { %v964_v15 = vpop.permute.xlu0 %963 }
 0xd70   :  { %v966_v8 = vmul.f32 %v964_v15, %v960_v13 }
 0xd72   :  { %968 = vrot.lane.b32.xlu1 %v966_v8, %s6534_s0 }
 0xde4   :  { %v969_v18 = vpop.permute.xlu1 %968 }
 0xde5   :  { %v971_v19 = vadd.f32 %v969_v18, %v961_v17 }
 0xde7   :  { %5963 = vtanh.f32 %v971_v19 }
 0xdf4   :  { %v5964_v20 = vpop.eup %5963 }
 0xdf5   :  { %974 = vrot.lane.b32.xlu0 %v5964_v20, %s6533_s27 }
 0xe67   :  { %v975_v21 = vpop.permute.xlu0 %974 }
 0xe68   :  { %v977_v22 = vmul.f32 %v975_v21, %v960_v13 }
 0xe6a   :  { %981 = vrot.lane.b32.xlu1 %v977_v22, %s6534_s0  ;;  %v1296_v22 = vld [vmem:[#allocation10 + $0x18] sm:$0xff] }
 0xedc   :  { %v982_v23 = vpop.permute.xlu1 %981 }
 0xedd   :  { %5465 = vmatmul.mubr.msk.f32.vlgmr.msra.gmra.mxu1 %vm456_vm5, %v982_v23  ;;  %v1295_v23 = vld [vmem:[#allocation10 + $0x10] sm:$0xff] }
 0xede   :  { %5479 = vmatpush3.msra.mxu1 %v6746_v2  ;;  %5486 = vmatprep.mubr.msk.f32.mxu1 %vm6531_vm0, %v6530_v0  ;;  %v430_v2 = vadd.f32 %v6864_v4, %v6790_v11 }
 0xedf   :  { %5480 = vmatprep.subr.mxu1 %v6530_v0 }
 0xee0   :  { %5481 = vmatpush3.msra.mxu1 %v6755_v5 }
 0xee1   :  { %5482 = vmatprep.subr.mxu1 %v6530_v0 }
 0xee2   :  { %5483 = vmatpush3.msra.mxu1 %v6760_v6 }
 0xee3   :  { %5484 = vmatprep.subr.mxu1 %v6530_v0 }
 0xee4   :  { %5485 = vmatpush3.msra.mxu1 %v6765_v7 }
 0xee5   :  { %5518 = vmatprep.subr.mxu1 %v6530_v0 }
 0xf9d   :  { %v1051_v24 = vpop.f32.mrf.mxu1 }
 0xf9e   :  { %v1055_v25 = vadd.f32 %v1051_v24, %v430_v2  ;;  %v1294_v2 = vld [vmem:[#allocation10 + $0x8] sm:$0xff]  ;;  %v1293_v24 = vld [vmem:[#allocation10] sm:$0xff] }
 0xf9f   :  { %v5466_v26 = vpop.f32.mrf.mxu1 }
 0xfa0   :  { %v1056_v27 = vmul.f32 %v1055_v25, %v6799_v16 }
 0xfa2   :  { %v5049_v28 = vmul.f32 -1.442695, %v1056_v27 }
 0xfa4   :  { %5965 = vpow2.f32 %v5049_v28  ;;  %v1381_v28 = vld [vmem:[#allocation13 + $0x8] sm:$0xff] }
 0xfb1   :  { %v5966_v5 = vpop.eup %5965 }
 0xfb2   :  { %v1060_v29 = vadd.f32 1.0, %v5966_v5 }
 0xfb4   :  { %5967 = vrcp.f32 %v1060_v29  ;;  %v1380_v29 = vld [vmem:[#allocation13] sm:$0xff] }
 0xfc1   :  { %v5968_v6 = vpop.eup %5967 }
 0xfc2   :  { %v1063_v30 = vmul.f32 2.0, %v5968_v6 }
 0xfc4   :  { %v5050_v31 = vadd.f32 -1.0, %v1063_v30 }
 0xfc6   :  { %v1065_v7 = vsel %vm6793_vm4, %v5050_v31, %v5968_v6  ;;  %v5057_v6 = vld [vmem:[#allocation12] ss:$0 sm:$0xff] }
 0xfc7   :  { %1068 = vrot.lane.b32.xlu0 %v1065_v7, %s6533_s27  ;;  %v1066_v33 = vmul.f32 %v1065_v7, %v971_v19 }
0x1039   :  { %v1069_v32 = vpop.permute.xlu0 %1068 }
0x103a   :  { %v1071_v4 = vmul.f32 %v1069_v32, %v1065_v7 }
0x103c   :  { %1073 = vrot.lane.b32.xlu1 %v1071_v4, %s6534_s0  ;;  %v1495_v4 = vld [vmem:[#allocation16 + $0x10] sm:$0xff] }
0x10ae   :  { %v1074_v34 = vpop.permute.xlu1 %1073 }
0x10af   :  { %v1076_v35 = vadd.f32 %v1074_v34, %v1066_v33  ;;  %v1494_v33 = vld [vmem:[#allocation16 + $0x8] sm:$0xff]  ;;  %v1493_v34 = vld [vmem:[#allocation16] sm:$0xff] }
0x10b1   :  { %5969 = vtanh.f32 %v1076_v35 }
0x10be   :  { %v5970_v36 = vpop.eup %5969 }
0x10bf   :  { %1079 = vrot.lane.b32.xlu0 %v5970_v36, %s6533_s27 }
0x1131   :  { %v1080_v37 = vpop.permute.xlu0 %1079 }
0x1132   :  { %v1082_v38 = vmul.f32 %v1080_v37, %v1065_v7  ;;  %v1496_v7 = vld [vmem:[#allocation16 + $0x18] sm:$0xff] }
0x1134   :  { %1086 = vrot.lane.b32.xlu1 %v1082_v38, %s6534_s0 }
0x11a6   :  { %v1087_v39 = vpop.permute.xlu1 %1086 }
0x11a7   :  { %5476 = vmatmul.mubr.msk.f32.vlgmr.msra.gmra.mxu0 %vm456_vm5, %v1087_v39  ;;  %v5063_v39 = vld [vmem:[#allocation18] ss:$0 sm:$0xff] }
0x11a8   :  { %5497 = vmatprep.mubr.msk.f32.mxu0 %vm6531_vm0, %v6530_v0  ;;  %5490 = vmatpush3.msra.mxu0 %v1296_v22  ;;  %v7073_v22 = vld [vmem:[%s7580_s10 + $0x10] sm:$0xff] }
0x11a9   :  { %5491 = vmatprep.subr.mxu0 %v6530_v0 }
0x11aa   :  { %5492 = vmatpush3.msra.mxu0 %v1295_v23  ;;  %v7080_v23 = vld [vmem:[%s7580_s10 + $0x8] sm:$0xff] }
0x11ab   :  { %5493 = vmatprep.subr.mxu0 %v6530_v0 }
0x11ac   :  { %5494 = vmatpush3.msra.mxu0 %v1294_v2  ;;  %v7087_v2 = vld [vmem:[%s7580_s10] sm:$0xff] }
0x11ad   :  { %5495 = vmatprep.subr.mxu0 %v6530_v0 }
0x11ae   :  { %5496 = vmatpush3.msra.mxu0 %v1293_v24  ;;  %v7091_v24 = vld [vmem:[#allocation27] ss:$0 sm:$0xff] }
0x11af   :  { %5500 = vmatprep.subr.mxu0 %v6530_v0 }
0x1267   :  { %v1156_v41 = vpop.f32.mrf.mxu0 }
0x1268   :  { %v1160_v42 = vadd.f32 %v1156_v41, %v435_v40 }
0x1269   :  { %v5477_v43 = vpop.f32.mrf.mxu0 }
0x126a   :  { %v1161_v44 = vmul.f32 %v1160_v42, %v6799_v16 }
0x126c   :  { %v5052_v45 = vmul.f32 -1.442695, %v1161_v44 }
0x126e   :  { %5971 = vpow2.f32 %v5052_v45 }
0x127b   :  { %v5972_v46 = vpop.eup %5971 }
0x127c   :  { %v1165_v47 = vadd.f32 1.0, %v5972_v46 }
0x127e   :  { %5973 = vrcp.f32 %v1165_v47 }
0x128b   :  { %v5974_v48 = vpop.eup %5973 }
0x128c   :  { %v1168_v49 = vmul.f32 2.0, %v5974_v48 }
0x128e   :  { %v5053_v50 = vadd.f32 -1.0, %v1168_v49 }
0x1290   :  { %v1170_v51 = vsel %vm6793_vm4, %v5053_v50, %v5974_v48 }
0x1291   :  { %1173 = vrot.lane.b32.xlu0 %v1170_v51, %s6533_s27  ;;  %v1171_v53 = vmul.f32 %v1170_v51, %v1076_v35  ;;  %v5059_v35 = vld [vmem:[#allocation15] ss:$0 sm:$0xff] }
0x1303   :  { %v1174_v52 = vpop.permute.xlu0 %1173 }
0x1304   :  { %v1176_v10 = vmul.f32 %v1174_v52, %v1170_v51 }
0x1306   :  { %1178 = vrot.lane.b32.xlu1 %v1176_v10, %s6534_s0 }
0x1378   :  { %v1179_v54 = vpop.permute.xlu1 %1178 }
0x1379   :  { %v1181_v55 = vadd.f32 %v1179_v54, %v1171_v53 }
0x137b   :  { %5975 = vtanh.f32 %v1181_v55 }
0x1388   :  { %v5976_v56 = vpop.eup %5975 }
0x1389   :  { %1184 = vrot.lane.b32.xlu0 %v5976_v56, %s6533_s27  ;;  %v6995_v56 = vld [vmem:[#allocation22 + $0x10] sm:$0xff] }
0x13fb   :  { %v1185_v57 = vpop.permute.xlu0 %1184 }
0x13fc   :  { %v1187_v58 = vmul.f32 %v1185_v57, %v1170_v51  ;;  %v6999_v57 = vld [vmem:[#allocation22 + $0x8] sm:$0xff] }
0x13fe   :  { %1191 = vrot.lane.b32.xlu1 %v1187_v58, %s6534_s0  ;;  %v7003_v58 = vld [vmem:[#allocation22] sm:$0xff] }
0x1470   :  { %v1192_v59 = vpop.permute.xlu1 %1191 }
0x1471   :  { %5487 = vmatmul.mubr.msk.f32.vlgmr.msra.gmra.mxu1 %vm456_vm5, %v1192_v59 }
0x1472   :  { %5526 = vmatprep.mubr.msk.f32.mxu1 %vm6531_vm0, %v6530_v0 }
0x1531   :  { %v1261_v61 = vpop.f32.mrf.mxu1 }
0x1532   :  { %v1265_v62 = vadd.f32 %v1261_v61, %v440_v60 }
0x1533   :  { %v5488_v63 = vpop.f32.mrf.mxu1 }
0x1534   :  { %v1266_v1 = vmul.f32 %v1265_v62, %v6799_v16  ;;  %v7014_v63 = vld [vmem:[#allocation25 + $0x18] sm:$0xff] }
0x1536   :  { %v5055_v3 = vmul.f32 -1.442695, %v1266_v1  ;;  %v7016_v1 = vld [vmem:[#allocation25 + $0x10] sm:$0xff] }
0x1538   :  { %5977 = vpow2.f32 %v5055_v3  ;;  %v7020_v3 = vld [vmem:[#allocation25 + $0x8] sm:$0xff] }
0x1545   :  { %v5978_v12 = vpop.eup %5977 }
0x1546   :  { %v1270_v13 = vadd.f32 1.0, %v5978_v12  ;;  %v7024_v12 = vld [vmem:[#allocation25] sm:$0xff] }
0x1548   :  { %5979 = vrcp.f32 %v1270_v13  ;;  %v7030_v13 = vld [vmem:[#allocation24] ss:$0 sm:$0xff] }
0x1555   :  { %v5980_v15 = vpop.eup %5979 }
0x1556   :  { %v1273_v8 = vmul.f32 2.0, %v5980_v15 }
0x1558   :  { %v5056_v17 = vadd.f32 -1.0, %v1273_v8 }
0x155a   :  { %v1275_v18 = vsel %vm6793_vm4, %v5056_v17, %v5980_v15 }
0x155b   :  { %1278 = vrot.lane.b32.xlu0 %v1275_v18, %s6533_s27  ;;  %v1276_v9 = vmul.f32 %v1275_v18, %v1181_v55  ;;  %v6993_v55 = vld [vmem:[#allocation22 + $0x18] sm:$0xff] }
0x155c   :  { %5519 = vmatpush3.msra.mxu1 %v6993_v55 }
0x155d   :  { %5520 = vmatprep.subr.mxu1 %v6530_v0 }
0x155e   :  { %5521 = vmatpush3.msra.mxu1 %v6995_v56 }
0x155f   :  { %5522 = vmatprep.subr.mxu1 %v6530_v0 }
0x1560   :  { %5523 = vmatpush3.msra.mxu1 %v6999_v57 }
0x1561   :  { %5524 = vmatprep.subr.mxu1 %v6530_v0 }
0x1562   :  { %5525 = vmatpush3.msra.mxu1 %v7003_v58 }
0x1563   :  { %5540 = vmatprep.subr.mxu1 %v6530_v0 }
0x15cd   :  { %v1279_v19 = vpop.permute.xlu0 %1278 }
0x15ce   :  { %v1281_v11 = vmul.f32 %v1279_v19, %v1275_v18 }
0x15d0   :  { %1283 = vrot.lane.b32.xlu1 %v1281_v11, %s6534_s0  ;;  %v7036_v11 = vld [vmem:[#allocation21 + $0x10] sm:$0xff] }
0x1642   :  { %v1284_v20 = vpop.permute.xlu1 %1283 }
0x1643   :  { %v1286_v21 = vadd.f32 %v1284_v20, %v1276_v9  ;;  %v7042_v9 = vld [vmem:[#allocation21 + $0x8] sm:$0xff]  ;;  %v7046_v20 = vld [vmem:[#allocation21] sm:$0xff] }
0x1645   :  { %5981 = vtanh.f32 %v1286_v21  ;;  %v7066_v21 = vld [vmem:[%s7580_s10 + $0x18] sm:$0xff] }
0x1652   :  { %v5982_v25 = vpop.eup %5981 }
0x1653   :  { %1289 = vrot.lane.b32.xlu0 %v5982_v25, %s6533_s27 }
0x16c5   :  { %v1290_v26 = vpop.permute.xlu0 %1289 }
0x16c6   :  { %v1292_v27 = vmul.f32 %v1290_v26, %v1275_v18  ;;  %v7033_v18 = vld [vmem:[#allocation21 + $0x18] sm:$0xff] }
0x16c8   :  { %1305 = vrot.lane.b32.xlu1 %v1292_v27, %s6534_s0 }
0x173a   :  { %v1306_v5 = vpop.permute.xlu1 %1305 }
0x173b   :  { %5498 = vmatmul.mubr.msk.f32.vlgmr.msra.gmra.mxu0 %vm456_vm5, %v1306_v5 }
0x173c   :  { %5501 = vmatpush3.msra.mxu0 %v1381_v28  ;;  %5504 = vmatprep.mubr.msk.f32.mxu0 %vm6531_vm0, %v6530_v0 }
0x173d   :  { %5502 = vmatprep.subr.mxu0 %v6530_v0 }
0x173e   :  { %5503 = vmatpush3.msra.mxu0 %v1380_v29 }
0x173f   :  { %5507 = vmatprep.subr.mxu0 %v6530_v0 }
0x17fb   :  { %v1375_v30 = vpop.f32.mrf.mxu0 }
0x17fc   :  { %v1376_v31 = vadd.f32 %v5057_v6, %v1375_v30  ;;  %v5065_v6 = vld [vmem:[#allocation19] ss:$0 sm:$0xff] }
0x17fd   :  { %v5499_v32 = vpop.f32.mrf.mxu0 }
0x17fe   :  { %1379 = vst.msk [vmem:[#allocation32] sm:$0xff] %vm456_vm5, %v1376_v31  ;;  %5505 = vmatmul.mubr.msk.f32.vlgmr.msra.gmra.mxu0 %vm1389_vm6, %v1376_v31 }
0x17ff   :  { %5508 = vmatpush3.msra.mxu0 %v1496_v7  ;;  %5515 = vmatprep.mubr.msk.f32.mxu0 %vm6531_vm0, %v6530_v0 }
0x1800   :  { %5509 = vmatprep.subr.mxu0 %v6530_v0 }
0x1801   :  { %5510 = vmatpush3.msra.mxu0 %v1495_v4 }
0x1802   :  { %5511 = vmatprep.subr.mxu0 %v6530_v0 }
0x1803   :  { %5512 = vmatpush3.msra.mxu0 %v1494_v33 }
0x1804   :  { %5513 = vmatprep.subr.mxu0 %v6530_v0 }
0x1805   :  { %5514 = vmatpush3.msra.mxu0 %v1493_v34 }
0x1806   :  { %5529 = vmatprep.subr.mxu0 %v6530_v0 }
0x18be   :  { %v1459_v36 = vpop.f32.mrf.mxu0 }
0x18bf   :  { %v1460_v37 = vadd.f32 %v5059_v35, %v1459_v36 }
0x18c0   :  { %v5506_v38 = vpop.f32.mrf.mxu0 }
0x18c1   :  { %5516 = vmatmul.mubr.msk.f32.vlgmr.msra.gmra.mxu0 %vm456_vm5, %v1460_v37 }
0x18c2   :  { %5537 = vmatprep.mubr.msk.f32.mxu0 %vm6531_vm0, %v6530_v0  ;;  %5530 = vmatpush3.msra.mxu0 %v7014_v63 }
0x18c3   :  { %5531 = vmatprep.subr.mxu0 %v6530_v0 }
0x18c4   :  { %5532 = vmatpush3.msra.mxu0 %v7016_v1 }
0x18c5   :  { %5533 = vmatprep.subr.mxu0 %v6530_v0 }
0x18c6   :  { %5534 = vmatpush3.msra.mxu0 %v7020_v3 }
0x18c7   :  { %5535 = vmatprep.subr.mxu0 %v6530_v0 }
0x18c8   :  { %5536 = vmatpush3.msra.mxu0 %v7024_v12 }
0x18c9   :  { %5551 = vmatprep.subr.mxu0 %v6530_v0 }
0x1981   :  { %v1573_v40 = vpop.f32.mrf.mxu0 }
0x1982   :  { %v6982_v41 = vadd.f32 %v5063_v39, %v1573_v40 }
0x1983   :  { %v5517_v42 = vpop.f32.mrf.mxu0 }
0x1984   :  { %v1585_v43 = vmul.f32 %v6982_v41, %v6799_v16  ;;  %v7107_v30 = vadd.f32 %v5065_v6, %v6982_v41 }
0x1986   :  { %v5066_v44 = vmul.f32 -1.442695, %v1585_v43 }
0x1988   :  { %5983 = vpow2.f32 %v5066_v44 }
0x1995   :  { %v5984_v45 = vpop.eup %5983 }
0x1996   :  { %v1589_v46 = vadd.f32 1.0, %v5984_v45 }
0x1998   :  { %5985 = vrcp.f32 %v1589_v46 }
0x19a5   :  { %v5986_v47 = vpop.eup %5985 }
0x19a6   :  { %v1592_v48 = vmul.f32 2.0, %v5986_v47 }
0x19a8   :  { %v5067_v49 = vadd.f32 -1.0, %v1592_v48 }
0x19aa   :  { %v1594_v50 = vsel %vm6793_vm4, %v5067_v49, %v5986_v47 }
0x19ab   :  { %1597 = vrot.lane.b32.xlu0 %v1594_v50, %s6533_s27  ;;  %v1595_v10 = vmul.f32 0.0, %v1594_v50 }
0x1a1d   :  { %v1598_v51 = vpop.permute.xlu0 %1597 }
0x1a1e   :  { %v1600_v52 = vmul.f32 %v1598_v51, %v1594_v50 }
0x1a20   :  { %1602 = vrot.lane.b32.xlu1 %v1600_v52, %s6534_s0 }
0x1a92   :  { %v1603_v53 = vpop.permute.xlu1 %1602 }
0x1a93   :  { %v6990_v54 = vadd.f32 %v1603_v53, %v1595_v10 }
0x1a95   :  { %5987 = vtanh.f32 %v6990_v54 }
0x1aa2   :  { %v5988_v59 = vpop.eup %5987 }
0x1aa3   :  { %1608 = vrot.lane.b32.xlu0 %v5988_v59, %s6533_s27 }
0x1b15   :  { %v1609_v60 = vpop.permute.xlu0 %1608 }
0x1b16   :  { %v1611_v61 = vmul.f32 %v1609_v60, %v1594_v50 }
0x1b18   :  { %1613 = vrot.lane.b32.xlu1 %v1611_v61, %s6534_s0 }
0x1b8a   :  { %v1614_v62 = vpop.permute.xlu1 %1613 }
0x1b8b   :  { %5527 = vmatmul.mubr.msk.f32.vlgmr.msra.gmra.mxu1 %vm456_vm5, %v1614_v62 }
0x1b8c   :  { %5548 = vmatprep.mubr.msk.f32.mxu1 %vm6531_vm0, %v6530_v0  ;;  %5541 = vmatpush3.msra.mxu1 %v7066_v21 }
0x1b8d   :  { %5542 = vmatprep.subr.mxu1 %v6530_v0 }
0x1b8e   :  { %5543 = vmatpush3.msra.mxu1 %v7073_v22 }
0x1b8f   :  { %5544 = vmatprep.subr.mxu1 %v6530_v0 }
0x1b90   :  { %5545 = vmatpush3.msra.mxu1 %v7080_v23 }
0x1b91   :  { %5546 = vmatprep.subr.mxu1 %v6530_v0 }
0x1b92   :  { %5547 = vmatpush3.msra.mxu1 %v7087_v2 }
0x1b93   :  { %5562 = vmatprep.subr.mxu1 %v6530_v0 }
0x1c4b   :  { %v1683_v15 = vpop.f32.mrf.mxu1 }
0x1c4c   :  { %v1684_v8 = vadd.f32 %v7030_v13, %v1683_v15 }
0x1c4d   :  { %v5528_v17 = vpop.f32.mrf.mxu1 }
0x1c4e   :  { %5989 = vtanh.f32 %v1684_v8 }
0x1c5b   :  { %v5990_v19 = vpop.eup %5989 }
0x1c5c   :  { %5538 = vmatmul.mubr.msk.f32.vlgmr.msra.gmra.mxu0 %vm456_vm5, %v5990_v19 }
0x1c5d   :  { %5552 = vmatpush3.msra.mxu0 %v7033_v18  ;;  %5559 = vmatprep.mubr.msk.f32.mxu0 %vm6531_vm0, %v6530_v0 }
0x1c5e   :  { %5553 = vmatprep.subr.mxu0 %v6530_v0 }
0x1c5f   :  { %5554 = vmatpush3.msra.mxu0 %v7036_v11 }
0x1c60   :  { %5555 = vmatprep.subr.mxu0 %v6530_v0 }
0x1c61   :  { %5556 = vmatpush3.msra.mxu0 %v7042_v9 }
0x1c62   :  { %5557 = vmatprep.subr.mxu0 %v6530_v0 }
0x1c63   :  { %5558 = vmatpush3.msra.mxu0 %v7046_v20 }
0x1c64   :  { %5560 = vmatmul.mubr.msk.f32.vlgmr.msra.gmra.mxu0 %vm456_vm5, %v1614_v62  ;;  %5573 = vmatprep.subr.mxu0 %v6530_v0 }
0x1c65   :  { %5574 = vmatpush3.msra.mxu0 %v7014_v63  ;;  %5581 = vmatprep.mubr.msk.f32.mxu0 %vm6531_vm0, %v6530_v0 }
0x1c66   :  { %5575 = vmatprep.subr.mxu0 %v6530_v0 }
0x1c67   :  { %5576 = vmatpush3.msra.mxu0 %v7016_v1 }
0x1c68   :  { %5577 = vmatprep.subr.mxu0 %v6530_v0 }
0x1c69   :  { %5578 = vmatpush3.msra.mxu0 %v7020_v3 }
0x1c6a   :  { %5579 = vmatprep.subr.mxu0 %v6530_v0 }
0x1c6b   :  { %5580 = vmatpush3.msra.mxu0 %v7024_v12 }
0x1c6c   :  { %5595 = vmatprep.subr.mxu0 %v6530_v0 }
0x1d1c   :  { %v1757_v25 = vpop.f32.mrf.mxu0 }
0x1d1d   :  { %v1758_v26 = vadd.f32 %v7091_v24, %v1757_v25 }
0x1d1e   :  { %v5539_v27 = vpop.f32.mrf.mxu0 }
0x1d1f   :  { %5991 = vtanh.f32 %v1758_v26 }
0x1d24   :  { %v1903_v28 = vpop.f32.mrf.mxu0 }
0x1d26   :  { %v5561_v5 = vpop.f32.mrf.mxu0 }
0x1d2c   :  { %v5992_v29 = vpop.eup %5991 }
0x1d2d   :  { %1762 = vst.msk [vmem:[#allocation3] sm:$0xff] %vm456_vm5, %v5992_v29  ;;  %5549 = vmatmul.mubr.msk.f32.vlgmr.msra.gmra.mxu1 %vm456_vm5, %v5992_v29 }
0x1d2e   :  { %5563 = vmatpush3.msra.mxu1 %v6993_v55  ;;  %5570 = vmatprep.mubr.msk.f32.mxu1 %vm6531_vm0, %v6530_v0 }
0x1d2f   :  { %5564 = vmatprep.subr.mxu1 %v6530_v0 }
0x1d30   :  { %5565 = vmatpush3.msra.mxu1 %v6995_v56 }
0x1d31   :  { %5566 = vmatprep.subr.mxu1 %v6530_v0 }
0x1d32   :  { %5567 = vmatpush3.msra.mxu1 %v6999_v57 }
0x1d33   :  { %5568 = vmatprep.subr.mxu1 %v6530_v0 }
0x1d34   :  { %5569 = vmatpush3.msra.mxu1 %v7003_v58 }
0x1d35   :  { %5584 = vmatprep.subr.mxu1 %v6530_v0 }
0x1ded   :  { %v1832_v31 = vpop.f32.mrf.mxu1 }
0x1dee   :  { %v1836_v7 = vadd.f32 %v1832_v31, %v7107_v30 }
0x1def   :  { %v5550_v32 = vpop.f32.mrf.mxu1 }
0x1df0   :  { %v1907_v4 = vadd.f32 %v1903_v28, %v1836_v7 }
0x1df2   :  { %v1908_v33 = vmul.f32 %v1907_v4, %v6799_v16 }
0x1df4   :  { %v5072_v34 = vmul.f32 -1.442695, %v1908_v33 }
0x1df6   :  { %5993 = vpow2.f32 %v5072_v34 }
0x1e03   :  { %v5994_v35 = vpop.eup %5993 }
0x1e04   :  { %v1912_v36 = vadd.f32 1.0, %v5994_v35 }
0x1e06   :  { %5995 = vrcp.f32 %v1912_v36 }
0x1e13   :  { %v5996_v37 = vpop.eup %5995 }
0x1e14   :  { %v1915_v38 = vmul.f32 2.0, %v5996_v37 }
0x1e16   :  { %v5073_v39 = vadd.f32 -1.0, %v1915_v38 }
0x1e18   :  { %v1917_v40 = vsel %vm6793_vm4, %v5073_v39, %v5996_v37 }
0x1e19   :  { %1920 = vrot.lane.b32.xlu0 %v1917_v40, %s6533_s27  ;;  %v1918_v43 = vmul.f32 %v1917_v40, %v6990_v54 }
0x1e8b   :  { %v1921_v41 = vpop.permute.xlu0 %1920 }
0x1e8c   :  { %v1923_v42 = vmul.f32 %v1921_v41, %v1917_v40 }
0x1e8e   :  { %1925 = vrot.lane.b32.xlu1 %v1923_v42, %s6534_s0 }
0x1f00   :  { %v1926_v44 = vpop.permute.xlu1 %1925 }
0x1f01   :  { %v7116_v45 = vadd.f32 %v1926_v44, %v1918_v43 }
0x1f03   :  { %5997 = vtanh.f32 %v7116_v45 }
0x1f10   :  { %v5998_v46 = vpop.eup %5997 }
0x1f11   :  { %1931 = vrot.lane.b32.xlu0 %v5998_v46, %s6533_s27 }
0x1f83   :  { %v1932_v47 = vpop.permute.xlu0 %1931 }
0x1f84   :  { %v1934_v48 = vmul.f32 %v1932_v47, %v1917_v40 }
0x1f86   :  { %1936 = vrot.lane.b32.xlu1 %v1934_v48, %s6534_s0 }
0x1ff8   :  { %v1937_v49 = vpop.permute.xlu1 %1936 }
0x1ff9   :  { %5571 = vmatmul.mubr.msk.f32.vlgmr.msra.gmra.mxu1 %vm456_vm5, %v1937_v49 }
0x1ffa   :  { %5585 = vmatpush3.msra.mxu1 %v7066_v21  ;;  %5592 = vmatprep.mubr.msk.f32.mxu1 %vm6531_vm0, %v6530_v0 }
0x1ffb   :  { %5586 = vmatprep.subr.mxu1 %v6530_v0 }
0x1ffc   :  { %5587 = vmatpush3.msra.mxu1 %v7073_v22 }
0x1ffd   :  { %5588 = vmatprep.subr.mxu1 %v6530_v0 }
0x1ffe   :  { %5589 = vmatpush3.msra.mxu1 %v7080_v23 }
0x1fff   :  { %5590 = vmatprep.subr.mxu1 %v6530_v0 }
0x2000   :  { %5591 = vmatpush3.msra.mxu1 %v7087_v2 }
0x2001   :  { %5606 = vmatprep.subr.mxu1 %v6530_v0 }
0x20b9   :  { %v2006_v50 = vpop.f32.mrf.mxu1 }
0x20ba   :  { %v2007_v51 = vadd.f32 %v7030_v13, %v2006_v50 }
0x20bb   :  { %v5572_v52 = vpop.f32.mrf.mxu1 }
0x20bc   :  { %5999 = vtanh.f32 %v2007_v51 }
0x20c9   :  { %v6000_v10 = vpop.eup %5999 }
0x20ca   :  { %5582 = vmatmul.mubr.msk.f32.vlgmr.msra.gmra.mxu0 %vm456_vm5, %v6000_v10 }
0x20cb   :  { %5596 = vmatpush3.msra.mxu0 %v7033_v18  ;;  %5603 = vmatprep.mubr.msk.f32.mxu0 %vm6531_vm0, %v6530_v0 }
0x20cc   :  { %5597 = vmatprep.subr.mxu0 %v6530_v0 }
0x20cd   :  { %5598 = vmatpush3.msra.mxu0 %v7036_v11 }
0x20ce   :  { %5599 = vmatprep.subr.mxu0 %v6530_v0 }
0x20cf   :  { %5600 = vmatpush3.msra.mxu0 %v7042_v9 }
0x20d0   :  { %5601 = vmatprep.subr.mxu0 %v6530_v0 }
0x20d1   :  { %5602 = vmatpush3.msra.mxu0 %v7046_v20 }
0x20d2   :  { %5604 = vmatmul.mubr.msk.f32.vlgmr.msra.gmra.mxu0 %vm456_vm5, %v1937_v49  ;;  %5617 = vmatprep.subr.mxu0 %v6530_v0 }
0x20d3   :  { %5618 = vmatpush3.msra.mxu0 %v7014_v63  ;;  %5625 = vmatprep.mubr.msk.f32.mxu0 %vm6531_vm0, %v6530_v0 }
0x20d4   :  { %5619 = vmatprep.subr.mxu0 %v6530_v0 }
0x20d5   :  { %5620 = vmatpush3.msra.mxu0 %v7016_v1 }
0x20d6   :  { %5621 = vmatprep.subr.mxu0 %v6530_v0 }
0x20d7   :  { %5622 = vmatpush3.msra.mxu0 %v7020_v3 }
0x20d8   :  { %5623 = vmatprep.subr.mxu0 %v6530_v0 }
0x20d9   :  { %5624 = vmatpush3.msra.mxu0 %v7024_v12 }
0x20da   :  { %5639 = vmatprep.subr.mxu0 %v6530_v0 }
0x218a   :  { %v2080_v53 = vpop.f32.mrf.mxu0 }
0x218b   :  { %v2081_v54 = vadd.f32 %v7091_v24, %v2080_v53 }
0x218c   :  { %v5583_v59 = vpop.f32.mrf.mxu0 }
0x218d   :  { %6001 = vtanh.f32 %v2081_v54 }
0x2192   :  { %v2227_v60 = vpop.f32.mrf.mxu0 }
0x2194   :  { %v5605_v61 = vpop.f32.mrf.mxu0 }
0x219a   :  { %v6002_v62 = vpop.eup %6001 }
0x219b   :  { %2086 = vst.msk [vmem:[#allocation3 + $0x8] sm:$0xff] %vm456_vm5, %v6002_v62  ;;  %5593 = vmatmul.mubr.msk.f32.vlgmr.msra.gmra.mxu1 %vm456_vm5, %v6002_v62 }
0x219c   :  { %5607 = vmatpush3.msra.mxu1 %v6993_v55  ;;  %5614 = vmatprep.mubr.msk.f32.mxu1 %vm6531_vm0, %v6530_v0 }
0x219d   :  { %5608 = vmatprep.subr.mxu1 %v6530_v0 }
0x219e   :  { %5609 = vmatpush3.msra.mxu1 %v6995_v56 }
0x219f   :  { %5610 = vmatprep.subr.mxu1 %v6530_v0 }
0x21a0   :  { %5611 = vmatpush3.msra.mxu1 %v6999_v57 }
0x21a1   :  { %5612 = vmatprep.subr.mxu1 %v6530_v0 }
0x21a2   :  { %5613 = vmatpush3.msra.mxu1 %v7003_v58 }
0x21a3   :  { %5628 = vmatprep.subr.mxu1 %v6530_v0 }
0x225b   :  { %v2156_v15 = vpop.f32.mrf.mxu1 }
0x225c   :  { %v2160_v8 = vadd.f32 %v2156_v15, %v7107_v30 }
0x225d   :  { %v5594_v17 = vpop.f32.mrf.mxu1 }
0x225e   :  { %v2231_v19 = vadd.f32 %v2227_v60, %v2160_v8 }
0x2260   :  { %v2232_v25 = vmul.f32 %v2231_v19, %v6799_v16 }
0x2262   :  { %v5078_v26 = vmul.f32 -1.442695, %v2232_v25 }
0x2264   :  { %6003 = vpow2.f32 %v5078_v26 }
0x2271   :  { %v6004_v27 = vpop.eup %6003 }
0x2272   :  { %v2236_v28 = vadd.f32 1.0, %v6004_v27 }
0x2274   :  { %6005 = vrcp.f32 %v2236_v28 }
0x2281   :  { %v6006_v5 = vpop.eup %6005 }
0x2282   :  { %v2239_v29 = vmul.f32 2.0, %v6006_v5 }
0x2284   :  { %v5079_v6 = vadd.f32 -1.0, %v2239_v29 }
0x2286   :  { %v2241_v31 = vsel %vm6793_vm4, %v5079_v6, %v6006_v5 }
0x2287   :  { %2244 = vrot.lane.b32.xlu0 %v2241_v31, %s6533_s27  ;;  %v2242_v4 = vmul.f32 %v2241_v31, %v7116_v45 }
0x22f9   :  { %v2245_v7 = vpop.permute.xlu0 %2244 }
0x22fa   :  { %v2247_v32 = vmul.f32 %v2245_v7, %v2241_v31 }
0x22fc   :  { %2249 = vrot.lane.b32.xlu1 %v2247_v32, %s6534_s0 }
0x236e   :  { %v2250_v33 = vpop.permute.xlu1 %2249 }
0x236f   :  { %v7175_v34 = vadd.f32 %v2250_v33, %v2242_v4 }
0x2371   :  { %6007 = vtanh.f32 %v7175_v34 }
0x237e   :  { %v6008_v35 = vpop.eup %6007 }
0x237f   :  { %2255 = vrot.lane.b32.xlu0 %v6008_v35, %s6533_s27 }
0x23f1   :  { %v2256_v36 = vpop.permute.xlu0 %2255 }
0x23f2   :  { %v2258_v37 = vmul.f32 %v2256_v36, %v2241_v31 }
0x23f4   :  { %2260 = vrot.lane.b32.xlu1 %v2258_v37, %s6534_s0 }
0x2466   :  { %v2261_v38 = vpop.permute.xlu1 %2260 }
0x2467   :  { %5615 = vmatmul.mubr.msk.f32.vlgmr.msra.gmra.mxu1 %vm456_vm5, %v2261_v38 }
0x2468   :  { %5629 = vmatpush3.msra.mxu1 %v7066_v21  ;;  %5636 = vmatprep.mubr.msk.f32.mxu1 %vm6531_vm0, %v6530_v0 }
0x2469   :  { %5630 = vmatprep.subr.mxu1 %v6530_v0 }
0x246a   :  { %5631 = vmatpush3.msra.mxu1 %v7073_v22 }
0x246b   :  { %5632 = vmatprep.subr.mxu1 %v6530_v0 }
0x246c   :  { %5633 = vmatpush3.msra.mxu1 %v7080_v23 }
0x246d   :  { %5634 = vmatprep.subr.mxu1 %v6530_v0 }
0x246e   :  { %5635 = vmatpush3.msra.mxu1 %v7087_v2 }
0x246f   :  { %5650 = vmatprep.subr.mxu1 %v6530_v0 }
0x2527   :  { %v2330_v39 = vpop.f32.mrf.mxu1 }
0x2528   :  { %v2331_v40 = vadd.f32 %v7030_v13, %v2330_v39 }
0x2529   :  { %v5616_v41 = vpop.f32.mrf.mxu1 }
0x252a   :  { %6009 = vtanh.f32 %v2331_v40 }
0x2537   :  { %v6010_v42 = vpop.eup %6009 }
0x2538   :  { %5626 = vmatmul.mubr.msk.f32.vlgmr.msra.gmra.mxu0 %vm456_vm5, %v6010_v42 }
0x2539   :  { %5640 = vmatpush3.msra.mxu0 %v7033_v18  ;;  %5647 = vmatprep.mubr.msk.f32.mxu0 %vm6531_vm0, %v6530_v0 }
0x253a   :  { %5641 = vmatprep.subr.mxu0 %v6530_v0 }
0x253b   :  { %5642 = vmatpush3.msra.mxu0 %v7036_v11 }
0x253c   :  { %5643 = vmatprep.subr.mxu0 %v6530_v0 }
0x253d   :  { %5644 = vmatpush3.msra.mxu0 %v7042_v9 }
0x253e   :  { %5645 = vmatprep.subr.mxu0 %v6530_v0 }
0x253f   :  { %5646 = vmatpush3.msra.mxu0 %v7046_v20 }
0x2540   :  { %5648 = vmatmul.mubr.msk.f32.vlgmr.msra.gmra.mxu0 %vm456_vm5, %v2261_v38  ;;  %5661 = vmatprep.subr.mxu0 %v6530_v0 }
0x2541   :  { %5662 = vmatpush3.msra.mxu0 %v7014_v63  ;;  %5669 = vmatprep.mubr.msk.f32.mxu0 %vm6531_vm0, %v6530_v0 }
0x2542   :  { %5663 = vmatprep.subr.mxu0 %v6530_v0 }
0x2543   :  { %5664 = vmatpush3.msra.mxu0 %v7016_v1 }
0x2544   :  { %5665 = vmatprep.subr.mxu0 %v6530_v0 }
0x2545   :  { %5666 = vmatpush3.msra.mxu0 %v7020_v3 }
0x2546   :  { %5667 = vmatprep.subr.mxu0 %v6530_v0 }
0x2547   :  { %5668 = vmatpush3.msra.mxu0 %v7024_v12 }
0x2548   :  { %5683 = vmatprep.subr.mxu0 %v6530_v0 }
0x25f8   :  { %v2404_v43 = vpop.f32.mrf.mxu0 }
0x25f9   :  { %v2405_v44 = vadd.f32 %v7091_v24, %v2404_v43 }
0x25fa   :  { %v5627_v45 = vpop.f32.mrf.mxu0 }
0x25fb   :  { %6011 = vtanh.f32 %v2405_v44 }
0x2600   :  { %v2551_v46 = vpop.f32.mrf.mxu0 }
0x2602   :  { %v5649_v47 = vpop.f32.mrf.mxu0 }
0x2608   :  { %v6012_v48 = vpop.eup %6011 }
0x2609   :  { %2410 = vst.msk [vmem:[#allocation3 + $0x10] sm:$0xff] %vm456_vm5, %v6012_v48  ;;  %5637 = vmatmul.mubr.msk.f32.vlgmr.msra.gmra.mxu1 %vm456_vm5, %v6012_v48 }
0x260a   :  { %5651 = vmatpush3.msra.mxu1 %v6993_v55  ;;  %5658 = vmatprep.mubr.msk.f32.mxu1 %vm6531_vm0, %v6530_v0 }
0x260b   :  { %5652 = vmatprep.subr.mxu1 %v6530_v0 }
0x260c   :  { %5653 = vmatpush3.msra.mxu1 %v6995_v56 }
0x260d   :  { %5654 = vmatprep.subr.mxu1 %v6530_v0 }
0x260e   :  { %5655 = vmatpush3.msra.mxu1 %v6999_v57 }
0x260f   :  { %5656 = vmatprep.subr.mxu1 %v6530_v0 }
0x2610   :  { %5657 = vmatpush3.msra.mxu1 %v7003_v58 }
0x2611   :  { %5672 = vmatprep.subr.mxu1 %v6530_v0 }
0x26c9   :  { %v2480_v49 = vpop.f32.mrf.mxu1 }
0x26ca   :  { %v2484_v50 = vadd.f32 %v2480_v49, %v7107_v30 }
0x26cb   :  { %v5638_v51 = vpop.f32.mrf.mxu1 }
0x26cc   :  { %v2555_v52 = vadd.f32 %v2551_v46, %v2484_v50 }
0x26ce   :  { %v2556_v10 = vmul.f32 %v2555_v52, %v6799_v16 }
0x26d0   :  { %v5084_v53 = vmul.f32 -1.442695, %v2556_v10 }
0x26d2   :  { %6013 = vpow2.f32 %v5084_v53 }
0x26df   :  { %v6014_v54 = vpop.eup %6013 }
0x26e0   :  { %v2560_v59 = vadd.f32 1.0, %v6014_v54 }
0x26e2   :  { %6015 = vrcp.f32 %v2560_v59 }
0x26ef   :  { %v6016_v60 = vpop.eup %6015 }
0x26f0   :  { %v2563_v61 = vmul.f32 2.0, %v6016_v60 }
0x26f2   :  { %v5085_v62 = vadd.f32 -1.0, %v2563_v61 }
0x26f4   :  { %v2565_v15 = vsel %vm6793_vm4, %v5085_v62, %v6016_v60 }
0x26f5   :  { %2568 = vrot.lane.b32.xlu0 %v2565_v15, %s6533_s27  ;;  %v2566_v19 = vmul.f32 %v2565_v15, %v7175_v34 }
0x2767   :  { %v2569_v8 = vpop.permute.xlu0 %2568 }
0x2768   :  { %v2571_v17 = vmul.f32 %v2569_v8, %v2565_v15 }
0x276a   :  { %2573 = vrot.lane.b32.xlu1 %v2571_v17, %s6534_s0 }
0x27dc   :  { %v2574_v25 = vpop.permute.xlu1 %2573 }
0x27dd   :  { %v7234_v26 = vadd.f32 %v2574_v25, %v2566_v19 }
0x27df   :  { %6017 = vtanh.f32 %v7234_v26 }
0x27ec   :  { %v6018_v27 = vpop.eup %6017 }
0x27ed   :  { %2579 = vrot.lane.b32.xlu0 %v6018_v27, %s6533_s27 }
0x285f   :  { %v2580_v28 = vpop.permute.xlu0 %2579 }
0x2860   :  { %v2582_v5 = vmul.f32 %v2580_v28, %v2565_v15 }
0x2862   :  { %2584 = vrot.lane.b32.xlu1 %v2582_v5, %s6534_s0 }
0x28d4   :  { %v2585_v29 = vpop.permute.xlu1 %2584 }
0x28d5   :  { %5659 = vmatmul.mubr.msk.f32.vlgmr.msra.gmra.mxu1 %vm456_vm5, %v2585_v29 }
0x28d6   :  { %5673 = vmatpush3.msra.mxu1 %v7066_v21  ;;  %5680 = vmatprep.mubr.msk.f32.mxu1 %vm6531_vm0, %v6530_v0 }
0x28d7   :  { %5674 = vmatprep.subr.mxu1 %v6530_v0 }
0x28d8   :  { %5675 = vmatpush3.msra.mxu1 %v7073_v22 }
0x28d9   :  { %5676 = vmatprep.subr.mxu1 %v6530_v0 }
0x28da   :  { %5677 = vmatpush3.msra.mxu1 %v7080_v23 }
0x28db   :  { %5678 = vmatprep.subr.mxu1 %v6530_v0 }
0x28dc   :  { %5679 = vmatpush3.msra.mxu1 %v7087_v2 }
0x28dd   :  { %5694 = vmatprep.subr.mxu1 %v6530_v0 }
0x2995   :  { %v2654_v6 = vpop.f32.mrf.mxu1 }
0x2996   :  { %v2655_v31 = vadd.f32 %v7030_v13, %v2654_v6 }
0x2997   :  { %v5660_v7 = vpop.f32.mrf.mxu1 }
0x2998   :  { %6019 = vtanh.f32 %v2655_v31 }
0x29a5   :  { %v6020_v32 = vpop.eup %6019 }
0x29a6   :  { %5670 = vmatmul.mubr.msk.f32.vlgmr.msra.gmra.mxu0 %vm456_vm5, %v6020_v32 }
0x29a7   :  { %5684 = vmatpush3.msra.mxu0 %v7033_v18  ;;  %5691 = vmatprep.mubr.msk.f32.mxu0 %vm6531_vm0, %v6530_v0 }
0x29a8   :  { %5685 = vmatprep.subr.mxu0 %v6530_v0 }
0x29a9   :  { %5686 = vmatpush3.msra.mxu0 %v7036_v11 }
0x29aa   :  { %5687 = vmatprep.subr.mxu0 %v6530_v0 }
0x29ab   :  { %5688 = vmatpush3.msra.mxu0 %v7042_v9 }
0x29ac   :  { %5689 = vmatprep.subr.mxu0 %v6530_v0 }
0x29ad   :  { %5690 = vmatpush3.msra.mxu0 %v7046_v20 }
0x29ae   :  { %5692 = vmatmul.mubr.msk.f32.vlgmr.msra.gmra.mxu0 %vm456_vm5, %v2585_v29  ;;  %5705 = vmatprep.subr.mxu0 %v6530_v0 }
0x29af   :  { %5706 = vmatpush3.msra.mxu0 %v7014_v63  ;;  %5713 = vmatprep.mubr.msk.f32.mxu0 %vm6531_vm0, %v6530_v0 }
0x29b0   :  { %5707 = vmatprep.subr.mxu0 %v6530_v0 }
0x29b1   :  { %5708 = vmatpush3.msra.mxu0 %v7016_v1 }
0x29b2   :  { %5709 = vmatprep.subr.mxu0 %v6530_v0 }
0x29b3   :  { %5710 = vmatpush3.msra.mxu0 %v7020_v3 }
0x29b4   :  { %5711 = vmatprep.subr.mxu0 %v6530_v0 }
0x29b5   :  { %5712 = vmatpush3.msra.mxu0 %v7024_v12 }
0x29b6   :  { %5727 = vmatprep.subr.mxu0 %v6530_v0 }
0x2a66   :  { %v2728_v4 = vpop.f32.mrf.mxu0 }
0x2a67   :  { %v2729_v33 = vadd.f32 %v7091_v24, %v2728_v4 }
0x2a68   :  { %v5671_v34 = vpop.f32.mrf.mxu0 }
0x2a69   :  { %6021 = vtanh.f32 %v2729_v33 }
0x2a6e   :  { %v2875_v35 = vpop.f32.mrf.mxu0 }
0x2a70   :  { %v5693_v36 = vpop.f32.mrf.mxu0 }
0x2a76   :  { %v6022_v37 = vpop.eup %6021 }
0x2a77   :  { %2734 = vst.msk [vmem:[#allocation3 + $0x18] sm:$0xff] %vm456_vm5, %v6022_v37  ;;  %5681 = vmatmul.mubr.msk.f32.vlgmr.msra.gmra.mxu1 %vm456_vm5, %v6022_v37 }
0x2a78   :  { %5695 = vmatpush3.msra.mxu1 %v6993_v55  ;;  %5702 = vmatprep.mubr.msk.f32.mxu1 %vm6531_vm0, %v6530_v0 }
0x2a79   :  { %5696 = vmatprep.subr.mxu1 %v6530_v0 }
0x2a7a   :  { %5697 = vmatpush3.msra.mxu1 %v6995_v56 }
0x2a7b   :  { %5698 = vmatprep.subr.mxu1 %v6530_v0 }
0x2a7c   :  { %5699 = vmatpush3.msra.mxu1 %v6999_v57 }
0x2a7d   :  { %5700 = vmatprep.subr.mxu1 %v6530_v0 }
0x2a7e   :  { %5701 = vmatpush3.msra.mxu1 %v7003_v58 }
0x2a7f   :  { %5716 = vmatprep.subr.mxu1 %v6530_v0 }
0x2b37   :  { %v2804_v38 = vpop.f32.mrf.mxu1 }
0x2b38   :  { %v2808_v39 = vadd.f32 %v2804_v38, %v7107_v30 }
0x2b39   :  { %v5682_v40 = vpop.f32.mrf.mxu1 }
0x2b3a   :  { %v2879_v41 = vadd.f32 %v2875_v35, %v2808_v39 }
0x2b3c   :  { %v2880_v42 = vmul.f32 %v2879_v41, %v6799_v16 }
0x2b3e   :  { %v5090_v43 = vmul.f32 -1.442695, %v2880_v42 }
0x2b40   :  { %6023 = vpow2.f32 %v5090_v43 }
0x2b4d   :  { %v6024_v44 = vpop.eup %6023 }
0x2b4e   :  { %v2884_v45 = vadd.f32 1.0, %v6024_v44 }
0x2b50   :  { %6025 = vrcp.f32 %v2884_v45 }
0x2b5d   :  { %v6026_v46 = vpop.eup %6025 }
0x2b5e   :  { %v2887_v47 = vmul.f32 2.0, %v6026_v46 }
0x2b60   :  { %v5091_v48 = vadd.f32 -1.0, %v2887_v47 }
0x2b62   :  { %v2889_v49 = vsel %vm6793_vm4, %v5091_v48, %v6026_v46 }
0x2b63   :  { %2892 = vrot.lane.b32.xlu0 %v2889_v49, %s6533_s27  ;;  %v2890_v52 = vmul.f32 %v2889_v49, %v7234_v26 }
0x2bd5   :  { %v2893_v50 = vpop.permute.xlu0 %2892 }
0x2bd6   :  { %v2895_v51 = vmul.f32 %v2893_v50, %v2889_v49 }
0x2bd8   :  { %2897 = vrot.lane.b32.xlu1 %v2895_v51, %s6534_s0 }
0x2c4a   :  { %v2898_v10 = vpop.permute.xlu1 %2897 }
0x2c4b   :  { %v7293_v53 = vadd.f32 %v2898_v10, %v2890_v52 }
0x2c4d   :  { %6027 = vtanh.f32 %v7293_v53 }
0x2c5a   :  { %v6028_v54 = vpop.eup %6027 }
0x2c5b   :  { %2903 = vrot.lane.b32.xlu0 %v6028_v54, %s6533_s27 }
0x2ccd   :  { %v2904_v59 = vpop.permute.xlu0 %2903 }
0x2cce   :  { %v2906_v60 = vmul.f32 %v2904_v59, %v2889_v49 }
0x2cd0   :  { %2908 = vrot.lane.b32.xlu1 %v2906_v60, %s6534_s0 }
0x2d42   :  { %v2909_v61 = vpop.permute.xlu1 %2908 }
0x2d43   :  { %5703 = vmatmul.mubr.msk.f32.vlgmr.msra.gmra.mxu1 %vm456_vm5, %v2909_v61 }
0x2d44   :  { %5717 = vmatpush3.msra.mxu1 %v7066_v21  ;;  %5724 = vmatprep.mubr.msk.f32.mxu1 %vm6531_vm0, %v6530_v0 }
0x2d45   :  { %5718 = vmatprep.subr.mxu1 %v6530_v0 }
0x2d46   :  { %5719 = vmatpush3.msra.mxu1 %v7073_v22 }
0x2d47   :  { %5720 = vmatprep.subr.mxu1 %v6530_v0 }
0x2d48   :  { %5721 = vmatpush3.msra.mxu1 %v7080_v23 }
0x2d49   :  { %5722 = vmatprep.subr.mxu1 %v6530_v0 }
0x2d4a   :  { %5723 = vmatpush3.msra.mxu1 %v7087_v2 }
0x2d4b   :  { %5738 = vmatprep.subr.mxu1 %v6530_v0 }
0x2e03   :  { %v2978_v62 = vpop.f32.mrf.mxu1 }
0x2e04   :  { %v2979_v15 = vadd.f32 %v7030_v13, %v2978_v62 }
0x2e05   :  { %v5704_v8 = vpop.f32.mrf.mxu1 }
0x2e06   :  { %6029 = vtanh.f32 %v2979_v15 }
0x2e13   :  { %v6030_v17 = vpop.eup %6029 }
0x2e14   :  { %5714 = vmatmul.mubr.msk.f32.vlgmr.msra.gmra.mxu0 %vm456_vm5, %v6030_v17 }
0x2e15   :  { %5728 = vmatpush3.msra.mxu0 %v7033_v18  ;;  %5735 = vmatprep.mubr.msk.f32.mxu0 %vm6531_vm0, %v6530_v0 }
0x2e16   :  { %5729 = vmatprep.subr.mxu0 %v6530_v0 }
0x2e17   :  { %5730 = vmatpush3.msra.mxu0 %v7036_v11 }
0x2e18   :  { %5731 = vmatprep.subr.mxu0 %v6530_v0 }
0x2e19   :  { %5732 = vmatpush3.msra.mxu0 %v7042_v9 }
0x2e1a   :  { %5733 = vmatprep.subr.mxu0 %v6530_v0 }
0x2e1b   :  { %5734 = vmatpush3.msra.mxu0 %v7046_v20 }
0x2e1c   :  { %5736 = vmatmul.mubr.msk.f32.vlgmr.msra.gmra.mxu0 %vm456_vm5, %v2909_v61  ;;  %5749 = vmatprep.subr.mxu0 %v6530_v0 }
0x2e1d   :  { %5750 = vmatpush3.msra.mxu0 %v7014_v63  ;;  %5757 = vmatprep.mubr.msk.f32.mxu0 %vm6531_vm0, %v6530_v0 }
0x2e1e   :  { %5751 = vmatprep.subr.mxu0 %v6530_v0 }
0x2e1f   :  { %5752 = vmatpush3.msra.mxu0 %v7016_v1 }
0x2e20   :  { %5753 = vmatprep.subr.mxu0 %v6530_v0 }
0x2e21   :  { %5754 = vmatpush3.msra.mxu0 %v7020_v3 }
0x2e22   :  { %5755 = vmatprep.subr.mxu0 %v6530_v0 }
0x2e23   :  { %5756 = vmatpush3.msra.mxu0 %v7024_v12 }
0x2e24   :  { %5771 = vmatprep.subr.mxu0 %v6530_v0 }
0x2ed4   :  { %v3052_v19 = vpop.f32.mrf.mxu0 }
0x2ed5   :  { %v3053_v25 = vadd.f32 %v7091_v24, %v3052_v19 }
0x2ed6   :  { %v5715_v26 = vpop.f32.mrf.mxu0 }
0x2ed7   :  { %6031 = vtanh.f32 %v3053_v25 }
0x2edc   :  { %v3199_v27 = vpop.f32.mrf.mxu0 }
0x2ede   :  { %v5737_v28 = vpop.f32.mrf.mxu0 }
0x2ee4   :  { %v6032_v5 = vpop.eup %6031 }
0x2ee5   :  { %3058 = vst.msk [vmem:[#allocation3 + $0x20] sm:$0xff] %vm456_vm5, %v6032_v5  ;;  %5725 = vmatmul.mubr.msk.f32.vlgmr.msra.gmra.mxu1 %vm456_vm5, %v6032_v5 }
0x2ee6   :  { %5739 = vmatpush3.msra.mxu1 %v6993_v55  ;;  %5746 = vmatprep.mubr.msk.f32.mxu1 %vm6531_vm0, %v6530_v0 }
0x2ee7   :  { %5740 = vmatprep.subr.mxu1 %v6530_v0 }
0x2ee8   :  { %5741 = vmatpush3.msra.mxu1 %v6995_v56 }
0x2ee9   :  { %5742 = vmatprep.subr.mxu1 %v6530_v0 }
0x2eea   :  { %5743 = vmatpush3.msra.mxu1 %v6999_v57 }
0x2eeb   :  { %5744 = vmatprep.subr.mxu1 %v6530_v0 }
0x2eec   :  { %5745 = vmatpush3.msra.mxu1 %v7003_v58 }
0x2eed   :  { %5760 = vmatprep.subr.mxu1 %v6530_v0 }
0x2fa5   :  { %v3128_v29 = vpop.f32.mrf.mxu1 }
0x2fa6   :  { %v3132_v6 = vadd.f32 %v3128_v29, %v7107_v30 }
0x2fa7   :  { %v5726_v31 = vpop.f32.mrf.mxu1 }
0x2fa8   :  { %v3203_v7 = vadd.f32 %v3199_v27, %v3132_v6 }
0x2faa   :  { %v3204_v32 = vmul.f32 %v3203_v7, %v6799_v16 }
0x2fac   :  { %v5096_v4 = vmul.f32 -1.442695, %v3204_v32 }
0x2fae   :  { %6033 = vpow2.f32 %v5096_v4 }
0x2fbb   :  { %v6034_v33 = vpop.eup %6033 }
0x2fbc   :  { %v3208_v34 = vadd.f32 1.0, %v6034_v33 }
0x2fbe   :  { %6035 = vrcp.f32 %v3208_v34  ;;  %v6083_v34 = vld [vmem:[#allocation22 + $0x18] sm:$0xff] }
0x2fcb   :  { %v6036_v35 = vpop.eup %6035 }
0x2fcc   :  { %v3211_v36 = vmul.f32 2.0, %v6036_v35 }
0x2fce   :  { %v5097_v37 = vadd.f32 -1.0, %v3211_v36  ;;  %v6086_v36 = vld [vmem:[#allocation22] sm:$0xff] }
0x2fd0   :  { %v3213_v38 = vsel %vm6793_vm4, %v5097_v37, %v6036_v35  ;;  %v6084_v35 = vld [vmem:[#allocation22 + $0x10] sm:$0xff] }
0x2fd1   :  { %3216 = vrot.lane.b32.xlu0 %v3213_v38, %s6533_s27  ;;  %v3214_v41 = vmul.f32 %v3213_v38, %v7293_v53 }
0x3043   :  { %v3217_v39 = vpop.permute.xlu0 %3216 }
0x3044   :  { %v3219_v40 = vmul.f32 %v3217_v39, %v3213_v38 }
0x3046   :  { %3221 = vrot.lane.b32.xlu1 %v3219_v40, %s6534_s0 }
0x30b8   :  { %v3222_v42 = vpop.permute.xlu1 %3221 }
0x30b9   :  { %v7352_v43 = vadd.f32 %v3222_v42, %v3214_v41 }
0x30bb   :  { %6037 = vtanh.f32 %v7352_v43 }
0x30c8   :  { %v6038_v44 = vpop.eup %6037 }
0x30c9   :  { %3227 = vrot.lane.b32.xlu0 %v6038_v44, %s6533_s27 }
0x313b   :  { %v3228_v45 = vpop.permute.xlu0 %3227 }
0x313c   :  { %v3230_v46 = vmul.f32 %v3228_v45, %v3213_v38 }
0x313e   :  { %3232 = vrot.lane.b32.xlu1 %v3230_v46, %s6534_s0 }
0x31b0   :  { %v3233_v47 = vpop.permute.xlu1 %3232 }
0x31b1   :  { %5747 = vmatmul.mubr.msk.f32.vlgmr.msra.gmra.mxu1 %vm456_vm5, %v3233_v47 }
0x31b2   :  { %5761 = vmatpush3.msra.mxu1 %v7066_v21  ;;  %5768 = vmatprep.mubr.msk.f32.mxu1 %vm6531_vm0, %v6530_v0 }
0x31b3   :  { %5762 = vmatprep.subr.mxu1 %v6530_v0 }
0x31b4   :  { %5763 = vmatpush3.msra.mxu1 %v7073_v22 }
0x31b5   :  { %5764 = vmatprep.subr.mxu1 %v6530_v0 }
0x31b6   :  { %5765 = vmatpush3.msra.mxu1 %v7080_v23 }
0x31b7   :  { %5766 = vmatprep.subr.mxu1 %v6530_v0 }
0x31b8   :  { %5767 = vmatpush3.msra.mxu1 %v7087_v2 }
0x31b9   :  { %5782 = vmatprep.subr.mxu1 %v6530_v0 }
0x3271   :  { %v3302_v48 = vpop.f32.mrf.mxu1 }
0x3272   :  { %v3303_v49 = vadd.f32 %v7030_v13, %v3302_v48 }
0x3273   :  { %v5748_v50 = vpop.f32.mrf.mxu1 }
0x3274   :  { %6039 = vtanh.f32 %v3303_v49 }
0x3281   :  { %v6040_v51 = vpop.eup %6039 }
0x3282   :  { %5758 = vmatmul.mubr.msk.f32.vlgmr.msra.gmra.mxu0 %vm456_vm5, %v6040_v51  ;;  %v4042_v51 = vld [vmem:[%s7587_s17 + $0x18] sm:$0xff] }
0x3283   :  { %5772 = vmatpush3.msra.mxu0 %v7033_v18  ;;  %5779 = vmatprep.mubr.msk.f32.mxu0 %vm6531_vm0, %v6530_v0 }
0x3284   :  { %5773 = vmatprep.subr.mxu0 %v6530_v0 }
0x3285   :  { %5774 = vmatpush3.msra.mxu0 %v7036_v11 }
0x3286   :  { %5775 = vmatprep.subr.mxu0 %v6530_v0 }
0x3287   :  { %5776 = vmatpush3.msra.mxu0 %v7042_v9 }
0x3288   :  { %5777 = vmatprep.subr.mxu0 %v6530_v0 }
0x3289   :  { %5778 = vmatpush3.msra.mxu0 %v7046_v20 }
0x328a   :  { %5780 = vmatmul.mubr.msk.f32.vlgmr.msra.gmra.mxu0 %vm456_vm5, %v3233_v47  ;;  %5793 = vmatprep.subr.mxu0 %v6530_v0 }
0x328b   :  { %5794 = vmatpush3.msra.mxu0 %v7014_v63  ;;  %5801 = vmatprep.mubr.msk.f32.mxu0 %vm6531_vm0, %v6530_v0 }
0x328c   :  { %5795 = vmatprep.subr.mxu0 %v6530_v0 }
0x328d   :  { %5796 = vmatpush3.msra.mxu0 %v7016_v1 }
0x328e   :  { %5797 = vmatprep.subr.mxu0 %v6530_v0 }
0x328f   :  { %5798 = vmatpush3.msra.mxu0 %v7020_v3 }
0x3290   :  { %5799 = vmatprep.subr.mxu0 %v6530_v0 }
0x3291   :  { %5800 = vmatpush3.msra.mxu0 %v7024_v12 }
0x3292   :  { %5815 = vmatprep.subr.mxu0 %v6530_v0 }
0x3342   :  { %v3376_v52 = vpop.f32.mrf.mxu0 }
0x3343   :  { %v3377_v63 = vadd.f32 %v7091_v24, %v3376_v52 }
0x3344   :  { %v5759_v10 = vpop.f32.mrf.mxu0 }
0x3345   :  { %6041 = vtanh.f32 %v3377_v63 }
0x334a   :  { %v3523_v53 = vpop.f32.mrf.mxu0 }
0x334c   :  { %v5781_v54 = vpop.f32.mrf.mxu0 }
0x334d   :  { %v4031_v54 = vld [vmem:[#allocation3] sm:$0xff] }
0x3352   :  { %v6042_v59 = vpop.eup %6041 }
0x3353   :  { %3382 = vst.msk [vmem:[#allocation3 + $0x28] sm:$0xff] %vm456_vm5, %v6042_v59  ;;  %5769 = vmatmul.mubr.msk.f32.vlgmr.msra.gmra.mxu1 %vm456_vm5, %v6042_v59  ;;  %v4040_v59 = vld [vmem:[%s7587_s17 + $0x8] sm:$0xff] }
0x3354   :  { %5783 = vmatpush3.msra.mxu1 %v6993_v55  ;;  %5790 = vmatprep.mubr.msk.f32.mxu1 %vm6531_vm0, %v6530_v0 }
0x3355   :  { %5784 = vmatprep.subr.mxu1 %v6530_v0 }
0x3356   :  { %5785 = vmatpush3.msra.mxu1 %v6995_v56 }
0x3357   :  { %5786 = vmatprep.subr.mxu1 %v6530_v0 }
0x3358   :  { %5787 = vmatpush3.msra.mxu1 %v6999_v57 }
0x3359   :  { %5788 = vmatprep.subr.mxu1 %v6530_v0 }
0x335a   :  { %5789 = vmatpush3.msra.mxu1 %v7003_v58 }
0x335b   :  { %5804 = vmatprep.subr.mxu1 %v6530_v0 }
0x3413   :  { %v3452_v1 = vpop.f32.mrf.mxu1 }
0x3414   :  { %v3456_v55 = vadd.f32 %v3452_v1, %v7107_v30  ;;  %v4039_v1 = vld [vmem:[%s7587_s17] sm:$0xff] }
0x3415   :  { %v5770_v3 = vpop.f32.mrf.mxu1 }
0x3416   :  { %v3527_v12 = vadd.f32 %v3523_v53, %v3456_v55  ;;  %v4041_v53 = vld [vmem:[%s7587_s17 + $0x10] sm:$0xff]  ;;  %v4032_v55 = vld [vmem:[#allocation3 + $0x8] sm:$0xff] }
0x3417   :  { %v4033_v3 = vld [vmem:[#allocation3 + $0x10] sm:$0xff] }
0x3418   :  { %v3528_v60 = vmul.f32 %v3527_v12, %v6799_v16  ;;  %v4034_v12 = vld [vmem:[#allocation3 + $0x18] sm:$0xff] }
0x341a   :  { %v5102_v61 = vmul.f32 -1.442695, %v3528_v60  ;;  %v4035_v60 = vld [vmem:[#allocation3 + $0x20] sm:$0xff] }
0x341c   :  { %6043 = vpow2.f32 %v5102_v61  ;;  %v4036_v61 = vld [vmem:[#allocation3 + $0x28] sm:$0xff] }
0x3429   :  { %v6044_v56 = vpop.eup %6043 }
0x342a   :  { %v3532_v62 = vadd.f32 1.0, %v6044_v56 }
0x342c   :  { %6045 = vrcp.f32 %v3532_v62  ;;  %v4182_v62 = vld [vmem:[#allocation30 + $0x18] sm:$0xff] }
0x3439   :  { %v6046_v15 = vpop.eup %6045 }
0x343a   :  { %v3535_v57 = vmul.f32 2.0, %v6046_v15 }
0x343c   :  { %v5103_v8 = vadd.f32 -1.0, %v3535_v57  ;;  %v6087_v57 = vld [vmem:[#allocation24] ss:$0 sm:$0xff] }
0x343e   :  { %v3537_v58 = vsel %vm6793_vm4, %v5103_v8, %v6046_v15 }
0x343f   :  { %3540 = vrot.lane.b32.xlu0 %v3537_v58, %s6533_s27  ;;  %v3538_v25 = vmul.f32 %v3537_v58, %v7352_v43 }
0x34b1   :  { %v3541_v17 = vpop.permute.xlu0 %3540 }
0x34b2   :  { %v3543_v19 = vmul.f32 %v3541_v17, %v3537_v58  ;;  %v7482_v17 = vld [vmem:[#allocation28] ss:$0 sm:$0xff] }
0x34b4   :  { %3545 = vrot.lane.b32.xlu1 %v3543_v19, %s6534_s0 }
0x3526   :  { %v3546_v26 = vpop.permute.xlu1 %3545 }
0x3527   :  { %v7411_v27 = vadd.f32 %v3546_v26, %v3538_v25 }
0x3529   :  { %6047 = vtanh.f32 %v7411_v27 }
0x3536   :  { %v6048_v28 = vpop.eup %6047 }
0x3537   :  { %3551 = vrot.lane.b32.xlu0 %v6048_v28, %s6533_s27 }
0x35a9   :  { %v3552_v5 = vpop.permute.xlu0 %3551 }
0x35aa   :  { %v3554_v29 = vmul.f32 %v3552_v5, %v3537_v58 }
0x35ac   :  { %3556 = vrot.lane.b32.xlu1 %v3554_v29, %s6534_s0 }
0x361e   :  { %v3557_v6 = vpop.permute.xlu1 %3556 }
0x361f   :  { %5791 = vmatmul.mubr.msk.f32.vlgmr.msra.gmra.mxu1 %vm456_vm5, %v3557_v6 }
0x3620   :  { %5805 = vmatpush3.msra.mxu1 %v7066_v21  ;;  %5812 = vmatprep.mubr.msk.f32.mxu1 %vm6531_vm0, %v6530_v0 }
0x3621   :  { %5806 = vmatprep.subr.mxu1 %v6530_v0 }
0x3622   :  { %5807 = vmatpush3.msra.mxu1 %v7073_v22 }
0x3623   :  { %5808 = vmatprep.subr.mxu1 %v6530_v0 }
0x3624   :  { %5809 = vmatpush3.msra.mxu1 %v7080_v23 }
0x3625   :  { %5810 = vmatprep.subr.mxu1 %v6530_v0 }
0x3626   :  { %5811 = vmatpush3.msra.mxu1 %v7087_v2 }
0x3627   :  { %5826 = vmatprep.subr.mxu1 %v6530_v0 }
0x36df   :  { %v3626_v31 = vpop.f32.mrf.mxu1 }
0x36e0   :  { %v3627_v21 = vadd.f32 %v7030_v13, %v3626_v31  ;;  %v6079_v13 = vld [vmem:[#allocation25 + $0x18] sm:$0xff] }
0x36e1   :  { %v5792_v7 = vpop.f32.mrf.mxu1 }
0x36e2   :  { %6049 = vtanh.f32 %v3627_v21  ;;  %v4181_v21 = vld [vmem:[#allocation30 + $0x10] sm:$0xff] }
0x36ef   :  { %v6050_v32 = vpop.eup %6049 }
0x36f0   :  { %5802 = vmatmul.mubr.msk.f32.vlgmr.msra.gmra.mxu0 %vm456_vm5, %v6050_v32  ;;  %v4180_v32 = vld [vmem:[#allocation30 + $0x8] sm:$0xff] }
0x36f1   :  { %5816 = vmatpush3.msra.mxu0 %v7033_v18  ;;  %5823 = vmatprep.mubr.msk.f32.mxu0 %vm6531_vm0, %v6530_v0  ;;  %v6080_v18 = vld [vmem:[#allocation25 + $0x10] sm:$0xff] }
0x36f2   :  { %5817 = vmatprep.subr.mxu0 %v6530_v0 }
0x36f3   :  { %5818 = vmatpush3.msra.mxu0 %v7036_v11  ;;  %v6081_v11 = vld [vmem:[#allocation25 + $0x8] sm:$0xff] }
0x36f4   :  { %5819 = vmatprep.subr.mxu0 %v6530_v0 }
0x36f5   :  { %5820 = vmatpush3.msra.mxu0 %v7042_v9  ;;  %v6082_v9 = vld [vmem:[#allocation25] sm:$0xff] }
0x36f6   :  { %5821 = vmatprep.subr.mxu0 %v6530_v0 }
0x36f7   :  { %5822 = vmatpush3.msra.mxu0 %v7046_v20 }
0x36f8   :  { %5824 = vmatmul.mubr.msk.f32.vlgmr.msra.gmra.mxu0 %vm456_vm5, %v3557_v6  ;;  %5837 = vmatprep.subr.mxu0 %v6530_v0 }
0x36f9   :  { %5838 = vmatpush3.msra.mxu0 %v6079_v13  ;;  %5845 = vmatprep.mubr.msk.f32.mxu0 %vm6531_vm0, %v6530_v0 }
0x36fa   :  { %5839 = vmatprep.subr.mxu0 %v6530_v0 }
0x36fb   :  { %5840 = vmatpush3.msra.mxu0 %v6080_v18 }
0x36fc   :  { %5841 = vmatprep.subr.mxu0 %v6530_v0 }
0x36fd   :  { %5842 = vmatpush3.msra.mxu0 %v6081_v11  ;;  %v4179_v11 = vld [vmem:[#allocation30] sm:$0xff] }
0x36fe   :  { %5843 = vmatprep.subr.mxu0 %v6530_v0 }
0x36ff   :  { %5844 = vmatpush3.msra.mxu0 %v6082_v9 }
0x3700   :  { %5868 = vmatprep.subr.mxu0 %v4182_v62 }
0x37b0   :  { %v3700_v20 = vpop.f32.mrf.mxu0 }
0x37b1   :  { %v3701_v22 = vadd.f32 %v7091_v24, %v3700_v20  ;;  %v6085_v24 = vld [vmem:[#allocation22 + $0x8] sm:$0xff]  ;;  %v4306_v20 = vld [vmem:[%s7591_s21 + $0x18] sm:$0xff] }
0x37b2   :  { %v5803_v23 = vpop.f32.mrf.mxu0 }
0x37b3   :  { %6051 = vtanh.f32 %v3701_v22  ;;  %v4305_v22 = vld [vmem:[%s7591_s21 + $0x10] sm:$0xff]  ;;  %v4304_v23 = vld [vmem:[%s7591_s21 + $0x8] sm:$0xff] }
0x37b8   :  { %v3847_v2 = vpop.f32.mrf.mxu0 }
0x37ba   :  { %v5825_v4 = vpop.f32.mrf.mxu0 }
0x37c0   :  { %v6052_v33 = vpop.eup %6051 }
0x37c1   :  { %3706 = vst.msk [vmem:[#allocation3 + $0x30] sm:$0xff] %vm456_vm5, %v6052_v33  ;;  %5813 = vmatmul.mubr.msk.f32.vlgmr.msra.gmra.mxu1 %vm456_vm5, %v6052_v33  ;;  %v6088_v33 = vld [vmem:[#allocation27] ss:$0 sm:$0xff] }
0x37c2   :  { %5827 = vmatpush3.msra.mxu1 %v6083_v34  ;;  %5834 = vmatprep.mubr.msk.f32.mxu1 %vm6531_vm0, %v6530_v0 }
0x37c3   :  { %5828 = vmatprep.subr.mxu1 %v6530_v0 }
0x37c4   :  { %5829 = vmatpush3.msra.mxu1 %v6084_v35 }
0x37c5   :  { %5830 = vmatprep.subr.mxu1 %v6530_v0 }
0x37c6   :  { %5831 = vmatpush3.msra.mxu1 %v6085_v24 }
0x37c7   :  { %5832 = vmatprep.subr.mxu1 %v6530_v0 }
0x37c8   :  { %5833 = vmatpush3.msra.mxu1 %v6086_v36  ;;  %v4037_v56 = vld [vmem:[#allocation3 + $0x30] sm:$0xff]  ;;  %v5121_v36 = vld [vmem:[%s7590_s20] ss:$0 sm:$0xff] }
0x37c9   :  { %5848 = vmatprep.subr.mxu1 %v4042_v51 }
0x3881   :  { %v3776_v37 = vpop.f32.mrf.mxu1 }
0x3882   :  { %v3780_v38 = vadd.f32 %v3776_v37, %v7107_v30 }
0x3883   :  { %v5814_v39 = vpop.f32.mrf.mxu1 }
0x3884   :  { %v3851_v40 = vadd.f32 %v3847_v2, %v3780_v38  ;;  %v4303_v2 = vld [vmem:[%s7591_s21] sm:$0xff] }
0x3886   :  { %v3852_v41 = vmul.f32 %v3851_v40, %v6799_v16 }
0x3888   :  { %v5108_v42 = vmul.f32 -1.442695, %v3852_v41 }
0x388a   :  { %6053 = vpow2.f32 %v5108_v42 }
0x3897   :  { %v6054_v43 = vpop.eup %6053 }
0x3898   :  { %v3856_v44 = vadd.f32 1.0, %v6054_v43 }
0x389a   :  { %6055 = vrcp.f32 %v3856_v44 }
0x38a7   :  { %v6056_v45 = vpop.eup %6055 }
0x38a8   :  { %v3859_v46 = vmul.f32 2.0, %v6056_v45 }
0x38aa   :  { %v5109_v47 = vadd.f32 -1.0, %v3859_v46 }
0x38ac   :  { %v3861_v0 = vsel %vm6793_vm4, %v5109_v47, %v6056_v45 }
0x38ad   :  { %3864 = vrot.lane.b32.xlu0 %v3861_v0, %s6533_s27  ;;  %v3862_v30 = vmul.f32 %v3861_v0, %v7411_v27 }
0x391f   :  { %v3865_v48 = vpop.permute.xlu0 %3864 }
0x3920   :  { %v3867_v49 = vmul.f32 %v3865_v48, %v3861_v0 }
0x3922   :  { %3869 = vrot.lane.b32.xlu1 %v3867_v49, %s6534_s0 }
0x3994   :  { %v3870_v16 = vpop.permute.xlu1 %3869 }
0x3995   :  { %v3872_v50 = vadd.f32 %v3870_v16, %v3862_v30 }
0x3997   :  { %6057 = vtanh.f32 %v3872_v50 }
0x39a4   :  { %v6058_v52 = vpop.eup %6057 }
0x39a5   :  { %3875 = vrot.lane.b32.xlu0 %v6058_v52, %s6533_s27 }
0x3a17   :  { %v3876_v14 = vpop.permute.xlu0 %3875 }
0x3a18   :  { %v3878_v63 = vmul.f32 %v3876_v14, %v3861_v0 }
0x3a1a   :  { %3880 = vrot.lane.b32.xlu1 %v3878_v63, %s6534_s0 }
0x3a8c   :  { %v3881_v10 = vpop.permute.xlu1 %3880 }
0x3a8d   :  { %5835 = vmatmul.mubr.msk.f32.vlgmr.msra.gmra.mxu1 %vm456_vm5, %v3881_v10 }
0x3a8e   :  { %5849 = vmatpush3.msra.mxu1 %v4042_v51  ;;  %5856 = vmatprep.mubr.msk.f32.mxu1 %vm456_vm5, %v4031_v54 }
0x3a8f   :  { %5850 = vmatprep.subr.mxu1 %v4041_v53 }
0x3a90   :  { %5851 = vmatpush3.msra.mxu1 %v4041_v53 }
0x3a91   :  { %5852 = vmatprep.subr.mxu1 %v4040_v59 }
0x3a92   :  { %5853 = vmatpush3.msra.mxu1 %v4040_v59 }
0x3a93   :  { %5854 = vmatprep.subr.mxu1 %v4039_v1 }
0x3a94   :  { %5855 = vmatpush3.msra.mxu1 %v4039_v1  ;;  %v7526_v1 = vld [vmem:[%s7592_s22] ss:$0 sm:$0xff]  ;;  %s6535_s22 = smov [#allocation32]  }
0x3a95   :  { %5857 = vmatmul.mubr.msk.f32.vlgmr.msra.gmra.mxu1 %vm456_vm5, %v4032_v55  ;;  %5888 = vmatprep.subr.mxu1 %v4306_v20  ;;  %s4989_s19 = sshll.u32 %s6535_s22, 4  ;;  %s4990_s19 = int_to_ptr.vmem [resolvable:$true] %s4989_s19 }
0x3a96   :  { %5859 = vmatprep.mubr.msk.f32.mxu1 %vm456_vm5, %v4033_v3  ;;  %5889 = vmatpush3.msra.mxu1 %v4306_v20  ;;  %s6429_s9 = scalar_lea.vmem %s4990_s19, 128  ;;  %p6434_p2 = scmp.lt.s32.totalorder %s4990_s19, %s4990_s19 }
0x3a97   :  { %5890 = vmatprep.subr.mxu1 %v4305_v22  ;;  %p6430_p1 = scmp.ne.s32.totalorder %s4990_s19, %s6429_s9  ;;  %p6435_p3 = scmp.lt.s32.totalorder %s6429_s9, %s6429_s9 }
0x3a98   :  { %5891 = vmatpush3.msra.mxu1 %v4305_v22 }
0x3a99   :  { %5860 = vmatmul.mubr.msk.f32.gmra.mxu1 %vm456_vm5, %v4034_v12  ;;  %5892 = vmatprep.subr.mxu1 %v4304_v23  ;;  %p6436_p4 = por %p6435_p3, %p6434_p2 }
0x3a9a   :  { %5862 = vmatprep.mubr.msk.f32.mxu1 %vm456_vm5, %v4035_v60  ;;  %5893 = vmatpush3.msra.mxu1 %v4304_v23 }
0x3a9b   :  { %5894 = vmatprep.subr.mxu1 %v4303_v2  ;;  %p6437_p5 = pnand %p6436_p4, %p6430_p1 }
0x3a9c   :  { %5895 = vmatpush3.msra.mxu1 %v4303_v2 }
0x3a9d   :  { %5863 = vmatmul.mubr.msk.f32.gmra.mxu1 %vm456_vm5, %v4036_v61 }
0x3a9e   :  { %5865 = vmatprep.mubr.msk.f32.mxu1 %vm456_vm5, %v4037_v56 }
0x3b4d   :  { %v3950_v15 = vpop.f32.mrf.mxu1 }
0x3b4e   :  { %v3951_v8 = vadd.f32 %v6087_v57, %v3950_v15 }
0x3b4f   :  { %v5836_v58 = vpop.f32.mrf.mxu1 }
0x3b50   :  { %6059 = vtanh.f32 %v3951_v8 }
0x3b55   :  { %v5858_v19 = vpop.f32.mrf.mxu1 }
0x3b56   :  { %v4146_v25 = vadd.f32 %v5858_v19, %v7482_v17 }
0x3b57   :  { %v4140_v26 = vpop.f32.mrf.mxu1 }
0x3b58   :  { %v4141_v27 = vadd.f32 %v7482_v17, %v4140_v26  ;;  %4475 = vxpose.xlu1.b32.start.end [1/1] (short) (narrow) %v4146_v25, 8 }
0x3b59   :  { %v5861_v28 = vpop.f32.mrf.mxu1 }
0x3b5a   :  { %4443 = vxpose.xlu0.b32.start.end [1/1] (short) (narrow) %v4141_v27, 8  ;;  %v4156_v29 = vadd.f32 %v5861_v28, %v7482_v17 }
0x3b5b   :  { %v4150_v5 = vpop.f32.mrf.mxu1 }
0x3b5c   :  { %v4151_v13 = vadd.f32 %v7482_v17, %v4150_v5 }
0x3b5d   :  { %v6060_v6 = vpop.eup %6059  ;;  %v5864_v31 = vpop.f32.mrf.mxu1 }
0x3b5e   :  { %v4166_v7 = vadd.f32 %v5864_v31, %v7482_v17  ;;  %4539 = vxpose.xlu0.b32.start.end [1/1] (short) (narrow) %v4156_v29, 8  ;;  %5846 = vmatmul.mubr.msk.f32.vlgmr.msra.gmra.mxu0 %vm456_vm5, %v6060_v6 }
0x3b5f   :  { %5869 = vmatpush3.msra.mxu0 %v4182_v62  ;;  %5876 = vmatprep.mubr.msk.f32.mxu0 %vm456_vm5, %v4031_v54  ;;  %v4160_v18 = vpop.f32.mrf.mxu1 }
0x3b60   :  { %5870 = vmatprep.subr.mxu0 %v4181_v21  ;;  %4603 = vxpose.xlu1.b32.start.end [1/1] (short) (narrow) %v4166_v7, 8  ;;  %v4161_v9 = vadd.f32 %v7482_v17, %v4160_v18 }
0x3b61   :  { %5871 = vmatpush3.msra.mxu0 %v4181_v21 }
0x3b62   :  { %5872 = vmatprep.subr.mxu0 %v4180_v32  ;;  %4507 = vxpose.xlu0.b32.start.end [1/1] (short) (narrow) %v4151_v13, 8 }
0x3b63   :  { %5873 = vmatpush3.msra.mxu0 %v4180_v32 }
0x3b64   :  { %5874 = vmatprep.subr.mxu0 %v4179_v11 }
0x3b65   :  { %5875 = vmatpush3.msra.mxu0 %v4179_v11 }
0x3b66   :  { %5877 = vmatmul.mubr.msk.f32.vlgmr.msra.gmra.mxu0 %vm456_vm5, %v4032_v55  ;;  %4571 = vxpose.xlu0.b32.start.end [1/1] (short) (narrow) %v4161_v9, 8 }
0x3b67   :  { %5879 = vmatprep.mubr.msk.f32.mxu0 %vm456_vm5, %v4033_v3 }
0x3b6a   :  { %5880 = vmatmul.mubr.msk.f32.gmra.mxu0 %vm456_vm5, %v4034_v12 }
0x3b6b   :  { %5882 = vmatprep.mubr.msk.f32.mxu0 %vm456_vm5, %v4035_v60 }
0x3b6e   :  { %5883 = vmatmul.mubr.msk.f32.gmra.mxu0 %vm456_vm5, %v4036_v61 }
0x3b6f   :  { %5885 = vmatprep.mubr.msk.f32.mxu0 %vm456_vm5, %v4037_v56 }
0x3bd4   :  { %v4491_v5 = vpop.trf.xlu1 }
0x3bd5   :  { %4700 = vst.msk [vmem:[#allocation31 + $0x8] sm:$0xff] %vm313_vm1, %v4491_v5 }
0x3bd6   :  { %v4459_v28 = vpop.trf.xlu0 }
0x3bd7   :  { %4699 = vst.msk [vmem:[#allocation31] sm:$0xff] %vm313_vm1, %v4459_v28 }
0x3bda   :  { %v4555_v29 = vpop.trf.xlu0 }
0x3bdb   :  { %4702 = vst.msk [vmem:[#allocation31 + $0x18] sm:$0xff] %vm313_vm1, %v4555_v29 }
0x3bdc   :  { %v4619_v6 = vpop.trf.xlu1 }
0x3bdd   :  { %4704 = vst.msk [vmem:[#allocation31 + $0x28] sm:$0xff] %vm313_vm1, %v4619_v6 }
0x3bde   :  { %v4523_v31 = vpop.trf.xlu0 }
0x3bdf   :  { %4701 = vst.msk [vmem:[#allocation31 + $0x10] sm:$0xff] %vm313_vm1, %v4523_v31 }
0x3be2   :  { %v4587_v21 = vpop.trf.xlu0 }
0x3be3   :  { %4703 = vst.msk [vmem:[#allocation31 + $0x20] sm:$0xff] %vm313_vm1, %v4587_v21 }
0x3c1e   :  { %v4024_v4 = vpop.f32.mrf.mxu0 }
0x3c1f   :  { %v4025_v34 = vadd.f32 %v6088_v33, %v4024_v4 }
0x3c20   :  { %v5847_v35 = vpop.f32.mrf.mxu0 }
0x3c21   :  { %6061 = vtanh.f32 %v4025_v34 }
0x3c26   :  { %v5878_v24 = vpop.f32.mrf.mxu0 }
0x3c27   :  { %v4262_v38 = vadd.f32 %v5878_v24, %v5121_v36 }
0x3c28   :  { %v4256_v37 = vpop.f32.mrf.mxu0 }
0x3c29   :  { %v4257_v39 = vadd.f32 %v5121_v36, %v4256_v37 }
0x3c2a   :  { %v5881_v40 = vpop.f32.mrf.mxu0 }
0x3c2b   :  { %6063 = vtanh.f32 %v4257_v39  ;;  %v4272_v42 = vadd.f32 %v5881_v40, %v5121_v36 }
0x3c2c   :  { %v4266_v41 = vpop.f32.mrf.mxu0  ;;  %6065 = vtanh.f32 %v4262_v38 }
0x3c2d   :  { %v4267_v43 = vadd.f32 %v5121_v36, %v4266_v41 }
0x3c2e   :  { %v6062_v44 = vpop.eup %6061  ;;  %v5884_v45 = vpop.f32.mrf.mxu0 }
0x3c2f   :  { %4030 = vst.msk [vmem:[#allocation3 + $0x38] sm:$0xff] %vm456_vm5, %v6062_v44  ;;  %6067 = vtanh.f32 %v4267_v43  ;;  %v4282_v47 = vadd.f32 %v5884_v45, %v5121_v36 }
0x3c30   :  { %v4276_v46 = vpop.f32.mrf.mxu0  ;;  %6069 = vtanh.f32 %v4272_v42 }
0x3c31   :  { %v4277_v0 = vadd.f32 %v5121_v36, %v4276_v46 }
0x3c33   :  { %6071 = vtanh.f32 %v4277_v0 }
0x3c34   :  { %6073 = vtanh.f32 %v4282_v47 }
0x3c36   :  { %v4038_v48 = vld [vmem:[#allocation3 + $0x38] sm:$0xff] }
0x3c37   :  { %5866 = vmatmul.mubr.msk.f32.gmra.mxu1 %vm456_vm5, %v4038_v48  ;;  %5886 = vmatmul.mubr.msk.f32.gmra.mxu0 %vm456_vm5, %v4038_v48 }
0x3c38   :  { %v6064_v49 = vpop.eup %6063 }
0x3c39   :  { %5896 = vmatprep.mubr.msk.f32.mxu1 %vm456_vm5, %v6064_v49  ;;  %v6066_v30 = vpop.eup %6065 }
0x3c3b   :  { %5897 = vmatmul.mubr.msk.f32.vlgmr.msra.gmra.mxu1 %vm456_vm5, %v6066_v30 }
0x3c3c   :  { %v6068_v16 = vpop.eup %6067 }
0x3c3d   :  { %5899 = vmatprep.mubr.msk.f32.mxu1 %vm456_vm5, %v6068_v16  ;;  %v6070_v50 = vpop.eup %6069 }
0x3c3f   :  { %5900 = vmatmul.mubr.msk.f32.gmra.mxu1 %vm456_vm5, %v6070_v50 }
0x3c40   :  { %v6072_v51 = vpop.eup %6071 }
0x3c41   :  { %5902 = vmatprep.mubr.msk.f32.mxu1 %vm456_vm5, %v6072_v51  ;;  %v6074_v52 = vpop.eup %6073 }
0x3c43   :  { %5903 = vmatmul.mubr.msk.f32.gmra.mxu1 %vm456_vm5, %v6074_v52 }
0x3cf7   :  { %v5867_v14 = vpop.f32.mrf.mxu1  ;;  %v5887_v63 = vpop.f32.mrf.mxu0 }
0x3cf8   :  { %v4176_v10 = vadd.f32 %v5867_v14, %v7482_v17  ;;  %v4292_v53 = vadd.f32 %v5887_v63, %v5121_v36 }
0x3cf9   :  { %v4170_v54 = vpop.f32.mrf.mxu1  ;;  %v4286_v59 = vpop.f32.mrf.mxu0 }
0x3cfa   :  { %v4171_v55 = vadd.f32 %v7482_v17, %v4170_v54  ;;  %v4287_v3 = vadd.f32 %v5121_v36, %v4286_v59  ;;  %4667 = vxpose.xlu1.b32.start.end [1/1] (short) (narrow) %v4176_v10, 8 }
0x3cfb   :  { %v5898_v12 = vpop.f32.mrf.mxu1 }
0x3cfc   :  { %6075 = vtanh.f32 %v4287_v3  ;;  %v4410_v60 = vadd.f32 %v5898_v12, %v7526_v1  ;;  %4635 = vxpose.xlu0.b32.start.end [1/1] (short) (narrow) %v4171_v55, 8 }
0x3cfd   :  { %6077 = vtanh.f32 %v4292_v53  ;;  %v4404_v61 = vpop.f32.mrf.mxu1 }
0x3cfe   :  { %v4405_v56 = vadd.f32 %v7526_v1, %v4404_v61  ;;  %4739 = vxpose.xlu1.b32.start.end [1/1] (short) (narrow) %v4410_v60, 8 }
0x3cff   :  { %v5901_v62 = vpop.f32.mrf.mxu1 }
0x3d00   :  { %v4420_v15 = vadd.f32 %v5901_v62, %v7526_v1  ;;  %4707 = vxpose.xlu0.b32.start.end [1/1] (short) (narrow) %v4405_v56, 8 }
0x3d01   :  { %v4414_v57 = vpop.f32.mrf.mxu1 }
0x3d02   :  { %v4415_v8 = vadd.f32 %v7526_v1, %v4414_v57  ;;  %4803 = vxpose.xlu1.b32.start.end [1/1] (short) (narrow) %v4420_v15, 8 }
0x3d03   :  { %v5904_v58 = vpop.f32.mrf.mxu1 }
0x3d04   :  { %v4430_v17 = vadd.f32 %v5904_v58, %v7526_v1  ;;  %4771 = vxpose.xlu0.b32.start.end [1/1] (short) (narrow) %v4415_v8, 8 }
0x3d05   :  { %v4424_v19 = vpop.f32.mrf.mxu1 }
0x3d06   :  { %v4425_v25 = vadd.f32 %v7526_v1, %v4424_v19  ;;  %4867 = vxpose.xlu1.b32.start.end [1/1] (short) (narrow) %v4430_v17, 8 }
0x3d08   :  { %4835 = vxpose.xlu0.b32.start.end [1/1] (short) (narrow) %v4425_v25, 8 }
0x3d09   :  { %v6076_v26 = vpop.eup %6075 }
0x3d0a   :  { %v6078_v27 = vpop.eup %6077  ;;  %5905 = vmatprep.mubr.msk.f32.mxu1 %vm456_vm5, %v6076_v26 }
0x3d0b   :  { %5906 = vmatmul.mubr.msk.f32.gmra.mxu1 %vm456_vm5, %v6078_v27 }
0x3d76   :  { %v4683_v7 = vpop.trf.xlu1 }
0x3d77   :  { %4706 = vst.msk [vmem:[#allocation31 + $0x38] sm:$0xff] %vm313_vm1, %v4683_v7 }
0x3d78   :  { %v4651_v32 = vpop.trf.xlu0 }
0x3d79   :  { %4705 = vst.msk [vmem:[#allocation31 + $0x30] sm:$0xff] %vm313_vm1, %v4651_v32 }
0x3d7a   :  { %v4755_v13 = vpop.trf.xlu1 }
0x3d7b   :  { %4964 = vst.msk [vmem:[#allocation34 + $0x8] sm:$0xff] %vm313_vm1, %v4755_v13 }
0x3d7c   :  { %v4723_v18 = vpop.trf.xlu0 }
0x3d7d   :  { %4963 = vst.msk [vmem:[#allocation34] sm:$0xff] %vm313_vm1, %v4723_v18 }
0x3d7e   :  { %v4819_v11 = vpop.trf.xlu1 }
0x3d7f   :  { %4966 = vst.msk [vmem:[#allocation34 + $0x18] sm:$0xff] %vm313_vm1, %v4819_v11 }
0x3d80   :  { %v4787_v9 = vpop.trf.xlu0 }
0x3d81   :  { %4965 = vst.msk [vmem:[#allocation34 + $0x10] sm:$0xff] %vm313_vm1, %v4787_v9 }
0x3d82   :  { %v4883_v20 = vpop.trf.xlu1 }
0x3d83   :  { %4968 = vst.msk [vmem:[#allocation34 + $0x28] sm:$0xff] %vm313_vm1, %v4883_v20 }
0x3d84   :  { %v4851_v22 = vpop.trf.xlu0 }
0x3d85   :  { %4967 = vst.msk [vmem:[#allocation34 + $0x20] sm:$0xff] %vm313_vm1, %v4851_v22 }
0x3dcb   :  { %v5907_v23 = vpop.f32.mrf.mxu1 }
0x3dcc   :  { %v4440_v2 = vadd.f32 %v5907_v23, %v7526_v1 }
0x3dcd   :  { %v4434_v4 = vpop.f32.mrf.mxu1 }
0x3dce   :  { %v4435_v33 = vadd.f32 %v7526_v1, %v4434_v4  ;;  %4931 = vxpose.xlu1.b32.start.end [1/1] (short) (narrow) %v4440_v2, 8 }
0x3dcf   :  { %6440 = shalt.err (!%p6437_p5)
}
0x3dd0   :  { %4992 = dma.vmem_to_hbm [thread:$0]  %s4990_s19, 128, %s7594_s24, [#allocation33]   ;;  %4899 = vxpose.xlu0.b32.start.end [1/1] (short) (narrow) %v4435_v33, 8 }
0x3dd1   :  { %s6449_s28 = scalar_lea.vmem %s4977_s8, 1024  ;;  %p6454_p7 = scmp.lt.s32.totalorder %s4977_s8, %s4977_s8 }
0x3dd2   :  { %p6450_p6 = scmp.ne.s32.totalorder %s4977_s8, %s6449_s28  ;;  %p6455_p8 = scmp.lt.s32.totalorder %s6449_s28, %s6449_s28 }
0x3dd4   :  { %p6456_p9 = por %p6455_p8, %p6454_p7 }
0x3dd6   :  { %p6457_p10 = pnand %p6456_p9, %p6450_p6 }
0x3dd8   :  { %6460 = shalt.err (!%p6457_p10)
}
0x3dd9   :  { %4982 = dma.vmem_to_hbm [thread:$0]  %s4977_s8, 1024, %s7593_s23, [#allocation6], %s6512_s30, %s6512_s30, %s6513_s7  }
0x3dda   :  { %s6537_s6 = smov [#allocation34]  }
0x3ddb   :  { %s4998_s29 = sshll.u32 %s6537_s6, 4  ;;  %s4999_s29 = int_to_ptr.vmem [resolvable:$true] %s4998_s29 }
0x3ddc   :  { %s6469_s24 = scalar_lea.vmem %s4999_s29, 1024  ;;  %p6474_p12 = scmp.lt.s32.totalorder %s4999_s29, %s4999_s29 }
0x3ddd   :  { %p6470_p11 = scmp.ne.s32.totalorder %s4999_s29, %s6469_s24  ;;  %p6475_p13 = scmp.lt.s32.totalorder %s6469_s24, %s6469_s24 }
0x3ddf   :  { %p6476_p0 = por %p6475_p13, %p6474_p12 }
0x3de1   :  { %p6477_p1 = pnand %p6476_p0, %p6470_p11 }
0x3e4a   :  { %v4947_v34 = vpop.trf.xlu1 }
0x3e4b   :  { %4970 = vst.msk [vmem:[#allocation34 + $0x38] sm:$0xff] %vm313_vm1, %v4947_v34 }
0x3e4c   :  { %v4915_v35 = vpop.trf.xlu0 }
0x3e4d   :  { %4969 = vst.msk [vmem:[#allocation34 + $0x30] sm:$0xff] %vm313_vm1, %v4915_v35 }
0x3e4e   :  { %6480 = shalt.err (!%p6477_p1)
}
0x3e4f   :  { %5004 = dma.vmem_to_hbm [thread:$0]  %s4999_s29, 1024, %s7595_s25, [#allocation33], %s6512_s30, %s6512_s30, %s6513_s7  }
0x3e50   :  { %6507 = dma.done.wait [#allocation6], 1024  }
0x3e51   :  { %6508 = vsyncadd [#allocation6], 4294966272 }
0x3e52   :  { %6509 = dma.done.wait [#allocation33], 1152  }
0x3e53   :  { %6510 = vsyncadd [#allocation33], 4294966144 }
0x3e54   :  { %5014 = vsyncpa [#allocation5], 1 }
0x3e55   :  { %5015 = vsyncpa [#allocation8], 1 }
0x3e56   :  { %5016 = vsyncpa [#allocation11], 1 }
0x3e57   :  { %5017 = vsyncpa [#allocation14], 1 }
0x3e58   :  { %5018 = vsyncpa [#allocation17], 1 }
0x3e59   :  { %5019 = vsyncpa [#allocation20], 1 }
0x3e5a   :  { %5020 = vsyncpa [#allocation23], 1 }
0x3e5b   :  { %5021 = vsyncpa [#allocation26], 1 }
0x3e5c   :  { %5022 = vsyncpa [#allocation29], 1 }
0x3e5d   :  { %5023 = vsyncpa [#allocation6], 1 }
0x3e5e   :  { %5024 = vsyncpa [#allocation33], 1 }

// kernel: tpu_custom_call.1
= control target key start
LH: loop header
LB: loop body
LE: loop exit
PB: predicated region body
PF: predicated region fallthrough
CT: control target
= control target key end

     0   :  { %s7048_s0 = inlined_call_operand.vmem [shape: f32[8,8,8], index: 0, kind: input, shape index: {}]   ;;  %s7049_s1 = inlined_call_operand.hbm [shape: f32[8,128], index: 1, kind: input, shape index: {}]   ;;  %s7050_s2 = inlined_call_operand.hbm [shape: f32[32,128], index: 2, kind: input, shape index: {}]   ;;  %s7051_s3 = inlined_call_operand.hbm [shape: f32[1,128], index: 3, kind: input, shape index: {}]   ;;  %s7052_s4 = inlined_call_operand.hbm [shape: f32[32,32], index: 4, kind: input, shape index: {}]   ;;  %s7053_s5 = inlined_call_operand.hbm [shape: f32[1,32], index: 5, kind: input, shape index: {}]   ;;  %s7054_s6 = inlined_call_operand.hbm [shape: f32[16,32], index: 6, kind: input, shape index: {}]   ;;  %s7055_s7 = inlined_call_operand.hbm [shape: f32[1,32], index: 7, kind: input, shape index: {}]   ;;  %s7056_s8 = inlined_call_operand.hbm [shape: f32[32,128], index: 8, kind: input, shape index: {}]   ;;  %s7057_s9 = inlined_call_operand.hbm [shape: f32[1,128], index: 9, kind: input, shape index: {}]   ;;  %s7058_s10 = inlined_call_operand.vmem [shape: f32[32,128], index: 10, kind: input, shape index: {}]   ;;  %s7059_s11 = inlined_call_operand.hbm [shape: f32[1,128], index: 11, kind: input, shape index: {}]   ;;  %s7060_s12 = inlined_call_operand.hbm [shape: f32[32,128], index: 12, kind: input, shape index: {}]   ;;  %s7061_s13 = inlined_call_operand.hbm [shape: f32[32,32], index: 13, kind: input, shape index: {}]   ;;  %s7062_s14 = inlined_call_operand.hbm [shape: f32[1,32], index: 14, kind: input, shape index: {}]   ;;  %s7063_s15 = inlined_call_operand.hbm [shape: f32[32,32], index: 15, kind: input, shape index: {}]   ;;  %s7064_s16 = inlined_call_operand.hbm [shape: f32[1,32], index: 16, kind: input, shape index: {}]   ;;  %s7065_s17 = inlined_call_operand.vmem [shape: f32[32,8], index: 17, kind: input, shape index: {}]   ;;  %s7066_s18 = inlined_call_operand.hbm [shape: f32[1,8], index: 18, kind: input, shape index: {}]   ;;  %s7067_s19 = inlined_call_operand.hbm [shape: f32[32,32], index: 19, kind: input, shape index: {}]   ;;  %s7068_s20 = inlined_call_operand.vmem [shape: f32[1,32], index: 20, kind: input, shape index: {}]   ;;  %s7069_s21 = inlined_call_operand.vmem [shape: f32[32,8], index: 21, kind: input, shape index: {}]   ;;  %s7070_s22 = inlined_call_operand.vmem [shape: f32[1,8], index: 22, kind: input, shape index: {}]   ;;  %s7071_s23 = inlined_call_operand.hbm [shape: f32[8,8,8], index: 23, kind: output, shape index: {0}]   ;;  %s7072_s24 = inlined_call_operand.hbm [shape: f32[8,32], index: 24, kind: output, shape index: {1}]   ;;  %s7073_s25 = inlined_call_operand.hbm [shape: f32[8,8,8], index: 25, kind: output, shape index: {2}]  }
   0x1   :  { %7075 = sst [smem:[#allocation46_spill]] %s7048_s0 }
   0x2   :  { %7076 = sst [smem:[#allocation47_spill]] %s7049_s1 }
   0x3   :  { %7077 = sst [smem:[#allocation48_spill]] %s7050_s2 }
   0x4   :  { %7078 = sst [smem:[#allocation49_spill]] %s7051_s3 }
   0x5   :  { %7079 = sst [smem:[#allocation50_spill]] %s7052_s4 }
   0x6   :  { %7080 = sst [smem:[#allocation51_spill]] %s7053_s5 }
   0x7   :  { %7081 = sst [smem:[#allocation52_spill]] %s7054_s6 }
   0x8   :  { %7082 = sst [smem:[#allocation53_spill]] %s7055_s7 }
   0x9   :  { %7083 = sst [smem:[#allocation54_spill]] %s7056_s8 }
   0xa   :  { %7084 = sst [smem:[#allocation55_spill]] %s7057_s9 }
   0xb   :  { %31 = vsyncpa [#allocation5], 0 }
   0xc   :  { %32 = vsyncpa [#allocation8], 0 }
   0xd   :  { %33 = vsyncpa [#allocation11], 0 }
   0xe   :  { %34 = vsyncpa [#allocation14], 0 }
   0xf   :  { %35 = vsyncpa [#allocation17], 0 }
  0x10   :  { %36 = vsyncpa [#allocation20], 0 }
  0x11   :  { %37 = vsyncpa [#allocation23], 0 }
  0x12   :  { %38 = vsyncpa [#allocation26], 0 }
  0x13   :  { %39 = vsyncpa [#allocation29], 0 }
  0x14   :  { %40 = vsyncpa [#allocation6], 0 }
  0x15   :  { %41 = vsyncpa [#allocation33], 0  ;;  %s5999_s29 = smov [#allocation7]  }
  0x16   :  { %s59_s2 = sshll.u32 %s5999_s29, 4  ;;  %s60_s2 = int_to_ptr.vmem [resolvable:$true] %s59_s2 }
  0x17   :  { %s5585_s6 = scalar_lea.vmem %s60_s2, 512  ;;  %p5590_p1 = scmp.lt.s32.totalorder %s60_s2, %s60_s2 }
  0x18   :  { %p5586_p0 = scmp.ne.s32.totalorder %s60_s2, %s5585_s6  ;;  %p5591_p2 = scmp.lt.s32.totalorder %s5585_s6, %s5585_s6 }
  0x1a   :  { %p5592_p3 = por %p5591_p2, %p5590_p1 }
  0x1c   :  { %p5593_p4 = pnand %p5592_p3, %p5586_p0 }
  0x1e   :  { %5596 = shalt.err (!%p5593_p4)
}
  0x1f   :  { %s6000_s30 = smov 128   ;;  %s6001_s7 = smov 8  }
  0x20   :  { %s7085_s1 = sld [smem:[#allocation48_spill]]  ;;  %s6002_s8 = smov [#allocation10]  }
  0x21   :  { %s81_s27 = sshll.u32 %s6002_s8, 4  ;;  %s6003_s4 = smov [#allocation13]   ;;  %s82_s27 = int_to_ptr.vmem [resolvable:$true] %s81_s27 }
  0x22   :  { %s103_s28 = sshll.u32 %s6003_s4, 4  ;;  %s5605_s9 = scalar_lea.vmem %s82_s27, 512  ;;  %s104_s28 = int_to_ptr.vmem [resolvable:$true] %s103_s28 }
  0x23   :  { %p5606_p5 = scmp.ne.s32.totalorder %s82_s27, %s5605_s9  ;;  %p5610_p6 = scmp.lt.s32.totalorder %s82_s27, %s82_s27 }
  0x24   :  { %p5611_p7 = scmp.lt.s32.totalorder %s5605_s9, %s5605_s9 }
  0x26   :  { %65 = dma.hbm_to_vmem [thread:$0]  %s7085_s1, 512, %s60_s2, [#allocation8], %s6000_s30, %s6000_s30, %s6001_s7  }
  0x27   :  { %p5612_p8 = por %p5611_p7, %p5610_p6 }
  0x29   :  { %p5613_p9 = pnand %p5612_p8, %p5606_p5 }
  0x2b   :  { %5616 = shalt.err (!%p5613_p9)
}
  0x2c   :  { %s7086_s29 = sld [smem:[#allocation50_spill]]  ;;  %s5625_s2 = scalar_lea.vmem %s104_s28, 256 }
  0x2d   :  { %p5626_p10 = scmp.ne.s32.totalorder %s104_s28, %s5625_s2  ;;  %p5630_p11 = scmp.lt.s32.totalorder %s104_s28, %s104_s28 }
  0x2e   :  { %p5631_p12 = scmp.lt.s32.totalorder %s5625_s2, %s5625_s2 }
  0x30   :  { %p5632_p13 = por %p5631_p12, %p5630_p11 }
  0x32   :  { %87 = dma.hbm_to_vmem [thread:$0]  %s7086_s29, 512, %s82_s27, [#allocation11], %s6000_s30, %s6000_s30, %s6001_s7  }
  0x33   :  { %p5633_p0 = pnand %p5632_p13, %p5626_p10 }
  0x35   :  { %5636 = shalt.err (!%p5633_p0)
}
  0x36   :  { %s7087_s26 = sld [smem:[#allocation52_spill]]  ;;  %s6004_s1 = smov [#allocation16]  }
  0x37   :  { %s125_s8 = sshll.u32 %s6004_s1, 4  ;;  %s6005_s4 = smov [#allocation19]   ;;  %s126_s8 = int_to_ptr.vmem [resolvable:$true] %s125_s8 }
  0x38   :  { %s150_s27 = sshll.u32 %s6005_s4, 4  ;;  %s5645_s9 = scalar_lea.vmem %s126_s8, 512  ;;  %s151_s27 = int_to_ptr.vmem [resolvable:$true] %s150_s27 }
  0x39   :  { %p5646_p1 = scmp.ne.s32.totalorder %s126_s8, %s5645_s9  ;;  %p5650_p2 = scmp.lt.s32.totalorder %s126_s8, %s126_s8 }
  0x3a   :  { %p5651_p3 = scmp.lt.s32.totalorder %s5645_s9, %s5645_s9 }
  0x3c   :  { %109 = dma.hbm_to_vmem [thread:$0]  %s7087_s26, 256, %s104_s28, [#allocation14], %s6000_s30, %s6000_s30, %s6001_s7  }
  0x3d   :  { %p5652_p4 = por %p5651_p3, %p5650_p2 }
  0x3f   :  { %p5653_p5 = pnand %p5652_p4, %p5646_p1 }
  0x41   :  { %5656 = shalt.err (!%p5653_p5)
}
  0x42   :  { %s7088_s29 = sld [smem:[#allocation54_spill]]  ;;  %s5665_s28 = scalar_lea.vmem %s151_s27, 16 }
  0x43   :  { %p5666_p6 = scmp.ne.s32.totalorder %s151_s27, %s5665_s28  ;;  %s5669_s2 = scalar_lea.vmem %s151_s27, 32 }
  0x44   :  { %p5670_p7 = scmp.lt.s32.totalorder %s151_s27, %s151_s27  ;;  %p5671_p8 = scmp.lt.s32.totalorder %s5669_s2, %s5665_s28 }
  0x46   :  { %p5672_p9 = por %p5671_p8, %p5670_p7 }
  0x48   :  { %131 = dma.hbm_to_vmem [thread:$0]  %s7088_s29, 512, %s126_s8, [#allocation17], %s6000_s30, %s6000_s30, %s6001_s7  }
  0x49   :  { %p5673_p10 = pnand %p5672_p9, %p5666_p6 }
  0x4b   :  { %5676 = shalt.err (!%p5673_p10)
}
  0x4c   :  { %153 = dma.hbm_to_vmem [thread:$0]  %s7059_s11, 16, %s151_s27, [#allocation20]  }
  0x4d   :  { %s6006_s26 = smov [#allocation22]   ;;  %s6007_s4 = smov [#allocation25]  }
  0x4e   :  { %s171_s1 = sshll.u32 %s6006_s26, 4  ;;  %s193_s9 = sshll.u32 %s6007_s4, 4  ;;  %s172_s1 = int_to_ptr.vmem [resolvable:$true] %s171_s1  ;;  %s194_s9 = int_to_ptr.vmem [resolvable:$true] %s193_s9 }
  0x4f   :  { %s5685_s5 = scalar_lea.vmem %s172_s1, 512  ;;  %p5690_p12 = scmp.lt.s32.totalorder %s172_s1, %s172_s1 }
  0x50   :  { %p5686_p11 = scmp.ne.s32.totalorder %s172_s1, %s5685_s5  ;;  %p5691_p13 = scmp.lt.s32.totalorder %s5685_s5, %s5685_s5 }
  0x52   :  { %p5692_p0 = por %p5691_p13, %p5690_p12 }
  0x54   :  { %p5693_p1 = pnand %p5692_p0, %p5686_p11 }
  0x56   :  { %5696 = shalt.err (!%p5693_p1)
}
  0x57   :  { %177 = dma.hbm_to_vmem [thread:$0]  %s7061_s13, 512, %s172_s1, [#allocation23], %s6000_s30, %s6000_s30, %s6001_s7  }
  0x58   :  { %s5705_s11 = scalar_lea.vmem %s194_s9, 512  ;;  %p5710_p3 = scmp.lt.s32.totalorder %s194_s9, %s194_s9 }
  0x59   :  { %p5706_p2 = scmp.ne.s32.totalorder %s194_s9, %s5705_s11  ;;  %p5711_p4 = scmp.lt.s32.totalorder %s5705_s11, %s5705_s11 }
  0x5b   :  { %p5712_p5 = por %p5711_p4, %p5710_p3 }
  0x5d   :  { %p5713_p6 = pnand %p5712_p5, %p5706_p2 }
  0x5f   :  { %5716 = shalt.err (!%p5713_p6)
}
  0x60   :  { %199 = dma.hbm_to_vmem [thread:$0]  %s7063_s15, 512, %s194_s9, [#allocation26], %s6000_s30, %s6000_s30, %s6001_s7  }
  0x61   :  { %s6008_s28 = smov [#allocation28]   ;;  %s6009_s6 = smov [#allocation4]  }
  0x62   :  { %s218_s2 = sshll.u32 %s6008_s28, 4  ;;  %s50_s13 = sshll.u32 %s6009_s6, 4  ;;  %s219_s2 = int_to_ptr.vmem [resolvable:$true] %s218_s2  ;;  %s51_s13 = int_to_ptr.vmem [resolvable:$true] %s50_s13 }
  0x63   :  { %s5725_s3 = scalar_lea.vmem %s219_s2, 16  ;;  %s5729_s26 = scalar_lea.vmem %s219_s2, 32 }
  0x64   :  { %p5726_p7 = scmp.ne.s32.totalorder %s219_s2, %s5725_s3  ;;  %p5730_p8 = scmp.lt.s32.totalorder %s219_s2, %s219_s2 }
  0x65   :  { %p5731_p9 = scmp.lt.s32.totalorder %s5729_s26, %s5725_s3 }
  0x67   :  { %p5732_p10 = por %p5731_p9, %p5730_p8 }
  0x69   :  { %p5733_p11 = pnand %p5732_p10, %p5726_p7 }
  0x6b   :  { %5736 = shalt.err (!%p5733_p11)
}
  0x6c   :  { %221 = dma.hbm_to_vmem [thread:$0]  %s7066_s18, 16, %s219_s2, [#allocation29]  }
  0x6d   :  { %s5745_s5 = scalar_lea.vmem %s51_s13, 128  ;;  %p5750_p13 = scmp.lt.s32.totalorder %s51_s13, %s51_s13 }
  0x6e   :  { %p5746_p12 = scmp.ne.s32.totalorder %s51_s13, %s5745_s5  ;;  %p5751_p0 = scmp.lt.s32.totalorder %s5745_s5, %s5745_s5 }
  0x70   :  { %p5752_p1 = por %p5751_p0, %p5750_p13 }
  0x72   :  { %p5753_p2 = pnand %p5752_p1, %p5746_p12 }
  0x74   :  { %5756 = shalt.err (!%p5753_p2)
}
  0x75   :  { %s7089_s8 = sld [smem:[#allocation47_spill]]  ;;  %s6010_s0 = smov [#allocation9]  }
  0x76   :  { %s72_s11 = sshll.u32 %s6010_s0, 4  ;;  %s6011_s27 = smov [#allocation12]   ;;  %s73_s11 = int_to_ptr.vmem [resolvable:$true] %s72_s11 }
  0x77   :  { %s94_s29 = sshll.u32 %s6011_s27, 4  ;;  %s5765_s28 = scalar_lea.vmem %s73_s11, 16  ;;  %s95_s29 = int_to_ptr.vmem [resolvable:$true] %s94_s29 }
  0x78   :  { %p5766_p3 = scmp.ne.s32.totalorder %s73_s11, %s5765_s28  ;;  %s5769_s18 = scalar_lea.vmem %s73_s11, 32 }
  0x79   :  { %p5770_p4 = scmp.lt.s32.totalorder %s73_s11, %s73_s11  ;;  %p5771_p5 = scmp.lt.s32.totalorder %s5769_s18, %s5765_s28 }
  0x7b   :  { %53 = dma.hbm_to_vmem [thread:$0]  %s7089_s8, 128, %s51_s13, [#allocation5]  }
  0x7c   :  { %p5772_p6 = por %p5771_p5, %p5770_p4 }
  0x7e   :  { %p5773_p7 = pnand %p5772_p6, %p5766_p3 }
  0x80   :  { %5776 = shalt.err (!%p5773_p7)
}
  0x81   :  { %s7090_s3 = sld [smem:[#allocation49_spill]]  ;;  %s5785_s26 = scalar_lea.vmem %s95_s29, 16 }
  0x82   :  { %p5786_p8 = scmp.ne.s32.totalorder %s95_s29, %s5785_s26  ;;  %s5789_s13 = scalar_lea.vmem %s95_s29, 32 }
  0x83   :  { %p5790_p9 = scmp.lt.s32.totalorder %s95_s29, %s95_s29  ;;  %p5791_p10 = scmp.lt.s32.totalorder %s5789_s13, %s5785_s26 }
  0x85   :  { %p5792_p11 = por %p5791_p10, %p5790_p9 }
  0x87   :  { %75 = dma.hbm_to_vmem [thread:$0]  %s7090_s3, 16, %s73_s11, [#allocation8]  }
  0x88   :  { %p5793_p12 = pnand %p5792_p11, %p5786_p8 }
  0x8a   :  { %5796 = shalt.err (!%p5793_p12)
}
  0x8b   :  { %s7091_s5 = sld [smem:[#allocation51_spill]]  ;;  %s6012_s15 = smov [#allocation15]  }
  0x8c   :  { %s116_s9 = sshll.u32 %s6012_s15, 4  ;;  %s6013_s8 = smov [#allocation18]   ;;  %s117_s9 = int_to_ptr.vmem [resolvable:$true] %s116_s9 }
  0x8d   :  { %s138_s0 = sshll.u32 %s6013_s8, 4  ;;  %s5805_s27 = scalar_lea.vmem %s117_s9, 16  ;;  %s139_s0 = int_to_ptr.vmem [resolvable:$true] %s138_s0 }
  0x8e   :  { %p5806_p13 = scmp.ne.s32.totalorder %s117_s9, %s5805_s27  ;;  %s5809_s11 = scalar_lea.vmem %s117_s9, 32 }
  0x8f   :  { %p5810_p0 = scmp.lt.s32.totalorder %s117_s9, %s117_s9  ;;  %p5811_p1 = scmp.lt.s32.totalorder %s5809_s11, %s5805_s27 }
  0x91   :  { %97 = dma.hbm_to_vmem [thread:$0]  %s7091_s5, 16, %s95_s29, [#allocation11]  }
  0x92   :  { %p5812_p2 = por %p5811_p1, %p5810_p0 }
  0x94   :  { %p5813_p3 = pnand %p5812_p2, %p5806_p13 }
  0x96   :  { %5816 = shalt.err (!%p5813_p3)
}
  0x97   :  { %s7092_s2 = sld [smem:[#allocation53_spill]]  ;;  %s5825_s6 = scalar_lea.vmem %s139_s0, 16 }
  0x98   :  { %p5826_p4 = scmp.ne.s32.totalorder %s139_s0, %s5825_s6  ;;  %s5829_s29 = scalar_lea.vmem %s139_s0, 32 }
  0x99   :  { %p5830_p5 = scmp.lt.s32.totalorder %s139_s0, %s139_s0  ;;  %p5831_p6 = scmp.lt.s32.totalorder %s5829_s29, %s5825_s6 }
  0x9b   :  { %p5832_p7 = por %p5831_p6, %p5830_p5 }
  0x9d   :  { %119 = dma.hbm_to_vmem [thread:$0]  %s7092_s2, 16, %s117_s9, [#allocation14]  }
  0x9e   :  { %p5833_p8 = pnand %p5832_p7, %p5826_p4 }
  0xa0   :  { %5836 = shalt.err (!%p5833_p8)
}
  0xa1   :  { %s7093_s13 = sld [smem:[#allocation55_spill]]  ;;  %s6014_s1 = smov [#allocation21]  }
  0xa2   :  { %s159_s4 = sshll.u32 %s6014_s1, 4  ;;  %s6015_s5 = smov [#allocation24]   ;;  %s160_s4 = int_to_ptr.vmem [resolvable:$true] %s159_s4 }
  0xa3   :  { %s184_s15 = sshll.u32 %s6015_s5, 4  ;;  %s5845_s8 = scalar_lea.vmem %s160_s4, 512  ;;  %s185_s15 = int_to_ptr.vmem [resolvable:$true] %s184_s15 }
  0xa4   :  { %p5846_p9 = scmp.ne.s32.totalorder %s160_s4, %s5845_s8  ;;  %p5850_p10 = scmp.lt.s32.totalorder %s160_s4, %s160_s4 }
  0xa5   :  { %p5851_p11 = scmp.lt.s32.totalorder %s5845_s8, %s5845_s8 }
  0xa7   :  { %141 = dma.hbm_to_vmem [thread:$0]  %s7093_s13, 16, %s139_s0, [#allocation17]  }
  0xa8   :  { %p5852_p12 = por %p5851_p11, %p5850_p10 }
  0xaa   :  { %p5853_p13 = pnand %p5852_p12, %p5846_p9 }
  0xac   :  { %5856 = shalt.err (!%p5853_p13)
}
  0xad   :  { %165 = dma.hbm_to_vmem [thread:$0]  %s7060_s12, 512, %s160_s4, [#allocation20], %s6000_s30, %s6000_s30, %s6001_s7  }
  0xae   :  { %s5865_s0 = scalar_lea.vmem %s185_s15, 16  ;;  %s5869_s11 = scalar_lea.vmem %s185_s15, 32 }
  0xaf   :  { %p5866_p0 = scmp.ne.s32.totalorder %s185_s15, %s5865_s0  ;;  %p5870_p1 = scmp.lt.s32.totalorder %s185_s15, %s185_s15 }
  0xb0   :  { %p5871_p2 = scmp.lt.s32.totalorder %s5869_s11, %s5865_s0 }
  0xb2   :  { %p5872_p3 = por %p5871_p2, %p5870_p1 }
  0xb4   :  { %p5873_p4 = pnand %p5872_p3, %p5866_p0 }
  0xb6   :  { %5876 = shalt.err (!%p5873_p4)
}
  0xb7   :  { %187 = dma.hbm_to_vmem [thread:$0]  %s7062_s14, 16, %s185_s15, [#allocation23]  }
  0xb8   :  { %s6016_s2 = smov [#allocation27]   ;;  %s6017_s29 = smov [#allocation30]  }
  0xb9   :  { %s206_s6 = sshll.u32 %s6016_s2, 4  ;;  %s227_s3 = sshll.u32 %s6017_s29, 4  ;;  %s207_s6 = int_to_ptr.vmem [resolvable:$true] %s206_s6  ;;  %s228_s3 = int_to_ptr.vmem [resolvable:$true] %s227_s3 }
  0xba   :  { %s5885_s26 = scalar_lea.vmem %s207_s6, 16  ;;  %s5889_s12 = scalar_lea.vmem %s207_s6, 32 }
  0xbb   :  { %p5886_p5 = scmp.ne.s32.totalorder %s207_s6, %s5885_s26  ;;  %p5890_p6 = scmp.lt.s32.totalorder %s207_s6, %s207_s6 }
  0xbc   :  { %p5891_p7 = scmp.lt.s32.totalorder %s5889_s12, %s5885_s26 }
  0xbe   :  { %p5892_p8 = por %p5891_p7, %p5890_p6 }
  0xc0   :  { %p5893_p9 = pnand %p5892_p8, %p5886_p5 }
  0xc2   :  { %5896 = shalt.err (!%p5893_p9)
}
  0xc3   :  { %209 = dma.hbm_to_vmem [thread:$0]  %s7064_s16, 16, %s207_s6, [#allocation26]  }
  0xc4   :  { %s5905_s4 = scalar_lea.vmem %s228_s3, 512  ;;  %p5910_p11 = scmp.lt.s32.totalorder %s228_s3, %s228_s3 }
  0xc5   :  { %p5906_p10 = scmp.ne.s32.totalorder %s228_s3, %s5905_s4  ;;  %p5911_p12 = scmp.lt.s32.totalorder %s5905_s4, %s5905_s4 }
  0xc7   :  { %p5912_p13 = por %p5911_p12, %p5910_p11 }
  0xc9   :  { %p5913_p0 = pnand %p5912_p13, %p5906_p10 }
  0xcb   :  { %5916 = shalt.err (!%p5913_p0)
}
  0xcc   :  { %233 = dma.hbm_to_vmem [thread:$0]  %s7067_s19, 512, %s228_s3, [#allocation29], %s6000_s30, %s6000_s30, %s6001_s7  }
  0xcd   :  { %5977 = dma.done.wait [#allocation5], 128  }
  0xce   :  { %5978 = vsyncadd [#allocation5], 4294967168 }
  0xcf   :  { %5979 = dma.done.wait [#allocation8], 528  }
  0xd0   :  { %5980 = vsyncadd [#allocation8], 4294966768 }
  0xd1   :  { %5981 = dma.done.wait [#allocation11], 528  }
  0xd2   :  { %5982 = vsyncadd [#allocation11], 4294966768 }
  0xd3   :  { %5983 = dma.done.wait [#allocation14], 272  }
  0xd4   :  { %5984 = vsyncadd [#allocation14], 4294967024 }
  0xd5   :  { %5985 = dma.done.wait [#allocation17], 528  }
  0xd6   :  { %5986 = vsyncadd [#allocation17], 4294966768 }
  0xd7   :  { %5987 = dma.done.wait [#allocation20], 528  }
  0xd8   :  { %5988 = vsyncadd [#allocation20], 4294966768 }
  0xd9   :  { %5989 = dma.done.wait [#allocation23], 528  }
  0xda   :  { %5990 = vsyncadd [#allocation23], 4294966768 }
  0xdb   :  { %5991 = dma.done.wait [#allocation26], 528  }
  0xdc   :  { %5992 = vsyncadd [#allocation26], 4294966768 }
  0xdd   :  { %5993 = dma.done.wait [#allocation29], 528  }
  0xde   :  { %5994 = vsyncadd [#allocation29], 4294966768  ;;  %v6018_v0 = vmov 0.0   ;;  %vm6019_vm0 = vmmov 0   ;;  %vm313_vm1 = vcmask 64512   ;;  %v305_v1 = vld [vmem:[#allocation4] sm:$0xff]  ;;  %v291_v8 = vlaneseq }
  0xdf   :  { %4889 = vmatprep.subr.mxu1 %v6018_v0  ;;  %4897 = vmatprep.mubr.msk.f32.mxu1 %vm6019_vm0, %v6018_v0  ;;  %v6234_v2 = vld [vmem:[#allocation7 + $0x18] sm:$0xff]  ;;  %s7094_s15 = sld [smem:[#allocation46_spill]]  ;;  %v6243_v5 = vld [vmem:[#allocation7 + $0x10] sm:$0xff]  ;;  %v6248_v6 = vld [vmem:[#allocation7 + $0x8] sm:$0xff]  ;;  %v6020_v15 = vmov 1.0   ;;  %s6021_s27 = smov 64  }
  0xe0   :  { %4875 = vmatprep.subr.mxu0 %v305_v1  ;;  %4890 = vmatpush3.msra.mxu1 %v6234_v2  ;;  %v6253_v7 = vld [vmem:[#allocation7] sm:$0xff]  ;;  %v292_v9 = vand.u32 127, %v291_v8  ;;  %s6022_s0 = smov 32   ;;  %vm456_vm5 = vcmask 261120   ;;  %vm1389_vm6 = vcmask 130048  }
  0xe1   :  { %4876 = vmatpush3.msra.mxu0 %v305_v1  ;;  %4891 = vmatprep.subr.mxu1 %v6018_v0  ;;  %v6278_v11 = vld [vmem:[#allocation9] ss:$0 sm:$0xff] }
  0xe2   :  { %4892 = vmatpush3.msra.mxu1 %v6243_v5  ;;  %4911 = vmatprep.subr.mxu0 %v6018_v0  ;;  %vm293_vm2 = vcmp.ge.s32.totalorder %v292_v9, 64  ;;  %vm294_vm3 = vcmp.lt.s32.totalorder %v292_v9, 96 }
  0xe3   :  { %4893 = vmatprep.subr.mxu1 %v6018_v0  ;;  %vm6281_vm4 = vmand %vm293_vm2, %vm294_vm3 }
  0xe4   :  { %4894 = vmatpush3.msra.mxu1 %v6248_v6  ;;  %v6287_v16 = vsel %vm6281_vm4, 2.0, %v6020_v15 }
  0xe5   :  { %v297_v3 = vld [vmem:[%s7094_s15] sm:$0xff]  ;;  %v298_v4 = vld [vmem:[%s7094_s15 + $0x8] sm:$0xff]  ;;  %4895 = vmatprep.subr.mxu1 %v6018_v0  ;;  %v299_v54 = vld [vmem:[%s7094_s15 + $0x10] sm:$0xff] }
  0xe6   :  { %4877 = vmatprep.mubr.msk.f32.mxu0 %vm313_vm1, %v297_v3  ;;  %4896 = vmatpush3.msra.mxu1 %v6253_v7  ;;  %v300_v55 = vld [vmem:[%s7094_s15 + $0x18] sm:$0xff]  ;;  %v301_v56 = vld [vmem:[%s7094_s15 + $0x20] sm:$0xff]  ;;  %v302_v57 = vld [vmem:[%s7094_s15 + $0x28] sm:$0xff] }
  0xe7   :  { %4878 = vmatmul.mubr.msk.f32.vlgmr.msra.gmra.mxu0 %vm313_vm1, %v298_v4  ;;  %4898 = vmatmul.mubr.f32.vlgmr.msra.gmra.mxu1 %v6018_v0  ;;  %v303_v58 = vld [vmem:[%s7094_s15 + $0x30] sm:$0xff]  ;;  %v304_v59 = vld [vmem:[%s7094_s15 + $0x38] sm:$0xff]  ;;  %s6024_s15 = smov [#allocation31]  }
  0xe8   :  { %4912 = vmatpush3.msra.mxu0 %v6234_v2  ;;  %4900 = vmatprep.subr.mxu1 %v6018_v0  ;;  %s4464_s8 = sshll.u32 %s6024_s15, 4  ;;  %s4465_s8 = int_to_ptr.vmem [resolvable:$true] %s4464_s8 }
  0xe9   :  { %4913 = vmatprep.subr.mxu0 %v6018_v0  ;;  %4901 = vmatpush3.msra.mxu1 %v6234_v2 }
  0xea   :  { %4914 = vmatpush3.msra.mxu0 %v6243_v5  ;;  %4908 = vmatprep.mubr.msk.f32.mxu1 %vm6019_vm0, %v6018_v0 }
  0xeb   :  { %4915 = vmatprep.subr.mxu0 %v6018_v0  ;;  %4902 = vmatprep.subr.mxu1 %v6018_v0 }
  0xec   :  { %4916 = vmatpush3.msra.mxu0 %v6248_v6  ;;  %4903 = vmatpush3.msra.mxu1 %v6243_v5 }
  0xed   :  { %4917 = vmatprep.subr.mxu0 %v6018_v0  ;;  %4904 = vmatprep.subr.mxu1 %v6018_v0 }
  0xee   :  { %4918 = vmatpush3.msra.mxu0 %v6253_v7  ;;  %4905 = vmatpush3.msra.mxu1 %v6248_v6 }
  0xef   :  { %4933 = vmatprep.subr.mxu0 %v6018_v0  ;;  %4906 = vmatprep.subr.mxu1 %v6018_v0 }
  0xf0   :  { %4907 = vmatpush3.msra.mxu1 %v6253_v7  ;;  %4880 = vmatprep.mubr.msk.f32.mxu0 %vm313_vm1, %v299_v54 }
  0xf1   :  { %4922 = vmatprep.subr.mxu1 %v6018_v0  ;;  %4881 = vmatmul.mubr.msk.f32.gmra.mxu0 %vm313_vm1, %v300_v55 }
  0xf2   :  { %4883 = vmatprep.mubr.msk.f32.mxu0 %vm313_vm1, %v301_v56 }
  0xf5   :  { %4884 = vmatmul.mubr.msk.f32.gmra.mxu0 %vm313_vm1, %v302_v57 }
  0xf6   :  { %4886 = vmatprep.mubr.msk.f32.mxu0 %vm313_vm1, %v303_v58 }
  0xf9   :  { %4887 = vmatmul.mubr.msk.f32.gmra.mxu0 %vm313_vm1, %v304_v59 }
  0xfa   :  { %4919 = vmatprep.mubr.msk.f32.mxu0 %vm6019_vm0, %v6018_v0 }
 0x1a7   :  { %v4879_v10 = vpop.f32.mrf.mxu0  ;;  %v526_v17 = vpop.f32.mrf.mxu1 }
 0x1a8   :  { %v410_v37 = vadd.f32 %v4879_v10, %v6278_v11 }
 0x1a9   :  { %v404_v12 = vpop.f32.mrf.mxu0  ;;  %v4899_v19 = vpop.f32.mrf.mxu1 }
 0x1aa   :  { %v405_v13 = vadd.f32 %v6278_v11, %v404_v12 }
 0x1ac   :  { %v530_v18 = vadd.f32 %v526_v17, %v405_v13 }
 0x1ae   :  { %v531_v20 = vmul.f32 %v530_v18, %v6287_v16 }
 0x1b0   :  { %v4522_v21 = vmul.f32 -1.442695, %v531_v20 }
 0x1b1   :  { %v4882_v1 = vpop.f32.mrf.mxu0 }
 0x1b2   :  { %5423 = vpow2.f32 %v4522_v21 }
 0x1b3   :  { %v414_v3 = vpop.f32.mrf.mxu0 }
 0x1b4   :  { %v415_v12 = vadd.f32 %v6278_v11, %v414_v3 }
 0x1b5   :  { %v6352_v4 = vpop.f32.mrf.mxu0 }
 0x1b7   :  { %v6354_v8 = vpop.f32.mrf.mxu0 }
 0x1b8   :  { %v425_v56 = vadd.f32 %v6278_v11, %v6354_v8 }
 0x1b9   :  { %v6356_v9 = vpop.f32.mrf.mxu0 }
 0x1bb   :  { %v6358_v10 = vpop.f32.mrf.mxu0 }
 0x1bf   :  { %v5424_v22 = vpop.eup %5423 }
 0x1c0   :  { %v535_v23 = vadd.f32 1.0, %v5424_v22 }
 0x1c2   :  { %5425 = vrcp.f32 %v535_v23 }
 0x1cf   :  { %v5426_v24 = vpop.eup %5425 }
 0x1d0   :  { %v538_v25 = vmul.f32 2.0, %v5426_v24 }
 0x1d2   :  { %v4523_v26 = vadd.f32 -1.0, %v538_v25 }
 0x1d4   :  { %v540_v27 = vsel %vm6281_vm4, %v4523_v26, %v5426_v24 }
 0x1d5   :  { %543 = vrot.lane.b32.xlu0 %v540_v27, %s6021_s27  ;;  %v541_v30 = vmul.f32 0.0, %v540_v27 }
 0x247   :  { %v544_v28 = vpop.permute.xlu0 %543 }
 0x248   :  { %v546_v29 = vmul.f32 %v544_v28, %v540_v27 }
 0x24a   :  { %548 = vrot.lane.b32.xlu0 %v546_v29, %s6022_s0 }
 0x2bc   :  { %v549_v31 = vpop.permute.xlu0 %548 }
 0x2bd   :  { %v551_v32 = vadd.f32 %v549_v31, %v541_v30 }
 0x2bf   :  { %5427 = vtanh.f32 %v551_v32 }
 0x2cc   :  { %v5428_v33 = vpop.eup %5427 }
 0x2cd   :  { %554 = vrot.lane.b32.xlu1 %v5428_v33, %s6021_s27 }
 0x33f   :  { %v555_v34 = vpop.permute.xlu1 %554 }
 0x340   :  { %v557_v35 = vmul.f32 %v555_v34, %v540_v27 }
 0x342   :  { %561 = vrot.lane.b32.xlu1 %v557_v35, %s6022_s0  ;;  %v420_v35 = vadd.f32 %v4882_v1, %v6278_v11 }
 0x3b4   :  { %v562_v36 = vpop.permute.xlu1 %561 }
 0x3b5   :  { %4909 = vmatmul.mubr.msk.f32.vlgmr.msra.gmra.mxu1 %vm456_vm5, %v562_v36 }
 0x3b6   :  { %4923 = vmatpush3.msra.mxu1 %v6234_v2  ;;  %4930 = vmatprep.mubr.msk.f32.mxu1 %vm6019_vm0, %v6018_v0 }
 0x3b7   :  { %4924 = vmatprep.subr.mxu1 %v6018_v0 }
 0x3b8   :  { %4925 = vmatpush3.msra.mxu1 %v6243_v5 }
 0x3b9   :  { %4926 = vmatprep.subr.mxu1 %v6018_v0 }
 0x3ba   :  { %4927 = vmatpush3.msra.mxu1 %v6248_v6 }
 0x3bb   :  { %4928 = vmatprep.subr.mxu1 %v6018_v0 }
 0x3bc   :  { %4929 = vmatpush3.msra.mxu1 %v6253_v7 }
 0x3bd   :  { %4944 = vmatprep.subr.mxu1 %v6018_v0 }
 0x475   :  { %v631_v38 = vpop.f32.mrf.mxu1 }
 0x476   :  { %v635_v39 = vadd.f32 %v631_v38, %v410_v37 }
 0x477   :  { %v4910_v40 = vpop.f32.mrf.mxu1 }
 0x478   :  { %v636_v41 = vmul.f32 %v635_v39, %v6287_v16 }
 0x47a   :  { %v4525_v42 = vmul.f32 -1.442695, %v636_v41 }
 0x47c   :  { %5429 = vpow2.f32 %v4525_v42 }
 0x489   :  { %v5430_v43 = vpop.eup %5429 }
 0x48a   :  { %v640_v44 = vadd.f32 1.0, %v5430_v43 }
 0x48c   :  { %5431 = vrcp.f32 %v640_v44 }
 0x499   :  { %v5432_v45 = vpop.eup %5431 }
 0x49a   :  { %v643_v46 = vmul.f32 2.0, %v5432_v45 }
 0x49c   :  { %v4526_v47 = vadd.f32 -1.0, %v643_v46 }
 0x49e   :  { %v645_v48 = vsel %vm6281_vm4, %v4526_v47, %v5432_v45 }
 0x49f   :  { %648 = vrot.lane.b32.xlu0 %v645_v48, %s6021_s27  ;;  %v646_v51 = vmul.f32 %v645_v48, %v551_v32 }
 0x511   :  { %v649_v49 = vpop.permute.xlu0 %648 }
 0x512   :  { %v651_v50 = vmul.f32 %v649_v49, %v645_v48 }
 0x514   :  { %653 = vrot.lane.b32.xlu1 %v651_v50, %s6022_s0 }
 0x586   :  { %v654_v52 = vpop.permute.xlu1 %653 }
 0x587   :  { %v656_v53 = vadd.f32 %v654_v52, %v646_v51 }
 0x589   :  { %5433 = vtanh.f32 %v656_v53 }
 0x596   :  { %v5434_v60 = vpop.eup %5433 }
 0x597   :  { %659 = vrot.lane.b32.xlu0 %v5434_v60, %s6021_s27 }
 0x609   :  { %v660_v61 = vpop.permute.xlu0 %659 }
 0x60a   :  { %v662_v62 = vmul.f32 %v660_v61, %v645_v48 }
 0x60c   :  { %666 = vrot.lane.b32.xlu1 %v662_v62, %s6022_s0 }
 0x67e   :  { %v667_v63 = vpop.permute.xlu1 %666 }
 0x67f   :  { %4920 = vmatmul.mubr.msk.f32.vlgmr.msra.gmra.mxu0 %vm456_vm5, %v667_v63 }
 0x680   :  { %4934 = vmatpush3.msra.mxu0 %v6234_v2  ;;  %4941 = vmatprep.mubr.msk.f32.mxu0 %vm6019_vm0, %v6018_v0 }
 0x681   :  { %4935 = vmatprep.subr.mxu0 %v6018_v0 }
 0x682   :  { %4936 = vmatpush3.msra.mxu0 %v6243_v5 }
 0x683   :  { %4937 = vmatprep.subr.mxu0 %v6018_v0 }
 0x684   :  { %4938 = vmatpush3.msra.mxu0 %v6248_v6 }
 0x685   :  { %4939 = vmatprep.subr.mxu0 %v6018_v0 }
 0x686   :  { %4940 = vmatpush3.msra.mxu0 %v6253_v7 }
 0x687   :  { %4955 = vmatprep.subr.mxu0 %v6018_v0 }
 0x73f   :  { %v736_v13 = vpop.f32.mrf.mxu0 }
 0x740   :  { %v740_v15 = vadd.f32 %v736_v13, %v415_v12 }
 0x741   :  { %v4921_v17 = vpop.f32.mrf.mxu0 }
 0x742   :  { %v741_v18 = vmul.f32 %v740_v15, %v6287_v16 }
 0x744   :  { %v4528_v19 = vmul.f32 -1.442695, %v741_v18 }
 0x746   :  { %5435 = vpow2.f32 %v4528_v19 }
 0x753   :  { %v5436_v20 = vpop.eup %5435 }
 0x754   :  { %v745_v21 = vadd.f32 1.0, %v5436_v20 }
 0x756   :  { %5437 = vrcp.f32 %v745_v21 }
 0x763   :  { %v5438_v22 = vpop.eup %5437 }
 0x764   :  { %v748_v23 = vmul.f32 2.0, %v5438_v22 }
 0x766   :  { %v4529_v24 = vadd.f32 -1.0, %v748_v23 }
 0x768   :  { %v750_v25 = vsel %vm6281_vm4, %v4529_v24, %v5438_v22 }
 0x769   :  { %753 = vrot.lane.b32.xlu0 %v750_v25, %s6021_s27  ;;  %v751_v28 = vmul.f32 %v750_v25, %v656_v53 }
 0x7db   :  { %v754_v26 = vpop.permute.xlu0 %753 }
 0x7dc   :  { %v756_v27 = vmul.f32 %v754_v26, %v750_v25 }
 0x7de   :  { %758 = vrot.lane.b32.xlu1 %v756_v27, %s6022_s0 }
 0x850   :  { %v759_v29 = vpop.permute.xlu1 %758 }
 0x851   :  { %v761_v30 = vadd.f32 %v759_v29, %v751_v28 }
 0x853   :  { %5439 = vtanh.f32 %v761_v30 }
 0x860   :  { %v5440_v31 = vpop.eup %5439 }
 0x861   :  { %764 = vrot.lane.b32.xlu0 %v5440_v31, %s6021_s27 }
 0x8d3   :  { %v765_v32 = vpop.permute.xlu0 %764 }
 0x8d4   :  { %v767_v33 = vmul.f32 %v765_v32, %v750_v25 }
 0x8d6   :  { %771 = vrot.lane.b32.xlu1 %v767_v33, %s6022_s0 }
 0x948   :  { %v772_v34 = vpop.permute.xlu1 %771 }
 0x949   :  { %4931 = vmatmul.mubr.msk.f32.vlgmr.msra.gmra.mxu1 %vm456_vm5, %v772_v34 }
 0x94a   :  { %4945 = vmatpush3.msra.mxu1 %v6234_v2  ;;  %4952 = vmatprep.mubr.msk.f32.mxu1 %vm6019_vm0, %v6018_v0 }
 0x94b   :  { %4946 = vmatprep.subr.mxu1 %v6018_v0 }
 0x94c   :  { %4947 = vmatpush3.msra.mxu1 %v6243_v5 }
 0x94d   :  { %4948 = vmatprep.subr.mxu1 %v6018_v0 }
 0x94e   :  { %4949 = vmatpush3.msra.mxu1 %v6248_v6 }
 0x94f   :  { %4950 = vmatprep.subr.mxu1 %v6018_v0 }
 0x950   :  { %4951 = vmatpush3.msra.mxu1 %v6253_v7 }
 0x951   :  { %4966 = vmatprep.subr.mxu1 %v6018_v0 }
 0xa09   :  { %v841_v36 = vpop.f32.mrf.mxu1 }
 0xa0a   :  { %v845_v37 = vadd.f32 %v841_v36, %v420_v35 }
 0xa0b   :  { %v4932_v38 = vpop.f32.mrf.mxu1 }
 0xa0c   :  { %v846_v39 = vmul.f32 %v845_v37, %v6287_v16 }
 0xa0e   :  { %v4531_v40 = vmul.f32 -1.442695, %v846_v39 }
 0xa10   :  { %5441 = vpow2.f32 %v4531_v40  ;;  %v435_v40 = vadd.f32 %v6278_v11, %v6358_v10 }
 0xa1d   :  { %v5442_v41 = vpop.eup %5441 }
 0xa1e   :  { %v850_v42 = vadd.f32 1.0, %v5442_v41 }
 0xa20   :  { %5443 = vrcp.f32 %v850_v42 }
 0xa2d   :  { %v5444_v43 = vpop.eup %5443 }
 0xa2e   :  { %v853_v44 = vmul.f32 2.0, %v5444_v43 }
 0xa30   :  { %v4532_v45 = vadd.f32 -1.0, %v853_v44 }
 0xa32   :  { %v855_v46 = vsel %vm6281_vm4, %v4532_v45, %v5444_v43 }
 0xa33   :  { %858 = vrot.lane.b32.xlu0 %v855_v46, %s6021_s27  ;;  %v856_v49 = vmul.f32 %v855_v46, %v761_v30 }
 0xaa5   :  { %v859_v47 = vpop.permute.xlu0 %858 }
 0xaa6   :  { %v861_v48 = vmul.f32 %v859_v47, %v855_v46 }
 0xaa8   :  { %863 = vrot.lane.b32.xlu1 %v861_v48, %s6022_s0 }
 0xb1a   :  { %v864_v50 = vpop.permute.xlu1 %863 }
 0xb1b   :  { %v866_v51 = vadd.f32 %v864_v50, %v856_v49 }
 0xb1d   :  { %5445 = vtanh.f32 %v866_v51 }
 0xb2a   :  { %v5446_v52 = vpop.eup %5445 }
 0xb2b   :  { %869 = vrot.lane.b32.xlu0 %v5446_v52, %s6021_s27 }
 0xb9d   :  { %v870_v53 = vpop.permute.xlu0 %869 }
 0xb9e   :  { %v872_v54 = vmul.f32 %v870_v53, %v855_v46 }
 0xba0   :  { %876 = vrot.lane.b32.xlu1 %v872_v54, %s6022_s0 }
 0xc12   :  { %v877_v55 = vpop.permute.xlu1 %876 }
 0xc13   :  { %4942 = vmatmul.mubr.msk.f32.vlgmr.msra.gmra.mxu0 %vm456_vm5, %v877_v55 }
 0xc14   :  { %4956 = vmatpush3.msra.mxu0 %v6234_v2  ;;  %4963 = vmatprep.mubr.msk.f32.mxu0 %vm6019_vm0, %v6018_v0 }
 0xc15   :  { %4957 = vmatprep.subr.mxu0 %v6018_v0 }
 0xc16   :  { %4958 = vmatpush3.msra.mxu0 %v6243_v5 }
 0xc17   :  { %4959 = vmatprep.subr.mxu0 %v6018_v0 }
 0xc18   :  { %4960 = vmatpush3.msra.mxu0 %v6248_v6 }
 0xc19   :  { %4961 = vmatprep.subr.mxu0 %v6018_v0 }
 0xc1a   :  { %4962 = vmatpush3.msra.mxu0 %v6253_v7 }
 0xc1b   :  { %4977 = vmatprep.subr.mxu0 %v6018_v0 }
 0xcd3   :  { %v946_v57 = vpop.f32.mrf.mxu0 }
 0xcd4   :  { %v950_v58 = vadd.f32 %v946_v57, %v425_v56 }
 0xcd5   :  { %v4943_v59 = vpop.f32.mrf.mxu0 }
 0xcd6   :  { %v951_v60 = vmul.f32 %v950_v58, %v6287_v16 }
 0xcd8   :  { %v4534_v61 = vmul.f32 -1.442695, %v951_v60  ;;  %v440_v60 = vadd.f32 %v6356_v9, %v6278_v11 }
 0xcda   :  { %5447 = vpow2.f32 %v4534_v61 }
 0xce7   :  { %v5448_v62 = vpop.eup %5447 }
 0xce8   :  { %v955_v63 = vadd.f32 1.0, %v5448_v62 }
 0xcea   :  { %5449 = vrcp.f32 %v955_v63 }
 0xcf7   :  { %v5450_v1 = vpop.eup %5449 }
 0xcf8   :  { %v958_v3 = vmul.f32 2.0, %v5450_v1 }
 0xcfa   :  { %v4535_v12 = vadd.f32 -1.0, %v958_v3 }
 0xcfc   :  { %v960_v13 = vsel %vm6281_vm4, %v4535_v12, %v5450_v1 }
 0xcfd   :  { %963 = vrot.lane.b32.xlu0 %v960_v13, %s6021_s27  ;;  %v961_v17 = vmul.f32 %v960_v13, %v866_v51 }
 0xd6f   :  { %v964_v15 = vpop.permute.xlu0 %963 }
 0xd70   :  { %v966_v8 = vmul.f32 %v964_v15, %v960_v13 }
 0xd72   :  { %968 = vrot.lane.b32.xlu1 %v966_v8, %s6022_s0 }
 0xde4   :  { %v969_v18 = vpop.permute.xlu1 %968 }
 0xde5   :  { %v971_v19 = vadd.f32 %v969_v18, %v961_v17 }
 0xde7   :  { %5451 = vtanh.f32 %v971_v19 }
 0xdf4   :  { %v5452_v20 = vpop.eup %5451 }
 0xdf5   :  { %974 = vrot.lane.b32.xlu0 %v5452_v20, %s6021_s27 }
 0xe67   :  { %v975_v21 = vpop.permute.xlu0 %974 }
 0xe68   :  { %v977_v22 = vmul.f32 %v975_v21, %v960_v13 }
 0xe6a   :  { %981 = vrot.lane.b32.xlu1 %v977_v22, %s6022_s0  ;;  %v1296_v22 = vld [vmem:[#allocation10 + $0x18] sm:$0xff] }
 0xedc   :  { %v982_v23 = vpop.permute.xlu1 %981 }
 0xedd   :  { %4953 = vmatmul.mubr.msk.f32.vlgmr.msra.gmra.mxu1 %vm456_vm5, %v982_v23  ;;  %v1295_v23 = vld [vmem:[#allocation10 + $0x10] sm:$0xff] }
 0xede   :  { %4967 = vmatpush3.msra.mxu1 %v6234_v2  ;;  %4974 = vmatprep.mubr.msk.f32.mxu1 %vm6019_vm0, %v6018_v0  ;;  %v430_v2 = vadd.f32 %v6352_v4, %v6278_v11 }
 0xedf   :  { %4968 = vmatprep.subr.mxu1 %v6018_v0 }
 0xee0   :  { %4969 = vmatpush3.msra.mxu1 %v6243_v5 }
 0xee1   :  { %4970 = vmatprep.subr.mxu1 %v6018_v0 }
 0xee2   :  { %4971 = vmatpush3.msra.mxu1 %v6248_v6 }
 0xee3   :  { %4972 = vmatprep.subr.mxu1 %v6018_v0 }
 0xee4   :  { %4973 = vmatpush3.msra.mxu1 %v6253_v7 }
 0xee5   :  { %5006 = vmatprep.subr.mxu1 %v6018_v0 }
 0xf9d   :  { %v1051_v24 = vpop.f32.mrf.mxu1 }
 0xf9e   :  { %v1055_v25 = vadd.f32 %v1051_v24, %v430_v2  ;;  %v1294_v2 = vld [vmem:[#allocation10 + $0x8] sm:$0xff]  ;;  %v1293_v24 = vld [vmem:[#allocation10] sm:$0xff] }
 0xf9f   :  { %v4954_v26 = vpop.f32.mrf.mxu1 }
 0xfa0   :  { %v1056_v27 = vmul.f32 %v1055_v25, %v6287_v16 }
 0xfa2   :  { %v4537_v28 = vmul.f32 -1.442695, %v1056_v27 }
 0xfa4   :  { %5453 = vpow2.f32 %v4537_v28  ;;  %v1381_v28 = vld [vmem:[#allocation13 + $0x8] sm:$0xff] }
 0xfb1   :  { %v5454_v5 = vpop.eup %5453 }
 0xfb2   :  { %v1060_v29 = vadd.f32 1.0, %v5454_v5 }
 0xfb4   :  { %5455 = vrcp.f32 %v1060_v29  ;;  %v1380_v29 = vld [vmem:[#allocation13] sm:$0xff] }
 0xfc1   :  { %v5456_v6 = vpop.eup %5455 }
 0xfc2   :  { %v1063_v30 = vmul.f32 2.0, %v5456_v6 }
 0xfc4   :  { %v4538_v31 = vadd.f32 -1.0, %v1063_v30 }
 0xfc6   :  { %v1065_v7 = vsel %vm6281_vm4, %v4538_v31, %v5456_v6  ;;  %v4545_v6 = vld [vmem:[#allocation12] ss:$0 sm:$0xff] }
 0xfc7   :  { %1068 = vrot.lane.b32.xlu0 %v1065_v7, %s6021_s27  ;;  %v1066_v33 = vmul.f32 %v1065_v7, %v971_v19 }
0x1039   :  { %v1069_v32 = vpop.permute.xlu0 %1068 }
0x103a   :  { %v1071_v4 = vmul.f32 %v1069_v32, %v1065_v7 }
0x103c   :  { %1073 = vrot.lane.b32.xlu1 %v1071_v4, %s6022_s0  ;;  %v1495_v4 = vld [vmem:[#allocation16 + $0x10] sm:$0xff] }
0x10ae   :  { %v1074_v34 = vpop.permute.xlu1 %1073 }
0x10af   :  { %v1076_v35 = vadd.f32 %v1074_v34, %v1066_v33  ;;  %v1494_v33 = vld [vmem:[#allocation16 + $0x8] sm:$0xff]  ;;  %v1493_v34 = vld [vmem:[#allocation16] sm:$0xff] }
0x10b1   :  { %5457 = vtanh.f32 %v1076_v35 }
0x10be   :  { %v5458_v36 = vpop.eup %5457 }
0x10bf   :  { %1079 = vrot.lane.b32.xlu0 %v5458_v36, %s6021_s27 }
0x1131   :  { %v1080_v37 = vpop.permute.xlu0 %1079 }
0x1132   :  { %v1082_v38 = vmul.f32 %v1080_v37, %v1065_v7  ;;  %v1496_v7 = vld [vmem:[#allocation16 + $0x18] sm:$0xff] }
0x1134   :  { %1086 = vrot.lane.b32.xlu1 %v1082_v38, %s6022_s0 }
0x11a6   :  { %v1087_v39 = vpop.permute.xlu1 %1086 }
0x11a7   :  { %4964 = vmatmul.mubr.msk.f32.vlgmr.msra.gmra.mxu0 %vm456_vm5, %v1087_v39  ;;  %v4551_v39 = vld [vmem:[#allocation18] ss:$0 sm:$0xff] }
0x11a8   :  { %4985 = vmatprep.mubr.msk.f32.mxu0 %vm6019_vm0, %v6018_v0  ;;  %4978 = vmatpush3.msra.mxu0 %v1296_v22  ;;  %v6561_v22 = vld [vmem:[%s7058_s10 + $0x10] sm:$0xff] }
0x11a9   :  { %4979 = vmatprep.subr.mxu0 %v6018_v0 }
0x11aa   :  { %4980 = vmatpush3.msra.mxu0 %v1295_v23  ;;  %v6568_v23 = vld [vmem:[%s7058_s10 + $0x8] sm:$0xff] }
0x11ab   :  { %4981 = vmatprep.subr.mxu0 %v6018_v0 }
0x11ac   :  { %4982 = vmatpush3.msra.mxu0 %v1294_v2  ;;  %v6575_v2 = vld [vmem:[%s7058_s10] sm:$0xff] }
0x11ad   :  { %4983 = vmatprep.subr.mxu0 %v6018_v0 }
0x11ae   :  { %4984 = vmatpush3.msra.mxu0 %v1293_v24  ;;  %v6579_v24 = vld [vmem:[#allocation27] ss:$0 sm:$0xff] }
0x11af   :  { %4988 = vmatprep.subr.mxu0 %v6018_v0 }
0x1267   :  { %v1156_v41 = vpop.f32.mrf.mxu0 }
0x1268   :  { %v1160_v42 = vadd.f32 %v1156_v41, %v435_v40 }
0x1269   :  { %v4965_v43 = vpop.f32.mrf.mxu0 }
0x126a   :  { %v1161_v44 = vmul.f32 %v1160_v42, %v6287_v16 }
0x126c   :  { %v4540_v45 = vmul.f32 -1.442695, %v1161_v44 }
0x126e   :  { %5459 = vpow2.f32 %v4540_v45 }
0x127b   :  { %v5460_v46 = vpop.eup %5459 }
0x127c   :  { %v1165_v47 = vadd.f32 1.0, %v5460_v46 }
0x127e   :  { %5461 = vrcp.f32 %v1165_v47 }
0x128b   :  { %v5462_v48 = vpop.eup %5461 }
0x128c   :  { %v1168_v49 = vmul.f32 2.0, %v5462_v48 }
0x128e   :  { %v4541_v50 = vadd.f32 -1.0, %v1168_v49 }
0x1290   :  { %v1170_v51 = vsel %vm6281_vm4, %v4541_v50, %v5462_v48 }
0x1291   :  { %1173 = vrot.lane.b32.xlu0 %v1170_v51, %s6021_s27  ;;  %v1171_v53 = vmul.f32 %v1170_v51, %v1076_v35  ;;  %v4547_v35 = vld [vmem:[#allocation15] ss:$0 sm:$0xff] }
0x1303   :  { %v1174_v52 = vpop.permute.xlu0 %1173 }
0x1304   :  { %v1176_v10 = vmul.f32 %v1174_v52, %v1170_v51 }
0x1306   :  { %1178 = vrot.lane.b32.xlu1 %v1176_v10, %s6022_s0 }
0x1378   :  { %v1179_v54 = vpop.permute.xlu1 %1178 }
0x1379   :  { %v1181_v55 = vadd.f32 %v1179_v54, %v1171_v53 }
0x137b   :  { %5463 = vtanh.f32 %v1181_v55 }
0x1388   :  { %v5464_v56 = vpop.eup %5463 }
0x1389   :  { %1184 = vrot.lane.b32.xlu0 %v5464_v56, %s6021_s27  ;;  %v6483_v56 = vld [vmem:[#allocation22 + $0x10] sm:$0xff] }
0x13fb   :  { %v1185_v57 = vpop.permute.xlu0 %1184 }
0x13fc   :  { %v1187_v58 = vmul.f32 %v1185_v57, %v1170_v51  ;;  %v6487_v57 = vld [vmem:[#allocation22 + $0x8] sm:$0xff] }
0x13fe   :  { %1191 = vrot.lane.b32.xlu1 %v1187_v58, %s6022_s0  ;;  %v6491_v58 = vld [vmem:[#allocation22] sm:$0xff] }
0x1470   :  { %v1192_v59 = vpop.permute.xlu1 %1191 }
0x1471   :  { %4975 = vmatmul.mubr.msk.f32.vlgmr.msra.gmra.mxu1 %vm456_vm5, %v1192_v59 }
0x1472   :  { %5014 = vmatprep.mubr.msk.f32.mxu1 %vm6019_vm0, %v6018_v0 }
0x1531   :  { %v1261_v61 = vpop.f32.mrf.mxu1 }
0x1532   :  { %v1265_v62 = vadd.f32 %v1261_v61, %v440_v60 }
0x1533   :  { %v4976_v63 = vpop.f32.mrf.mxu1 }
0x1534   :  { %v1266_v1 = vmul.f32 %v1265_v62, %v6287_v16  ;;  %v6502_v63 = vld [vmem:[#allocation25 + $0x18] sm:$0xff] }
0x1536   :  { %v4543_v3 = vmul.f32 -1.442695, %v1266_v1  ;;  %v6504_v1 = vld [vmem:[#allocation25 + $0x10] sm:$0xff] }
0x1538   :  { %5465 = vpow2.f32 %v4543_v3  ;;  %v6508_v3 = vld [vmem:[#allocation25 + $0x8] sm:$0xff] }
0x1545   :  { %v5466_v12 = vpop.eup %5465 }
0x1546   :  { %v1270_v13 = vadd.f32 1.0, %v5466_v12  ;;  %v6512_v12 = vld [vmem:[#allocation25] sm:$0xff] }
0x1548   :  { %5467 = vrcp.f32 %v1270_v13  ;;  %v6518_v13 = vld [vmem:[#allocation24] ss:$0 sm:$0xff] }
0x1555   :  { %v5468_v15 = vpop.eup %5467 }
0x1556   :  { %v1273_v8 = vmul.f32 2.0, %v5468_v15 }
0x1558   :  { %v4544_v17 = vadd.f32 -1.0, %v1273_v8 }
0x155a   :  { %v1275_v18 = vsel %vm6281_vm4, %v4544_v17, %v5468_v15 }
0x155b   :  { %1278 = vrot.lane.b32.xlu0 %v1275_v18, %s6021_s27  ;;  %v1276_v9 = vmul.f32 %v1275_v18, %v1181_v55  ;;  %v6481_v55 = vld [vmem:[#allocation22 + $0x18] sm:$0xff] }
0x155c   :  { %5007 = vmatpush3.msra.mxu1 %v6481_v55 }
0x155d   :  { %5008 = vmatprep.subr.mxu1 %v6018_v0 }
0x155e   :  { %5009 = vmatpush3.msra.mxu1 %v6483_v56 }
0x155f   :  { %5010 = vmatprep.subr.mxu1 %v6018_v0 }
0x1560   :  { %5011 = vmatpush3.msra.mxu1 %v6487_v57 }
0x1561   :  { %5012 = vmatprep.subr.mxu1 %v6018_v0 }
0x1562   :  { %5013 = vmatpush3.msra.mxu1 %v6491_v58 }
0x1563   :  { %5028 = vmatprep.subr.mxu1 %v6018_v0 }
0x15cd   :  { %v1279_v19 = vpop.permute.xlu0 %1278 }
0x15ce   :  { %v1281_v11 = vmul.f32 %v1279_v19, %v1275_v18 }
0x15d0   :  { %1283 = vrot.lane.b32.xlu1 %v1281_v11, %s6022_s0  ;;  %v6524_v11 = vld [vmem:[#allocation21 + $0x10] sm:$0xff] }
0x1642   :  { %v1284_v20 = vpop.permute.xlu1 %1283 }
0x1643   :  { %v1286_v21 = vadd.f32 %v1284_v20, %v1276_v9  ;;  %v6530_v9 = vld [vmem:[#allocation21 + $0x8] sm:$0xff]  ;;  %v6534_v20 = vld [vmem:[#allocation21] sm:$0xff] }
0x1645   :  { %5469 = vtanh.f32 %v1286_v21  ;;  %v6554_v21 = vld [vmem:[%s7058_s10 + $0x18] sm:$0xff] }
0x1652   :  { %v5470_v25 = vpop.eup %5469 }
0x1653   :  { %1289 = vrot.lane.b32.xlu0 %v5470_v25, %s6021_s27 }
0x16c5   :  { %v1290_v26 = vpop.permute.xlu0 %1289 }
0x16c6   :  { %v1292_v27 = vmul.f32 %v1290_v26, %v1275_v18  ;;  %v6521_v18 = vld [vmem:[#allocation21 + $0x18] sm:$0xff] }
0x16c8   :  { %1305 = vrot.lane.b32.xlu1 %v1292_v27, %s6022_s0 }
0x173a   :  { %v1306_v5 = vpop.permute.xlu1 %1305 }
0x173b   :  { %4986 = vmatmul.mubr.msk.f32.vlgmr.msra.gmra.mxu0 %vm456_vm5, %v1306_v5 }
0x173c   :  { %4989 = vmatpush3.msra.mxu0 %v1381_v28  ;;  %4992 = vmatprep.mubr.msk.f32.mxu0 %vm6019_vm0, %v6018_v0 }
0x173d   :  { %4990 = vmatprep.subr.mxu0 %v6018_v0 }
0x173e   :  { %4991 = vmatpush3.msra.mxu0 %v1380_v29 }
0x173f   :  { %4995 = vmatprep.subr.mxu0 %v6018_v0 }
0x17fb   :  { %v1375_v30 = vpop.f32.mrf.mxu0 }
0x17fc   :  { %v1376_v31 = vadd.f32 %v4545_v6, %v1375_v30  ;;  %v4553_v6 = vld [vmem:[#allocation19] ss:$0 sm:$0xff] }
0x17fd   :  { %v4987_v32 = vpop.f32.mrf.mxu0 }
0x17fe   :  { %1379 = vst.msk [vmem:[#allocation32] sm:$0xff] %vm456_vm5, %v1376_v31  ;;  %4993 = vmatmul.mubr.msk.f32.vlgmr.msra.gmra.mxu0 %vm1389_vm6, %v1376_v31 }
0x17ff   :  { %4996 = vmatpush3.msra.mxu0 %v1496_v7  ;;  %5003 = vmatprep.mubr.msk.f32.mxu0 %vm6019_vm0, %v6018_v0 }
0x1800   :  { %4997 = vmatprep.subr.mxu0 %v6018_v0 }
0x1801   :  { %4998 = vmatpush3.msra.mxu0 %v1495_v4 }
0x1802   :  { %4999 = vmatprep.subr.mxu0 %v6018_v0 }
0x1803   :  { %5000 = vmatpush3.msra.mxu0 %v1494_v33 }
0x1804   :  { %5001 = vmatprep.subr.mxu0 %v6018_v0 }
0x1805   :  { %5002 = vmatpush3.msra.mxu0 %v1493_v34 }
0x1806   :  { %5017 = vmatprep.subr.mxu0 %v6018_v0 }
0x18be   :  { %v1459_v36 = vpop.f32.mrf.mxu0 }
0x18bf   :  { %v1460_v37 = vadd.f32 %v4547_v35, %v1459_v36 }
0x18c0   :  { %v4994_v38 = vpop.f32.mrf.mxu0 }
0x18c1   :  { %5004 = vmatmul.mubr.msk.f32.vlgmr.msra.gmra.mxu0 %vm456_vm5, %v1460_v37 }
0x18c2   :  { %5025 = vmatprep.mubr.msk.f32.mxu0 %vm6019_vm0, %v6018_v0  ;;  %5018 = vmatpush3.msra.mxu0 %v6502_v63 }
0x18c3   :  { %5019 = vmatprep.subr.mxu0 %v6018_v0 }
0x18c4   :  { %5020 = vmatpush3.msra.mxu0 %v6504_v1 }
0x18c5   :  { %5021 = vmatprep.subr.mxu0 %v6018_v0 }
0x18c6   :  { %5022 = vmatpush3.msra.mxu0 %v6508_v3 }
0x18c7   :  { %5023 = vmatprep.subr.mxu0 %v6018_v0 }
0x18c8   :  { %5024 = vmatpush3.msra.mxu0 %v6512_v12 }
0x18c9   :  { %5039 = vmatprep.subr.mxu0 %v6018_v0 }
0x1981   :  { %v1573_v40 = vpop.f32.mrf.mxu0 }
0x1982   :  { %v6470_v41 = vadd.f32 %v4551_v39, %v1573_v40 }
0x1983   :  { %v5005_v42 = vpop.f32.mrf.mxu0 }
0x1984   :  { %v1585_v43 = vmul.f32 %v6470_v41, %v6287_v16  ;;  %v6595_v30 = vadd.f32 %v4553_v6, %v6470_v41 }
0x1986   :  { %v4554_v44 = vmul.f32 -1.442695, %v1585_v43 }
0x1988   :  { %5471 = vpow2.f32 %v4554_v44 }
0x1995   :  { %v5472_v45 = vpop.eup %5471 }
0x1996   :  { %v1589_v46 = vadd.f32 1.0, %v5472_v45 }
0x1998   :  { %5473 = vrcp.f32 %v1589_v46 }
0x19a5   :  { %v5474_v47 = vpop.eup %5473 }
0x19a6   :  { %v1592_v48 = vmul.f32 2.0, %v5474_v47 }
0x19a8   :  { %v4555_v49 = vadd.f32 -1.0, %v1592_v48 }
0x19aa   :  { %v1594_v50 = vsel %vm6281_vm4, %v4555_v49, %v5474_v47 }
0x19ab   :  { %1597 = vrot.lane.b32.xlu0 %v1594_v50, %s6021_s27  ;;  %v1595_v10 = vmul.f32 0.0, %v1594_v50 }
0x1a1d   :  { %v1598_v51 = vpop.permute.xlu0 %1597 }
0x1a1e   :  { %v1600_v52 = vmul.f32 %v1598_v51, %v1594_v50 }
0x1a20   :  { %1602 = vrot.lane.b32.xlu1 %v1600_v52, %s6022_s0 }
0x1a92   :  { %v1603_v53 = vpop.permute.xlu1 %1602 }
0x1a93   :  { %v6478_v54 = vadd.f32 %v1603_v53, %v1595_v10 }
0x1a95   :  { %5475 = vtanh.f32 %v6478_v54 }
0x1aa2   :  { %v5476_v59 = vpop.eup %5475 }
0x1aa3   :  { %1608 = vrot.lane.b32.xlu0 %v5476_v59, %s6021_s27 }
0x1b15   :  { %v1609_v60 = vpop.permute.xlu0 %1608 }
0x1b16   :  { %v1611_v61 = vmul.f32 %v1609_v60, %v1594_v50 }
0x1b18   :  { %1613 = vrot.lane.b32.xlu1 %v1611_v61, %s6022_s0 }
0x1b8a   :  { %v1614_v62 = vpop.permute.xlu1 %1613 }
0x1b8b   :  { %5015 = vmatmul.mubr.msk.f32.vlgmr.msra.gmra.mxu1 %vm456_vm5, %v1614_v62 }
0x1b8c   :  { %5036 = vmatprep.mubr.msk.f32.mxu1 %vm6019_vm0, %v6018_v0  ;;  %5029 = vmatpush3.msra.mxu1 %v6554_v21 }
0x1b8d   :  { %5030 = vmatprep.subr.mxu1 %v6018_v0 }
0x1b8e   :  { %5031 = vmatpush3.msra.mxu1 %v6561_v22 }
0x1b8f   :  { %5032 = vmatprep.subr.mxu1 %v6018_v0 }
0x1b90   :  { %5033 = vmatpush3.msra.mxu1 %v6568_v23 }
0x1b91   :  { %5034 = vmatprep.subr.mxu1 %v6018_v0 }
0x1b92   :  { %5035 = vmatpush3.msra.mxu1 %v6575_v2 }
0x1b93   :  { %5050 = vmatprep.subr.mxu1 %v6018_v0 }
0x1c4b   :  { %v1683_v15 = vpop.f32.mrf.mxu1 }
0x1c4c   :  { %v1684_v8 = vadd.f32 %v6518_v13, %v1683_v15 }
0x1c4d   :  { %v5016_v17 = vpop.f32.mrf.mxu1 }
0x1c4e   :  { %5477 = vtanh.f32 %v1684_v8 }
0x1c5b   :  { %v5478_v19 = vpop.eup %5477 }
0x1c5c   :  { %5026 = vmatmul.mubr.msk.f32.vlgmr.msra.gmra.mxu0 %vm456_vm5, %v5478_v19 }
0x1c5d   :  { %5040 = vmatpush3.msra.mxu0 %v6521_v18  ;;  %5047 = vmatprep.mubr.msk.f32.mxu0 %vm6019_vm0, %v6018_v0 }
0x1c5e   :  { %5041 = vmatprep.subr.mxu0 %v6018_v0 }
0x1c5f   :  { %5042 = vmatpush3.msra.mxu0 %v6524_v11 }
0x1c60   :  { %5043 = vmatprep.subr.mxu0 %v6018_v0 }
0x1c61   :  { %5044 = vmatpush3.msra.mxu0 %v6530_v9 }
0x1c62   :  { %5045 = vmatprep.subr.mxu0 %v6018_v0 }
0x1c63   :  { %5046 = vmatpush3.msra.mxu0 %v6534_v20 }
0x1c64   :  { %5048 = vmatmul.mubr.msk.f32.vlgmr.msra.gmra.mxu0 %vm456_vm5, %v1614_v62  ;;  %5061 = vmatprep.subr.mxu0 %v6018_v0 }
0x1c65   :  { %5062 = vmatpush3.msra.mxu0 %v6502_v63  ;;  %5069 = vmatprep.mubr.msk.f32.mxu0 %vm6019_vm0, %v6018_v0 }
0x1c66   :  { %5063 = vmatprep.subr.mxu0 %v6018_v0 }
0x1c67   :  { %5064 = vmatpush3.msra.mxu0 %v6504_v1 }
0x1c68   :  { %5065 = vmatprep.subr.mxu0 %v6018_v0 }
0x1c69   :  { %5066 = vmatpush3.msra.mxu0 %v6508_v3 }
0x1c6a   :  { %5067 = vmatprep.subr.mxu0 %v6018_v0 }
0x1c6b   :  { %5068 = vmatpush3.msra.mxu0 %v6512_v12 }
0x1c6c   :  { %5083 = vmatprep.subr.mxu0 %v6018_v0 }
0x1d1c   :  { %v1757_v25 = vpop.f32.mrf.mxu0 }
0x1d1d   :  { %v1758_v26 = vadd.f32 %v6579_v24, %v1757_v25 }
0x1d1e   :  { %v5027_v27 = vpop.f32.mrf.mxu0 }
0x1d1f   :  { %5479 = vtanh.f32 %v1758_v26 }
0x1d24   :  { %v1903_v28 = vpop.f32.mrf.mxu0 }
0x1d26   :  { %v5049_v5 = vpop.f32.mrf.mxu0 }
0x1d2c   :  { %v5480_v29 = vpop.eup %5479 }
0x1d2d   :  { %1762 = vst.msk [vmem:[#allocation3] sm:$0xff] %vm456_vm5, %v5480_v29  ;;  %5037 = vmatmul.mubr.msk.f32.vlgmr.msra.gmra.mxu1 %vm456_vm5, %v5480_v29 }
0x1d2e   :  { %5051 = vmatpush3.msra.mxu1 %v6481_v55  ;;  %5058 = vmatprep.mubr.msk.f32.mxu1 %vm6019_vm0, %v6018_v0 }
0x1d2f   :  { %5052 = vmatprep.subr.mxu1 %v6018_v0 }
0x1d30   :  { %5053 = vmatpush3.msra.mxu1 %v6483_v56 }
0x1d31   :  { %5054 = vmatprep.subr.mxu1 %v6018_v0 }
0x1d32   :  { %5055 = vmatpush3.msra.mxu1 %v6487_v57 }
0x1d33   :  { %5056 = vmatprep.subr.mxu1 %v6018_v0 }
0x1d34   :  { %5057 = vmatpush3.msra.mxu1 %v6491_v58 }
0x1d35   :  { %5072 = vmatprep.subr.mxu1 %v6018_v0 }
0x1ded   :  { %v1832_v31 = vpop.f32.mrf.mxu1 }
0x1dee   :  { %v1836_v7 = vadd.f32 %v1832_v31, %v6595_v30 }
0x1def   :  { %v5038_v32 = vpop.f32.mrf.mxu1 }
0x1df0   :  { %v1907_v4 = vadd.f32 %v1903_v28, %v1836_v7 }
0x1df2   :  { %v1908_v33 = vmul.f32 %v1907_v4, %v6287_v16 }
0x1df4   :  { %v4560_v34 = vmul.f32 -1.442695, %v1908_v33 }
0x1df6   :  { %5481 = vpow2.f32 %v4560_v34 }
0x1e03   :  { %v5482_v35 = vpop.eup %5481 }
0x1e04   :  { %v1912_v36 = vadd.f32 1.0, %v5482_v35 }
0x1e06   :  { %5483 = vrcp.f32 %v1912_v36 }
0x1e13   :  { %v5484_v37 = vpop.eup %5483 }
0x1e14   :  { %v1915_v38 = vmul.f32 2.0, %v5484_v37 }
0x1e16   :  { %v4561_v39 = vadd.f32 -1.0, %v1915_v38 }
0x1e18   :  { %v1917_v40 = vsel %vm6281_vm4, %v4561_v39, %v5484_v37 }
0x1e19   :  { %1920 = vrot.lane.b32.xlu0 %v1917_v40, %s6021_s27  ;;  %v1918_v43 = vmul.f32 %v1917_v40, %v6478_v54 }
0x1e8b   :  { %v1921_v41 = vpop.permute.xlu0 %1920 }
0x1e8c   :  { %v1923_v42 = vmul.f32 %v1921_v41, %v1917_v40 }
0x1e8e   :  { %1925 = vrot.lane.b32.xlu1 %v1923_v42, %s6022_s0 }
0x1f00   :  { %v1926_v44 = vpop.permute.xlu1 %1925 }
0x1f01   :  { %v6604_v45 = vadd.f32 %v1926_v44, %v1918_v43 }
0x1f03   :  { %5485 = vtanh.f32 %v6604_v45 }
0x1f10   :  { %v5486_v46 = vpop.eup %5485 }
0x1f11   :  { %1931 = vrot.lane.b32.xlu0 %v5486_v46, %s6021_s27 }
0x1f83   :  { %v1932_v47 = vpop.permute.xlu0 %1931 }
0x1f84   :  { %v1934_v48 = vmul.f32 %v1932_v47, %v1917_v40 }
0x1f86   :  { %1936 = vrot.lane.b32.xlu1 %v1934_v48, %s6022_s0 }
0x1ff8   :  { %v1937_v49 = vpop.permute.xlu1 %1936 }
0x1ff9   :  { %5059 = vmatmul.mubr.msk.f32.vlgmr.msra.gmra.mxu1 %vm456_vm5, %v1937_v49 }
0x1ffa   :  { %5073 = vmatpush3.msra.mxu1 %v6554_v21  ;;  %5080 = vmatprep.mubr.msk.f32.mxu1 %vm6019_vm0, %v6018_v0 }
0x1ffb   :  { %5074 = vmatprep.subr.mxu1 %v6018_v0 }
0x1ffc   :  { %5075 = vmatpush3.msra.mxu1 %v6561_v22 }
0x1ffd   :  { %5076 = vmatprep.subr.mxu1 %v6018_v0 }
0x1ffe   :  { %5077 = vmatpush3.msra.mxu1 %v6568_v23 }
0x1fff   :  { %5078 = vmatprep.subr.mxu1 %v6018_v0 }
0x2000   :  { %5079 = vmatpush3.msra.mxu1 %v6575_v2 }
0x2001   :  { %5094 = vmatprep.subr.mxu1 %v6018_v0 }
0x20b9   :  { %v2006_v50 = vpop.f32.mrf.mxu1 }
0x20ba   :  { %v2007_v51 = vadd.f32 %v6518_v13, %v2006_v50 }
0x20bb   :  { %v5060_v52 = vpop.f32.mrf.mxu1 }
0x20bc   :  { %5487 = vtanh.f32 %v2007_v51 }
0x20c9   :  { %v5488_v10 = vpop.eup %5487 }
0x20ca   :  { %5070 = vmatmul.mubr.msk.f32.vlgmr.msra.gmra.mxu0 %vm456_vm5, %v5488_v10 }
0x20cb   :  { %5084 = vmatpush3.msra.mxu0 %v6521_v18  ;;  %5091 = vmatprep.mubr.msk.f32.mxu0 %vm6019_vm0, %v6018_v0 }
0x20cc   :  { %5085 = vmatprep.subr.mxu0 %v6018_v0 }
0x20cd   :  { %5086 = vmatpush3.msra.mxu0 %v6524_v11 }
0x20ce   :  { %5087 = vmatprep.subr.mxu0 %v6018_v0 }
0x20cf   :  { %5088 = vmatpush3.msra.mxu0 %v6530_v9 }
0x20d0   :  { %5089 = vmatprep.subr.mxu0 %v6018_v0 }
0x20d1   :  { %5090 = vmatpush3.msra.mxu0 %v6534_v20 }
0x20d2   :  { %5092 = vmatmul.mubr.msk.f32.vlgmr.msra.gmra.mxu0 %vm456_vm5, %v1937_v49  ;;  %5105 = vmatprep.subr.mxu0 %v6018_v0 }
0x20d3   :  { %5106 = vmatpush3.msra.mxu0 %v6502_v63  ;;  %5113 = vmatprep.mubr.msk.f32.mxu0 %vm6019_vm0, %v6018_v0 }
0x20d4   :  { %5107 = vmatprep.subr.mxu0 %v6018_v0 }
0x20d5   :  { %5108 = vmatpush3.msra.mxu0 %v6504_v1 }
0x20d6   :  { %5109 = vmatprep.subr.mxu0 %v6018_v0 }
0x20d7   :  { %5110 = vmatpush3.msra.mxu0 %v6508_v3 }
0x20d8   :  { %5111 = vmatprep.subr.mxu0 %v6018_v0 }
0x20d9   :  { %5112 = vmatpush3.msra.mxu0 %v6512_v12 }
0x20da   :  { %5127 = vmatprep.subr.mxu0 %v6018_v0 }
0x218a   :  { %v2080_v53 = vpop.f32.mrf.mxu0 }
0x218b   :  { %v2081_v54 = vadd.f32 %v6579_v24, %v2080_v53 }
0x218c   :  { %v5071_v59 = vpop.f32.mrf.mxu0 }
0x218d   :  { %5489 = vtanh.f32 %v2081_v54 }
0x2192   :  { %v2227_v60 = vpop.f32.mrf.mxu0 }
0x2194   :  { %v5093_v61 = vpop.f32.mrf.mxu0 }
0x219a   :  { %v5490_v62 = vpop.eup %5489 }
0x219b   :  { %2086 = vst.msk [vmem:[#allocation3 + $0x8] sm:$0xff] %vm456_vm5, %v5490_v62  ;;  %5081 = vmatmul.mubr.msk.f32.vlgmr.msra.gmra.mxu1 %vm456_vm5, %v5490_v62 }
0x219c   :  { %5095 = vmatpush3.msra.mxu1 %v6481_v55  ;;  %5102 = vmatprep.mubr.msk.f32.mxu1 %vm6019_vm0, %v6018_v0 }
0x219d   :  { %5096 = vmatprep.subr.mxu1 %v6018_v0 }
0x219e   :  { %5097 = vmatpush3.msra.mxu1 %v6483_v56 }
0x219f   :  { %5098 = vmatprep.subr.mxu1 %v6018_v0 }
0x21a0   :  { %5099 = vmatpush3.msra.mxu1 %v6487_v57 }
0x21a1   :  { %5100 = vmatprep.subr.mxu1 %v6018_v0 }
0x21a2   :  { %5101 = vmatpush3.msra.mxu1 %v6491_v58 }
0x21a3   :  { %5116 = vmatprep.subr.mxu1 %v6018_v0 }
0x225b   :  { %v2156_v15 = vpop.f32.mrf.mxu1 }
0x225c   :  { %v2160_v8 = vadd.f32 %v2156_v15, %v6595_v30 }
0x225d   :  { %v5082_v17 = vpop.f32.mrf.mxu1 }
0x225e   :  { %v2231_v19 = vadd.f32 %v2227_v60, %v2160_v8 }
0x2260   :  { %v2232_v25 = vmul.f32 %v2231_v19, %v6287_v16 }
0x2262   :  { %v4566_v26 = vmul.f32 -1.442695, %v2232_v25 }
0x2264   :  { %5491 = vpow2.f32 %v4566_v26 }
0x2271   :  { %v5492_v27 = vpop.eup %5491 }
0x2272   :  { %v2236_v28 = vadd.f32 1.0, %v5492_v27 }
0x2274   :  { %5493 = vrcp.f32 %v2236_v28 }
0x2281   :  { %v5494_v5 = vpop.eup %5493 }
0x2282   :  { %v2239_v29 = vmul.f32 2.0, %v5494_v5 }
0x2284   :  { %v4567_v6 = vadd.f32 -1.0, %v2239_v29 }
0x2286   :  { %v2241_v31 = vsel %vm6281_vm4, %v4567_v6, %v5494_v5 }
0x2287   :  { %2244 = vrot.lane.b32.xlu0 %v2241_v31, %s6021_s27  ;;  %v2242_v4 = vmul.f32 %v2241_v31, %v6604_v45 }
0x22f9   :  { %v2245_v7 = vpop.permute.xlu0 %2244 }
0x22fa   :  { %v2247_v32 = vmul.f32 %v2245_v7, %v2241_v31 }
0x22fc   :  { %2249 = vrot.lane.b32.xlu1 %v2247_v32, %s6022_s0 }
0x236e   :  { %v2250_v33 = vpop.permute.xlu1 %2249 }
0x236f   :  { %v6663_v34 = vadd.f32 %v2250_v33, %v2242_v4 }
0x2371   :  { %5495 = vtanh.f32 %v6663_v34 }
0x237e   :  { %v5496_v35 = vpop.eup %5495 }
0x237f   :  { %2255 = vrot.lane.b32.xlu0 %v5496_v35, %s6021_s27 }
0x23f1   :  { %v2256_v36 = vpop.permute.xlu0 %2255 }
0x23f2   :  { %v2258_v37 = vmul.f32 %v2256_v36, %v2241_v31 }
0x23f4   :  { %2260 = vrot.lane.b32.xlu1 %v2258_v37, %s6022_s0 }
0x2466   :  { %v2261_v38 = vpop.permute.xlu1 %2260 }
0x2467   :  { %5103 = vmatmul.mubr.msk.f32.vlgmr.msra.gmra.mxu1 %vm456_vm5, %v2261_v38 }
0x2468   :  { %5117 = vmatpush3.msra.mxu1 %v6554_v21  ;;  %5124 = vmatprep.mubr.msk.f32.mxu1 %vm6019_vm0, %v6018_v0 }
0x2469   :  { %5118 = vmatprep.subr.mxu1 %v6018_v0 }
0x246a   :  { %5119 = vmatpush3.msra.mxu1 %v6561_v22 }
0x246b   :  { %5120 = vmatprep.subr.mxu1 %v6018_v0 }
0x246c   :  { %5121 = vmatpush3.msra.mxu1 %v6568_v23 }
0x246d   :  { %5122 = vmatprep.subr.mxu1 %v6018_v0 }
0x246e   :  { %5123 = vmatpush3.msra.mxu1 %v6575_v2 }
0x246f   :  { %5138 = vmatprep.subr.mxu1 %v6018_v0 }
0x2527   :  { %v2330_v39 = vpop.f32.mrf.mxu1 }
0x2528   :  { %v2331_v40 = vadd.f32 %v6518_v13, %v2330_v39 }
0x2529   :  { %v5104_v41 = vpop.f32.mrf.mxu1 }
0x252a   :  { %5497 = vtanh.f32 %v2331_v40 }
0x2537   :  { %v5498_v42 = vpop.eup %5497 }
0x2538   :  { %5114 = vmatmul.mubr.msk.f32.vlgmr.msra.gmra.mxu0 %vm456_vm5, %v5498_v42 }
0x2539   :  { %5128 = vmatpush3.msra.mxu0 %v6521_v18  ;;  %5135 = vmatprep.mubr.msk.f32.mxu0 %vm6019_vm0, %v6018_v0 }
0x253a   :  { %5129 = vmatprep.subr.mxu0 %v6018_v0 }
0x253b   :  { %5130 = vmatpush3.msra.mxu0 %v6524_v11 }
0x253c   :  { %5131 = vmatprep.subr.mxu0 %v6018_v0 }
0x253d   :  { %5132 = vmatpush3.msra.mxu0 %v6530_v9 }
0x253e   :  { %5133 = vmatprep.subr.mxu0 %v6018_v0 }
0x253f   :  { %5134 = vmatpush3.msra.mxu0 %v6534_v20 }
0x2540   :  { %5136 = vmatmul.mubr.msk.f32.vlgmr.msra.gmra.mxu0 %vm456_vm5, %v2261_v38  ;;  %5149 = vmatprep.subr.mxu0 %v6018_v0 }
0x2541   :  { %5150 = vmatpush3.msra.mxu0 %v6502_v63  ;;  %5157 = vmatprep.mubr.msk.f32.mxu0 %vm6019_vm0, %v6018_v0 }
0x2542   :  { %5151 = vmatprep.subr.mxu0 %v6018_v0 }
0x2543   :  { %5152 = vmatpush3.msra.mxu0 %v6504_v1 }
0x2544   :  { %5153 = vmatprep.subr.mxu0 %v6018_v0 }
0x2545   :  { %5154 = vmatpush3.msra.mxu0 %v6508_v3 }
0x2546   :  { %5155 = vmatprep.subr.mxu0 %v6018_v0 }
0x2547   :  { %5156 = vmatpush3.msra.mxu0 %v6512_v12 }
0x2548   :  { %5171 = vmatprep.subr.mxu0 %v6018_v0 }
0x25f8   :  { %v2404_v43 = vpop.f32.mrf.mxu0 }
0x25f9   :  { %v2405_v44 = vadd.f32 %v6579_v24, %v2404_v43 }
0x25fa   :  { %v5115_v45 = vpop.f32.mrf.mxu0 }
0x25fb   :  { %5499 = vtanh.f32 %v2405_v44 }
0x2600   :  { %v2551_v46 = vpop.f32.mrf.mxu0 }
0x2602   :  { %v5137_v47 = vpop.f32.mrf.mxu0 }
0x2608   :  { %v5500_v48 = vpop.eup %5499 }
0x2609   :  { %2410 = vst.msk [vmem:[#allocation3 + $0x10] sm:$0xff] %vm456_vm5, %v5500_v48  ;;  %5125 = vmatmul.mubr.msk.f32.vlgmr.msra.gmra.mxu1 %vm456_vm5, %v5500_v48 }
0x260a   :  { %5139 = vmatpush3.msra.mxu1 %v6481_v55  ;;  %5146 = vmatprep.mubr.msk.f32.mxu1 %vm6019_vm0, %v6018_v0 }
0x260b   :  { %5140 = vmatprep.subr.mxu1 %v6018_v0 }
0x260c   :  { %5141 = vmatpush3.msra.mxu1 %v6483_v56 }
0x260d   :  { %5142 = vmatprep.subr.mxu1 %v6018_v0 }
0x260e   :  { %5143 = vmatpush3.msra.mxu1 %v6487_v57 }
0x260f   :  { %5144 = vmatprep.subr.mxu1 %v6018_v0 }
0x2610   :  { %5145 = vmatpush3.msra.mxu1 %v6491_v58 }
0x2611   :  { %5160 = vmatprep.subr.mxu1 %v6018_v0 }
0x26c9   :  { %v2480_v49 = vpop.f32.mrf.mxu1 }
0x26ca   :  { %v2484_v50 = vadd.f32 %v2480_v49, %v6595_v30 }
0x26cb   :  { %v5126_v51 = vpop.f32.mrf.mxu1 }
0x26cc   :  { %v2555_v52 = vadd.f32 %v2551_v46, %v2484_v50 }
0x26ce   :  { %v2556_v10 = vmul.f32 %v2555_v52, %v6287_v16 }
0x26d0   :  { %v4572_v53 = vmul.f32 -1.442695, %v2556_v10 }
0x26d2   :  { %5501 = vpow2.f32 %v4572_v53 }
0x26df   :  { %v5502_v54 = vpop.eup %5501 }
0x26e0   :  { %v2560_v59 = vadd.f32 1.0, %v5502_v54 }
0x26e2   :  { %5503 = vrcp.f32 %v2560_v59 }
0x26ef   :  { %v5504_v60 = vpop.eup %5503 }
0x26f0   :  { %v2563_v61 = vmul.f32 2.0, %v5504_v60 }
0x26f2   :  { %v4573_v62 = vadd.f32 -1.0, %v2563_v61 }
0x26f4   :  { %v2565_v15 = vsel %vm6281_vm4, %v4573_v62, %v5504_v60 }
0x26f5   :  { %2568 = vrot.lane.b32.xlu0 %v2565_v15, %s6021_s27  ;;  %v2566_v19 = vmul.f32 %v2565_v15, %v6663_v34 }
0x2767   :  { %v2569_v8 = vpop.permute.xlu0 %2568 }
0x2768   :  { %v2571_v17 = vmul.f32 %v2569_v8, %v2565_v15 }
0x276a   :  { %2573 = vrot.lane.b32.xlu1 %v2571_v17, %s6022_s0 }
0x27dc   :  { %v2574_v25 = vpop.permute.xlu1 %2573 }
0x27dd   :  { %v6722_v26 = vadd.f32 %v2574_v25, %v2566_v19 }
0x27df   :  { %5505 = vtanh.f32 %v6722_v26 }
0x27ec   :  { %v5506_v27 = vpop.eup %5505 }
0x27ed   :  { %2579 = vrot.lane.b32.xlu0 %v5506_v27, %s6021_s27 }
0x285f   :  { %v2580_v28 = vpop.permute.xlu0 %2579 }
0x2860   :  { %v2582_v5 = vmul.f32 %v2580_v28, %v2565_v15 }
0x2862   :  { %2584 = vrot.lane.b32.xlu1 %v2582_v5, %s6022_s0 }
0x28d4   :  { %v2585_v29 = vpop.permute.xlu1 %2584 }
0x28d5   :  { %5147 = vmatmul.mubr.msk.f32.vlgmr.msra.gmra.mxu1 %vm456_vm5, %v2585_v29 }
0x28d6   :  { %5161 = vmatpush3.msra.mxu1 %v6554_v21  ;;  %5168 = vmatprep.mubr.msk.f32.mxu1 %vm6019_vm0, %v6018_v0 }
0x28d7   :  { %5162 = vmatprep.subr.mxu1 %v6018_v0 }
0x28d8   :  { %5163 = vmatpush3.msra.mxu1 %v6561_v22 }
0x28d9   :  { %5164 = vmatprep.subr.mxu1 %v6018_v0 }
0x28da   :  { %5165 = vmatpush3.msra.mxu1 %v6568_v23 }
0x28db   :  { %5166 = vmatprep.subr.mxu1 %v6018_v0 }
0x28dc   :  { %5167 = vmatpush3.msra.mxu1 %v6575_v2 }
0x28dd   :  { %5182 = vmatprep.subr.mxu1 %v6018_v0 }
0x2995   :  { %v2654_v6 = vpop.f32.mrf.mxu1 }
0x2996   :  { %v2655_v31 = vadd.f32 %v6518_v13, %v2654_v6 }
0x2997   :  { %v5148_v7 = vpop.f32.mrf.mxu1 }
0x2998   :  { %5507 = vtanh.f32 %v2655_v31 }
0x29a5   :  { %v5508_v32 = vpop.eup %5507 }
0x29a6   :  { %5158 = vmatmul.mubr.msk.f32.vlgmr.msra.gmra.mxu0 %vm456_vm5, %v5508_v32 }
0x29a7   :  { %5172 = vmatpush3.msra.mxu0 %v6521_v18  ;;  %5179 = vmatprep.mubr.msk.f32.mxu0 %vm6019_vm0, %v6018_v0 }
0x29a8   :  { %5173 = vmatprep.subr.mxu0 %v6018_v0 }
0x29a9   :  { %5174 = vmatpush3.msra.mxu0 %v6524_v11 }
0x29aa   :  { %5175 = vmatprep.subr.mxu0 %v6018_v0 }
0x29ab   :  { %5176 = vmatpush3.msra.mxu0 %v6530_v9 }
0x29ac   :  { %5177 = vmatprep.subr.mxu0 %v6018_v0 }
0x29ad   :  { %5178 = vmatpush3.msra.mxu0 %v6534_v20 }
0x29ae   :  { %5180 = vmatmul.mubr.msk.f32.vlgmr.msra.gmra.mxu0 %vm456_vm5, %v2585_v29  ;;  %5193 = vmatprep.subr.mxu0 %v6018_v0 }
0x29af   :  { %5194 = vmatpush3.msra.mxu0 %v6502_v63  ;;  %5201 = vmatprep.mubr.msk.f32.mxu0 %vm6019_vm0, %v6018_v0 }
0x29b0   :  { %5195 = vmatprep.subr.mxu0 %v6018_v0 }
0x29b1   :  { %5196 = vmatpush3.msra.mxu0 %v6504_v1 }
0x29b2   :  { %5197 = vmatprep.subr.mxu0 %v6018_v0 }
0x29b3   :  { %5198 = vmatpush3.msra.mxu0 %v6508_v3 }
0x29b4   :  { %5199 = vmatprep.subr.mxu0 %v6018_v0 }
0x29b5   :  { %5200 = vmatpush3.msra.mxu0 %v6512_v12 }
0x29b6   :  { %5215 = vmatprep.subr.mxu0 %v6018_v0 }
0x2a66   :  { %v2728_v4 = vpop.f32.mrf.mxu0 }
0x2a67   :  { %v2729_v33 = vadd.f32 %v6579_v24, %v2728_v4 }
0x2a68   :  { %v5159_v34 = vpop.f32.mrf.mxu0 }
0x2a69   :  { %5509 = vtanh.f32 %v2729_v33 }
0x2a6e   :  { %v2875_v35 = vpop.f32.mrf.mxu0 }
0x2a70   :  { %v5181_v36 = vpop.f32.mrf.mxu0 }
0x2a76   :  { %v5510_v37 = vpop.eup %5509 }
0x2a77   :  { %2734 = vst.msk [vmem:[#allocation3 + $0x18] sm:$0xff] %vm456_vm5, %v5510_v37  ;;  %5169 = vmatmul.mubr.msk.f32.vlgmr.msra.gmra.mxu1 %vm456_vm5, %v5510_v37 }
0x2a78   :  { %5183 = vmatpush3.msra.mxu1 %v6481_v55  ;;  %5190 = vmatprep.mubr.msk.f32.mxu1 %vm6019_vm0, %v6018_v0 }
0x2a79   :  { %5184 = vmatprep.subr.mxu1 %v6018_v0 }
0x2a7a   :  { %5185 = vmatpush3.msra.mxu1 %v6483_v56 }
0x2a7b   :  { %5186 = vmatprep.subr.mxu1 %v6018_v0 }
0x2a7c   :  { %5187 = vmatpush3.msra.mxu1 %v6487_v57 }
0x2a7d   :  { %5188 = vmatprep.subr.mxu1 %v6018_v0 }
0x2a7e   :  { %5189 = vmatpush3.msra.mxu1 %v6491_v58 }
0x2a7f   :  { %5204 = vmatprep.subr.mxu1 %v6018_v0 }
0x2b37   :  { %v2804_v38 = vpop.f32.mrf.mxu1 }
0x2b38   :  { %v2808_v39 = vadd.f32 %v2804_v38, %v6595_v30 }
0x2b39   :  { %v5170_v40 = vpop.f32.mrf.mxu1 }
0x2b3a   :  { %v2879_v41 = vadd.f32 %v2875_v35, %v2808_v39 }
0x2b3c   :  { %v2880_v42 = vmul.f32 %v2879_v41, %v6287_v16 }
0x2b3e   :  { %v4578_v43 = vmul.f32 -1.442695, %v2880_v42 }
0x2b40   :  { %5511 = vpow2.f32 %v4578_v43 }
0x2b4d   :  { %v5512_v44 = vpop.eup %5511 }
0x2b4e   :  { %v2884_v45 = vadd.f32 1.0, %v5512_v44 }
0x2b50   :  { %5513 = vrcp.f32 %v2884_v45 }
0x2b5d   :  { %v5514_v46 = vpop.eup %5513 }
0x2b5e   :  { %v2887_v47 = vmul.f32 2.0, %v5514_v46 }
0x2b60   :  { %v4579_v48 = vadd.f32 -1.0, %v2887_v47 }
0x2b62   :  { %v2889_v49 = vsel %vm6281_vm4, %v4579_v48, %v5514_v46 }
0x2b63   :  { %2892 = vrot.lane.b32.xlu0 %v2889_v49, %s6021_s27  ;;  %v2890_v52 = vmul.f32 %v2889_v49, %v6722_v26 }
0x2bd5   :  { %v2893_v50 = vpop.permute.xlu0 %2892 }
0x2bd6   :  { %v2895_v51 = vmul.f32 %v2893_v50, %v2889_v49 }
0x2bd8   :  { %2897 = vrot.lane.b32.xlu1 %v2895_v51, %s6022_s0 }
0x2c4a   :  { %v2898_v10 = vpop.permute.xlu1 %2897 }
0x2c4b   :  { %v6781_v53 = vadd.f32 %v2898_v10, %v2890_v52 }
0x2c4d   :  { %5515 = vtanh.f32 %v6781_v53 }
0x2c5a   :  { %v5516_v54 = vpop.eup %5515 }
0x2c5b   :  { %2903 = vrot.lane.b32.xlu0 %v5516_v54, %s6021_s27 }
0x2ccd   :  { %v2904_v59 = vpop.permute.xlu0 %2903 }
0x2cce   :  { %v2906_v60 = vmul.f32 %v2904_v59, %v2889_v49 }
0x2cd0   :  { %2908 = vrot.lane.b32.xlu1 %v2906_v60, %s6022_s0 }
0x2d42   :  { %v2909_v61 = vpop.permute.xlu1 %2908 }
0x2d43   :  { %5191 = vmatmul.mubr.msk.f32.vlgmr.msra.gmra.mxu1 %vm456_vm5, %v2909_v61 }
0x2d44   :  { %5205 = vmatpush3.msra.mxu1 %v6554_v21  ;;  %5212 = vmatprep.mubr.msk.f32.mxu1 %vm6019_vm0, %v6018_v0 }
0x2d45   :  { %5206 = vmatprep.subr.mxu1 %v6018_v0 }
0x2d46   :  { %5207 = vmatpush3.msra.mxu1 %v6561_v22 }
0x2d47   :  { %5208 = vmatprep.subr.mxu1 %v6018_v0 }
0x2d48   :  { %5209 = vmatpush3.msra.mxu1 %v6568_v23 }
0x2d49   :  { %5210 = vmatprep.subr.mxu1 %v6018_v0 }
0x2d4a   :  { %5211 = vmatpush3.msra.mxu1 %v6575_v2 }
0x2d4b   :  { %5226 = vmatprep.subr.mxu1 %v6018_v0 }
0x2e03   :  { %v2978_v62 = vpop.f32.mrf.mxu1 }
0x2e04   :  { %v2979_v15 = vadd.f32 %v6518_v13, %v2978_v62 }
0x2e05   :  { %v5192_v8 = vpop.f32.mrf.mxu1 }
0x2e06   :  { %5517 = vtanh.f32 %v2979_v15 }
0x2e13   :  { %v5518_v17 = vpop.eup %5517 }
0x2e14   :  { %5202 = vmatmul.mubr.msk.f32.vlgmr.msra.gmra.mxu0 %vm456_vm5, %v5518_v17 }
0x2e15   :  { %5216 = vmatpush3.msra.mxu0 %v6521_v18  ;;  %5223 = vmatprep.mubr.msk.f32.mxu0 %vm6019_vm0, %v6018_v0 }
0x2e16   :  { %5217 = vmatprep.subr.mxu0 %v6018_v0 }
0x2e17   :  { %5218 = vmatpush3.msra.mxu0 %v6524_v11 }
0x2e18   :  { %5219 = vmatprep.subr.mxu0 %v6018_v0 }
0x2e19   :  { %5220 = vmatpush3.msra.mxu0 %v6530_v9 }
0x2e1a   :  { %5221 = vmatprep.subr.mxu0 %v6018_v0 }
0x2e1b   :  { %5222 = vmatpush3.msra.mxu0 %v6534_v20 }
0x2e1c   :  { %5224 = vmatmul.mubr.msk.f32.vlgmr.msra.gmra.mxu0 %vm456_vm5, %v2909_v61  ;;  %5237 = vmatprep.subr.mxu0 %v6018_v0 }
0x2e1d   :  { %5238 = vmatpush3.msra.mxu0 %v6502_v63  ;;  %5245 = vmatprep.mubr.msk.f32.mxu0 %vm6019_vm0, %v6018_v0 }
0x2e1e   :  { %5239 = vmatprep.subr.mxu0 %v6018_v0 }
0x2e1f   :  { %5240 = vmatpush3.msra.mxu0 %v6504_v1 }
0x2e20   :  { %5241 = vmatprep.subr.mxu0 %v6018_v0 }
0x2e21   :  { %5242 = vmatpush3.msra.mxu0 %v6508_v3 }
0x2e22   :  { %5243 = vmatprep.subr.mxu0 %v6018_v0 }
0x2e23   :  { %5244 = vmatpush3.msra.mxu0 %v6512_v12 }
0x2e24   :  { %5259 = vmatprep.subr.mxu0 %v6018_v0 }
0x2ed4   :  { %v3052_v19 = vpop.f32.mrf.mxu0 }
0x2ed5   :  { %v3053_v25 = vadd.f32 %v6579_v24, %v3052_v19 }
0x2ed6   :  { %v5203_v26 = vpop.f32.mrf.mxu0 }
0x2ed7   :  { %5519 = vtanh.f32 %v3053_v25 }
0x2edc   :  { %v3199_v27 = vpop.f32.mrf.mxu0 }
0x2ede   :  { %v5225_v28 = vpop.f32.mrf.mxu0 }
0x2ee4   :  { %v5520_v5 = vpop.eup %5519 }
0x2ee5   :  { %3058 = vst.msk [vmem:[#allocation3 + $0x20] sm:$0xff] %vm456_vm5, %v5520_v5  ;;  %5213 = vmatmul.mubr.msk.f32.vlgmr.msra.gmra.mxu1 %vm456_vm5, %v5520_v5 }
0x2ee6   :  { %5227 = vmatpush3.msra.mxu1 %v6481_v55  ;;  %5234 = vmatprep.mubr.msk.f32.mxu1 %vm6019_vm0, %v6018_v0 }
0x2ee7   :  { %5228 = vmatprep.subr.mxu1 %v6018_v0 }
0x2ee8   :  { %5229 = vmatpush3.msra.mxu1 %v6483_v56 }
0x2ee9   :  { %5230 = vmatprep.subr.mxu1 %v6018_v0 }
0x2eea   :  { %5231 = vmatpush3.msra.mxu1 %v6487_v57 }
0x2eeb   :  { %5232 = vmatprep.subr.mxu1 %v6018_v0 }
0x2eec   :  { %5233 = vmatpush3.msra.mxu1 %v6491_v58 }
0x2eed   :  { %5248 = vmatprep.subr.mxu1 %v6018_v0 }
0x2fa5   :  { %v3128_v29 = vpop.f32.mrf.mxu1 }
0x2fa6   :  { %v3132_v6 = vadd.f32 %v3128_v29, %v6595_v30 }
0x2fa7   :  { %v5214_v31 = vpop.f32.mrf.mxu1 }
0x2fa8   :  { %v3203_v7 = vadd.f32 %v3199_v27, %v3132_v6 }
0x2faa   :  { %v3204_v32 = vmul.f32 %v3203_v7, %v6287_v16 }
0x2fac   :  { %v4584_v4 = vmul.f32 -1.442695, %v3204_v32 }
0x2fae   :  { %5521 = vpow2.f32 %v4584_v4 }
0x2fbb   :  { %v5522_v33 = vpop.eup %5521 }
0x2fbc   :  { %v3208_v34 = vadd.f32 1.0, %v5522_v33 }
0x2fbe   :  { %5523 = vrcp.f32 %v3208_v34  ;;  %v5571_v34 = vld [vmem:[#allocation22 + $0x18] sm:$0xff] }
0x2fcb   :  { %v5524_v35 = vpop.eup %5523 }
0x2fcc   :  { %v3211_v36 = vmul.f32 2.0, %v5524_v35 }
0x2fce   :  { %v4585_v37 = vadd.f32 -1.0, %v3211_v36  ;;  %v5574_v36 = vld [vmem:[#allocation22] sm:$0xff] }
0x2fd0   :  { %v3213_v38 = vsel %vm6281_vm4, %v4585_v37, %v5524_v35  ;;  %v5572_v35 = vld [vmem:[#allocation22 + $0x10] sm:$0xff] }
0x2fd1   :  { %3216 = vrot.lane.b32.xlu0 %v3213_v38, %s6021_s27  ;;  %v3214_v41 = vmul.f32 %v3213_v38, %v6781_v53 }
0x3043   :  { %v3217_v39 = vpop.permute.xlu0 %3216 }
0x3044   :  { %v3219_v40 = vmul.f32 %v3217_v39, %v3213_v38 }
0x3046   :  { %3221 = vrot.lane.b32.xlu1 %v3219_v40, %s6022_s0 }
0x30b8   :  { %v3222_v42 = vpop.permute.xlu1 %3221 }
0x30b9   :  { %v6840_v43 = vadd.f32 %v3222_v42, %v3214_v41 }
0x30bb   :  { %5525 = vtanh.f32 %v6840_v43 }
0x30c8   :  { %v5526_v44 = vpop.eup %5525 }
0x30c9   :  { %3227 = vrot.lane.b32.xlu0 %v5526_v44, %s6021_s27 }
0x313b   :  { %v3228_v45 = vpop.permute.xlu0 %3227 }
0x313c   :  { %v3230_v46 = vmul.f32 %v3228_v45, %v3213_v38 }
0x313e   :  { %3232 = vrot.lane.b32.xlu1 %v3230_v46, %s6022_s0 }
0x31b0   :  { %v3233_v47 = vpop.permute.xlu1 %3232 }
0x31b1   :  { %5235 = vmatmul.mubr.msk.f32.vlgmr.msra.gmra.mxu1 %vm456_vm5, %v3233_v47 }
0x31b2   :  { %5249 = vmatpush3.msra.mxu1 %v6554_v21  ;;  %5256 = vmatprep.mubr.msk.f32.mxu1 %vm6019_vm0, %v6018_v0 }
0x31b3   :  { %5250 = vmatprep.subr.mxu1 %v6018_v0 }
0x31b4   :  { %5251 = vmatpush3.msra.mxu1 %v6561_v22 }
0x31b5   :  { %5252 = vmatprep.subr.mxu1 %v6018_v0 }
0x31b6   :  { %5253 = vmatpush3.msra.mxu1 %v6568_v23 }
0x31b7   :  { %5254 = vmatprep.subr.mxu1 %v6018_v0 }
0x31b8   :  { %5255 = vmatpush3.msra.mxu1 %v6575_v2 }
0x31b9   :  { %5270 = vmatprep.subr.mxu1 %v6018_v0 }
0x3271   :  { %v3302_v48 = vpop.f32.mrf.mxu1 }
0x3272   :  { %v3303_v49 = vadd.f32 %v6518_v13, %v3302_v48 }
0x3273   :  { %v5236_v50 = vpop.f32.mrf.mxu1 }
0x3274   :  { %5527 = vtanh.f32 %v3303_v49 }
0x3281   :  { %v5528_v51 = vpop.eup %5527 }
0x3282   :  { %5246 = vmatmul.mubr.msk.f32.vlgmr.msra.gmra.mxu0 %vm456_vm5, %v5528_v51  ;;  %v4042_v51 = vld [vmem:[%s7065_s17 + $0x18] sm:$0xff] }
0x3283   :  { %5260 = vmatpush3.msra.mxu0 %v6521_v18  ;;  %5267 = vmatprep.mubr.msk.f32.mxu0 %vm6019_vm0, %v6018_v0 }
0x3284   :  { %5261 = vmatprep.subr.mxu0 %v6018_v0 }
0x3285   :  { %5262 = vmatpush3.msra.mxu0 %v6524_v11 }
0x3286   :  { %5263 = vmatprep.subr.mxu0 %v6018_v0 }
0x3287   :  { %5264 = vmatpush3.msra.mxu0 %v6530_v9 }
0x3288   :  { %5265 = vmatprep.subr.mxu0 %v6018_v0 }
0x3289   :  { %5266 = vmatpush3.msra.mxu0 %v6534_v20 }
0x328a   :  { %5268 = vmatmul.mubr.msk.f32.vlgmr.msra.gmra.mxu0 %vm456_vm5, %v3233_v47  ;;  %5281 = vmatprep.subr.mxu0 %v6018_v0 }
0x328b   :  { %5282 = vmatpush3.msra.mxu0 %v6502_v63  ;;  %5289 = vmatprep.mubr.msk.f32.mxu0 %vm6019_vm0, %v6018_v0 }
0x328c   :  { %5283 = vmatprep.subr.mxu0 %v6018_v0 }
0x328d   :  { %5284 = vmatpush3.msra.mxu0 %v6504_v1 }
0x328e   :  { %5285 = vmatprep.subr.mxu0 %v6018_v0 }
0x328f   :  { %5286 = vmatpush3.msra.mxu0 %v6508_v3 }
0x3290   :  { %5287 = vmatprep.subr.mxu0 %v6018_v0 }
0x3291   :  { %5288 = vmatpush3.msra.mxu0 %v6512_v12 }
0x3292   :  { %5303 = vmatprep.subr.mxu0 %v6018_v0 }
0x3342   :  { %v3376_v52 = vpop.f32.mrf.mxu0 }
0x3343   :  { %v3377_v63 = vadd.f32 %v6579_v24, %v3376_v52 }
0x3344   :  { %v5247_v10 = vpop.f32.mrf.mxu0 }
0x3345   :  { %5529 = vtanh.f32 %v3377_v63 }
0x334a   :  { %v3523_v53 = vpop.f32.mrf.mxu0 }
0x334c   :  { %v5269_v54 = vpop.f32.mrf.mxu0 }
0x334d   :  { %v4031_v54 = vld [vmem:[#allocation3] sm:$0xff] }
0x3352   :  { %v5530_v59 = vpop.eup %5529 }
0x3353   :  { %3382 = vst.msk [vmem:[#allocation3 + $0x28] sm:$0xff] %vm456_vm5, %v5530_v59  ;;  %5257 = vmatmul.mubr.msk.f32.vlgmr.msra.gmra.mxu1 %vm456_vm5, %v5530_v59  ;;  %v4040_v59 = vld [vmem:[%s7065_s17 + $0x8] sm:$0xff] }
0x3354   :  { %5271 = vmatpush3.msra.mxu1 %v6481_v55  ;;  %5278 = vmatprep.mubr.msk.f32.mxu1 %vm6019_vm0, %v6018_v0 }
0x3355   :  { %5272 = vmatprep.subr.mxu1 %v6018_v0 }
0x3356   :  { %5273 = vmatpush3.msra.mxu1 %v6483_v56 }
0x3357   :  { %5274 = vmatprep.subr.mxu1 %v6018_v0 }
0x3358   :  { %5275 = vmatpush3.msra.mxu1 %v6487_v57 }
0x3359   :  { %5276 = vmatprep.subr.mxu1 %v6018_v0 }
0x335a   :  { %5277 = vmatpush3.msra.mxu1 %v6491_v58 }
0x335b   :  { %5292 = vmatprep.subr.mxu1 %v6018_v0 }
0x3413   :  { %v3452_v1 = vpop.f32.mrf.mxu1 }
0x3414   :  { %v3456_v55 = vadd.f32 %v3452_v1, %v6595_v30  ;;  %v4039_v1 = vld [vmem:[%s7065_s17] sm:$0xff] }
0x3415   :  { %v5258_v3 = vpop.f32.mrf.mxu1 }
0x3416   :  { %v3527_v12 = vadd.f32 %v3523_v53, %v3456_v55  ;;  %v4041_v53 = vld [vmem:[%s7065_s17 + $0x10] sm:$0xff]  ;;  %v4032_v55 = vld [vmem:[#allocation3 + $0x8] sm:$0xff] }
0x3417   :  { %v4033_v3 = vld [vmem:[#allocation3 + $0x10] sm:$0xff] }
0x3418   :  { %v3528_v60 = vmul.f32 %v3527_v12, %v6287_v16  ;;  %v4034_v12 = vld [vmem:[#allocation3 + $0x18] sm:$0xff] }
0x341a   :  { %v4590_v61 = vmul.f32 -1.442695, %v3528_v60  ;;  %v4035_v60 = vld [vmem:[#allocation3 + $0x20] sm:$0xff] }
0x341c   :  { %5531 = vpow2.f32 %v4590_v61  ;;  %v4036_v61 = vld [vmem:[#allocation3 + $0x28] sm:$0xff] }
0x3429   :  { %v5532_v56 = vpop.eup %5531 }
0x342a   :  { %v3532_v62 = vadd.f32 1.0, %v5532_v56 }
0x342c   :  { %5533 = vrcp.f32 %v3532_v62  ;;  %v4182_v62 = vld [vmem:[#allocation30 + $0x18] sm:$0xff] }
0x3439   :  { %v5534_v15 = vpop.eup %5533 }
0x343a   :  { %v3535_v57 = vmul.f32 2.0, %v5534_v15 }
0x343c   :  { %v4591_v8 = vadd.f32 -1.0, %v3535_v57  ;;  %v5575_v57 = vld [vmem:[#allocation24] ss:$0 sm:$0xff] }
0x343e   :  { %v3537_v58 = vsel %vm6281_vm4, %v4591_v8, %v5534_v15 }
0x343f   :  { %3540 = vrot.lane.b32.xlu0 %v3537_v58, %s6021_s27  ;;  %v3538_v25 = vmul.f32 %v3537_v58, %v6840_v43 }
0x34b1   :  { %v3541_v17 = vpop.permute.xlu0 %3540 }
0x34b2   :  { %v3543_v19 = vmul.f32 %v3541_v17, %v3537_v58  ;;  %v6970_v17 = vld [vmem:[#allocation28] ss:$0 sm:$0xff] }
0x34b4   :  { %3545 = vrot.lane.b32.xlu1 %v3543_v19, %s6022_s0 }
0x3526   :  { %v3546_v26 = vpop.permute.xlu1 %3545 }
0x3527   :  { %v6899_v27 = vadd.f32 %v3546_v26, %v3538_v25 }
0x3529   :  { %5535 = vtanh.f32 %v6899_v27 }
0x3536   :  { %v5536_v28 = vpop.eup %5535 }
0x3537   :  { %3551 = vrot.lane.b32.xlu0 %v5536_v28, %s6021_s27 }
0x35a9   :  { %v3552_v5 = vpop.permute.xlu0 %3551 }
0x35aa   :  { %v3554_v29 = vmul.f32 %v3552_v5, %v3537_v58 }
0x35ac   :  { %3556 = vrot.lane.b32.xlu1 %v3554_v29, %s6022_s0 }
0x361e   :  { %v3557_v6 = vpop.permute.xlu1 %3556 }
0x361f   :  { %5279 = vmatmul.mubr.msk.f32.vlgmr.msra.gmra.mxu1 %vm456_vm5, %v3557_v6 }
0x3620   :  { %5293 = vmatpush3.msra.mxu1 %v6554_v21  ;;  %5300 = vmatprep.mubr.msk.f32.mxu1 %vm6019_vm0, %v6018_v0 }
0x3621   :  { %5294 = vmatprep.subr.mxu1 %v6018_v0 }
0x3622   :  { %5295 = vmatpush3.msra.mxu1 %v6561_v22 }
0x3623   :  { %5296 = vmatprep.subr.mxu1 %v6018_v0 }
0x3624   :  { %5297 = vmatpush3.msra.mxu1 %v6568_v23 }
0x3625   :  { %5298 = vmatprep.subr.mxu1 %v6018_v0 }
0x3626   :  { %5299 = vmatpush3.msra.mxu1 %v6575_v2 }
0x3627   :  { %5314 = vmatprep.subr.mxu1 %v6018_v0 }
0x36df   :  { %v3626_v31 = vpop.f32.mrf.mxu1 }
0x36e0   :  { %v3627_v21 = vadd.f32 %v6518_v13, %v3626_v31  ;;  %v5567_v13 = vld [vmem:[#allocation25 + $0x18] sm:$0xff] }
0x36e1   :  { %v5280_v7 = vpop.f32.mrf.mxu1 }
0x36e2   :  { %5537 = vtanh.f32 %v3627_v21  ;;  %v4181_v7 = vld [vmem:[#allocation30 + $0x10] sm:$0xff] }
0x36ef   :  { %v5538_v32 = vpop.eup %5537 }
0x36f0   :  { %5290 = vmatmul.mubr.msk.f32.vlgmr.msra.gmra.mxu0 %vm456_vm5, %v5538_v32 }
0x36f1   :  { %5304 = vmatpush3.msra.mxu0 %v6521_v18  ;;  %5311 = vmatprep.mubr.msk.f32.mxu0 %vm6019_vm0, %v6018_v0  ;;  %v5568_v18 = vld [vmem:[#allocation25 + $0x10] sm:$0xff] }
0x36f2   :  { %5305 = vmatprep.subr.mxu0 %v6018_v0 }
0x36f3   :  { %5306 = vmatpush3.msra.mxu0 %v6524_v11  ;;  %v5569_v11 = vld [vmem:[#allocation25 + $0x8] sm:$0xff] }
0x36f4   :  { %5307 = vmatprep.subr.mxu0 %v6018_v0 }
0x36f5   :  { %5308 = vmatpush3.msra.mxu0 %v6530_v9  ;;  %v5570_v9 = vld [vmem:[#allocation25] sm:$0xff] }
0x36f6   :  { %5309 = vmatprep.subr.mxu0 %v6018_v0 }
0x36f7   :  { %5310 = vmatpush3.msra.mxu0 %v6534_v20 }
0x36f8   :  { %5312 = vmatmul.mubr.msk.f32.vlgmr.msra.gmra.mxu0 %vm456_vm5, %v3557_v6  ;;  %5325 = vmatprep.subr.mxu0 %v6018_v0 }
0x36f9   :  { %5326 = vmatpush3.msra.mxu0 %v5567_v13  ;;  %5333 = vmatprep.mubr.msk.f32.mxu0 %vm6019_vm0, %v6018_v0 }
0x36fa   :  { %5327 = vmatprep.subr.mxu0 %v6018_v0 }
0x36fb   :  { %5328 = vmatpush3.msra.mxu0 %v5568_v18  ;;  %v4180_v18 = vld [vmem:[#allocation30 + $0x8] sm:$0xff] }
0x36fc   :  { %5329 = vmatprep.subr.mxu0 %v6018_v0 }
0x36fd   :  { %5330 = vmatpush3.msra.mxu0 %v5569_v11 }
0x36fe   :  { %5331 = vmatprep.subr.mxu0 %v6018_v0 }
0x36ff   :  { %5332 = vmatpush3.msra.mxu0 %v5570_v9  ;;  %v4179_v9 = vld [vmem:[#allocation30] sm:$0xff] }
0x3700   :  { %5356 = vmatprep.subr.mxu0 %v4182_v62 }
0x37b0   :  { %v3700_v20 = vpop.f32.mrf.mxu0 }
0x37b1   :  { %v3701_v22 = vadd.f32 %v6579_v24, %v3700_v20  ;;  %v5573_v24 = vld [vmem:[#allocation22 + $0x8] sm:$0xff]  ;;  %v4306_v20 = vld [vmem:[%s7069_s21 + $0x18] sm:$0xff] }
0x37b2   :  { %v5291_v23 = vpop.f32.mrf.mxu0 }
0x37b3   :  { %5539 = vtanh.f32 %v3701_v22  ;;  %v4305_v22 = vld [vmem:[%s7069_s21 + $0x10] sm:$0xff]  ;;  %v4304_v23 = vld [vmem:[%s7069_s21 + $0x8] sm:$0xff] }
0x37b8   :  { %v3847_v2 = vpop.f32.mrf.mxu0 }
0x37ba   :  { %v5313_v4 = vpop.f32.mrf.mxu0 }
0x37c0   :  { %v5540_v33 = vpop.eup %5539 }
0x37c1   :  { %3706 = vst.msk [vmem:[#allocation3 + $0x30] sm:$0xff] %vm456_vm5, %v5540_v33  ;;  %5301 = vmatmul.mubr.msk.f32.vlgmr.msra.gmra.mxu1 %vm456_vm5, %v5540_v33  ;;  %v5576_v33 = vld [vmem:[#allocation27] ss:$0 sm:$0xff] }
0x37c2   :  { %5315 = vmatpush3.msra.mxu1 %v5571_v34  ;;  %5322 = vmatprep.mubr.msk.f32.mxu1 %vm6019_vm0, %v6018_v0 }
0x37c3   :  { %5316 = vmatprep.subr.mxu1 %v6018_v0 }
0x37c4   :  { %5317 = vmatpush3.msra.mxu1 %v5572_v35 }
0x37c5   :  { %5318 = vmatprep.subr.mxu1 %v6018_v0 }
0x37c6   :  { %5319 = vmatpush3.msra.mxu1 %v5573_v24 }
0x37c7   :  { %5320 = vmatprep.subr.mxu1 %v6018_v0 }
0x37c8   :  { %5321 = vmatpush3.msra.mxu1 %v5574_v36  ;;  %v4037_v56 = vld [vmem:[#allocation3 + $0x30] sm:$0xff]  ;;  %v4609_v36 = vld [vmem:[%s7068_s20] ss:$0 sm:$0xff] }
0x37c9   :  { %5336 = vmatprep.subr.mxu1 %v4042_v51 }
0x3881   :  { %v3776_v37 = vpop.f32.mrf.mxu1 }
0x3882   :  { %v3780_v38 = vadd.f32 %v3776_v37, %v6595_v30 }
0x3883   :  { %v5302_v39 = vpop.f32.mrf.mxu1 }
0x3884   :  { %v3851_v40 = vadd.f32 %v3847_v2, %v3780_v38  ;;  %v4303_v2 = vld [vmem:[%s7069_s21] sm:$0xff] }
0x3886   :  { %v3852_v41 = vmul.f32 %v3851_v40, %v6287_v16 }
0x3888   :  { %v4596_v42 = vmul.f32 -1.442695, %v3852_v41 }
0x388a   :  { %5541 = vpow2.f32 %v4596_v42 }
0x3897   :  { %v5542_v43 = vpop.eup %5541 }
0x3898   :  { %v3856_v44 = vadd.f32 1.0, %v5542_v43 }
0x389a   :  { %5543 = vrcp.f32 %v3856_v44 }
0x38a7   :  { %v5544_v45 = vpop.eup %5543 }
0x38a8   :  { %v3859_v46 = vmul.f32 2.0, %v5544_v45 }
0x38aa   :  { %v4597_v47 = vadd.f32 -1.0, %v3859_v46 }
0x38ac   :  { %v3861_v0 = vsel %vm6281_vm4, %v4597_v47, %v5544_v45 }
0x38ad   :  { %3864 = vrot.lane.b32.xlu0 %v3861_v0, %s6021_s27  ;;  %v3862_v30 = vmul.f32 %v3861_v0, %v6899_v27 }
0x391f   :  { %v3865_v48 = vpop.permute.xlu0 %3864 }
0x3920   :  { %v3867_v49 = vmul.f32 %v3865_v48, %v3861_v0 }
0x3922   :  { %3869 = vrot.lane.b32.xlu1 %v3867_v49, %s6022_s0 }
0x3994   :  { %v3870_v16 = vpop.permute.xlu1 %3869 }
0x3995   :  { %v3872_v50 = vadd.f32 %v3870_v16, %v3862_v30 }
0x3997   :  { %5545 = vtanh.f32 %v3872_v50 }
0x39a4   :  { %v5546_v52 = vpop.eup %5545 }
0x39a5   :  { %3875 = vrot.lane.b32.xlu0 %v5546_v52, %s6021_s27 }
0x3a17   :  { %v3876_v14 = vpop.permute.xlu0 %3875 }
0x3a18   :  { %v3878_v63 = vmul.f32 %v3876_v14, %v3861_v0 }
0x3a1a   :  { %3880 = vrot.lane.b32.xlu1 %v3878_v63, %s6022_s0 }
0x3a8c   :  { %v3881_v10 = vpop.permute.xlu1 %3880 }
0x3a8d   :  { %5323 = vmatmul.mubr.msk.f32.vlgmr.msra.gmra.mxu1 %vm456_vm5, %v3881_v10 }
0x3a8e   :  { %5337 = vmatpush3.msra.mxu1 %v4042_v51  ;;  %5344 = vmatprep.mubr.msk.f32.mxu1 %vm456_vm5, %v4031_v54 }
0x3a8f   :  { %5338 = vmatprep.subr.mxu1 %v4041_v53 }
0x3a90   :  { %5339 = vmatpush3.msra.mxu1 %v4041_v53 }
0x3a91   :  { %5340 = vmatprep.subr.mxu1 %v4040_v59 }
0x3a92   :  { %5341 = vmatpush3.msra.mxu1 %v4040_v59 }
0x3a93   :  { %5342 = vmatprep.subr.mxu1 %v4039_v1 }
0x3a94   :  { %5343 = vmatpush3.msra.mxu1 %v4039_v1  ;;  %v4618_v1 = vld [vmem:[%s7070_s22] ss:$0 sm:$0xff]  ;;  %s6023_s22 = smov [#allocation32]  }
0x3a95   :  { %5345 = vmatmul.mubr.msk.f32.vlgmr.msra.gmra.mxu1 %vm456_vm5, %v4032_v55  ;;  %5376 = vmatprep.subr.mxu1 %v4306_v20  ;;  %s4477_s19 = sshll.u32 %s6023_s22, 4  ;;  %s4478_s19 = int_to_ptr.vmem [resolvable:$true] %s4477_s19 }
0x3a96   :  { %5347 = vmatprep.mubr.msk.f32.mxu1 %vm456_vm5, %v4033_v3  ;;  %5377 = vmatpush3.msra.mxu1 %v4306_v20  ;;  %s5917_s9 = scalar_lea.vmem %s4478_s19, 128  ;;  %p5922_p2 = scmp.lt.s32.totalorder %s4478_s19, %s4478_s19 }
0x3a97   :  { %5378 = vmatprep.subr.mxu1 %v4305_v22  ;;  %p5918_p1 = scmp.ne.s32.totalorder %s4478_s19, %s5917_s9  ;;  %p5923_p3 = scmp.lt.s32.totalorder %s5917_s9, %s5917_s9 }
0x3a98   :  { %5379 = vmatpush3.msra.mxu1 %v4305_v22 }
0x3a99   :  { %5348 = vmatmul.mubr.msk.f32.gmra.mxu1 %vm456_vm5, %v4034_v12  ;;  %5380 = vmatprep.subr.mxu1 %v4304_v23  ;;  %p5924_p4 = por %p5923_p3, %p5922_p2 }
0x3a9a   :  { %5350 = vmatprep.mubr.msk.f32.mxu1 %vm456_vm5, %v4035_v60  ;;  %5381 = vmatpush3.msra.mxu1 %v4304_v23 }
0x3a9b   :  { %5382 = vmatprep.subr.mxu1 %v4303_v2  ;;  %p5925_p5 = pnand %p5924_p4, %p5918_p1 }
0x3a9c   :  { %5383 = vmatpush3.msra.mxu1 %v4303_v2 }
0x3a9d   :  { %5351 = vmatmul.mubr.msk.f32.gmra.mxu1 %vm456_vm5, %v4036_v61 }
0x3a9e   :  { %5353 = vmatprep.mubr.msk.f32.mxu1 %vm456_vm5, %v4037_v56 }
0x3b4d   :  { %v3950_v15 = vpop.f32.mrf.mxu1 }
0x3b4e   :  { %v3951_v8 = vadd.f32 %v5575_v57, %v3950_v15 }
0x3b4f   :  { %v5324_v58 = vpop.f32.mrf.mxu1 }
0x3b50   :  { %5547 = vtanh.f32 %v3951_v8 }
0x3b55   :  { %v5346_v19 = vpop.f32.mrf.mxu1 }
0x3b56   :  { %v4146_v25 = vadd.f32 %v5346_v19, %v6970_v17 }
0x3b57   :  { %v4140_v26 = vpop.f32.mrf.mxu1 }
0x3b58   :  { %4444 = vst.msk [vmem:[#allocation31 + $0x8] sm:$0xff] %vm313_vm1, %v4146_v25  ;;  %v4141_v27 = vadd.f32 %v6970_v17, %v4140_v26 }
0x3b59   :  { %v5349_v28 = vpop.f32.mrf.mxu1 }
0x3b5a   :  { %4443 = vst.msk [vmem:[#allocation31] sm:$0xff] %vm313_vm1, %v4141_v27  ;;  %v4156_v5 = vadd.f32 %v5349_v28, %v6970_v17 }
0x3b5b   :  { %v4150_v29 = vpop.f32.mrf.mxu1 }
0x3b5c   :  { %4446 = vst.msk [vmem:[#allocation31 + $0x18] sm:$0xff] %vm313_vm1, %v4156_v5  ;;  %v4151_v6 = vadd.f32 %v6970_v17, %v4150_v29 }
0x3b5d   :  { %v5548_v31 = vpop.eup %5547  ;;  %v5352_v21 = vpop.f32.mrf.mxu1 }
0x3b5e   :  { %4445 = vst.msk [vmem:[#allocation31 + $0x10] sm:$0xff] %vm313_vm1, %v4151_v6  ;;  %v4166_v32 = vadd.f32 %v5352_v21, %v6970_v17  ;;  %5334 = vmatmul.mubr.msk.f32.vlgmr.msra.gmra.mxu0 %vm456_vm5, %v5548_v31 }
0x3b5f   :  { %v4160_v13 = vpop.f32.mrf.mxu1  ;;  %5357 = vmatpush3.msra.mxu0 %v4182_v62  ;;  %5364 = vmatprep.mubr.msk.f32.mxu0 %vm456_vm5, %v4031_v54 }
0x3b60   :  { %4448 = vst.msk [vmem:[#allocation31 + $0x28] sm:$0xff] %vm313_vm1, %v4166_v32  ;;  %v4161_v11 = vadd.f32 %v6970_v17, %v4160_v13  ;;  %5358 = vmatprep.subr.mxu0 %v4181_v7 }
0x3b61   :  { %5359 = vmatpush3.msra.mxu0 %v4181_v7 }
0x3b62   :  { %4447 = vst.msk [vmem:[#allocation31 + $0x20] sm:$0xff] %vm313_vm1, %v4161_v11  ;;  %5360 = vmatprep.subr.mxu0 %v4180_v18 }
0x3b63   :  { %5361 = vmatpush3.msra.mxu0 %v4180_v18 }
0x3b64   :  { %5362 = vmatprep.subr.mxu0 %v4179_v9 }
0x3b65   :  { %5363 = vmatpush3.msra.mxu0 %v4179_v9 }
0x3b66   :  { %5365 = vmatmul.mubr.msk.f32.vlgmr.msra.gmra.mxu0 %vm456_vm5, %v4032_v55 }
0x3b67   :  { %5367 = vmatprep.mubr.msk.f32.mxu0 %vm456_vm5, %v4033_v3 }
0x3b6a   :  { %5368 = vmatmul.mubr.msk.f32.gmra.mxu0 %vm456_vm5, %v4034_v12 }
0x3b6b   :  { %5370 = vmatprep.mubr.msk.f32.mxu0 %vm456_vm5, %v4035_v60 }
0x3b6e   :  { %5371 = vmatmul.mubr.msk.f32.gmra.mxu0 %vm456_vm5, %v4036_v61 }
0x3b6f   :  { %5373 = vmatprep.mubr.msk.f32.mxu0 %vm456_vm5, %v4037_v56 }
0x3c1e   :  { %v4024_v4 = vpop.f32.mrf.mxu0 }
0x3c1f   :  { %v4025_v34 = vadd.f32 %v5576_v33, %v4024_v4 }
0x3c20   :  { %v5335_v35 = vpop.f32.mrf.mxu0 }
0x3c21   :  { %5549 = vtanh.f32 %v4025_v34 }
0x3c26   :  { %v5366_v24 = vpop.f32.mrf.mxu0 }
0x3c27   :  { %v4262_v38 = vadd.f32 %v5366_v24, %v4609_v36 }
0x3c28   :  { %v4256_v37 = vpop.f32.mrf.mxu0 }
0x3c29   :  { %v4257_v39 = vadd.f32 %v4609_v36, %v4256_v37 }
0x3c2a   :  { %v5369_v40 = vpop.f32.mrf.mxu0 }
0x3c2b   :  { %5551 = vtanh.f32 %v4257_v39  ;;  %v4272_v42 = vadd.f32 %v5369_v40, %v4609_v36 }
0x3c2c   :  { %v4266_v41 = vpop.f32.mrf.mxu0  ;;  %5553 = vtanh.f32 %v4262_v38 }
0x3c2d   :  { %v4267_v43 = vadd.f32 %v4609_v36, %v4266_v41 }
0x3c2e   :  { %v5550_v44 = vpop.eup %5549  ;;  %v5372_v45 = vpop.f32.mrf.mxu0 }
0x3c2f   :  { %4030 = vst.msk [vmem:[#allocation3 + $0x38] sm:$0xff] %vm456_vm5, %v5550_v44  ;;  %5555 = vtanh.f32 %v4267_v43  ;;  %v4282_v47 = vadd.f32 %v5372_v45, %v4609_v36 }
0x3c30   :  { %v4276_v46 = vpop.f32.mrf.mxu0  ;;  %5557 = vtanh.f32 %v4272_v42 }
0x3c31   :  { %v4277_v0 = vadd.f32 %v4609_v36, %v4276_v46 }
0x3c33   :  { %5559 = vtanh.f32 %v4277_v0 }
0x3c34   :  { %5561 = vtanh.f32 %v4282_v47 }
0x3c36   :  { %v4038_v48 = vld [vmem:[#allocation3 + $0x38] sm:$0xff] }
0x3c37   :  { %5354 = vmatmul.mubr.msk.f32.gmra.mxu1 %vm456_vm5, %v4038_v48  ;;  %5374 = vmatmul.mubr.msk.f32.gmra.mxu0 %vm456_vm5, %v4038_v48 }
0x3c38   :  { %v5552_v49 = vpop.eup %5551 }
0x3c39   :  { %5384 = vmatprep.mubr.msk.f32.mxu1 %vm456_vm5, %v5552_v49  ;;  %v5554_v30 = vpop.eup %5553 }
0x3c3b   :  { %5385 = vmatmul.mubr.msk.f32.vlgmr.msra.gmra.mxu1 %vm456_vm5, %v5554_v30 }
0x3c3c   :  { %v5556_v16 = vpop.eup %5555 }
0x3c3d   :  { %5387 = vmatprep.mubr.msk.f32.mxu1 %vm456_vm5, %v5556_v16  ;;  %v5558_v50 = vpop.eup %5557 }
0x3c3f   :  { %5388 = vmatmul.mubr.msk.f32.gmra.mxu1 %vm456_vm5, %v5558_v50 }
0x3c40   :  { %v5560_v51 = vpop.eup %5559 }
0x3c41   :  { %5390 = vmatprep.mubr.msk.f32.mxu1 %vm456_vm5, %v5560_v51  ;;  %v5562_v52 = vpop.eup %5561 }
0x3c43   :  { %5391 = vmatmul.mubr.msk.f32.gmra.mxu1 %vm456_vm5, %v5562_v52 }
0x3cf7   :  { %v5355_v14 = vpop.f32.mrf.mxu1  ;;  %v5375_v63 = vpop.f32.mrf.mxu0 }
0x3cf8   :  { %v4176_v10 = vadd.f32 %v5355_v14, %v6970_v17  ;;  %v4292_v53 = vadd.f32 %v5375_v63, %v4609_v36 }
0x3cf9   :  { %v4170_v54 = vpop.f32.mrf.mxu1  ;;  %v4286_v59 = vpop.f32.mrf.mxu0 }
0x3cfa   :  { %4450 = vst.msk [vmem:[#allocation31 + $0x38] sm:$0xff] %vm313_vm1, %v4176_v10  ;;  %v4171_v55 = vadd.f32 %v6970_v17, %v4170_v54  ;;  %v4287_v3 = vadd.f32 %v4609_v36, %v4286_v59 }
0x3cfb   :  { %v5386_v12 = vpop.f32.mrf.mxu1 }
0x3cfc   :  { %4449 = vst.msk [vmem:[#allocation31 + $0x30] sm:$0xff] %vm313_vm1, %v4171_v55  ;;  %5563 = vtanh.f32 %v4287_v3  ;;  %v4410_v60 = vadd.f32 %v5386_v12, %v4618_v1 }
0x3cfd   :  { %5565 = vtanh.f32 %v4292_v53  ;;  %v4404_v61 = vpop.f32.mrf.mxu1 }
0x3cfe   :  { %4452 = vst.msk [vmem:[#allocation34 + $0x8] sm:$0xff] %vm313_vm1, %v4410_v60  ;;  %v4405_v56 = vadd.f32 %v4618_v1, %v4404_v61 }
0x3cff   :  { %v5389_v62 = vpop.f32.mrf.mxu1 }
0x3d00   :  { %4451 = vst.msk [vmem:[#allocation34] sm:$0xff] %vm313_vm1, %v4405_v56  ;;  %v4420_v15 = vadd.f32 %v5389_v62, %v4618_v1 }
0x3d01   :  { %v4414_v57 = vpop.f32.mrf.mxu1 }
0x3d02   :  { %4454 = vst.msk [vmem:[#allocation34 + $0x18] sm:$0xff] %vm313_vm1, %v4420_v15  ;;  %v4415_v8 = vadd.f32 %v4618_v1, %v4414_v57 }
0x3d03   :  { %v5392_v58 = vpop.f32.mrf.mxu1 }
0x3d04   :  { %4453 = vst.msk [vmem:[#allocation34 + $0x10] sm:$0xff] %vm313_vm1, %v4415_v8  ;;  %v4430_v17 = vadd.f32 %v5392_v58, %v4618_v1 }
0x3d05   :  { %v4424_v19 = vpop.f32.mrf.mxu1 }
0x3d06   :  { %4456 = vst.msk [vmem:[#allocation34 + $0x28] sm:$0xff] %vm313_vm1, %v4430_v17  ;;  %v4425_v25 = vadd.f32 %v4618_v1, %v4424_v19 }
0x3d08   :  { %4455 = vst.msk [vmem:[#allocation34 + $0x20] sm:$0xff] %vm313_vm1, %v4425_v25 }
0x3d09   :  { %v5564_v26 = vpop.eup %5563 }
0x3d0a   :  { %v5566_v27 = vpop.eup %5565  ;;  %5393 = vmatprep.mubr.msk.f32.mxu1 %vm456_vm5, %v5564_v26 }
0x3d0b   :  { %5394 = vmatmul.mubr.msk.f32.gmra.mxu1 %vm456_vm5, %v5566_v27 }
0x3d0c   :  { %5928 = shalt.err (!%p5925_p5)
}
0x3d0d   :  { %4480 = dma.vmem_to_hbm [thread:$0]  %s4478_s19, 128, %s7072_s24, [#allocation33]  }
0x3d0e   :  { %s5937_s28 = scalar_lea.vmem %s4465_s8, 1024  ;;  %p5942_p7 = scmp.lt.s32.totalorder %s4465_s8, %s4465_s8 }
0x3d0f   :  { %p5938_p6 = scmp.ne.s32.totalorder %s4465_s8, %s5937_s28  ;;  %p5943_p8 = scmp.lt.s32.totalorder %s5937_s28, %s5937_s28 }
0x3d11   :  { %p5944_p9 = por %p5943_p8, %p5942_p7 }
0x3d13   :  { %p5945_p10 = pnand %p5944_p9, %p5938_p6 }
0x3d15   :  { %5948 = shalt.err (!%p5945_p10)
}
0x3d16   :  { %4470 = dma.vmem_to_hbm [thread:$0]  %s4465_s8, 1024, %s7071_s23, [#allocation6], %s6000_s30, %s6000_s30, %s6001_s7  }
0x3d17   :  { %s6025_s6 = smov [#allocation34]  }
0x3d18   :  { %s4486_s29 = sshll.u32 %s6025_s6, 4  ;;  %s4487_s29 = int_to_ptr.vmem [resolvable:$true] %s4486_s29 }
0x3d19   :  { %s5957_s24 = scalar_lea.vmem %s4487_s29, 1024  ;;  %p5962_p12 = scmp.lt.s32.totalorder %s4487_s29, %s4487_s29 }
0x3d1a   :  { %p5958_p11 = scmp.ne.s32.totalorder %s4487_s29, %s5957_s24  ;;  %p5963_p13 = scmp.lt.s32.totalorder %s5957_s24, %s5957_s24 }
0x3d1c   :  { %p5964_p0 = por %p5963_p13, %p5962_p12 }
0x3d1e   :  { %p5965_p1 = pnand %p5964_p0, %p5958_p11 }
0x3dcb   :  { %v5395_v28 = vpop.f32.mrf.mxu1 }
0x3dcc   :  { %v4440_v5 = vadd.f32 %v5395_v28, %v4618_v1 }
0x3dcd   :  { %v4434_v29 = vpop.f32.mrf.mxu1 }
0x3dce   :  { %4458 = vst.msk [vmem:[#allocation34 + $0x38] sm:$0xff] %vm313_vm1, %v4440_v5  ;;  %v4435_v6 = vadd.f32 %v4618_v1, %v4434_v29 }
0x3dd0   :  { %4457 = vst.msk [vmem:[#allocation34 + $0x30] sm:$0xff] %vm313_vm1, %v4435_v6 }
0x3dd1   :  { %5968 = shalt.err (!%p5965_p1)
}
0x3dd2   :  { %4492 = dma.vmem_to_hbm [thread:$0]  %s4487_s29, 1024, %s7073_s25, [#allocation33], %s6000_s30, %s6000_s30, %s6001_s7  }
0x3dd3   :  { %5995 = dma.done.wait [#allocation6], 1024  }
0x3dd4   :  { %5996 = vsyncadd [#allocation6], 4294966272 }
0x3dd5   :  { %5997 = dma.done.wait [#allocation33], 1152  }
0x3dd6   :  { %5998 = vsyncadd [#allocation33], 4294966144 }
0x3dd7   :  { %4502 = vsyncpa [#allocation5], 1 }
0x3dd8   :  { %4503 = vsyncpa [#allocation8], 1 }
0x3dd9   :  { %4504 = vsyncpa [#allocation11], 1 }
0x3dda   :  { %4505 = vsyncpa [#allocation14], 1 }
0x3ddb   :  { %4506 = vsyncpa [#allocation17], 1 }
0x3ddc   :  { %4507 = vsyncpa [#allocation20], 1 }
0x3ddd   :  { %4508 = vsyncpa [#allocation23], 1 }
0x3dde   :  { %4509 = vsyncpa [#allocation26], 1 }
0x3ddf   :  { %4510 = vsyncpa [#allocation29], 1 }
0x3de0   :  { %4511 = vsyncpa [#allocation6], 1 }
0x3de1   :  { %4512 = vsyncpa [#allocation33], 1 }

</bundles_post_ra>
